<compile_context>
chip_gen: v5e
topology: v5e:2x2
jax: 0.10.0
libtpu: 0.0.40
codegen_flags: <defaults>
</compile_context>

<pallas_src>
import jax
import jax.numpy as jnp
from jax.experimental import pallas as pl
from jax.experimental.pallas import tpu as pltpu

LANE = 128


def _round_up(x, m):
    return (x + m - 1) // m * m


# ---------------------------------------------------------------------------
# Kernel
# ---------------------------------------------------------------------------
def _conv3x3_bn_relu(src_pad_ref, w_ref, scale, shift, h, w):
    """One 3x3 conv + folded BN + ReLU as 9 accumulated MXU matmuls.

    src_pad_ref: (h+2, w+2, cin)  zero-padded input, bf16 VMEM scratch
    w_ref:       (9, cin, cout)   bf16 weights, tap-major
    scale/shift: (cout,)          folded BN scale / (conv-bias + BN) shift, f32
    returns:     (h, w, cout)     f32
    """
    cin = src_pad_ref.shape[-1]
    cout = w_ref.shape[-1]

    acc = jnp.zeros((h * w, cout), jnp.float32)
    for k in range(9):
        dy, dx = divmod(k, 3)
        patch = src_pad_ref[dy:dy + h, dx:dx + w, :].reshape(h * w, cin)
        acc = acc + jnp.dot(patch, w_ref[k],
                            preferred_element_type=jnp.float32)

    y = acc.reshape(h, w, cout) * scale + shift
    return jnp.maximum(y, 0.0)


def _double_conv_pool_kernel(x_ref, w1_ref, sc1_ref, sh1_ref,
                             w2_ref, sc2_ref, sh2_ref,
                             skip_ref, pool_ref,
                             xpad_ref, hpad_ref):
    """Fused DoubleConv (+BN+ReLU) + 2x2/stride-2 max-pool for one image."""
    _, h, w, _ = x_ref.shape

    # Zero borders only once: the interior is fully rewritten every grid step,
    # the border is never touched again, so it stays zero across the batch.
    @pl.when(pl.program_id(0) == 0)
    def _():
        xpad_ref[...] = jnp.zeros_like(xpad_ref)
        hpad_ref[...] = jnp.zeros_like(hpad_ref)

    # conv1: pad the input inside VMEM (no wrapper-side HBM pad pass).
    xpad_ref[1:h + 1, 1:w + 1, :] = x_ref[0]
    h1 = _conv3x3_bn_relu(xpad_ref, w1_ref, sc1_ref[0], sh1_ref[0], h, w)

    # conv2 consumes h1 straight out of VMEM -- no HBM round trip.
    hpad_ref[1:h + 1, 1:w + 1, :] = h1.astype(hpad_ref.dtype)
    y = _conv3x3_bn_relu(hpad_ref, w2_ref, sc2_ref[0], sh2_ref[0], h, w)

    skip_ref[0] = y.astype(skip_ref.dtype)

    # 2x2 / stride-2 max pool (floors odd sizes like nn.MaxPool2d):
    # row pairs first via a layout-free leading-dim reshape, then column pairs.
    ph, pw = h // 2, w // 2
    c = y.shape[-1]
    rmax = y[:2 * ph, :2 * pw, :].reshape(ph, 2, 2 * pw, c).max(axis=1)
    pooled = rmax.reshape(ph, pw, 2, c).max(axis=2)
    pool_ref[0] = pooled.astype(pool_ref.dtype)


# ---------------------------------------------------------------------------
# Wrapper glue: BN folding, channel padding, weight packing, layout transposes
# ---------------------------------------------------------------------------
def _fold_bn(bias, gamma, beta, mean, var, eps=1e-5):
    scale = gamma * jax.lax.rsqrt(var + eps)
    shift = (bias - mean) * scale + beta
    return scale, shift


def _pack_conv_weight(w_oihw, cin_p, cout_p):
    """(Cout, Cin, 3, 3) -> (9, Cin_p, Cout_p) bf16, tap-major."""
    cout, cin = w_oihw.shape[:2]
    w = jnp.transpose(w_oihw, (2, 3, 1, 0))                      # (3,3,Cin,Cout)
    w = jnp.pad(w, ((0, 0), (0, 0), (0, cin_p - cin), (0, cout_p - cout)))
    return w.reshape(9, cin_p, cout_p).astype(jnp.bfloat16)


def _pad_channel_vec(v, c_p, fill):
    return jnp.pad(v, (0, c_p - v.shape[0]),
                   constant_values=fill).reshape(1, c_p).astype(jnp.float32)


def _encoder_block_fused(x_nhwc, w1, sc1, sh1, w2, sc2, sh2):
    n, h, w, c1p = x_nhwc.shape
    cp = w1.shape[2]
    ph, pw = h // 2, w // 2

    flops = 2 * n * h * w * 9 * (c1p * cp + cp * cp)
    bytes_accessed = (n * h * w * c1p * 2                 # bf16 input
                      + (9 * c1p * cp + 9 * cp * cp) * 2  # bf16 weights
                      + 4 * cp * 4                        # scales/shifts
                      + n * h * w * cp * 4                # f32 skip
                      + n * ph * pw * cp * 4)             # f32 pooled
    cost = pl.CostEstimate(flops=flops, transcendentals=0,
                           bytes_accessed=bytes_accessed)

    return pl.pallas_call(
        _double_conv_pool_kernel,
        out_shape=(
            jax.ShapeDtypeStruct((n, h, w, cp), jnp.float32),
            jax.ShapeDtypeStruct((n, ph, pw, cp), jnp.float32),
        ),
        grid_spec=pltpu.PrefetchScalarGridSpec(
            num_scalar_prefetch=0,
            grid=(n,),
            in_specs=[
                pl.BlockSpec((1, h, w, c1p), lambda i: (i, 0, 0, 0)),
                pl.BlockSpec((9, c1p, cp), lambda i: (0, 0, 0)),
                pl.BlockSpec((1, cp), lambda i: (0, 0)),
                pl.BlockSpec((1, cp), lambda i: (0, 0)),
                pl.BlockSpec((9, cp, cp), lambda i: (0, 0, 0)),
                pl.BlockSpec((1, cp), lambda i: (0, 0)),
                pl.BlockSpec((1, cp), lambda i: (0, 0)),
            ],
            out_specs=(
                pl.BlockSpec((1, h, w, cp), lambda i: (i, 0, 0, 0)),
                pl.BlockSpec((1, ph, pw, cp), lambda i: (i, 0, 0, 0)),
            ),
            scratch_shapes=[
                pltpu.VMEM((h + 2, w + 2, c1p), jnp.bfloat16),   # padded input
                pltpu.VMEM((h + 2, w + 2, cp), jnp.bfloat16),    # padded h1
            ],
        ),
        compiler_params=pltpu.CompilerParams(
            dimension_semantics=("parallel",),
            vmem_limit_bytes=32 * 1024 * 1024,
        ),
        cost_estimate=cost,
    )(x_nhwc, w1, sc1, sh1, w2, sc2, sh2)


def init_encoder_params(key, in_channels, out_channels):
    """Deterministic parameter init (shapes match the PyTorch module)."""
    k1, k2, k3, k4 = jax.random.split(key, 4)
    fan1 = in_channels * 9
    fan2 = out_channels * 9
    return {
        "w1": jax.random.normal(k1, (out_channels, in_channels, 3, 3),
                                jnp.float32) / jnp.sqrt(fan1),
        "b1": jax.random.normal(k2, (out_channels,), jnp.float32) * 0.01,
        "w2": jax.random.normal(k3, (out_channels, out_channels, 3, 3),
                                jnp.float32) / jnp.sqrt(fan2),
        "b2": jax.random.normal(k4, (out_channels,), jnp.float32) * 0.01,
        # BatchNorm2d defaults: gamma=1, beta=0, running_mean=0, running_var=1
        "bn1_gamma": jnp.ones((out_channels,), jnp.float32),
        "bn1_beta": jnp.zeros((out_channels,), jnp.float32),
        "bn1_mean": jnp.zeros((out_channels,), jnp.float32),
        "bn1_var": jnp.ones((out_channels,), jnp.float32),
        "bn2_gamma": jnp.ones((out_channels,), jnp.float32),
        "bn2_beta": jnp.zeros((out_channels,), jnp.float32),
        "bn2_mean": jnp.zeros((out_channels,), jnp.float32),
        "bn2_var": jnp.ones((out_channels,), jnp.float32),
    }


@jax.jit
def encoder_block(x_nchw, params):
    """EncoderBlock forward: returns (skip, downsampled), both NCHW float32."""
    n, cin, h, w = x_nchw.shape
    cout = params["w1"].shape[0]
    c1p = _round_up(cin, LANE)
    cp = _round_up(cout, LANE)

    # NCHW -> NHWC (channels -> lanes); lane-pad channels to a multiple of 128
    # and cast activations to bf16 for the MXU (accumulation stays f32).
    x = jnp.transpose(x_nchw, (0, 2, 3, 1))
    x = jnp.pad(x, ((0, 0), (0, 0), (0, 0), (0, c1p - cin))).astype(jnp.bfloat16)

    s1, t1 = _fold_bn(params["b1"], params["bn1_gamma"], params["bn1_beta"],
                      params["bn1_mean"], params["bn1_var"])
    s2, t2 = _fold_bn(params["b2"], params["bn2_gamma"], params["bn2_beta"],
                      params["bn2_mean"], params["bn2_var"])

    w1 = _pack_conv_weight(params["w1"], c1p, cp)
    w2 = _pack_conv_weight(params["w2"], cp, cp)
    # Padded output channels stay exactly zero through conv/BN/ReLU
    # (zero weights, scale=1, shift=0); they are stripped after the call.
    s1p, t1p = _pad_channel_vec(s1, cp, 1.0), _pad_channel_vec(t1, cp, 0.0)
    s2p, t2p = _pad_channel_vec(s2, cp, 1.0), _pad_channel_vec(t2, cp, 0.0)

    skip, pooled = _encoder_block_fused(x, w1, s1p, t1p, w2, s2p, t2p)

    # Strip channel padding; NHWC -> NCHW to match the PyTorch convention.
    skip = jnp.transpose(skip[..., :cout], (0, 3, 1, 2))
    pooled = jnp.transpose(pooled[..., :cout], (0, 3, 1, 2))
    return skip, pooled


# ---------------------------------------------------------------------------
# Pure-JAX reference (f32) for a sanity check
# ---------------------------------------------------------------------------
def _reference(x, params):
    def conv_bn_relu(x, w, b, gamma, beta, mean, var, eps=1e-5):
        y = jax.lax.conv_general_dilated(
            x, w, window_strides=(1, 1), padding="SAME",
            dimension_numbers=("NCHW", "OIHW", "NCHW"))
        y = y + b[None, :, None, None]
        y = ((y - mean[None, :, None, None])
             * jax.lax.rsqrt(var[None, :, None, None] + eps)
             * gamma[None, :, None, None] + beta[None, :, None, None])
        return jnp.maximum(y, 0.0)

    h1 = conv_bn_relu(x, params["w1"], params["b1"], params["bn1_gamma"],
                      params["bn1_beta"], params["bn1_mean"], params["bn1_var"])
    skip = conv_bn_relu(h1, params["w2"], params["b2"], params["bn2_gamma"],
                        params["bn2_beta"], params["bn2_mean"], params["bn2_var"])
    n, c, hh, ww = skip.shape
    pooled = skip.reshape(n, c, hh // 2, 2, ww // 2, 2).max(axis=(3, 5))
    return skip, pooled


# ---------------------------------------------------------------------------
if __name__ == "__main__":
    key = jax.random.PRNGKey(0)
    kx, kp = jax.random.split(key)

    N, Cin, Cout, H, W = 2, 4, 8, 16, 16
    x = jax.random.normal(kx, (N, Cin, H, W), jnp.float32)
    params = init_encoder_params(kp, Cin, Cout)

    skip, down = encoder_block(x, params)
    jax.block_until_ready((skip, down))

    assert skip.shape == (N, Cout, H, W), skip.shape
    assert down.shape == (N, Cout, H // 2, W // 2), down.shape

    # Loose-tolerance check vs. an f32 reference (kernel uses bf16 MXU operands).
    ref_skip, ref_down = _reference(x, params)
    err_skip = float(jnp.max(jnp.abs(skip - ref_skip)))
    err_down = float(jnp.max(jnp.abs(down - ref_down)))
    assert err_skip < 0.2 and err_down < 0.2, (err_skip, err_down)

    print("KERNEL_OK")
</pallas_src>

<mosaic_0001>
module attributes {stable_mosaic.version = 11 : i64} {
  func.func @_double_conv_pool_kernel(%arg0: i32, %arg1: memref<1x16x16x128xbf16, #tpu.memory_space<vmem>>, %arg2: memref<9x128x128xbf16, #tpu.memory_space<vmem>>, %arg3: memref<1x128xf32, #tpu.memory_space<vmem>>, %arg4: memref<1x128xf32, #tpu.memory_space<vmem>>, %arg5: memref<9x128x128xbf16, #tpu.memory_space<vmem>>, %arg6: memref<1x128xf32, #tpu.memory_space<vmem>>, %arg7: memref<1x128xf32, #tpu.memory_space<vmem>>, %arg8: memref<1x16x16x128xf32, #tpu.memory_space<vmem>>, %arg9: memref<1x8x8x128xf32, #tpu.memory_space<vmem>>, %arg10: memref<18x18x128xbf16, #tpu.memory_space<vmem>>, %arg11: memref<18x18x128xbf16, #tpu.memory_space<vmem>>) attributes {dimension_semantics = [#tpu.dimension_semantics<parallel>], iteration_bounds = array<i64: 2>, scalar_prefetch = 0 : i64, scratch_operands = 2 : i64, tpu.core_type = #tpu.core_type<tc>, window_params = [{transform_indices = @transform_0, window_bounds = array<i64: 1, 16, 16, 128>}, {pipeline_mode = #tpu.pipeline_mode<synchronous>, transform_indices = @transform_1, window_bounds = array<i64: 9, 128, 128>}, {pipeline_mode = #tpu.pipeline_mode<synchronous>, transform_indices = @transform_2, window_bounds = array<i64: 1, 128>}, {pipeline_mode = #tpu.pipeline_mode<synchronous>, transform_indices = @transform_3, window_bounds = array<i64: 1, 128>}, {pipeline_mode = #tpu.pipeline_mode<synchronous>, transform_indices = @transform_4, window_bounds = array<i64: 9, 128, 128>}, {pipeline_mode = #tpu.pipeline_mode<synchronous>, transform_indices = @transform_5, window_bounds = array<i64: 1, 128>}, {pipeline_mode = #tpu.pipeline_mode<synchronous>, transform_indices = @transform_6, window_bounds = array<i64: 1, 128>}, {transform_indices = @transform_7, window_bounds = array<i64: 1, 16, 16, 128>}, {transform_indices = @transform_8, window_bounds = array<i64: 1, 8, 8, 128>}]} {
    %c0_i32 = arith.constant 0 : i32
    %0 = arith.cmpi eq, %arg0, %c0_i32 : i32
    %1 = arith.extui %0 : i1 to i32
    %c0_i32_0 = arith.constant 0 : i32
    %2 = arith.cmpi ne, %1, %c0_i32_0 : i32
    scf.if %2 {
      %cst_149 = arith.constant 0.000000e+00 : bf16
      %154 = vector.broadcast %cst_149 : bf16 to vector<18x18x128xbf16>
      %c0_150 = arith.constant 0 : index
      %c0_151 = arith.constant 0 : index
      %c0_152 = arith.constant 0 : index
      %155 = vector.load %arg10[%c0_150, %c0_151, %c0_152] : memref<18x18x128xbf16, #tpu.memory_space<vmem>>, vector<18x18x128xbf16>
      tpu.vector_store %arg10[%c0_150, %c0_151, %c0_152], %154 {strides = array<i32>} : memref<18x18x128xbf16, #tpu.memory_space<vmem>>, vector<18x18x128xbf16>,
      %cst_153 = arith.constant 0.000000e+00 : bf16
      %156 = vector.broadcast %cst_153 : bf16 to vector<18x18x128xbf16>
      %c0_154 = arith.constant 0 : index
      %c0_155 = arith.constant 0 : index
      %c0_156 = arith.constant 0 : index
      %157 = vector.load %arg11[%c0_154, %c0_155, %c0_156] : memref<18x18x128xbf16, #tpu.memory_space<vmem>>, vector<18x18x128xbf16>
      tpu.vector_store %arg11[%c0_154, %c0_155, %c0_156], %156 {strides = array<i32>} : memref<18x18x128xbf16, #tpu.memory_space<vmem>>, vector<18x18x128xbf16>,
    } else {
    }
    %c0 = arith.constant 0 : index
    %c0_1 = arith.constant 0 : index
    %c0_2 = arith.constant 0 : index
    %c0_3 = arith.constant 0 : index
    %3 = vector.load %arg1[%c0, %c0_1, %c0_2, %c0_3] : memref<1x16x16x128xbf16, #tpu.memory_space<vmem>>, vector<1x16x16x128xbf16>
    %4 = vector.shape_cast %3 : vector<1x16x16x128xbf16> to vector<16x16x128xbf16>
    %c1 = arith.constant 1 : index
    %c1_4 = arith.constant 1 : index
    %c0_5 = arith.constant 0 : index
    %5 = vector.load %arg10[%c1, %c1_4, %c0_5] : memref<18x18x128xbf16, #tpu.memory_space<vmem>>, vector<16x16x128xbf16>
    tpu.vector_store %arg10[%c1, %c1_4, %c0_5], %4 {strides = array<i32>} : memref<18x18x128xbf16, #tpu.memory_space<vmem>>, vector<16x16x128xbf16>,
    %c0_6 = arith.constant 0 : index
    %c0_7 = arith.constant 0 : index
    %6 = vector.load %arg3[%c0_6, %c0_7] : memref<1x128xf32, #tpu.memory_space<vmem>>, vector<1x128xf32>
    %7 = vector.shape_cast %6 : vector<1x128xf32> to vector<128xf32>
    %c0_8 = arith.constant 0 : index
    %c0_9 = arith.constant 0 : index
    %8 = vector.load %arg4[%c0_8, %c0_9] : memref<1x128xf32, #tpu.memory_space<vmem>>, vector<1x128xf32>
    %9 = vector.shape_cast %8 : vector<1x128xf32> to vector<128xf32>
    %cst = arith.constant 0.000000e+00 : f32
    %10 = vector.broadcast %cst : f32 to vector<256x128xf32>
    %c0_10 = arith.constant 0 : index
    %c0_11 = arith.constant 0 : index
    %c0_12 = arith.constant 0 : index
    %11 = vector.load %arg10[%c0_10, %c0_11, %c0_12] : memref<18x18x128xbf16, #tpu.memory_space<vmem>>, vector<16x16x128xbf16>
    %12 = vector.shape_cast %11 : vector<16x16x128xbf16> to vector<256x128xbf16>
    %c0_13 = arith.constant 0 : index
    %c0_14 = arith.constant 0 : index
    %c0_15 = arith.constant 0 : index
    %13 = vector.load %arg2[%c0_13, %c0_14, %c0_15] : memref<9x128x128xbf16, #tpu.memory_space<vmem>>, vector<1x128x128xbf16>
    %14 = vector.shape_cast %13 : vector<1x128x128xbf16> to vector<128x128xbf16>
    %cst_16 = arith.constant dense<0.000000e+00> : vector<256x128xf32>
    %15 = tpu.matmul %12, %14, %cst_16 {dimension_numbers = #tpu.dot_dimension_numbers<[1], [0], [0], [1], [0, 0, 1, 1], [], []>} : vector<256x128xbf16>, vector<128x128xbf16>, vector<256x128xf32> -> vector<256x128xf32>
    %16 = arith.addf %10, %15 : vector<256x128xf32>
    %c0_17 = arith.constant 0 : index
    %c1_18 = arith.constant 1 : index
    %c0_19 = arith.constant 0 : index
    %17 = vector.load %arg10[%c0_17, %c1_18, %c0_19] : memref<18x18x128xbf16, #tpu.memory_space<vmem>>, vector<16x16x128xbf16>
    %18 = vector.shape_cast %17 : vector<16x16x128xbf16> to vector<256x128xbf16>
    %c1_20 = arith.constant 1 : index
    %c0_21 = arith.constant 0 : index
    %c0_22 = arith.constant 0 : index
    %19 = vector.load %arg2[%c1_20, %c0_21, %c0_22] : memref<9x128x128xbf16, #tpu.memory_space<vmem>>, vector<1x128x128xbf16>
    %20 = vector.shape_cast %19 : vector<1x128x128xbf16> to vector<128x128xbf16>
    %cst_23 = arith.constant dense<0.000000e+00> : vector<256x128xf32>
    %21 = tpu.matmul %18, %20, %cst_23 {dimension_numbers = #tpu.dot_dimension_numbers<[1], [0], [0], [1], [0, 0, 1, 1], [], []>} : vector<256x128xbf16>, vector<128x128xbf16>, vector<256x128xf32> -> vector<256x128xf32>
    %22 = arith.addf %16, %21 : vector<256x128xf32>
    %c0_24 = arith.constant 0 : index
    %c2 = arith.constant 2 : index
    %c0_25 = arith.constant 0 : index
    %23 = vector.load %arg10[%c0_24, %c2, %c0_25] : memref<18x18x128xbf16, #tpu.memory_space<vmem>>, vector<16x16x128xbf16>
    %24 = vector.shape_cast %23 : vector<16x16x128xbf16> to vector<256x128xbf16>
    %c2_26 = arith.constant 2 : index
    %c0_27 = arith.constant 0 : index
    %c0_28 = arith.constant 0 : index
    %25 = vector.load %arg2[%c2_26, %c0_27, %c0_28] : memref<9x128x128xbf16, #tpu.memory_space<vmem>>, vector<1x128x128xbf16>
    %26 = vector.shape_cast %25 : vector<1x128x128xbf16> to vector<128x128xbf16>
    %cst_29 = arith.constant dense<0.000000e+00> : vector<256x128xf32>
    %27 = tpu.matmul %24, %26, %cst_29 {dimension_numbers = #tpu.dot_dimension_numbers<[1], [0], [0], [1], [0, 0, 1, 1], [], []>} : vector<256x128xbf16>, vector<128x128xbf16>, vector<256x128xf32> -> vector<256x128xf32>
    %28 = arith.addf %22, %27 : vector<256x128xf32>
    %c1_30 = arith.constant 1 : index
    %c0_31 = arith.constant 0 : index
    %c0_32 = arith.constant 0 : index
    %29 = vector.load %arg10[%c1_30, %c0_31, %c0_32] : memref<18x18x128xbf16, #tpu.memory_space<vmem>>, vector<16x16x128xbf16>
    %30 = vector.shape_cast %29 : vector<16x16x128xbf16> to vector<256x128xbf16>
    %c3 = arith.constant 3 : index
    %c0_33 = arith.constant 0 : index
    %c0_34 = arith.constant 0 : index
    %31 = vector.load %arg2[%c3, %c0_33, %c0_34] : memref<9x128x128xbf16, #tpu.memory_space<vmem>>, vector<1x128x128xbf16>
    %32 = vector.shape_cast %31 : vector<1x128x128xbf16> to vector<128x128xbf16>
    %cst_35 = arith.constant dense<0.000000e+00> : vector<256x128xf32>
    %33 = tpu.matmul %30, %32, %cst_35 {dimension_numbers = #tpu.dot_dimension_numbers<[1], [0], [0], [1], [0, 0, 1, 1], [], []>} : vector<256x128xbf16>, vector<128x128xbf16>, vector<256x128xf32> -> vector<256x128xf32>
    %34 = arith.addf %28, %33 : vector<256x128xf32>
    %c1_36 = arith.constant 1 : index
    %c1_37 = arith.constant 1 : index
    %c0_38 = arith.constant 0 : index
    %35 = vector.load %arg10[%c1_36, %c1_37, %c0_38] : memref<18x18x128xbf16, #tpu.memory_space<vmem>>, vector<16x16x128xbf16>
    %36 = vector.shape_cast %35 : vector<16x16x128xbf16> to vector<256x128xbf16>
    %c4 = arith.constant 4 : index
    %c0_39 = arith.constant 0 : index
    %c0_40 = arith.constant 0 : index
    %37 = vector.load %arg2[%c4, %c0_39, %c0_40] : memref<9x128x128xbf16, #tpu.memory_space<vmem>>, vector<1x128x128xbf16>
    %38 = vector.shape_cast %37 : vector<1x128x128xbf16> to vector<128x128xbf16>
    %cst_41 = arith.constant dense<0.000000e+00> : vector<256x128xf32>
    %39 = tpu.matmul %36, %38, %cst_41 {dimension_numbers = #tpu.dot_dimension_numbers<[1], [0], [0], [1], [0, 0, 1, 1], [], []>} : vector<256x128xbf16>, vector<128x128xbf16>, vector<256x128xf32> -> vector<256x128xf32>
    %40 = arith.addf %34, %39 : vector<256x128xf32>
    %c1_42 = arith.constant 1 : index
    %c2_43 = arith.constant 2 : index
    %c0_44 = arith.constant 0 : index
    %41 = vector.load %arg10[%c1_42, %c2_43, %c0_44] : memref<18x18x128xbf16, #tpu.memory_space<vmem>>, vector<16x16x128xbf16>
    %42 = vector.shape_cast %41 : vector<16x16x128xbf16> to vector<256x128xbf16>
    %c5 = arith.constant 5 : index
    %c0_45 = arith.constant 0 : index
    %c0_46 = arith.constant 0 : index
    %43 = vector.load %arg2[%c5, %c0_45, %c0_46] : memref<9x128x128xbf16, #tpu.memory_space<vmem>>, vector<1x128x128xbf16>
    %44 = vector.shape_cast %43 : vector<1x128x128xbf16> to vector<128x128xbf16>
    %cst_47 = arith.constant dense<0.000000e+00> : vector<256x128xf32>
    %45 = tpu.matmul %42, %44, %cst_47 {dimension_numbers = #tpu.dot_dimension_numbers<[1], [0], [0], [1], [0, 0, 1, 1], [], []>} : vector<256x128xbf16>, vector<128x128xbf16>, vector<256x128xf32> -> vector<256x128xf32>
    %46 = arith.addf %40, %45 : vector<256x128xf32>
    %c2_48 = arith.constant 2 : index
    %c0_49 = arith.constant 0 : index
    %c0_50 = arith.constant 0 : index
    %47 = vector.load %arg10[%c2_48, %c0_49, %c0_50] : memref<18x18x128xbf16, #tpu.memory_space<vmem>>, vector<16x16x128xbf16>
    %48 = vector.shape_cast %47 : vector<16x16x128xbf16> to vector<256x128xbf16>
    %c6 = arith.constant 6 : index
    %c0_51 = arith.constant 0 : index
    %c0_52 = arith.constant 0 : index
    %49 = vector.load %arg2[%c6, %c0_51, %c0_52] : memref<9x128x128xbf16, #tpu.memory_space<vmem>>, vector<1x128x128xbf16>
    %50 = vector.shape_cast %49 : vector<1x128x128xbf16> to vector<128x128xbf16>
    %cst_53 = arith.constant dense<0.000000e+00> : vector<256x128xf32>
    %51 = tpu.matmul %48, %50, %cst_53 {dimension_numbers = #tpu.dot_dimension_numbers<[1], [0], [0], [1], [0, 0, 1, 1], [], []>} : vector<256x128xbf16>, vector<128x128xbf16>, vector<256x128xf32> -> vector<256x128xf32>
    %52 = arith.addf %46, %51 : vector<256x128xf32>
    %c2_54 = arith.constant 2 : index
    %c1_55 = arith.constant 1 : index
    %c0_56 = arith.constant 0 : index
    %53 = vector.load %arg10[%c2_54, %c1_55, %c0_56] : memref<18x18x128xbf16, #tpu.memory_space<vmem>>, vector<16x16x128xbf16>
    %54 = vector.shape_cast %53 : vector<16x16x128xbf16> to vector<256x128xbf16>
    %c7 = arith.constant 7 : index
    %c0_57 = arith.constant 0 : index
    %c0_58 = arith.constant 0 : index
    %55 = vector.load %arg2[%c7, %c0_57, %c0_58] : memref<9x128x128xbf16, #tpu.memory_space<vmem>>, vector<1x128x128xbf16>
    %56 = vector.shape_cast %55 : vector<1x128x128xbf16> to vector<128x128xbf16>
    %cst_59 = arith.constant dense<0.000000e+00> : vector<256x128xf32>
    %57 = tpu.matmul %54, %56, %cst_59 {dimension_numbers = #tpu.dot_dimension_numbers<[1], [0], [0], [1], [0, 0, 1, 1], [], []>} : vector<256x128xbf16>, vector<128x128xbf16>, vector<256x128xf32> -> vector<256x128xf32>
    %58 = arith.addf %52, %57 : vector<256x128xf32>
    %c2_60 = arith.constant 2 : index
    %c2_61 = arith.constant 2 : index
    %c0_62 = arith.constant 0 : index
    %59 = vector.load %arg10[%c2_60, %c2_61, %c0_62] : memref<18x18x128xbf16, #tpu.memory_space<vmem>>, vector<16x16x128xbf16>
    %60 = vector.shape_cast %59 : vector<16x16x128xbf16> to vector<256x128xbf16>
    %c8 = arith.constant 8 : index
    %c0_63 = arith.constant 0 : index
    %c0_64 = arith.constant 0 : index
    %61 = vector.load %arg2[%c8, %c0_63, %c0_64] : memref<9x128x128xbf16, #tpu.memory_space<vmem>>, vector<1x128x128xbf16>
    %62 = vector.shape_cast %61 : vector<1x128x128xbf16> to vector<128x128xbf16>
    %cst_65 = arith.constant dense<0.000000e+00> : vector<256x128xf32>
    %63 = tpu.matmul %60, %62, %cst_65 {dimension_numbers = #tpu.dot_dimension_numbers<[1], [0], [0], [1], [0, 0, 1, 1], [], []>} : vector<256x128xbf16>, vector<128x128xbf16>, vector<256x128xf32> -> vector<256x128xf32>
    %64 = arith.addf %58, %63 : vector<256x128xf32>
    %65 = vector.shape_cast %64 : vector<256x128xf32> to vector<16x16x128xf32>
    %66 = vector.shape_cast %7 : vector<128xf32> to vector<1x1x128xf32>
    %67 = vector.broadcast %66 : vector<1x1x128xf32> to vector<16x16x128xf32>
    %68 = arith.mulf %65, %67 : vector<16x16x128xf32>
    %69 = vector.shape_cast %9 : vector<128xf32> to vector<1x1x128xf32>
    %70 = vector.broadcast %69 : vector<1x1x128xf32> to vector<16x16x128xf32>
    %71 = arith.addf %68, %70 : vector<16x16x128xf32>
    %cst_66 = arith.constant 0.000000e+00 : f32
    %72 = vector.broadcast %cst_66 : f32 to vector<16x16x128xf32>
    %73 = arith.maximumf %71, %72 : vector<16x16x128xf32>
    %74 = arith.truncf %73 : vector<16x16x128xf32> to vector<16x16x128xbf16>
    %c1_67 = arith.constant 1 : index
    %c1_68 = arith.constant 1 : index
    %c0_69 = arith.constant 0 : index
    %75 = vector.load %arg11[%c1_67, %c1_68, %c0_69] : memref<18x18x128xbf16, #tpu.memory_space<vmem>>, vector<16x16x128xbf16>
    tpu.vector_store %arg11[%c1_67, %c1_68, %c0_69], %74 {strides = array<i32>} : memref<18x18x128xbf16, #tpu.memory_space<vmem>>, vector<16x16x128xbf16>,
    %c0_70 = arith.constant 0 : index
    %c0_71 = arith.constant 0 : index
    %76 = vector.load %arg6[%c0_70, %c0_71] : memref<1x128xf32, #tpu.memory_space<vmem>>, vector<1x128xf32>
    %77 = vector.shape_cast %76 : vector<1x128xf32> to vector<128xf32>
    %c0_72 = arith.constant 0 : index
    %c0_73 = arith.constant 0 : index
    %78 = vector.load %arg7[%c0_72, %c0_73] : memref<1x128xf32, #tpu.memory_space<vmem>>, vector<1x128xf32>
    %79 = vector.shape_cast %78 : vector<1x128xf32> to vector<128xf32>
    %cst_74 = arith.constant 0.000000e+00 : f32
    %80 = vector.broadcast %cst_74 : f32 to vector<256x128xf32>
    %c0_75 = arith.constant 0 : index
    %c0_76 = arith.constant 0 : index
    %c0_77 = arith.constant 0 : index
    %81 = vector.load %arg11[%c0_75, %c0_76, %c0_77] : memref<18x18x128xbf16, #tpu.memory_space<vmem>>, vector<16x16x128xbf16>
    %82 = vector.shape_cast %81 : vector<16x16x128xbf16> to vector<256x128xbf16>
    %c0_78 = arith.constant 0 : index
    %c0_79 = arith.constant 0 : index
    %c0_80 = arith.constant 0 : index
    %83 = vector.load %arg5[%c0_78, %c0_79, %c0_80] : memref<9x128x128xbf16, #tpu.memory_space<vmem>>, vector<1x128x128xbf16>
    %84 = vector.shape_cast %83 : vector<1x128x128xbf16> to vector<128x128xbf16>
    %cst_81 = arith.constant dense<0.000000e+00> : vector<256x128xf32>
    %85 = tpu.matmul %82, %84, %cst_81 {dimension_numbers = #tpu.dot_dimension_numbers<[1], [0], [0], [1], [0, 0, 1, 1], [], []>} : vector<256x128xbf16>, vector<128x128xbf16>, vector<256x128xf32> -> vector<256x128xf32>
    %86 = arith.addf %80, %85 : vector<256x128xf32>
    %c0_82 = arith.constant 0 : index
    %c1_83 = arith.constant 1 : index
    %c0_84 = arith.constant 0 : index
    %87 = vector.load %arg11[%c0_82, %c1_83, %c0_84] : memref<18x18x128xbf16, #tpu.memory_space<vmem>>, vector<16x16x128xbf16>
    %88 = vector.shape_cast %87 : vector<16x16x128xbf16> to vector<256x128xbf16>
    %c1_85 = arith.constant 1 : index
    %c0_86 = arith.constant 0 : index
    %c0_87 = arith.constant 0 : index
    %89 = vector.load %arg5[%c1_85, %c0_86, %c0_87] : memref<9x128x128xbf16, #tpu.memory_space<vmem>>, vector<1x128x128xbf16>
    %90 = vector.shape_cast %89 : vector<1x128x128xbf16> to vector<128x128xbf16>
    %cst_88 = arith.constant dense<0.000000e+00> : vector<256x128xf32>
    %91 = tpu.matmul %88, %90, %cst_88 {dimension_numbers = #tpu.dot_dimension_numbers<[1], [0], [0], [1], [0, 0, 1, 1], [], []>} : vector<256x128xbf16>, vector<128x128xbf16>, vector<256x128xf32> -> vector<256x128xf32>
    %92 = arith.addf %86, %91 : vector<256x128xf32>
    %c0_89 = arith.constant 0 : index
    %c2_90 = arith.constant 2 : index
    %c0_91 = arith.constant 0 : index
    %93 = vector.load %arg11[%c0_89, %c2_90, %c0_91] : memref<18x18x128xbf16, #tpu.memory_space<vmem>>, vector<16x16x128xbf16>
    %94 = vector.shape_cast %93 : vector<16x16x128xbf16> to vector<256x128xbf16>
    %c2_92 = arith.constant 2 : index
    %c0_93 = arith.constant 0 : index
    %c0_94 = arith.constant 0 : index
    %95 = vector.load %arg5[%c2_92, %c0_93, %c0_94] : memref<9x128x128xbf16, #tpu.memory_space<vmem>>, vector<1x128x128xbf16>
    %96 = vector.shape_cast %95 : vector<1x128x128xbf16> to vector<128x128xbf16>
    %cst_95 = arith.constant dense<0.000000e+00> : vector<256x128xf32>
    %97 = tpu.matmul %94, %96, %cst_95 {dimension_numbers = #tpu.dot_dimension_numbers<[1], [0], [0], [1], [0, 0, 1, 1], [], []>} : vector<256x128xbf16>, vector<128x128xbf16>, vector<256x128xf32> -> vector<256x128xf32>
    %98 = arith.addf %92, %97 : vector<256x128xf32>
    %c1_96 = arith.constant 1 : index
    %c0_97 = arith.constant 0 : index
    %c0_98 = arith.constant 0 : index
    %99 = vector.load %arg11[%c1_96, %c0_97, %c0_98] : memref<18x18x128xbf16, #tpu.memory_space<vmem>>, vector<16x16x128xbf16>
    %100 = vector.shape_cast %99 : vector<16x16x128xbf16> to vector<256x128xbf16>
    %c3_99 = arith.constant 3 : index
    %c0_100 = arith.constant 0 : index
    %c0_101 = arith.constant 0 : index
    %101 = vector.load %arg5[%c3_99, %c0_100, %c0_101] : memref<9x128x128xbf16, #tpu.memory_space<vmem>>, vector<1x128x128xbf16>
    %102 = vector.shape_cast %101 : vector<1x128x128xbf16> to vector<128x128xbf16>
    %cst_102 = arith.constant dense<0.000000e+00> : vector<256x128xf32>
    %103 = tpu.matmul %100, %102, %cst_102 {dimension_numbers = #tpu.dot_dimension_numbers<[1], [0], [0], [1], [0, 0, 1, 1], [], []>} : vector<256x128xbf16>, vector<128x128xbf16>, vector<256x128xf32> -> vector<256x128xf32>
    %104 = arith.addf %98, %103 : vector<256x128xf32>
    %c1_103 = arith.constant 1 : index
    %c1_104 = arith.constant 1 : index
    %c0_105 = arith.constant 0 : index
    %105 = vector.load %arg11[%c1_103, %c1_104, %c0_105] : memref<18x18x128xbf16, #tpu.memory_space<vmem>>, vector<16x16x128xbf16>
    %106 = vector.shape_cast %105 : vector<16x16x128xbf16> to vector<256x128xbf16>
    %c4_106 = arith.constant 4 : index
    %c0_107 = arith.constant 0 : index
    %c0_108 = arith.constant 0 : index
    %107 = vector.load %arg5[%c4_106, %c0_107, %c0_108] : memref<9x128x128xbf16, #tpu.memory_space<vmem>>, vector<1x128x128xbf16>
    %108 = vector.shape_cast %107 : vector<1x128x128xbf16> to vector<128x128xbf16>
    %cst_109 = arith.constant dense<0.000000e+00> : vector<256x128xf32>
    %109 = tpu.matmul %106, %108, %cst_109 {dimension_numbers = #tpu.dot_dimension_numbers<[1], [0], [0], [1], [0, 0, 1, 1], [], []>} : vector<256x128xbf16>, vector<128x128xbf16>, vector<256x128xf32> -> vector<256x128xf32>
    %110 = arith.addf %104, %109 : vector<256x128xf32>
    %c1_110 = arith.constant 1 : index
    %c2_111 = arith.constant 2 : index
    %c0_112 = arith.constant 0 : index
    %111 = vector.load %arg11[%c1_110, %c2_111, %c0_112] : memref<18x18x128xbf16, #tpu.memory_space<vmem>>, vector<16x16x128xbf16>
    %112 = vector.shape_cast %111 : vector<16x16x128xbf16> to vector<256x128xbf16>
    %c5_113 = arith.constant 5 : index
    %c0_114 = arith.constant 0 : index
    %c0_115 = arith.constant 0 : index
    %113 = vector.load %arg5[%c5_113, %c0_114, %c0_115] : memref<9x128x128xbf16, #tpu.memory_space<vmem>>, vector<1x128x128xbf16>
    %114 = vector.shape_cast %113 : vector<1x128x128xbf16> to vector<128x128xbf16>
    %cst_116 = arith.constant dense<0.000000e+00> : vector<256x128xf32>
    %115 = tpu.matmul %112, %114, %cst_116 {dimension_numbers = #tpu.dot_dimension_numbers<[1], [0], [0], [1], [0, 0, 1, 1], [], []>} : vector<256x128xbf16>, vector<128x128xbf16>, vector<256x128xf32> -> vector<256x128xf32>
    %116 = arith.addf %110, %115 : vector<256x128xf32>
    %c2_117 = arith.constant 2 : index
    %c0_118 = arith.constant 0 : index
    %c0_119 = arith.constant 0 : index
    %117 = vector.load %arg11[%c2_117, %c0_118, %c0_119] : memref<18x18x128xbf16, #tpu.memory_space<vmem>>, vector<16x16x128xbf16>
    %118 = vector.shape_cast %117 : vector<16x16x128xbf16> to vector<256x128xbf16>
    %c6_120 = arith.constant 6 : index
    %c0_121 = arith.constant 0 : index
    %c0_122 = arith.constant 0 : index
    %119 = vector.load %arg5[%c6_120, %c0_121, %c0_122] : memref<9x128x128xbf16, #tpu.memory_space<vmem>>, vector<1x128x128xbf16>
    %120 = vector.shape_cast %119 : vector<1x128x128xbf16> to vector<128x128xbf16>
    %cst_123 = arith.constant dense<0.000000e+00> : vector<256x128xf32>
    %121 = tpu.matmul %118, %120, %cst_123 {dimension_numbers = #tpu.dot_dimension_numbers<[1], [0], [0], [1], [0, 0, 1, 1], [], []>} : vector<256x128xbf16>, vector<128x128xbf16>, vector<256x128xf32> -> vector<256x128xf32>
    %122 = arith.addf %116, %121 : vector<256x128xf32>
    %c2_124 = arith.constant 2 : index
    %c1_125 = arith.constant 1 : index
    %c0_126 = arith.constant 0 : index
    %123 = vector.load %arg11[%c2_124, %c1_125, %c0_126] : memref<18x18x128xbf16, #tpu.memory_space<vmem>>, vector<16x16x128xbf16>
    %124 = vector.shape_cast %123 : vector<16x16x128xbf16> to vector<256x128xbf16>
    %c7_127 = arith.constant 7 : index
    %c0_128 = arith.constant 0 : index
    %c0_129 = arith.constant 0 : index
    %125 = vector.load %arg5[%c7_127, %c0_128, %c0_129] : memref<9x128x128xbf16, #tpu.memory_space<vmem>>, vector<1x128x128xbf16>
    %126 = vector.shape_cast %125 : vector<1x128x128xbf16> to vector<128x128xbf16>
    %cst_130 = arith.constant dense<0.000000e+00> : vector<256x128xf32>
    %127 = tpu.matmul %124, %126, %cst_130 {dimension_numbers = #tpu.dot_dimension_numbers<[1], [0], [0], [1], [0, 0, 1, 1], [], []>} : vector<256x128xbf16>, vector<128x128xbf16>, vector<256x128xf32> -> vector<256x128xf32>
    %128 = arith.addf %122, %127 : vector<256x128xf32>
    %c2_131 = arith.constant 2 : index
    %c2_132 = arith.constant 2 : index
    %c0_133 = arith.constant 0 : index
    %129 = vector.load %arg11[%c2_131, %c2_132, %c0_133] : memref<18x18x128xbf16, #tpu.memory_space<vmem>>, vector<16x16x128xbf16>
    %130 = vector.shape_cast %129 : vector<16x16x128xbf16> to vector<256x128xbf16>
    %c8_134 = arith.constant 8 : index
    %c0_135 = arith.constant 0 : index
    %c0_136 = arith.constant 0 : index
    %131 = vector.load %arg5[%c8_134, %c0_135, %c0_136] : memref<9x128x128xbf16, #tpu.memory_space<vmem>>, vector<1x128x128xbf16>
    %132 = vector.shape_cast %131 : vector<1x128x128xbf16> to vector<128x128xbf16>
    %cst_137 = arith.constant dense<0.000000e+00> : vector<256x128xf32>
    %133 = tpu.matmul %130, %132, %cst_137 {dimension_numbers = #tpu.dot_dimension_numbers<[1], [0], [0], [1], [0, 0, 1, 1], [], []>} : vector<256x128xbf16>, vector<128x128xbf16>, vector<256x128xf32> -> vector<256x128xf32>
    %134 = arith.addf %128, %133 : vector<256x128xf32>
    %135 = vector.shape_cast %134 : vector<256x128xf32> to vector<16x16x128xf32>
    %136 = vector.shape_cast %77 : vector<128xf32> to vector<1x1x128xf32>
    %137 = vector.broadcast %136 : vector<1x1x128xf32> to vector<16x16x128xf32>
    %138 = arith.mulf %135, %137 : vector<16x16x128xf32>
    %139 = vector.shape_cast %79 : vector<128xf32> to vector<1x1x128xf32>
    %140 = vector.broadcast %139 : vector<1x1x128xf32> to vector<16x16x128xf32>
    %141 = arith.addf %138, %140 : vector<16x16x128xf32>
    %cst_138 = arith.constant 0.000000e+00 : f32
    %142 = vector.broadcast %cst_138 : f32 to vector<16x16x128xf32>
    %143 = arith.maximumf %141, %142 : vector<16x16x128xf32>
    %c0_139 = arith.constant 0 : index
    %c0_140 = arith.constant 0 : index
    %c0_141 = arith.constant 0 : index
    %c0_142 = arith.constant 0 : index
    %144 = vector.load %arg8[%c0_139, %c0_140, %c0_141, %c0_142] : memref<1x16x16x128xf32, #tpu.memory_space<vmem>>, vector<1x16x16x128xf32>
    %145 = vector.shape_cast %144 : vector<1x16x16x128xf32> to vector<16x16x128xf32>
    %146 = vector.shape_cast %143 : vector<16x16x128xf32> to vector<1x16x16x128xf32>
    tpu.vector_store %arg8[%c0_139, %c0_140, %c0_141, %c0_142], %146 {strides = array<i32>} : memref<1x16x16x128xf32, #tpu.memory_space<vmem>>, vector<1x16x16x128xf32>,
    %147 = vector.shape_cast %143 : vector<16x16x128xf32> to vector<8x2x16x128xf32>
    %cst_143 = arith.constant dense<0xFF800000> : vector<8x16x128xf32>
    %148 = vector.multi_reduction <maximumf>, %147, %cst_143 [1] : vector<8x2x16x128xf32> to vector<8x16x128xf32>
    %149 = vector.shape_cast %148 : vector<8x16x128xf32> to vector<8x8x2x128xf32>
    %cst_144 = arith.constant dense<0xFF800000> : vector<8x8x128xf32>
    %150 = vector.multi_reduction <maximumf>, %149, %cst_144 [2] : vector<8x8x2x128xf32> to vector<8x8x128xf32>
    %c0_145 = arith.constant 0 : index
    %c0_146 = arith.constant 0 : index
    %c0_147 = arith.constant 0 : index
    %c0_148 = arith.constant 0 : index
    %151 = vector.load %arg9[%c0_145, %c0_146, %c0_147, %c0_148] : memref<1x8x8x128xf32, #tpu.memory_space<vmem>>, vector<1x8x8x128xf32>
    %152 = vector.shape_cast %151 : vector<1x8x8x128xf32> to vector<8x8x128xf32>
    %153 = vector.shape_cast %150 : vector<8x8x128xf32> to vector<1x8x8x128xf32>
    tpu.vector_store %arg9[%c0_145, %c0_146, %c0_147, %c0_148], %153 {strides = array<i32>} : memref<1x8x8x128xf32, #tpu.memory_space<vmem>>, vector<1x8x8x128xf32>,
    return
  }
  func.func @transform_0(%arg0: i32) -> (i32, i32, i32, i32) {
    %c0_i32 = arith.constant 0 : i32
    %c0_i32_0 = arith.constant 0 : i32
    %c0_i32_1 = arith.constant 0 : i32
    %c0_i32_2 = arith.constant 0 : i32
    return %arg0, %c0_i32, %c0_i32_0, %c0_i32_1 : i32, i32, i32, i32
  }
  func.func @transform_1(%arg0: i32) -> (i32, i32, i32) {
    %c0_i32 = arith.constant 0 : i32
    %c0_i32_0 = arith.constant 0 : i32
    %c0_i32_1 = arith.constant 0 : i32
    %c0_i32_2 = arith.constant 0 : i32
    return %c0_i32, %c0_i32_0, %c0_i32_1 : i32, i32, i32
  }
  func.func @transform_2(%arg0: i32) -> (i32, i32) {
    %c0_i32 = arith.constant 0 : i32
    %c0_i32_0 = arith.constant 0 : i32
    %c0_i32_1 = arith.constant 0 : i32
    return %c0_i32, %c0_i32_0 : i32, i32
  }
  func.func @transform_3(%arg0: i32) -> (i32, i32) {
    %c0_i32 = arith.constant 0 : i32
    %c0_i32_0 = arith.constant 0 : i32
    %c0_i32_1 = arith.constant 0 : i32
    return %c0_i32, %c0_i32_0 : i32, i32
  }
  func.func @transform_4(%arg0: i32) -> (i32, i32, i32) {
    %c0_i32 = arith.constant 0 : i32
    %c0_i32_0 = arith.constant 0 : i32
    %c0_i32_1 = arith.constant 0 : i32
    %c0_i32_2 = arith.constant 0 : i32
    return %c0_i32, %c0_i32_0, %c0_i32_1 : i32, i32, i32
  }
  func.func @transform_5(%arg0: i32) -> (i32, i32) {
    %c0_i32 = arith.constant 0 : i32
    %c0_i32_0 = arith.constant 0 : i32
    %c0_i32_1 = arith.constant 0 : i32
    return %c0_i32, %c0_i32_0 : i32, i32
  }
  func.func @transform_6(%arg0: i32) -> (i32, i32) {
    %c0_i32 = arith.constant 0 : i32
    %c0_i32_0 = arith.constant 0 : i32
    %c0_i32_1 = arith.constant 0 : i32
    return %c0_i32, %c0_i32_0 : i32, i32
  }
  func.func @transform_7(%arg0: i32) -> (i32, i32, i32, i32) {
    %c0_i32 = arith.constant 0 : i32
    %c0_i32_0 = arith.constant 0 : i32
    %c0_i32_1 = arith.constant 0 : i32
    %c0_i32_2 = arith.constant 0 : i32
    return %arg0, %c0_i32, %c0_i32_0, %c0_i32_1 : i32, i32, i32, i32
  }
  func.func @transform_8(%arg0: i32) -> (i32, i32, i32, i32) {
    %c0_i32 = arith.constant 0 : i32
    %c0_i32_0 = arith.constant 0 : i32
    %c0_i32_1 = arith.constant 0 : i32
    %c0_i32_2 = arith.constant 0 : i32
    return %arg0, %c0_i32, %c0_i32_0, %c0_i32_1 : i32, i32, i32, i32
  }
}

</mosaic_0001>

<bundles_post_ra>
// kernel: encoder_block.1
= control target key start
LH: loop header
LB: loop body
LE: loop exit
PB: predicated region body
PF: predicated region fallthrough
CT: control target
= control target key end

     0   :  { %s12425_s27 = smov 0   ;;  %s16435_s0 = inlined_call_operand.vmem [shape: bf16[2,16,16,128], index: 0, kind: input, shape index: {}]   ;;  %s16436_s1 = inlined_call_operand.vmem [shape: bf16[9,128,128], index: 1, kind: input, shape index: {}]   ;;  %s16437_s2 = inlined_call_operand.vmem [shape: f32[1,128], index: 2, kind: input, shape index: {}]   ;;  %s16438_s3 = inlined_call_operand.vmem [shape: f32[1,128], index: 3, kind: input, shape index: {}]   ;;  %s16439_s4 = inlined_call_operand.vmem [shape: bf16[9,128,128], index: 4, kind: input, shape index: {}]   ;;  %s16440_s5 = inlined_call_operand.vmem [shape: f32[1,128], index: 5, kind: input, shape index: {}]   ;;  %s16441_s6 = inlined_call_operand.vmem [shape: f32[1,128], index: 6, kind: input, shape index: {}]   ;;  %s16442_s7 = inlined_call_operand.vmem [shape: f32[2,16,16,128], index: 7, kind: output, shape index: {0}]   ;;  %s16443_s8 = inlined_call_operand.vmem [shape: f32[2,8,8,128], index: 8, kind: output, shape index: {1}]  }
   0x1 LB: > { %s10732_s28 = sadd.s32 4294967295, %s12377_s27   ;;  %p10736_p0 = scmp.ge.s32.totalorder %s12377_s27, 1  ;;  %s12377_s27 = sphi %s12425_s27, %s19_s27  }
   0x2   : > { %p265_p1 = scmp.lt.s32.totalorder %s12377_s27, 3 }
   0x4   : > { %p266_p2 = pnand %p10736_p0, %p265_p1 }
   0x6   : > { %269 = sbr.rel (%p266_p2) target bundleno = 1644 (0x66c), region = 48 }
   0xb   : > { %p304_p3 = scmp.lt.s32.totalorder %s10732_s28, 1  ;;  %p10743_p4 = scmp.ne.s32.totalorder %s10732_s28, 0 }
   0xd   : > { %s305_s29 = scalar_select %p304_p3, %s10732_s28, 1 }
   0xe   : > { %323 = sbr.rel (%p10743_p4) target bundleno = 128 (0x80), region = 52 }
   0xf   : > { %s12058_s30 = sshll.u32 %s305_s29, 7  ;;  %s12059_s9 = sshll.u32 %s305_s29, 8 }
  0x10   : > { %s12436_s12 = scalar_lea.vmem %s16435_s0, %s12058_s30  ;;  %s12441_s15 = scalar_lea.vmem %s16442_s7, %s12059_s9 }
  0x11   : > { %s12060_s16 = sshll.u32 %s305_s29, 6 }
  0x12   : > { %s12446_s19 = scalar_lea.vmem %s16443_s8, %s12060_s16 }
  0x13   : > { %v12379_v0 = vmov 0  }
  0x14   : > { %324 = vst [vmem:[#allocation2] sm:$0xf] %v12379_v0 }
  0x15   : > { %325 = vst [vmem:[#allocation2 + $0x4] sm:$0xf] %v12379_v0 }
  0x16   : > { %326 = vst [vmem:[#allocation2 + $0x8] sm:$0x1] %v12379_v0 }
  0x17   : > { %327 = vst [vmem:[#allocation2 + $0xc] sm:$0xf] %v12379_v0 }
  0x18   : > { %328 = vst [vmem:[#allocation2 + $0x10] sm:$0xf] %v12379_v0 }
  0x19   : > { %329 = vst [vmem:[#allocation2 + $0x14] sm:$0x1] %v12379_v0 }
  0x1a   : > { %330 = vst [vmem:[#allocation2 + $0x18] sm:$0xf] %v12379_v0 }
  0x1b   : > { %331 = vst [vmem:[#allocation2 + $0x1c] sm:$0xf] %v12379_v0 }
  0x1c   : > { %332 = vst [vmem:[#allocation2 + $0x20] sm:$0x1] %v12379_v0 }
  0x1d   : > { %333 = vst [vmem:[#allocation2 + $0x24] sm:$0xf] %v12379_v0 }
  0x1e   : > { %334 = vst [vmem:[#allocation2 + $0x28] sm:$0xf] %v12379_v0 }
  0x1f   : > { %335 = vst [vmem:[#allocation2 + $0x2c] sm:$0x1] %v12379_v0 }
  0x20   : > { %336 = vst [vmem:[#allocation2 + $0x30] sm:$0xf] %v12379_v0 }
  0x21   : > { %337 = vst [vmem:[#allocation2 + $0x34] sm:$0xf] %v12379_v0 }
  0x22   : > { %338 = vst [vmem:[#allocation2 + $0x38] sm:$0x1] %v12379_v0 }
  0x23   : > { %339 = vst [vmem:[#allocation2 + $0x3c] sm:$0xf] %v12379_v0 }
  0x24   : > { %340 = vst [vmem:[#allocation2 + $0x40] sm:$0xf] %v12379_v0 }
  0x25   : > { %341 = vst [vmem:[#allocation2 + $0x44] sm:$0x1] %v12379_v0 }
  0x26   : > { %342 = vst [vmem:[#allocation2 + $0x48] sm:$0xf] %v12379_v0 }
  0x27   : > { %343 = vst [vmem:[#allocation2 + $0x4c] sm:$0xf] %v12379_v0 }
  0x28   : > { %344 = vst [vmem:[#allocation2 + $0x50] sm:$0x1] %v12379_v0 }
  0x29   : > { %345 = vst [vmem:[#allocation2 + $0x54] sm:$0xf] %v12379_v0 }
  0x2a   : > { %346 = vst [vmem:[#allocation2 + $0x58] sm:$0xf] %v12379_v0 }
  0x2b   : > { %347 = vst [vmem:[#allocation2 + $0x5c] sm:$0x1] %v12379_v0 }
  0x2c   : > { %348 = vst [vmem:[#allocation2 + $0x60] sm:$0xf] %v12379_v0 }
  0x2d   : > { %349 = vst [vmem:[#allocation2 + $0x64] sm:$0xf] %v12379_v0 }
  0x2e   : > { %350 = vst [vmem:[#allocation2 + $0x68] sm:$0x1] %v12379_v0 }
  0x2f   : > { %351 = vst [vmem:[#allocation2 + $0x6c] sm:$0xf] %v12379_v0 }
  0x30   : > { %352 = vst [vmem:[#allocation2 + $0x70] sm:$0xf] %v12379_v0 }
  0x31   : > { %353 = vst [vmem:[#allocation2 + $0x74] sm:$0x1] %v12379_v0 }
  0x32   : > { %354 = vst [vmem:[#allocation2 + $0x78] sm:$0xf] %v12379_v0 }
  0x33   : > { %355 = vst [vmem:[#allocation2 + $0x7c] sm:$0xf] %v12379_v0 }
  0x34   : > { %356 = vst [vmem:[#allocation2 + $0x80] sm:$0x1] %v12379_v0 }
  0x35   : > { %357 = vst [vmem:[#allocation2 + $0x84] sm:$0xf] %v12379_v0 }
  0x36   : > { %358 = vst [vmem:[#allocation2 + $0x88] sm:$0xf] %v12379_v0 }
  0x37   : > { %359 = vst [vmem:[#allocation2 + $0x8c] sm:$0x1] %v12379_v0 }
  0x38   : > { %360 = vst [vmem:[#allocation2 + $0x90] sm:$0xf] %v12379_v0 }
  0x39   : > { %361 = vst [vmem:[#allocation2 + $0x94] sm:$0xf] %v12379_v0 }
  0x3a   : > { %362 = vst [vmem:[#allocation2 + $0x98] sm:$0x1] %v12379_v0 }
  0x3b   : > { %363 = vst [vmem:[#allocation2 + $0x9c] sm:$0xf] %v12379_v0 }
  0x3c   : > { %364 = vst [vmem:[#allocation2 + $0xa0] sm:$0xf] %v12379_v0 }
  0x3d   : > { %365 = vst [vmem:[#allocation2 + $0xa4] sm:$0x1] %v12379_v0 }
  0x3e   : > { %366 = vst [vmem:[#allocation2 + $0xa8] sm:$0xf] %v12379_v0 }
  0x3f   : > { %367 = vst [vmem:[#allocation2 + $0xac] sm:$0xf] %v12379_v0 }
  0x40   : > { %368 = vst [vmem:[#allocation2 + $0xb0] sm:$0x1] %v12379_v0 }
  0x41   : > { %369 = vst [vmem:[#allocation2 + $0xb4] sm:$0xf] %v12379_v0 }
  0x42   : > { %370 = vst [vmem:[#allocation2 + $0xb8] sm:$0xf] %v12379_v0 }
  0x43   : > { %371 = vst [vmem:[#allocation2 + $0xbc] sm:$0x1] %v12379_v0 }
  0x44   : > { %372 = vst [vmem:[#allocation2 + $0xc0] sm:$0xf] %v12379_v0 }
  0x45   : > { %373 = vst [vmem:[#allocation2 + $0xc4] sm:$0xf] %v12379_v0 }
  0x46   : > { %374 = vst [vmem:[#allocation2 + $0xc8] sm:$0x1] %v12379_v0 }
  0x47   : > { %375 = vst [vmem:[#allocation2 + $0xcc] sm:$0xf] %v12379_v0 }
  0x48   : > { %376 = vst [vmem:[#allocation2 + $0xd0] sm:$0xf] %v12379_v0 }
  0x49   : > { %377 = vst [vmem:[#allocation2 + $0xd4] sm:$0x1] %v12379_v0 }
  0x4a   : > { %378 = vst [vmem:[#allocation3] sm:$0xf] %v12379_v0 }
  0x4b   : > { %379 = vst [vmem:[#allocation3 + $0x4] sm:$0xf] %v12379_v0 }
  0x4c   : > { %380 = vst [vmem:[#allocation3 + $0x8] sm:$0x1] %v12379_v0 }
  0x4d   : > { %381 = vst [vmem:[#allocation3 + $0xc] sm:$0xf] %v12379_v0 }
  0x4e   : > { %382 = vst [vmem:[#allocation3 + $0x10] sm:$0xf] %v12379_v0 }
  0x4f   : > { %383 = vst [vmem:[#allocation3 + $0x14] sm:$0x1] %v12379_v0 }
  0x50   : > { %384 = vst [vmem:[#allocation3 + $0x18] sm:$0xf] %v12379_v0 }
  0x51   : > { %385 = vst [vmem:[#allocation3 + $0x1c] sm:$0xf] %v12379_v0 }
  0x52   : > { %386 = vst [vmem:[#allocation3 + $0x20] sm:$0x1] %v12379_v0 }
  0x53   : > { %387 = vst [vmem:[#allocation3 + $0x24] sm:$0xf] %v12379_v0 }
  0x54   : > { %388 = vst [vmem:[#allocation3 + $0x28] sm:$0xf] %v12379_v0 }
  0x55   : > { %389 = vst [vmem:[#allocation3 + $0x2c] sm:$0x1] %v12379_v0 }
  0x56   : > { %390 = vst [vmem:[#allocation3 + $0x30] sm:$0xf] %v12379_v0 }
  0x57   : > { %391 = vst [vmem:[#allocation3 + $0x34] sm:$0xf] %v12379_v0 }
  0x58   : > { %392 = vst [vmem:[#allocation3 + $0x38] sm:$0x1] %v12379_v0 }
  0x59   : > { %393 = vst [vmem:[#allocation3 + $0x3c] sm:$0xf] %v12379_v0 }
  0x5a   : > { %394 = vst [vmem:[#allocation3 + $0x40] sm:$0xf] %v12379_v0 }
  0x5b   : > { %395 = vst [vmem:[#allocation3 + $0x44] sm:$0x1] %v12379_v0 }
  0x5c   : > { %396 = vst [vmem:[#allocation3 + $0x48] sm:$0xf] %v12379_v0 }
  0x5d   : > { %397 = vst [vmem:[#allocation3 + $0x4c] sm:$0xf] %v12379_v0 }
  0x5e   : > { %398 = vst [vmem:[#allocation3 + $0x50] sm:$0x1] %v12379_v0 }
  0x5f   : > { %399 = vst [vmem:[#allocation3 + $0x54] sm:$0xf] %v12379_v0 }
  0x60   : > { %400 = vst [vmem:[#allocation3 + $0x58] sm:$0xf] %v12379_v0 }
  0x61   : > { %401 = vst [vmem:[#allocation3 + $0x5c] sm:$0x1] %v12379_v0 }
  0x62   : > { %402 = vst [vmem:[#allocation3 + $0x60] sm:$0xf] %v12379_v0 }
  0x63   : > { %403 = vst [vmem:[#allocation3 + $0x64] sm:$0xf] %v12379_v0 }
  0x64   : > { %404 = vst [vmem:[#allocation3 + $0x68] sm:$0x1] %v12379_v0 }
  0x65   : > { %405 = vst [vmem:[#allocation3 + $0x6c] sm:$0xf] %v12379_v0 }
  0x66   : > { %406 = vst [vmem:[#allocation3 + $0x70] sm:$0xf] %v12379_v0 }
  0x67   : > { %407 = vst [vmem:[#allocation3 + $0x74] sm:$0x1] %v12379_v0 }
  0x68   : > { %408 = vst [vmem:[#allocation3 + $0x78] sm:$0xf] %v12379_v0 }
  0x69   : > { %409 = vst [vmem:[#allocation3 + $0x7c] sm:$0xf] %v12379_v0 }
  0x6a   : > { %410 = vst [vmem:[#allocation3 + $0x80] sm:$0x1] %v12379_v0 }
  0x6b   : > { %411 = vst [vmem:[#allocation3 + $0x84] sm:$0xf] %v12379_v0 }
  0x6c   : > { %412 = vst [vmem:[#allocation3 + $0x88] sm:$0xf] %v12379_v0 }
  0x6d   : > { %413 = vst [vmem:[#allocation3 + $0x8c] sm:$0x1] %v12379_v0 }
  0x6e   : > { %414 = vst [vmem:[#allocation3 + $0x90] sm:$0xf] %v12379_v0 }
  0x6f   : > { %415 = vst [vmem:[#allocation3 + $0x94] sm:$0xf] %v12379_v0 }
  0x70   : > { %416 = vst [vmem:[#allocation3 + $0x98] sm:$0x1] %v12379_v0 }
  0x71   : > { %417 = vst [vmem:[#allocation3 + $0x9c] sm:$0xf] %v12379_v0 }
  0x72   : > { %418 = vst [vmem:[#allocation3 + $0xa0] sm:$0xf] %v12379_v0 }
  0x73   : > { %419 = vst [vmem:[#allocation3 + $0xa4] sm:$0x1] %v12379_v0 }
  0x74   : > { %420 = vst [vmem:[#allocation3 + $0xa8] sm:$0xf] %v12379_v0 }
  0x75   : > { %421 = vst [vmem:[#allocation3 + $0xac] sm:$0xf] %v12379_v0 }
  0x76   : > { %422 = vst [vmem:[#allocation3 + $0xb0] sm:$0x1] %v12379_v0 }
  0x77   : > { %423 = vst [vmem:[#allocation3 + $0xb4] sm:$0xf] %v12379_v0 }
  0x78   : > { %424 = vst [vmem:[#allocation3 + $0xb8] sm:$0xf] %v12379_v0 }
  0x79   : > { %425 = vst [vmem:[#allocation3 + $0xbc] sm:$0x1] %v12379_v0 }
  0x7a   : > { %426 = vst [vmem:[#allocation3 + $0xc0] sm:$0xf] %v12379_v0 }
  0x7b   : > { %427 = vst [vmem:[#allocation3 + $0xc4] sm:$0xf] %v12379_v0 }
  0x7c   : > { %428 = vst [vmem:[#allocation3 + $0xc8] sm:$0x1] %v12379_v0 }
  0x7d   : > { %429 = vst [vmem:[#allocation3 + $0xcc] sm:$0xf] %v12379_v0 }
  0x7e   : > { %430 = vst [vmem:[#allocation3 + $0xd0] sm:$0xf] %v12379_v0 }
  0x7f   : > { %431 = vst [vmem:[#allocation3 + $0xd4] sm:$0x1] %v12379_v0 }
  0x80 PF: > { %v12092_v1 = vld [vmem:[%s16436_s1 + $0x78] sm:$0xff]  ;;  %v12091_v3 = vld [vmem:[%s16436_s1 + $0x70] sm:$0xff]  ;;  %vm971_vm0 = vsmask.f32 3328  ;;  %v12090_v5 = vld [vmem:[%s16436_s1 + $0x68] sm:$0xff]  ;;  %vm788_vm3 = vcmask 1043456  }
  0x81   : > { %v12084_v2 = vld [vmem:[%s16436_s1 + $0x38] sm:$0xff]  ;;  %1487 = vmatpush.bf16.msra.mxu0 %v12092_v1  ;;  %12301 = vmatpush.bf16.msra.mxu2 %v12092_v1  ;;  %v12083_v4 = vld [vmem:[%s16436_s1 + $0x30] sm:$0xff]  ;;  %vm972_vm1 = vsmask.f32 7440  ;;  %vm464_vm2 = vsmask.f32 256 }
  0x82   : > { %12309 = vmatpush.bf16.msra.mxu3 %v12084_v2  ;;  %1720 = vmatpush.bf16.msra.mxu1 %v12084_v2  ;;  %v12082_v6 = vld [vmem:[%s16436_s1 + $0x28] sm:$0xff]  ;;  %v907_v7 = vld [vmem:[#allocation2] sm:$0xf]  ;;  %v908_v8 = vld [vmem:[#allocation2 + $0x4] sm:$0xf]  ;;  %vm795_vm5 = vcmask 1040384  }
  0x83   : > { %vm465_vm4 = vsmask.f32 4368  ;;  %v955_v9 = vld [vmem:[#allocation2 + $0x8] sm:$0x1]  ;;  %v975_v10 = vshrl.u32 %v907_v7, 16  ;;  %v978_v11 = vshll.u32 %v907_v7, 16  ;;  %vm12584_vm7 = vmor %vm971_vm0, %vm972_vm1 }
  0x84   : > { %v984_v12 = vshll.u32 %v908_v8, 16  ;;  %v988_v13 = vshrl.u32 %v908_v8, 16  ;;  %v994_v14 = vshll.u32 %v955_v9, 16  ;;  %v446_v15 = vld [vmem:[%s12436_s12 + $0x38] sm:$0xf]  ;;  %v12089_v24 = vld [vmem:[%s16436_s1 + $0x60] sm:$0xff]  ;;  %vm12590_vm8 = vmor %vm464_vm2, %vm465_vm4 }
  0x85   : > { %1488 = vmatpush.bf16.msra.mxu0 %v12091_v3  ;;  %12302 = vmatpush.bf16.msra.mxu2 %v12091_v3  ;;  %v447_v16 = vld [vmem:[%s12436_s12 + $0x3c] sm:$0xf]  ;;  %v977_v17 = vrot.slane %v975_v10, 4  ;;  %v980_v18 = vrot.slane %v978_v11, 5  ;;  %v587_v21 = vshrl.u32 %v446_v15, 16  ;;  %v590_v22 = vshll.u32 %v446_v15, 16  ;;  %vm12610_vm10 = vmand %vm795_vm5, %vm464_vm2 }
  0x86   : > { %12310 = vmatpush.bf16.msra.mxu3 %v12083_v4  ;;  %1721 = vmatpush.bf16.msra.mxu1 %v12083_v4  ;;  %v986_v19 = vrot.slane %v984_v12, 5  ;;  %v990_v20 = vrot.slane %v988_v13, 4  ;;  %v595_v23 = vshrl.u32 %v447_v16, 16  ;;  %vm789_vm6 = vsmask.f32 7938  ;;  %v12081_v25 = vld [vmem:[%s16436_s1 + $0x20] sm:$0xff] }
  0x87   : > { %v981_v27 = vor.u32 %v980_v18, %v977_v17  ;;  %v996_v29 = vrot.slane %v994_v14, 5  ;;  %v598_v30 = vshll.u32 %v447_v16, 16  ;;  %v589_v32 = vrot.slane %v587_v21, 7  ;;  %v842_v34 = vld [vmem:[#allocation2 + $0x60] sm:$0xf]  ;;  %v12088_v36 = vld [vmem:[%s16436_s1 + $0x58] sm:$0xff]  ;;  %vm12600_vm9 = vmand %vm788_vm3, %vm789_vm6 }
  0x88   : > { %v991_v28 = vor.u32 %v990_v20, %v986_v19  ;;  %v597_v33 = vrot.slane %v595_v23, 7  ;;  %v432_v35 = vld [vmem:[%s12436_s12] sm:$0xf]  ;;  %v433_v40 = vld [vmem:[%s12436_s12 + $0x4] sm:$0xf]  ;;  %v12080_v43 = vld [vmem:[%s16436_s1 + $0x18] sm:$0xff] }
  0x89   : > { %1489 = vmatpush.bf16.msra.mxu0 %v12090_v5  ;;  %12303 = vmatpush.bf16.msra.mxu2 %v12090_v5  ;;  %v982_v37 = vrot.slane %v981_v27, 4  ;;  %v468_v41 = vshrl.u32 %v432_v35, 16  ;;  %v471_v42 = vshll.u32 %v432_v35, 16  ;;  %v592_v44 = vor.u32 %v590_v22, %v589_v32  ;;  %v846_v49 = vld [vmem:[#allocation2 + $0x68] sm:$0x1]  ;;  %v12087_v7 = vld [vmem:[%s16436_s1 + $0x50] sm:$0xff] }
  0x8a   : > { %12311 = vmatpush.bf16.msra.mxu3 %v12082_v6  ;;  %1722 = vmatpush.bf16.msra.mxu1 %v12082_v6  ;;  %v992_v38 = vrot.slane %v991_v28, 4  ;;  %v593_v45 = vrot.slane %v589_v32, 4  ;;  %v600_v46 = vor.u32 %v598_v30, %v597_v33  ;;  %v602_v47 = vrot.slane %v597_v33, 4  ;;  %v791_v54 = vld [vmem:[#allocation2 + $0xc] sm:$0xf]  ;;  %v12079_v12 = vld [vmem:[%s16436_s1 + $0x10] sm:$0xff] }
  0x8b   : > { %v987_v50 = vsel %vm12584_vm7, %v982_v37, %v986_v19  ;;  %v470_v52 = vrot.slane %v468_v41, 7  ;;  %v476_v53 = vshrl.u32 %v433_v40, 16  ;;  %v448_v55 = vld [vmem:[%s12436_s12 + $0x40] sm:$0xf]  ;;  %v843_v58 = vsel %vm12600_vm9, %v592_v44, %v842_v34  ;;  %v797_v59 = vld [vmem:[#allocation2 + $0x14] sm:$0x1] }
  0x8c   : > { %v997_v51 = vsel %vm12584_vm7, %v992_v38, %v996_v29  ;;  %v12619_v56 = vunpack.c.l.b16 %v987_v50  ;;  %v601_v57 = vsel %vm12590_vm8, %v593_v45, %v600_v46  ;;  %v449_v60 = vld [vmem:[%s12436_s12 + $0x44] sm:$0xf]  ;;  %v434_v61 = vld [vmem:[%s12436_s12 + $0x8] sm:$0xf]  ;;  %844 = vst [vmem:[#allocation2 + $0x60] sm:$0xf] %v843_v58  ;;  %v847_v63 = vsel %vm12610_vm10, %v602_v47, %v846_v49 }
  0x8d   : > { %1490 = vmatpush.bf16.msra.mxu0 %v12089_v24  ;;  %12304 = vmatpush.bf16.msra.mxu2 %v12089_v24  ;;  %v12627_v62 = vunpack.c.l.b16 %v997_v51  ;;  %v473_v0 = vor.u32 %v471_v42, %v470_v52  ;;  %v478_v1 = vrot.slane %v476_v53, 7  ;;  %v435_v2 = vld [vmem:[%s12436_s12 + $0xc] sm:$0xf]  ;;  %845 = vst [vmem:[#allocation2 + $0x64] sm:$0xf] %v601_v57  ;;  %v474_v3 = vrot.slane %v470_v52, 4 }
  0x8e   : > { %12312 = vmatpush.bf16.msra.mxu3 %v12081_v25  ;;  %1723 = vmatpush.bf16.msra.mxu1 %v12081_v25  ;;  %v479_v4 = vshll.u32 %v433_v40, 16  ;;  %v604_v5 = vshrl.u32 %v448_v55, 16  ;;  %v607_v6 = vshll.u32 %v448_v55, 16  ;;  %848 = vst [vmem:[#allocation2 + $0x68] sm:$0x1] %v847_v63  ;;  %v612_v10 = vshrl.u32 %v449_v60, 16 }
  0x8f   : > { %v483_v8 = vrot.slane %v478_v1, 4  ;;  %v792_v9 = vsel %vm12600_vm9, %v473_v0, %v791_v54  ;;  %v615_v11 = vshll.u32 %v449_v60, 16  ;;  %v485_v15 = vshrl.u32 %v434_v61, 16  ;;  %v849_v19 = vld [vmem:[#allocation2 + $0x6c] sm:$0xf]  ;;  %v12085_v41 = vld [vmem:[%s16436_s1 + $0x40] sm:$0xff] }
  0x90   : > { %v481_v13 = vor.u32 %v479_v4, %v478_v1  ;;  %793 = vst [vmem:[#allocation2 + $0xc] sm:$0xf] %v792_v9  ;;  %v606_v14 = vrot.slane %v604_v5, 7  ;;  %v488_v16 = vshll.u32 %v434_v61, 16  ;;  %v614_v18 = vrot.slane %v612_v10, 7  ;;  %v12086_v28 = vld [vmem:[%s16436_s1 + $0x48] sm:$0xff] }
  0x91   : > { %1491 = vmatpush.bf16.msra.mxu0 %v12088_v36  ;;  %12305 = vmatpush.bf16.msra.mxu2 %v12088_v36  ;;  %v798_v17 = vsel %vm12610_vm10, %v483_v8, %v797_v59  ;;  %v493_v20 = vshrl.u32 %v435_v2, 16  ;;  %v496_v21 = vshll.u32 %v435_v2, 16  ;;  %v853_v25 = vld [vmem:[#allocation2 + $0x74] sm:$0x1]  ;;  %v487_v27 = vrot.slane %v485_v15, 7  ;;  %v12078_v34 = vld [vmem:[%s16436_s1 + $0x8] sm:$0xff] }
  0x92   : > { %12313 = vmatpush.bf16.msra.mxu3 %v12080_v43  ;;  %1724 = vmatpush.bf16.msra.mxu1 %v12080_v43  ;;  %v482_v22 = vsel %vm12590_vm8, %v474_v3, %v481_v13  ;;  %799 = vst [vmem:[#allocation2 + $0x14] sm:$0x1] %v798_v17  ;;  %v609_v23 = vor.u32 %v607_v6, %v606_v14  ;;  %v610_v24 = vrot.slane %v606_v14, 4  ;;  %v619_v32 = vrot.slane %v614_v18, 4  ;;  %v800_v33 = vld [vmem:[#allocation2 + $0x18] sm:$0xf] }
  0x93   : > { %v1407_v29 = vpack.c.b16 %v12627_v62, %v12619_v56  ;;  %794 = vst [vmem:[#allocation2 + $0x10] sm:$0xf] %v482_v22  ;;  %v617_v30 = vor.u32 %v615_v11, %v614_v18  ;;  %v923_v35 = vld [vmem:[#allocation2 + $0x60] sm:$0xf]  ;;  %v490_v37 = vor.u32 %v488_v16, %v487_v27  ;;  %v491_v38 = vrot.slane %v487_v27, 4  ;;  %v12100_v60 = vld [vmem:[%s16436_s1 + $0xb8] sm:$0xff] }
  0x94   : > { %v850_v36 = vsel %vm12600_vm9, %v609_v23, %v849_v19  ;;  %v495_v40 = vrot.slane %v493_v20, 7  ;;  %v924_v42 = vld [vmem:[#allocation2 + $0x64] sm:$0xf]  ;;  %v1167_v43 = vshrl.u32 %v923_v35, 16  ;;  %v1170_v44 = vshll.u32 %v923_v35, 16  ;;  %v12132_v13 = vld [vmem:[%s16436_s1 + $0x138] sm:$0xff] }
  0x95   : > { %1492 = vmatpush.bf16.msra.mxu0 %v12087_v7  ;;  %12306 = vmatpush.bf16.msra.mxu2 %v12087_v7  ;;  %v618_v45 = vsel %vm12590_vm8, %v610_v24, %v617_v30  ;;  %v854_v46 = vsel %vm12610_vm10, %v619_v32, %v853_v25  ;;  %v804_v47 = vld [vmem:[#allocation2 + $0x20] sm:$0x1]  ;;  %v963_v50 = vld [vmem:[#allocation2 + $0x68] sm:$0x1]  ;;  %v1176_v51 = vshll.u32 %v924_v42, 16  ;;  %v1180_v52 = vshrl.u32 %v924_v42, 16 }
  0x96   : > { %12314 = vmatpush.bf16.msra.mxu3 %v12079_v12  ;;  %1725 = vmatpush.bf16.msra.mxu1 %v12079_v12  ;;  %v12077_v49 = vld [vmem:[%s16436_s1] sm:$0xff]  ;;  %851 = vst [vmem:[#allocation2 + $0x6c] sm:$0xf] %v850_v36  ;;  %v498_v53 = vor.u32 %v496_v21, %v495_v40  ;;  %v801_v54 = vsel %vm12600_vm9, %v490_v37, %v800_v33  ;;  %v12667_v55 = vld [vmem:[%s12436_s12 + $0x48] sm:$0xf]  ;;  %v1169_v57 = vrot.slane %v1167_v43, 4 }
  0x97   : > { %v1172_v58 = vrot.slane %v1170_v44, 5  ;;  %v1186_v59 = vshll.u32 %v963_v50, 16  ;;  %v909_v61 = vld [vmem:[#allocation2 + $0xc] sm:$0xf]  ;;  %v500_v63 = vrot.slane %v495_v40, 4  ;;  %v1178_v0 = vrot.slane %v1176_v51, 5 }
  0x98   : > { %v1182_v1 = vrot.slane %v1180_v52, 4  ;;  %v999_v2 = vshrl.u32 %v909_v61, 16  ;;  %v1002_v3 = vshll.u32 %v909_v61, 16  ;;  %852 = vst [vmem:[#allocation2 + $0x70] sm:$0xf] %v618_v45  ;;  %v12061_v6 = vld [vmem:[#allocation2] sm:$0xff]  ;;  %v499_v9 = vsel %vm12590_vm8, %v491_v38, %v498_v53 }
  0x99   : > { %1493 = vmatpush.bf16.msra.mxu0 %v12086_v28  ;;  %12307 = vmatpush.bf16.msra.mxu2 %v12086_v28  ;;  %v1173_v4 = vor.u32 %v1172_v58, %v1169_v57  ;;  %v1188_v5 = vrot.slane %v1186_v59, 5  ;;  %v12124_v7 = vld [vmem:[%s16436_s1 + $0xf8] sm:$0xff]  ;;  %v956_v8 = vld [vmem:[#allocation2 + $0x14] sm:$0x1]  ;;  %855 = vst [vmem:[#allocation2 + $0x74] sm:$0x1] %v854_v46  ;;  %v805_v10 = vsel %vm12610_vm10, %v500_v63, %v804_v47 }
  0x9a   : > { %12315 = vmatpush.bf16.msra.mxu3 %v12078_v34  ;;  %1726 = vmatpush.bf16.msra.mxu1 %v12078_v34  ;;  %v1183_v11 = vor.u32 %v1182_v1, %v1178_v0  ;;  %v12069_v12 = vld [vmem:[#allocation2 + $0x60] sm:$0xff]  ;;  %v910_v14 = vld [vmem:[#allocation2 + $0x10] sm:$0xf]  ;;  %v1001_v15 = vrot.slane %v999_v2, 4  ;;  %v1004_v16 = vrot.slane %v1002_v3, 5  ;;  %v1018_v17 = vshll.u32 %v956_v8, 16 }
  0x9b   : > { %v1174_v18 = vrot.slane %v1173_v4, 4  ;;  %v1008_v19 = vshll.u32 %v910_v14, 16  ;;  %v1012_v20 = vshrl.u32 %v910_v14, 16  ;;  %802 = vst [vmem:[#allocation2 + $0x18] sm:$0xf] %v801_v54  ;;  %v621_v21 = vshrl.u32 %v12667_v55, 16 }
  0x9c   : > { %v1184_v22 = vrot.slane %v1183_v11, 4  ;;  %v1005_v23 = vor.u32 %v1004_v16, %v1001_v15  ;;  %v1020_v24 = vrot.slane %v1018_v17, 5  ;;  %v12099_v25 = vld [vmem:[%s16436_s1 + $0xb0] sm:$0xff]  ;;  %803 = vst [vmem:[#allocation2 + $0x1c] sm:$0xf] %v499_v9  ;;  %v624_v58 = vshll.u32 %v12667_v55, 16 }
  0x9d   : > { %1494 = vmatpush.bf16.msra.mxu0 %v12085_v41  ;;  %12308 = vmatpush.bf16.msra.mxu2 %v12085_v41  ;;  %v12123_v27 = vld [vmem:[%s16436_s1 + $0xf0] sm:$0xff]  ;;  %v1179_v28 = vsel %vm12584_vm7, %v1174_v18, %v1178_v0  ;;  %v1010_v30 = vrot.slane %v1008_v19, 5  ;;  %v1014_v32 = vrot.slane %v1012_v20, 4  ;;  %v925_v33 = vld [vmem:[#allocation2 + $0x6c] sm:$0xf]  ;;  %v12696_v43 = vrot.slane %v621_v21, 7 }
  0x9e   : > { %12316 = vmatpush.bf16.msra.mxu3 %v12077_v49  ;;  %1727 = vmatpush.bf16.msra.mxu1 %v12077_v49  ;;  %806 = vst [vmem:[#allocation2 + $0x20] sm:$0x1] %v805_v10  ;;  %v1189_v34 = vsel %vm12584_vm7, %v1184_v22, %v1188_v5  ;;  %v1391_v35 = vunpack.c.l.b16 %v1179_v28  ;;  %v1006_v36 = vrot.slane %v1005_v23, 4  ;;  %v1191_v37 = vshrl.u32 %v925_v33, 16  ;;  %v12131_v46 = vld [vmem:[%s16436_s1 + $0x130] sm:$0xff]  ;;  %v12098_v10 = vld [vmem:[%s16436_s1 + $0xa8] sm:$0xff] }
  0x9f   : > { %v1392_v38 = vunpack.c.l.b16 %v1189_v34  ;;  %v1015_v40 = vor.u32 %v1014_v32, %v1010_v30  ;;  %v926_v41 = vld [vmem:[#allocation2 + $0x70] sm:$0xf]  ;;  %v1194_v42 = vshll.u32 %v925_v33, 16  ;;  %v12122_v14 = vld [vmem:[%s16436_s1 + $0xe8] sm:$0xff]  ;;  %v626_v19 = vor.u32 %v624_v58, %v12696_v43  ;;  %v856_v20 = vld [vmem:[#allocation2 + $0x78] sm:$0xf] }
  0xa0   : > { %1495 = vmatmul.bf16.vlgmr.msra.gmra.mxu0 %v1407_v29  ;;  %v1011_v44 = vsel %vm12584_vm7, %v1006_v36, %v1010_v30  ;;  %v964_v56 = vld [vmem:[#allocation2 + $0x74] sm:$0x1]  ;;  %v1193_v62 = vrot.slane %v1191_v37, 4  ;;  %v1200_v29 = vshll.u32 %v926_v41, 16  ;;  %v1204_v45 = vshrl.u32 %v926_v41, 16  ;;  %v12130_v15 = vld [vmem:[%s16436_s1 + $0x128] sm:$0xff] }
  0xa1   : > { %2101 = vmatpush.bf16.msrb.mxu2 %v12100_v60  ;;  %1768 = vmatmul.bf16.vlgmr.msra.gmra.mxu3 %v12069_v12  ;;  %v1415_v47 = vpack.c.b16 %v1392_v38, %v1391_v35  ;;  %v1016_v49 = vrot.slane %v1015_v40, 4  ;;  %v12703_v50 = vunpack.c.l.b16 %v1011_v44  ;;  %v1196_v51 = vrot.slane %v1194_v42, 5  ;;  %v436_v21 = vld [vmem:[%s12436_s12 + $0x10] sm:$0xf]  ;;  %v437_v33 = vld [vmem:[%s12436_s12 + $0x14] sm:$0xf] }
  0xa2   : > { %2415 = vmatpush.bf16.msrb.mxu3 %v12124_v7  ;;  %1728 = vmatmul.bf16.vlgmr.msra.gmra.mxu1 %v12061_v6  ;;  %v1202_v52 = vrot.slane %v1200_v29, 5  ;;  %v1206_v53 = vrot.slane %v1204_v45, 4  ;;  %v1210_v54 = vshll.u32 %v964_v56, 16  ;;  %v911_v57 = vld [vmem:[#allocation2 + $0x18] sm:$0xf]  ;;  %v12062_v34 = vld [vmem:[#allocation2 + $0xc] sm:$0xff]  ;;  %v857_v36 = vsel %vm12600_vm9, %v626_v19, %v856_v20 }
  0xa3   : > { %3097 = vmatpush.bf16.msrb.mxu0 %v12132_v13  ;;  %1535 = vmatmul.bf16.vlgmr.msra.gmra.mxu2 %v1415_v47  ;;  %v1021_v59 = vsel %vm12584_vm7, %v1016_v49, %v1020_v24  ;;  %v1197_v60 = vor.u32 %v1196_v51, %v1193_v62  ;;  %v912_v61 = vld [vmem:[#allocation2 + $0x1c] sm:$0xf]  ;;  %v1023_v63 = vshrl.u32 %v911_v57, 16  ;;  %v1026_v0 = vshll.u32 %v911_v57, 16  ;;  %v451_v6 = vld [vmem:[%s12436_s12 + $0x4c] sm:$0xf] }
  0xa4   : > { %v1378_v1 = vunpack.c.l.b16 %v1021_v59  ;;  %v1207_v2 = vor.u32 %v1206_v53, %v1202_v52  ;;  %v1212_v3 = vrot.slane %v1210_v54, 5  ;;  %v1032_v5 = vshll.u32 %v912_v61, 16  ;;  %v860_v37 = vld [vmem:[#allocation2 + $0x80] sm:$0x1]  ;;  %v452_v41 = vld [vmem:[%s12436_s12 + $0x50] sm:$0xf] }
  0xa5   : > { %2102 = vmatpush.bf16.msrb.mxu2 %v12099_v25  ;;  %v957_v4 = vld [vmem:[#allocation2 + $0x20] sm:$0x1]  ;;  %v1198_v7 = vrot.slane %v1197_v60, 4  ;;  %v1025_v8 = vrot.slane %v1023_v63, 4  ;;  %v1028_v9 = vrot.slane %v1026_v0, 5  ;;  %v1036_v55 = vshrl.u32 %v912_v61, 16 }
  0xa6   : > { %2416 = vmatpush.bf16.msrb.mxu3 %v12123_v27  ;;  %v1208_v11 = vrot.slane %v1207_v2, 4  ;;  %v1034_v12 = vrot.slane %v1032_v5, 5  ;;  %v1042_v13 = vshll.u32 %v957_v4, 16  ;;  %v1408_v22 = vpack.c.b16 %v1378_v1, %v12703_v50  ;;  %v12070_v42 = vld [vmem:[#allocation2 + $0x6c] sm:$0xff]  ;;  %858 = vst [vmem:[#allocation2 + $0x78] sm:$0xf] %v857_v36 }
  0xa7   : > { %3098 = vmatpush.bf16.msrb.mxu0 %v12131_v46  ;;  %v1203_v16 = vsel %vm12584_vm7, %v1198_v7, %v1202_v52  ;;  %v1029_v17 = vor.u32 %v1028_v9, %v1025_v8  ;;  %v1038_v18 = vrot.slane %v1036_v55, 4  ;;  %v629_v32 = vshrl.u32 %v451_v6, 16  ;;  %v807_v45 = vld [vmem:[#allocation2 + $0x24] sm:$0xf]  ;;  %v453_v51 = vld [vmem:[%s12436_s12 + $0x54] sm:$0xf] }
  0xa8   : > { %v1213_v23 = vsel %vm12584_vm7, %v1208_v11, %v1212_v3  ;;  %v12725_v24 = vunpack.c.l.b16 %v1203_v16  ;;  %v1044_v25 = vrot.slane %v1042_v13, 5  ;;  %v632_v35 = vshll.u32 %v451_v6, 16  ;;  %v811_v57 = vld [vmem:[#allocation2 + $0x2c] sm:$0x1]  ;;  %v863_v63 = vld [vmem:[#allocation2 + $0x84] sm:$0xf] }
  0xa9   : > { %2103 = vmatpush.bf16.msrb.mxu2 %v12098_v10  ;;  %v1394_v27 = vunpack.c.l.b16 %v1213_v23  ;;  %v1030_v28 = vrot.slane %v1029_v17, 4  ;;  %v1039_v30 = vor.u32 %v1038_v18, %v1034_v12  ;;  %v502_v38 = vshrl.u32 %v436_v21, 16  ;;  %v438_v0 = vld [vmem:[%s12436_s12 + $0x18] sm:$0xf]  ;;  %v439_v5 = vld [vmem:[%s12436_s12 + $0x1c] sm:$0xf] }
  0xaa   : > { %2417 = vmatpush.bf16.msrb.mxu3 %v12122_v14  ;;  %v505_v40 = vshll.u32 %v436_v21, 16  ;;  %v627_v62 = vrot.slane %v12696_v43, 4  ;;  %v631_v29 = vrot.slane %v629_v32, 7  ;;  %v510_v49 = vshrl.u32 %v437_v33, 16  ;;  %v12751_v55 = vld [vmem:[%s12436_s12 + $0x58] sm:$0xf] }
  0xab   : > { %3099 = vmatpush.bf16.msrb.mxu0 %v12130_v15  ;;  %v1035_v44 = vsel %vm12584_vm7, %v1030_v28, %v1034_v12  ;;  %v1040_v56 = vrot.slane %v1039_v30, 4  ;;  %v1416_v46 = vpack.c.b16 %v1394_v27, %v12725_v24  ;;  %v504_v47 = vrot.slane %v502_v38, 7  ;;  %v867_v17 = vld [vmem:[#allocation2 + $0x8c] sm:$0x1]  ;;  %v12121_v36 = vld [vmem:[%s16436_s1 + $0xe0] sm:$0xff] }
  0xac   : > { %v513_v50 = vshll.u32 %v437_v33, 16  ;;  %v634_v53 = vor.u32 %v632_v35, %v631_v29  ;;  %v636_v54 = vrot.slane %v631_v29, 4  ;;  %v638_v58 = vshrl.u32 %v452_v41, 16  ;;  %v12097_v35 = vld [vmem:[%s16436_s1 + $0xa0] sm:$0xff] }
  0xad   : > { %v1045_v52 = vsel %vm12584_vm7, %v1040_v56, %v1044_v25  ;;  %v12738_v43 = vunpack.c.l.b16 %v1035_v44  ;;  %v507_v59 = vor.u32 %v505_v40, %v504_v47  ;;  %v508_v60 = vrot.slane %v504_v47, 4  ;;  %v927_v14 = vld [vmem:[#allocation2 + $0x78] sm:$0xf]  ;;  %2104 = vmatpush.bf16.msrb.mxu2 %v12097_v35 }
  0xae   : > { %v512_v61 = vrot.slane %v510_v49, 7  ;;  %v635_v1 = vsel %vm12590_vm8, %v627_v62, %v634_v53  ;;  %v861_v2 = vsel %vm12610_vm10, %v636_v54, %v860_v37  ;;  %v640_v3 = vrot.slane %v638_v58, 7  ;;  %v12129_v37 = vld [vmem:[%s16436_s1 + $0x120] sm:$0xff]  ;;  %2418 = vmatpush.bf16.msrb.mxu3 %v12121_v36  ;;  %v12063_v54 = vld [vmem:[#allocation2 + $0x18] sm:$0xff] }
  0xaf   : > { %v641_v4 = vshll.u32 %v452_v41, 16  ;;  %v12746_v6 = vunpack.c.l.b16 %v1045_v52  ;;  %859 = vst [vmem:[#allocation2 + $0x7c] sm:$0xf] %v635_v1  ;;  %v808_v9 = vsel %vm12600_vm9, %v507_v59, %v807_v45  ;;  %v646_v12 = vshrl.u32 %v453_v51, 16  ;;  %3100 = vmatpush.bf16.msrb.mxu0 %v12129_v37 }
  0xb0   : > { %1500 = vmatmul.bf16.gmra.mxu0 %v1408_v22  ;;  %v515_v7 = vor.u32 %v513_v50, %v512_v61  ;;  %v517_v8 = vrot.slane %v512_v61, 4  ;;  %862 = vst [vmem:[#allocation2 + $0x80] sm:$0x1] %v861_v2  ;;  %v644_v11 = vrot.slane %v640_v3, 4  ;;  %v649_v13 = vshll.u32 %v453_v51, 16 }
  0xb1   : > { %1773 = vmatmul.bf16.gmra.mxu3 %v12070_v42  ;;  %v643_v10 = vor.u32 %v641_v4, %v640_v3  ;;  %809 = vst [vmem:[#allocation2 + $0x24] sm:$0xf] %v808_v9  ;;  %v519_v18 = vshrl.u32 %v438_v0, 16  ;;  %v522_v19 = vshll.u32 %v438_v0, 16  ;;  %v1215_v20 = vshrl.u32 %v927_v14, 16 }
  0xb2   : > { %1733 = vmatmul.bf16.gmra.mxu1 %v12062_v34  ;;  %v516_v15 = vsel %vm12590_vm8, %v508_v60, %v515_v7  ;;  %v812_v16 = vsel %vm12610_vm10, %v517_v8, %v811_v57  ;;  %v1218_v21 = vshll.u32 %v927_v14, 16  ;;  %v648_v22 = vrot.slane %v646_v12, 7  ;;  %v814_v42 = vld [vmem:[#allocation2 + $0x30] sm:$0xf] }
  0xb3   : > { %1540 = vmatmul.bf16.gmra.mxu2 %v1416_v46  ;;  %810 = vst [vmem:[#allocation2 + $0x28] sm:$0xf] %v516_v15  ;;  %v864_v23 = vsel %vm12600_vm9, %v643_v10, %v863_v63  ;;  %v521_v24 = vrot.slane %v519_v18, 7  ;;  %v527_v25 = vshrl.u32 %v439_v5, 16  ;;  %v530_v27 = vshll.u32 %v439_v5, 16 }
  0xb4   : > { %813 = vst [vmem:[#allocation2 + $0x2c] sm:$0x1] %v812_v16  ;;  %v655_v28 = vshrl.u32 %v12751_v55, 16  ;;  %v1217_v30 = vrot.slane %v1215_v20, 4  ;;  %v1220_v32 = vrot.slane %v1218_v21, 5  ;;  %v651_v33 = vor.u32 %v649_v13, %v648_v22 }
  0xb5   : > { %v653_v34 = vrot.slane %v648_v22, 4  ;;  %865 = vst [vmem:[#allocation2 + $0x84] sm:$0xf] %v864_v23  ;;  %v524_v38 = vor.u32 %v522_v19, %v521_v24  ;;  %v525_v40 = vrot.slane %v521_v24, 4  ;;  %v12769_v41 = vrot.slane %v527_v25, 7 }
  0xb6   : > { %v928_v44 = vld [vmem:[#allocation2 + $0x7c] sm:$0xf]  ;;  %v1221_v56 = vor.u32 %v1220_v32, %v1217_v30  ;;  %v652_v62 = vsel %vm12590_vm8, %v644_v11, %v651_v33  ;;  %v12775_v45 = vrot.slane %v655_v28, 7  ;;  %v1409_v51 = vpack.c.b16 %v12746_v6, %v12738_v43  ;;  %v818_v19 = vld [vmem:[#allocation2 + $0x38] sm:$0x1] }
  0xb7   : > { %v868_v29 = vsel %vm12610_vm10, %v653_v34, %v867_v17  ;;  %v965_v46 = vld [vmem:[#allocation2 + $0x80] sm:$0x1]  ;;  %v1224_v47 = vshll.u32 %v928_v44, 16  ;;  %v1228_v49 = vshrl.u32 %v928_v44, 16  ;;  %866 = vst [vmem:[#allocation2 + $0x88] sm:$0xf] %v652_v62  ;;  %v532_v50 = vor.u32 %v530_v27, %v12769_v41 }
  0xb8   : > { %v1222_v52 = vrot.slane %v1221_v56, 4  ;;  %v1234_v53 = vshll.u32 %v965_v46, 16  ;;  %v913_v57 = vld [vmem:[#allocation2 + $0x24] sm:$0xf]  ;;  %869 = vst [vmem:[#allocation2 + $0x8c] sm:$0x1] %v868_v29  ;;  %v815_v58 = vsel %vm12600_vm9, %v524_v38, %v814_v42 }
  0xb9   : > { %v1226_v59 = vrot.slane %v1224_v47, 5  ;;  %v1230_v60 = vrot.slane %v1228_v49, 4  ;;  %v1047_v63 = vshrl.u32 %v913_v57, 16  ;;  %v1050_v0 = vshll.u32 %v913_v57, 16  ;;  %v12071_v2 = vld [vmem:[#allocation2 + $0x78] sm:$0xff] }
  0xba   : > { %v914_v61 = vld [vmem:[#allocation2 + $0x28] sm:$0xf]  ;;  %v1236_v1 = vrot.slane %v1234_v53, 5  ;;  %v533_v43 = vsel %vm12590_vm8, %v525_v40, %v532_v50  ;;  %816 = vst [vmem:[#allocation2 + $0x30] sm:$0xf] %v815_v58  ;;  %v534_v23 = vrot.slane %v12769_v41, 4 }
  0xbb   : > { %v958_v3 = vld [vmem:[#allocation2 + $0x2c] sm:$0x1]  ;;  %v1056_v4 = vshll.u32 %v914_v61, 16  ;;  %v1060_v5 = vshrl.u32 %v914_v61, 16  ;;  %v1227_v6 = vsel %vm12584_vm7, %v1222_v52, %v1226_v59  ;;  %v1231_v7 = vor.u32 %v1230_v60, %v1226_v59  ;;  %817 = vst [vmem:[#allocation2 + $0x34] sm:$0xf] %v533_v43 }
  0xbc   : > { %v1049_v8 = vrot.slane %v1047_v63, 4  ;;  %v1052_v9 = vrot.slane %v1050_v0, 5  ;;  %v929_v10 = vld [vmem:[#allocation2 + $0x84] sm:$0xf]  ;;  %v1395_v11 = vunpack.c.l.b16 %v1227_v6  ;;  %v1066_v14 = vshll.u32 %v958_v3, 16  ;;  %v12096_v59 = vld [vmem:[%s16436_s1 + $0x98] sm:$0xff] }
  0xbd   : > { %v1058_v12 = vrot.slane %v1056_v4, 5  ;;  %v1062_v13 = vrot.slane %v1060_v5, 4  ;;  %v1232_v15 = vrot.slane %v1231_v7, 4  ;;  %v1239_v17 = vshrl.u32 %v929_v10, 16  ;;  %v455_v29 = vld [vmem:[%s12436_s12 + $0x5c] sm:$0xf]  ;;  %2105 = vmatpush.bf16.msrb.mxu2 %v12096_v59 }
  0xbe   : > { %v1053_v16 = vor.u32 %v1052_v9, %v1049_v8  ;;  %v1242_v18 = vshll.u32 %v929_v10, 16  ;;  %v1068_v21 = vrot.slane %v1066_v14, 5  ;;  %v930_v22 = vld [vmem:[#allocation2 + $0x88] sm:$0xf]  ;;  %v658_v24 = vshll.u32 %v12751_v55, 16 }
  0xbf   : > { %v1063_v20 = vor.u32 %v1062_v13, %v1058_v12  ;;  %v1237_v25 = vsel %vm12584_vm7, %v1232_v15, %v1236_v1  ;;  %v966_v28 = vld [vmem:[#allocation2 + $0x8c] sm:$0x1]  ;;  %v1241_v30 = vrot.slane %v1239_v17, 4  ;;  %v1248_v35 = vshll.u32 %v930_v22, 16  ;;  %v870_v52 = vld [vmem:[#allocation2 + $0x90] sm:$0xf] }
  0xc0   : > { %1505 = vmatmul.bf16.gmra.mxu0 %v1409_v51  ;;  %v1054_v27 = vrot.slane %v1053_v16, 4  ;;  %v1244_v32 = vrot.slane %v1242_v18, 5  ;;  %v1396_v33 = vunpack.c.l.b16 %v1237_v25  ;;  %v1252_v36 = vshrl.u32 %v930_v22, 16  ;;  %v12120_v1 = vld [vmem:[%s16436_s1 + $0xd8] sm:$0xff]  ;;  %v440_v3 = vld [vmem:[%s12436_s12 + $0x20] sm:$0xf] }
  0xc1   : > { %1778 = vmatmul.bf16.gmra.mxu3 %v12071_v2  ;;  %v1064_v34 = vrot.slane %v1063_v20, 4  ;;  %v1258_v40 = vshll.u32 %v966_v28, 16  ;;  %v819_v55 = vsel %vm12610_vm10, %v534_v23, %v818_v19  ;;  %v1250_v56 = vrot.slane %v1248_v35, 5  ;;  %v915_v62 = vld [vmem:[#allocation2 + $0x30] sm:$0xf]  ;;  %v12128_v2 = vld [vmem:[%s16436_s1 + $0x118] sm:$0xff] }
  0xc2   : > { %1738 = vmatmul.bf16.gmra.mxu1 %v12063_v54  ;;  %v1059_v37 = vsel %vm12584_vm7, %v1054_v27, %v1058_v12  ;;  %v1245_v38 = vor.u32 %v1244_v32, %v1241_v30  ;;  %v1417_v41 = vpack.c.b16 %v1396_v33, %v1395_v11  ;;  %820 = vst [vmem:[#allocation2 + $0x38] sm:$0x1] %v819_v55  ;;  %v1254_v49 = vrot.slane %v1252_v36, 4  ;;  %v916_v51 = vld [vmem:[#allocation2 + $0x34] sm:$0xf]  ;;  %v12072_v22 = vld [vmem:[#allocation2 + $0x84] sm:$0xff] }
  0xc3   : > { %v1069_v42 = vsel %vm12584_vm7, %v1064_v34, %v1068_v21  ;;  %v1381_v44 = vunpack.c.l.b16 %v1059_v37  ;;  %v1260_v50 = vrot.slane %v1258_v40, 5  ;;  %v1071_v53 = vshrl.u32 %v915_v62, 16  ;;  %2419 = vmatpush.bf16.msrb.mxu3 %v12120_v1  ;;  %3101 = vmatpush.bf16.msrb.mxu0 %v12128_v2  ;;  %v874_v14 = vld [vmem:[#allocation2 + $0x98] sm:$0x1]  ;;  %v441_v15 = vld [vmem:[%s12436_s12 + $0x24] sm:$0xf] }
  0xc4   : > { %v1382_v46 = vunpack.c.l.b16 %v1069_v42  ;;  %v1246_v47 = vrot.slane %v1245_v38, 4  ;;  %1545 = vmatmul.bf16.gmra.mxu2 %v1417_v41  ;;  %v1074_v54 = vshll.u32 %v915_v62, 16  ;;  %v1080_v57 = vshll.u32 %v916_v51, 16  ;;  %v12064_v23 = vld [vmem:[#allocation2 + $0x24] sm:$0xff]  ;;  %v821_v34 = vld [vmem:[#allocation2 + $0x3c] sm:$0xf] }
  0xc5   : > { %v1084_v58 = vshrl.u32 %v916_v51, 16  ;;  %v1255_v63 = vor.u32 %v1254_v49, %v1250_v56  ;;  %v660_v0 = vor.u32 %v658_v24, %v12775_v45  ;;  %v1073_v5 = vrot.slane %v1071_v53, 4  ;;  %v456_v37 = vld [vmem:[%s12436_s12 + $0x60] sm:$0xf]  ;;  %v457_v38 = vld [vmem:[%s12436_s12 + $0x64] sm:$0xf] }
  0xc6   : > { %v1410_v60 = vpack.c.b16 %v1382_v46, %v1381_v44  ;;  %v1251_v61 = vsel %vm12584_vm7, %v1246_v47, %v1250_v56  ;;  %v1076_v43 = vrot.slane %v1074_v54, 5  ;;  %v1082_v6 = vrot.slane %v1080_v57, 5  ;;  %v825_v44 = vld [vmem:[#allocation2 + $0x44] sm:$0x1]  ;;  %v442_v47 = vld [vmem:[%s12436_s12 + $0x28] sm:$0xf] }
  0xc7   : > { %v12810_v4 = vunpack.c.l.b16 %v1251_v61  ;;  %v1256_v7 = vrot.slane %v1255_v63, 4  ;;  %v1086_v8 = vrot.slane %v1084_v58, 4  ;;  %v661_v9 = vrot.slane %v12775_v45, 4 }
  0xc8   : > { %v663_v10 = vshrl.u32 %v455_v29, 16  ;;  %v1077_v11 = vor.u32 %v1076_v43, %v1073_v5  ;;  %v666_v12 = vshll.u32 %v455_v29, 16  ;;  %v871_v13 = vsel %vm12600_vm9, %v660_v0, %v870_v52  ;;  %v881_v5 = vld [vmem:[#allocation2 + $0xa4] sm:$0x1] }
  0xc9   : > { %v536_v16 = vshrl.u32 %v440_v3, 16  ;;  %v1261_v17 = vsel %vm12584_vm7, %v1256_v7, %v1260_v50  ;;  %v959_v18 = vld [vmem:[#allocation2 + $0x38] sm:$0x1]  ;;  %v1087_v19 = vor.u32 %v1086_v8, %v1082_v6  ;;  %872 = vst [vmem:[#allocation2 + $0x90] sm:$0xf] %v871_v13  ;;  %v539_v45 = vshll.u32 %v440_v3, 16 }
  0xca   : > { %v665_v20 = vrot.slane %v663_v10, 7  ;;  %v1398_v21 = vunpack.c.l.b16 %v1261_v17  ;;  %v1078_v24 = vrot.slane %v1077_v11, 4  ;;  %v1090_v25 = vshll.u32 %v959_v18, 16  ;;  %v12119_v13 = vld [vmem:[%s16436_s1 + $0xd0] sm:$0xff]  ;;  %v443_v18 = vld [vmem:[%s12436_s12 + $0x2c] sm:$0xf] }
  0xcb   : > { %v538_v27 = vrot.slane %v536_v16, 7  ;;  %v1088_v28 = vrot.slane %v1087_v19, 4  ;;  %v544_v33 = vshrl.u32 %v441_v15, 16  ;;  %v547_v29 = vshll.u32 %v441_v15, 16  ;;  %2420 = vmatpush.bf16.msrb.mxu3 %v12119_v13 }
  0xcc   : > { %v668_v30 = vor.u32 %v666_v12, %v665_v20  ;;  %v670_v32 = vrot.slane %v665_v20, 4  ;;  %v1092_v35 = vrot.slane %v1090_v25, 5  ;;  %v1083_v40 = vsel %vm12584_vm7, %v1078_v24, %v1082_v6  ;;  %v12095_v12 = vld [vmem:[%s16436_s1 + $0x90] sm:$0xff] }
  0xcd   : > { %v541_v36 = vor.u32 %v539_v45, %v538_v27  ;;  %v542_v42 = vrot.slane %v538_v27, 4  ;;  %v546_v62 = vrot.slane %v544_v33, 7  ;;  %v1418_v49 = vpack.c.b16 %v1398_v21, %v12810_v4  ;;  %v877_v4 = vld [vmem:[#allocation2 + $0x9c] sm:$0xf]  ;;  %2106 = vmatpush.bf16.msrb.mxu2 %v12095_v12 }
  0xce   : > { %v669_v55 = vsel %vm12590_vm8, %v661_v9, %v668_v30  ;;  %v875_v41 = vsel %vm12610_vm10, %v670_v32, %v874_v14  ;;  %v1093_v56 = vsel %vm12584_vm7, %v1088_v28, %v1092_v35  ;;  %v672_v50 = vshrl.u32 %v456_v37, 16  ;;  %v12127_v14 = vld [vmem:[%s16436_s1 + $0x110] sm:$0xff] }
  0xcf   : > { %873 = vst [vmem:[#allocation2 + $0x94] sm:$0xf] %v669_v55  ;;  %v822_v46 = vsel %vm12600_vm9, %v541_v36, %v821_v34  ;;  %v675_v51 = vshll.u32 %v456_v37, 16  ;;  %v680_v52 = vshrl.u32 %v457_v38, 16  ;;  %v12832_v53 = vunpack.c.l.b16 %v1083_v40  ;;  %3102 = vmatpush.bf16.msrb.mxu0 %v12127_v14 }
  0xd0   : > { %1510 = vmatmul.bf16.gmra.mxu0 %v1410_v60  ;;  %876 = vst [vmem:[#allocation2 + $0x98] sm:$0x1] %v875_v41  ;;  %v931_v54 = vld [vmem:[#allocation2 + $0x90] sm:$0xf]  ;;  %v549_v57 = vor.u32 %v547_v29, %v546_v62  ;;  %v551_v58 = vrot.slane %v546_v62, 4  ;;  %v683_v59 = vshll.u32 %v457_v38, 16  ;;  %v12834_v60 = vunpack.c.l.b16 %v1093_v56 }
  0xd1   : > { %1783 = vmatmul.bf16.gmra.mxu3 %v12072_v22  ;;  %823 = vst [vmem:[#allocation2 + $0x3c] sm:$0xf] %v822_v46  ;;  %v1263_v61 = vshrl.u32 %v931_v54, 16  ;;  %v1266_v63 = vshll.u32 %v931_v54, 16  ;;  %v674_v0 = vrot.slane %v672_v50, 7  ;;  %v682_v3 = vrot.slane %v680_v52, 7 }
  0xd2   : > { %1743 = vmatmul.bf16.gmra.mxu1 %v12064_v23  ;;  %v550_v1 = vsel %vm12590_vm8, %v542_v42, %v549_v57  ;;  %v826_v2 = vsel %vm12610_vm10, %v551_v58, %v825_v44  ;;  %v553_v43 = vshrl.u32 %v442_v47, 16  ;;  %v556_v20 = vshll.u32 %v442_v47, 16  ;;  %v828_v41 = vld [vmem:[#allocation2 + $0x48] sm:$0xf]  ;;  %v12065_v62 = vld [vmem:[#allocation2 + $0x30] sm:$0xff] }
  0xd3   : > { %v1265_v6 = vrot.slane %v1263_v61, 4  ;;  %v1268_v7 = vrot.slane %v1266_v63, 5  ;;  %824 = vst [vmem:[#allocation2 + $0x40] sm:$0xf] %v550_v1  ;;  %v677_v8 = vor.u32 %v675_v51, %v674_v0  ;;  %v678_v9 = vrot.slane %v674_v0, 4 }
  0xd4   : > { %1550 = vmatmul.bf16.gmra.mxu2 %v1418_v49  ;;  %827 = vst [vmem:[#allocation2 + $0x44] sm:$0x1] %v826_v2  ;;  %v685_v10 = vor.u32 %v683_v59, %v682_v3  ;;  %v687_v11 = vrot.slane %v682_v3, 4  ;;  %v12852_v19 = vrot.slane %v553_v43, 7  ;;  %v1411_v25 = vpack.c.b16 %v12834_v60, %v12832_v53 }
  0xd5   : > { %v1269_v16 = vor.u32 %v1268_v7, %v1265_v6  ;;  %v878_v17 = vsel %vm12600_vm9, %v677_v8, %v877_v4  ;;  %v561_v40 = vshrl.u32 %v443_v18, 16  ;;  %v564_v55 = vshll.u32 %v443_v18, 16  ;;  %v458_v6 = vld [vmem:[%s12436_s12 + $0x68] sm:$0xf] }
  0xd6   : > { %v932_v15 = vld [vmem:[#allocation2 + $0x94] sm:$0xf]  ;;  %v686_v23 = vsel %vm12590_vm8, %v678_v9, %v685_v10  ;;  %879 = vst [vmem:[#allocation2 + $0x9c] sm:$0xf] %v878_v17  ;;  %v882_v24 = vsel %vm12610_vm10, %v687_v11, %v881_v5  ;;  %v558_v32 = vor.u32 %v556_v20, %v12852_v19  ;;  %v559_v38 = vrot.slane %v12852_v19, 4 }
  0xd7   : > { %v967_v45 = vld [vmem:[#allocation2 + $0x98] sm:$0x1]  ;;  %v1272_v21 = vshll.u32 %v932_v15, 16  ;;  %v1276_v22 = vshrl.u32 %v932_v15, 16  ;;  %v1270_v27 = vrot.slane %v1269_v16, 4  ;;  %v12073_v56 = vld [vmem:[#allocation2 + $0x90] sm:$0xff] }
  0xd8   : > { %v1282_v28 = vshll.u32 %v967_v45, 16  ;;  %v917_v30 = vld [vmem:[#allocation2 + $0x3c] sm:$0xf]  ;;  %880 = vst [vmem:[#allocation2 + $0xa0] sm:$0xf] %v686_v23  ;;  %v563_v53 = vrot.slane %v561_v40, 7  ;;  %v829_v59 = vsel %vm12600_vm9, %v558_v32, %v828_v41 }
  0xd9   : > { %v1274_v33 = vrot.slane %v1272_v21, 5  ;;  %v1278_v34 = vrot.slane %v1276_v22, 4  ;;  %v1095_v35 = vshrl.u32 %v917_v30, 16  ;;  %v1098_v36 = vshll.u32 %v917_v30, 16  ;;  %883 = vst [vmem:[#allocation2 + $0xa4] sm:$0x1] %v882_v24 }
  0xda   : > { %v1284_v37 = vrot.slane %v1282_v28, 5  ;;  %v918_v29 = vld [vmem:[#allocation2 + $0x40] sm:$0xf]  ;;  %v566_v0 = vor.u32 %v564_v55, %v563_v53  ;;  %v568_v1 = vrot.slane %v563_v53, 4  ;;  %830 = vst [vmem:[#allocation2 + $0x48] sm:$0xf] %v829_v59 }
  0xdb   : > { %v1275_v42 = vsel %vm12584_vm7, %v1270_v27, %v1274_v33  ;;  %v1279_v44 = vor.u32 %v1278_v34, %v1274_v33  ;;  %v1097_v46 = vrot.slane %v1095_v35, 4  ;;  %v1100_v47 = vrot.slane %v1098_v36, 5  ;;  %v960_v50 = vld [vmem:[#allocation2 + $0x44] sm:$0x1]  ;;  %v832_v16 = vld [vmem:[#allocation2 + $0x50] sm:$0x1] }
  0xdc   : > { %v1399_v49 = vunpack.c.l.b16 %v1275_v42  ;;  %v1104_v51 = vshll.u32 %v918_v29, 16  ;;  %v1108_v52 = vshrl.u32 %v918_v29, 16  ;;  %v1114_v58 = vshll.u32 %v960_v50, 16  ;;  %v459_v45 = vld [vmem:[%s12436_s12 + $0x6c] sm:$0xf] }
  0xdd   : > { %v1280_v54 = vrot.slane %v1279_v44, 4  ;;  %v1101_v57 = vor.u32 %v1100_v47, %v1097_v46  ;;  %v933_v63 = vld [vmem:[#allocation2 + $0x9c] sm:$0xf]  ;;  %v567_v24 = vsel %vm12590_vm8, %v559_v38, %v566_v0  ;;  %v833_v28 = vsel %vm12610_vm10, %v568_v1, %v832_v16  ;;  %v444_v32 = vld [vmem:[%s12436_s12 + $0x30] sm:$0xf]  ;;  %v12118_v38 = vld [vmem:[%s16436_s1 + $0xc8] sm:$0xff] }
  0xde   : > { %v1106_v60 = vrot.slane %v1104_v51, 5  ;;  %v1110_v61 = vrot.slane %v1108_v52, 4  ;;  %v1116_v4 = vrot.slane %v1114_v58, 5  ;;  %v1287_v43 = vshrl.u32 %v933_v63, 16  ;;  %831 = vst [vmem:[#allocation2 + $0x4c] sm:$0xf] %v567_v24  ;;  %2421 = vmatpush.bf16.msrb.mxu3 %v12118_v38 }
  0xdf   : > { %v1285_v2 = vsel %vm12584_vm7, %v1280_v54, %v1284_v37  ;;  %v1102_v3 = vrot.slane %v1101_v57, 4  ;;  %v934_v5 = vld [vmem:[#allocation2 + $0xa0] sm:$0xf]  ;;  %v1290_v10 = vshll.u32 %v933_v63, 16  ;;  %v689_v30 = vshrl.u32 %v458_v6, 16  ;;  %v12094_v37 = vld [vmem:[%s16436_s1 + $0x88] sm:$0xff] }
  0xe0   : > { %1515 = vmatmul.bf16.gmra.mxu0 %v1411_v25  ;;  %v1400_v7 = vunpack.c.l.b16 %v1285_v2  ;;  %v1111_v8 = vor.u32 %v1110_v61, %v1106_v60  ;;  %v968_v9 = vld [vmem:[#allocation2 + $0xa4] sm:$0x1]  ;;  %v1296_v11 = vshll.u32 %v934_v5, 16  ;;  %v1289_v13 = vrot.slane %v1287_v43, 4  ;;  %834 = vst [vmem:[#allocation2 + $0x50] sm:$0x1] %v833_v28  ;;  %2107 = vmatpush.bf16.msrb.mxu2 %v12094_v37 }
  0xe1   : > { %1788 = vmatmul.bf16.gmra.mxu3 %v12073_v56  ;;  %v1107_v12 = vsel %vm12584_vm7, %v1102_v3, %v1106_v60  ;;  %v1300_v14 = vshrl.u32 %v934_v5, 16  ;;  %v1306_v15 = vshll.u32 %v968_v9, 16  ;;  %v1292_v20 = vrot.slane %v1290_v10, 5  ;;  %v12126_v42 = vld [vmem:[%s16436_s1 + $0x108] sm:$0xff]  ;;  %v12140_v44 = vld [vmem:[%s16436_s1 + $0x178] sm:$0xff] }
  0xe2   : > { %1748 = vmatmul.bf16.gmra.mxu1 %v12065_v62  ;;  %v1419_v17 = vpack.c.b16 %v1400_v7, %v1399_v49  ;;  %v1112_v18 = vrot.slane %v1111_v8, 4  ;;  %v12871_v19 = vunpack.c.l.b16 %v1107_v12  ;;  %v1298_v21 = vrot.slane %v1296_v11, 5  ;;  %v919_v29 = vld [vmem:[#allocation2 + $0x48] sm:$0xf]  ;;  %3103 = vmatpush.bf16.msrb.mxu0 %v12126_v42  ;;  %v445_v54 = vld [vmem:[%s12436_s12 + $0x34] sm:$0xf] }
  0xe3   : > { %v1302_v22 = vrot.slane %v1300_v14, 4  ;;  %v1308_v23 = vrot.slane %v1306_v15, 5  ;;  %v1293_v27 = vor.u32 %v1292_v20, %v1289_v13  ;;  %v692_v35 = vshll.u32 %v458_v6, 16  ;;  %v884_v53 = vld [vmem:[#allocation2 + $0xa8] sm:$0xf]  ;;  %3523 = vmatpush.bf16.msrb.mxu1 %v12140_v44  ;;  %v12066_v58 = vld [vmem:[#allocation2 + $0x3c] sm:$0xff] }
  0xe4   : > { %v1117_v25 = vsel %vm12584_vm7, %v1112_v18, %v1116_v4  ;;  %1555 = vmatmul.bf16.gmra.mxu2 %v1419_v17  ;;  %v697_v36 = vshrl.u32 %v459_v45, 16  ;;  %v691_v55 = vrot.slane %v689_v30, 7  ;;  %v700_v41 = vshll.u32 %v459_v45, 16  ;;  %v888_v61 = vld [vmem:[#allocation2 + $0xb0] sm:$0x1]  ;;  %v12074_v1 = vld [vmem:[#allocation2 + $0x9c] sm:$0xff] }
  0xe5   : > { %v1386_v33 = vunpack.c.l.b16 %v1117_v25  ;;  %v1303_v34 = vor.u32 %v1302_v22, %v1298_v21  ;;  %v1294_v40 = vrot.slane %v1293_v27, 4  ;;  %v570_v47 = vshrl.u32 %v444_v32, 16  ;;  %v460_v5 = vld [vmem:[%s12436_s12 + $0x70] sm:$0xf]  ;;  %v920_v43 = vld [vmem:[#allocation2 + $0x4c] sm:$0xf] }
  0xe6   : > { %v699_v46 = vrot.slane %v697_v36, 7  ;;  %v1119_v50 = vshrl.u32 %v919_v29, 16  ;;  %v1122_v51 = vshll.u32 %v919_v29, 16  ;;  %v694_v52 = vor.u32 %v692_v35, %v691_v55  ;;  %v835_v10 = vld [vmem:[#allocation2 + $0x54] sm:$0xf] }
  0xe7   : > { %v1412_v56 = vpack.c.b16 %v1386_v33, %v12871_v19  ;;  %v1304_v62 = vrot.slane %v1303_v34, 4  ;;  %v1299_v49 = vsel %vm12584_vm7, %v1294_v40, %v1298_v21  ;;  %v695_v59 = vrot.slane %v691_v55, 4  ;;  %v961_v12 = vld [vmem:[#allocation2 + $0x50] sm:$0x1]  ;;  %v461_v20 = vld [vmem:[%s12436_s12 + $0x74] sm:$0xf] }
  0xe8   : > { %v702_v60 = vor.u32 %v700_v41, %v699_v46  ;;  %v573_v63 = vshll.u32 %v444_v32, 16  ;;  %v12899_v0 = vunpack.c.l.b16 %v1299_v49  ;;  %v1121_v2 = vrot.slane %v1119_v50, 4  ;;  %v839_v28 = vld [vmem:[#allocation2 + $0x5c] sm:$0x1] }
  0xe9   : > { %v1309_v57 = vsel %vm12584_vm7, %v1304_v62, %v1308_v23  ;;  %v1124_v3 = vrot.slane %v1122_v51, 5  ;;  %v704_v4 = vrot.slane %v699_v46, 4  ;;  %v885_v7 = vsel %vm12600_vm9, %v694_v52, %v884_v53  ;;  %v891_v53 = vld [vmem:[#allocation2 + $0xb4] sm:$0xf] }
  0xea   : > { %v703_v6 = vsel %vm12590_vm8, %v695_v59, %v702_v60  ;;  %v572_v8 = vrot.slane %v570_v47, 7  ;;  %v578_v9 = vshrl.u32 %v445_v54, 16  ;;  %v1402_v11 = vunpack.c.l.b16 %v1309_v57  ;;  %886 = vst [vmem:[#allocation2 + $0xa8] sm:$0xf] %v885_v7  ;;  %v12139_v57 = vld [vmem:[%s16436_s1 + $0x170] sm:$0xff] }
  0xeb   : > { %v1125_v13 = vor.u32 %v1124_v3, %v1121_v2  ;;  %v1128_v14 = vshll.u32 %v920_v43, 16  ;;  %v1132_v15 = vshrl.u32 %v920_v43, 16  ;;  %v1138_v16 = vshll.u32 %v961_v12, 16  ;;  %887 = vst [vmem:[#allocation2 + $0xac] sm:$0xf] %v703_v6  ;;  %3524 = vmatpush.bf16.msrb.mxu1 %v12139_v57 }
  0xec   : > { %v889_v17 = vsel %vm12610_vm10, %v704_v4, %v888_v61  ;;  %v575_v18 = vor.u32 %v573_v63, %v572_v8  ;;  %v576_v19 = vrot.slane %v572_v8, 4  ;;  %v580_v23 = vrot.slane %v578_v9, 7  ;;  %v12093_v4 = vld [vmem:[%s16436_s1 + $0x80] sm:$0xff]  ;;  %v12138_v9 = vld [vmem:[%s16436_s1 + $0x168] sm:$0xff] }
  0xed   : > { %v1126_v45 = vrot.slane %v1125_v13, 4  ;;  %v1130_v21 = vrot.slane %v1128_v14, 5  ;;  %v1134_v22 = vrot.slane %v1132_v15, 4  ;;  %890 = vst [vmem:[#allocation2 + $0xb0] sm:$0x1] %v889_v17  ;;  %v1140_v24 = vrot.slane %v1138_v16, 5  ;;  %2108 = vmatpush.bf16.msrb.mxu2 %v12093_v4 }
  0xee   : > { %v581_v25 = vshll.u32 %v445_v54, 16  ;;  %v836_v27 = vsel %vm12600_vm9, %v575_v18, %v835_v10  ;;  %v706_v30 = vshrl.u32 %v460_v5, 16  ;;  %v585_v34 = vrot.slane %v580_v23, 4  ;;  %v895_v54 = vld [vmem:[#allocation2 + $0xbc] sm:$0x1]  ;;  %v12125_v13 = vld [vmem:[%s16436_s1 + $0x100] sm:$0xff] }
  0xef   : > { %v1131_v32 = vsel %vm12584_vm7, %v1126_v45, %v1130_v21  ;;  %v1135_v33 = vor.u32 %v1134_v22, %v1130_v21  ;;  %837 = vst [vmem:[#allocation2 + $0x54] sm:$0xf] %v836_v27  ;;  %v709_v35 = vshll.u32 %v460_v5, 16  ;;  %v1420_v36 = vpack.c.b16 %v1402_v11, %v12899_v0  ;;  %v12117_v5 = vld [vmem:[%s16436_s1 + $0xc0] sm:$0xff]  ;;  %3525 = vmatpush.bf16.msrb.mxu1 %v12138_v9 }
  0xf0   : > { %1520 = vmatmul.bf16.gmra.mxu0 %v1412_v56  ;;  %v583_v37 = vor.u32 %v581_v25, %v580_v23  ;;  %v708_v38 = vrot.slane %v706_v30, 7  ;;  %v714_v40 = vshrl.u32 %v461_v20, 16  ;;  %v840_v41 = vsel %vm12610_vm10, %v585_v34, %v839_v28  ;;  %2422 = vmatpush.bf16.msrb.mxu3 %v12117_v5  ;;  %v12137_v22 = vld [vmem:[%s16436_s1 + $0x160] sm:$0xff]  ;;  %v12067_v25 = vld [vmem:[#allocation2 + $0x48] sm:$0xff] }
  0xf1   : > { %1793 = vmatmul.bf16.gmra.mxu3 %v12074_v1  ;;  %v1136_v55 = vrot.slane %v1135_v33, 4  ;;  %v717_v42 = vshll.u32 %v461_v20, 16  ;;  %v12916_v44 = vunpack.c.l.b16 %v1131_v32  ;;  %v935_v56 = vld [vmem:[#allocation2 + $0xa8] sm:$0xf]  ;;  %841 = vst [vmem:[#allocation2 + $0x5c] sm:$0x1] %v840_v41  ;;  %3104 = vmatpush.bf16.msrb.mxu0 %v12125_v13 }
  0xf2   : > { %1753 = vmatmul.bf16.gmra.mxu1 %v12066_v58  ;;  %v584_v62 = vsel %vm12590_vm8, %v576_v19, %v583_v37  ;;  %v712_v29 = vrot.slane %v708_v38, 4  ;;  %v716_v46 = vrot.slane %v714_v40, 7  ;;  %v936_v49 = vld [vmem:[#allocation2 + $0xac] sm:$0xf]  ;;  %v1311_v50 = vshrl.u32 %v935_v56, 16  ;;  %v12136_v40 = vld [vmem:[%s16436_s1 + $0x158] sm:$0xff] }
  0xf3   : > { %v1141_v47 = vsel %vm12584_vm7, %v1136_v55, %v1140_v24  ;;  %v1314_v51 = vshll.u32 %v935_v56, 16  ;;  %v711_v52 = vor.u32 %v709_v35, %v708_v38  ;;  %v1320_v60 = vshll.u32 %v936_v49, 16  ;;  %838 = vst [vmem:[#allocation2 + $0x58] sm:$0xf] %v584_v62  ;;  %v12075_v24 = vld [vmem:[#allocation2 + $0xa8] sm:$0xff]  ;;  %3526 = vmatpush.bf16.msrb.mxu1 %v12137_v22  ;;  %v12133_v22 = vld [vmem:[%s16436_s1 + $0x140] sm:$0xff] }
  0xf4   : > { %1560 = vmatmul.bf16.gmra.mxu2 %v1420_v36  ;;  %v1388_v58 = vunpack.c.l.b16 %v1141_v47  ;;  %v969_v59 = vld [vmem:[#allocation2 + $0xb0] sm:$0x1]  ;;  %v1324_v61 = vshrl.u32 %v936_v49, 16  ;;  %v719_v63 = vor.u32 %v717_v42, %v716_v46  ;;  %v1313_v0 = vrot.slane %v1311_v50, 4 }
  0xf5   : > { %v1316_v1 = vrot.slane %v1314_v51, 5  ;;  %v1330_v2 = vshll.u32 %v969_v59, 16  ;;  %v721_v3 = vrot.slane %v716_v46, 4  ;;  %v1322_v43 = vrot.slane %v1320_v60, 5 }
  0xf6   : > { %v1326_v6 = vrot.slane %v1324_v61, 4  ;;  %v921_v7 = vld [vmem:[#allocation2 + $0x54] sm:$0xf]  ;;  %v720_v8 = vsel %vm12590_vm8, %v712_v29, %v719_v63  ;;  %v892_v16 = vsel %vm12600_vm9, %v711_v52, %v891_v53  ;;  %v1413_v18 = vpack.c.b16 %v1388_v58, %v12916_v44  ;;  %v2536_v44 = vld [vmem:[#allocation2 + $0xc] sm:$0xf] }
  0xf7   : > { %v1317_v10 = vor.u32 %v1316_v1, %v1313_v0  ;;  %v1143_v11 = vshrl.u32 %v921_v7, 16  ;;  %v1146_v12 = vshll.u32 %v921_v7, 16  ;;  %894 = vst [vmem:[#allocation2 + $0xb8] sm:$0xf] %v720_v8  ;;  %v1332_v15 = vrot.slane %v1330_v2, 5  ;;  %3527 = vmatpush.bf16.msrb.mxu1 %v12136_v40  ;;  %v12135_v1 = vld [vmem:[%s16436_s1 + $0x150] sm:$0xff] }
  0xf8   : > { %v1327_v14 = vor.u32 %v1326_v6, %v1322_v43  ;;  %v896_v17 = vsel %vm12610_vm10, %v721_v3, %v895_v54  ;;  %v962_v20 = vld [vmem:[#allocation2 + $0x5c] sm:$0x1]  ;;  %893 = vst [vmem:[#allocation2 + $0xb4] sm:$0xf] %v892_v16  ;;  %v2585_v53 = vshrl.u32 %v2536_v44, 16  ;;  %v2588_v60 = vshll.u32 %v2536_v44, 16 }
  0xf9   : > { %v1318_v19 = vrot.slane %v1317_v10, 4  ;;  %v1145_v45 = vrot.slane %v1143_v11, 4  ;;  %v1148_v21 = vrot.slane %v1146_v12, 5  ;;  %v1162_v32 = vshll.u32 %v962_v20, 16  ;;  %897 = vst [vmem:[#allocation2 + $0xbc] sm:$0x1] %v896_v17 }
  0xfa   : > { %v1328_v23 = vrot.slane %v1327_v14, 4  ;;  %v922_v28 = vld [vmem:[#allocation2 + $0x58] sm:$0xf]  ;;  %v12956_v0 = vld [vmem:[#allocation2 + $0x10] sm:$0xf]  ;;  %v2587_v10 = vrot.slane %v2585_v53, 4 }
  0xfb   : > { %v1323_v27 = vsel %vm12584_vm7, %v1318_v19, %v1322_v43  ;;  %v1149_v30 = vor.u32 %v1148_v21, %v1145_v45  ;;  %v1152_v35 = vshll.u32 %v922_v28, 16  ;;  %v1156_v36 = vshrl.u32 %v922_v28, 16  ;;  %v12164_v43 = vld [vmem:[%s16436_s1 + $0x1b8] sm:$0xff]  ;;  %3528 = vmatpush.bf16.msrb.mxu1 %v12135_v1  ;;  %v2538_v17 = vld [vmem:[#allocation2 + $0x14] sm:$0x1] }
  0xfc   : > { %v1333_v33 = vsel %vm12584_vm7, %v1328_v23, %v1332_v15  ;;  %v1403_v34 = vunpack.c.l.b16 %v1323_v27  ;;  %v1164_v47 = vrot.slane %v1162_v32, 5  ;;  %v12172_v6 = vld [vmem:[%s16436_s1 + $0x1f8] sm:$0xff]  ;;  %v2590_v12 = vrot.slane %v2588_v60, 5  ;;  %3838 = vmatpush.bf16.msra.mxu2 %v12164_v43  ;;  %v12134_v15 = vld [vmem:[%s16436_s1 + $0x148] sm:$0xff] }
  0xfd   : > { %v1404_v37 = vunpack.c.l.b16 %v1333_v33  ;;  %v1150_v38 = vrot.slane %v1149_v30, 4  ;;  %v1154_v55 = vrot.slane %v1152_v35, 5  ;;  %v1158_v41 = vrot.slane %v1156_v36, 4  ;;  %4520 = vmatpush.bf16.msra.mxu3 %v12172_v6  ;;  %v12180_v16 = vld [vmem:[%s16436_s1 + $0x238] sm:$0xff]  ;;  %v3218_v35 = vld [vmem:[#allocation2 + $0xc] sm:$0xe] }
  0xfe   : > { %v938_v42 = vld [vmem:[#allocation2 + $0xb8] sm:$0xf]  ;;  %v2594_v13 = vshll.u32 %v12956_v0, 16  ;;  %v2598_v14 = vshrl.u32 %v12956_v0, 16  ;;  %4946 = vmatpush.bf16.msra.mxu0 %v12180_v16  ;;  %v2591_v27 = vor.u32 %v2590_v12, %v2587_v10  ;;  %v2604_v28 = vshll.u32 %v2538_v17, 16 }
  0xff   : > { %v1344_v56 = vshll.u32 %v938_v42, 16  ;;  %v1348_v62 = vshrl.u32 %v938_v42, 16  ;;  %v1421_v29 = vpack.c.b16 %v1404_v37, %v1403_v34  ;;  %v1159_v46 = vor.u32 %v1158_v41, %v1154_v55  ;;  %v937_v50 = vld [vmem:[#allocation2 + $0xb4] sm:$0xf]  ;;  %3529 = vmatpush.bf16.msrb.mxu1 %v12134_v15  ;;  %v2539_v40 = vld [vmem:[#allocation2 + $0x18] sm:$0xf] }
 0x100   : > { %1525 = vmatmul.bf16.gmra.mxu0 %v1413_v18  ;;  %v1155_v49 = vsel %vm12584_vm7, %v1150_v38, %v1154_v55  ;;  %v970_v57 = vld [vmem:[#allocation2 + $0xbc] sm:$0x1]  ;;  %v1335_v58 = vshrl.u32 %v937_v50, 16  ;;  %v1338_v59 = vshll.u32 %v937_v50, 16  ;;  %v2596_v19 = vrot.slane %v2594_v13, 5  ;;  %v12101_v13 = vld [vmem:[#allocation2 + $0xc] sm:$0xff] }
 0x101   : > { %1798 = vmatmul.bf16.gmra.mxu3 %v12075_v24  ;;  %v1346_v51 = vrot.slane %v1344_v56, 5  ;;  %v1350_v52 = vrot.slane %v1348_v62, 4  ;;  %v1160_v54 = vrot.slane %v1159_v46, 4  ;;  %v1354_v63 = vshll.u32 %v970_v57, 16  ;;  %v12076_v24 = vld [vmem:[#allocation2 + $0xb4] sm:$0xff] }
 0x102   : > { %1758 = vmatmul.bf16.gmra.mxu1 %v12067_v25  ;;  %v1389_v3 = vunpack.c.l.b16 %v1155_v49  ;;  %v1337_v4 = vrot.slane %v1335_v58, 4  ;;  %v1340_v5 = vrot.slane %v1338_v59, 5  ;;  %v2600_v21 = vrot.slane %v2598_v14, 4  ;;  %v12068_v25 = vld [vmem:[#allocation2 + $0x54] sm:$0xff]  ;;  %v12985_v44 = vld [vmem:[#allocation2 + $0x1c] sm:$0xf] }
 0x103   : > { %v1351_v61 = vor.u32 %v1350_v52, %v1346_v51  ;;  %v1165_v2 = vsel %vm12584_vm7, %v1160_v54, %v1164_v47  ;;  %v1356_v9 = vrot.slane %v1354_v63, 5  ;;  %v3284_v32 = vrot.slane %v12956_v0, 5  ;;  %3530 = vmatpush.bf16.msrb.mxu1 %v12133_v22  ;;  %v12330_v62 = vld [vmem:[#allocation2 + $0x4] sm:$0xf]  ;;  %v1809_v46 = vld [vmem:[#allocation2] sm:$0xe] }
 0x104   : > { %1565 = vmatmul.bf16.gmra.mxu2 %v1421_v29  ;;  %v1390_v7 = vunpack.c.l.b16 %v1165_v2  ;;  %v1341_v11 = vor.u32 %v1340_v5, %v1337_v4  ;;  %v2601_v30 = vor.u32 %v2600_v21, %v2596_v19  ;;  %vm1857_vm11 = vcmask 1042432   ;;  %v3219_v21 = vld [vmem:[#allocation2 + $0x18] sm:$0xe] }
 0x105   : > { %v1352_v8 = vrot.slane %v1351_v61, 4  ;;  %v2592_v36 = vrot.slane %v2591_v27, 4  ;;  %v2606_v38 = vrot.slane %v2604_v28, 5  ;;  %vm1858_vm12 = vcmask 1046532   ;;  %v12331_v61 = vld [vmem:[#allocation2 + $0x8] sm:$0x1] }
 0x106   : > { %v1342_v18 = vrot.slane %v1341_v11, 4  ;;  %v1414_v20 = vpack.c.b16 %v1390_v7, %v1389_v3  ;;  %v2602_v37 = vrot.slane %v2601_v30, 4  ;;  %v11112_v55 = vrot.slane %v3218_v35, 9  ;;  %vm12988_vm13 = vmor %vm1857_vm11, %vm1858_vm12  ;;  %v2541_v7 = vld [vmem:[#allocation2 + $0x20] sm:$0x1] }
 0x107   : > { %v1357_v45 = vsel %vm12584_vm7, %v1352_v8, %v1356_v9  ;;  %v3286_v41 = vrot.slane %v3284_v32, 4  ;;  %v3287_v42 = vrot.slane %v2538_v17, 5  ;;  %v1862_v29 = vrot.slane %v12330_v62, 5  ;;  %v13009_v27 = vld [vmem:[#allocation2 + $0x28] sm:$0xf] }
 0x108   : > { %v1347_v23 = vsel %vm12584_vm7, %v1342_v18, %v1346_v51  ;;  %v1406_v34 = vunpack.c.l.b16 %v1357_v45  ;;  %v2609_v47 = vshrl.u32 %v2539_v40, 16  ;;  %v2612_v49 = vshll.u32 %v2539_v40, 16  ;;  %v12332_v35 = vld [vmem:[#allocation2 + $0x10] sm:$0xf] }
 0x109   : > { %v1405_v33 = vunpack.c.l.b16 %v1347_v23  ;;  %v2597_v51 = vsel %vm12584_vm7, %v2592_v36, %v2596_v19  ;;  %v2607_v52 = vsel %vm12584_vm7, %v2602_v37, %v2606_v38  ;;  %v2618_v53 = vshll.u32 %v12985_v44, 16 }
 0x10a   : > { %v2622_v54 = vshrl.u32 %v12985_v44, 16  ;;  %v3285_v57 = vsel %vm12988_vm13, %v11112_v55, %v3284_v32  ;;  %v3288_v58 = vsel %vm12988_vm13, %v3286_v41, %v3287_v42  ;;  %v10888_v59 = vrot.slane %v1809_v46, 9 }
 0x10b   : > { %v1422_v56 = vpack.c.b16 %v1406_v34, %v1405_v33  ;;  %v1864_v60 = vrot.slane %v1862_v29, 4  ;;  %v1865_v63 = vrot.slane %v12331_v61, 5  ;;  %v2985_v0 = vunpack.c.l.b16 %v2597_v51  ;;  %v1810_v34 = vld [vmem:[#allocation2 + $0xc] sm:$0xe] }
 0x10c   : > { %v2986_v1 = vunpack.c.l.b16 %v2607_v52  ;;  %v2611_v2 = vrot.slane %v2609_v47, 4  ;;  %v2614_v3 = vrot.slane %v2612_v49, 5  ;;  %v3411_v4 = vunpack.c.l.b16 %v3285_v57  ;;  %v12333_v52 = vld [vmem:[#allocation2 + $0x14] sm:$0x1] }
 0x10d   : > { %v3412_v5 = vunpack.c.l.b16 %v3288_v58  ;;  %v2620_v43 = vrot.slane %v2618_v53, 5  ;;  %v2624_v6 = vrot.slane %v2622_v54, 4  ;;  %v1863_v8 = vsel %vm12988_vm13, %v10888_v59, %v1862_v29  ;;  %v12163_v57 = vld [vmem:[%s16436_s1 + $0x1b0] sm:$0xff] }
 0x10e   : > { %v1866_v9 = vsel %vm12988_vm13, %v1864_v60, %v1865_v63  ;;  %v3017_v10 = vpack.c.b16 %v2986_v1, %v2985_v0  ;;  %v2615_v11 = vor.u32 %v2614_v3, %v2611_v2  ;;  %v2628_v16 = vshll.u32 %v2541_v7, 16  ;;  %v12171_v58 = vld [vmem:[%s16436_s1 + $0x1f0] sm:$0xff]  ;;  %3839 = vmatpush.bf16.msra.mxu2 %v12163_v57  ;;  %v12335_v57 = vld [vmem:[#allocation2 + $0x20] sm:$0x1] }
 0x10f   : > { %v3443_v14 = vpack.c.b16 %v3412_v5, %v3411_v4  ;;  %v2625_v15 = vor.u32 %v2624_v6, %v2620_v43  ;;  %v3291_v18 = vrot.slane %v12985_v44, 5  ;;  %v1990_v45 = vunpack.c.l.b16 %v1866_v9  ;;  %4521 = vmatpush.bf16.msra.mxu3 %v12171_v58  ;;  %v2544_v5 = vld [vmem:[#allocation2 + $0x2c] sm:$0x1] }
 0x110   : > { %1530 = vmatmul.bf16.gmra.mxu0 %v1414_v20  ;;  %v1989_v20 = vunpack.c.l.b16 %v1863_v8  ;;  %v2616_v22 = vrot.slane %v2615_v11, 4  ;;  %v11113_v28 = vrot.slane %v3219_v21, 9  ;;  %v3294_v32 = vrot.slane %v2541_v7, 5  ;;  %v3220_v21 = vld [vmem:[#allocation2 + $0x24] sm:$0xe] }
 0x111   : > { %1803 = vmatmul.bf16.gmra.mxu3 %v12076_v24  ;;  %v2626_v23 = vrot.slane %v2625_v15, 4  ;;  %v2630_v24 = vrot.slane %v2628_v16, 5  ;;  %v3293_v30 = vrot.slane %v3291_v18, 4  ;;  %v1869_v36 = vrot.slane %v12332_v35, 5 }
 0x112   : > { %1763 = vmatmul.bf16.gmra.mxu1 %v12068_v25  ;;  %v2542_v25 = vld [vmem:[#allocation2 + $0x24] sm:$0xf]  ;;  %v2021_v33 = vpack.c.b16 %v1990_v45, %v1989_v20  ;;  %v2621_v38 = vsel %vm12584_vm7, %v2616_v22, %v2620_v43  ;;  %v2642_v41 = vshll.u32 %v13009_v27, 16  ;;  %v10889_v29 = vrot.slane %v1810_v34, 9  ;;  %v12179_v43 = vld [vmem:[%s16436_s1 + $0x230] sm:$0xff] }
 0x113   : > { %v2633_v40 = vshrl.u32 %v2542_v25, 16  ;;  %v2636_v55 = vshll.u32 %v2542_v25, 16  ;;  %v2631_v44 = vsel %vm12584_vm7, %v2626_v23, %v2630_v24  ;;  %v3292_v46 = vsel %vm12988_vm13, %v11113_v28, %v3291_v18  ;;  %4947 = vmatpush.bf16.msra.mxu0 %v12179_v43 }
 0x114   : > { %1570 = vmatmul.bf16.gmra.mxu2 %v1422_v56  ;;  %v2646_v56 = vshrl.u32 %v13009_v27, 16  ;;  %v3295_v47 = vsel %vm12988_vm13, %v3293_v30, %v3294_v32  ;;  %v1871_v51 = vrot.slane %v1869_v36, 4  ;;  %v1872_v53 = vrot.slane %v12333_v52, 5  ;;  %v2545_v30 = vld [vmem:[#allocation2 + $0x30] sm:$0xf] }
 0x115   : > { %v2987_v54 = vunpack.c.l.b16 %v2621_v38  ;;  %v2988_v60 = vunpack.c.l.b16 %v2631_v44  ;;  %v2635_v61 = vrot.slane %v2633_v40, 4  ;;  %v2638_v63 = vrot.slane %v2636_v55, 5  ;;  %v13043_v32 = vld [vmem:[#allocation2 + $0x34] sm:$0xf] }
 0x116   : > { %v2644_v0 = vrot.slane %v2642_v41, 5  ;;  %v3413_v2 = vunpack.c.l.b16 %v3292_v46  ;;  %v3414_v3 = vunpack.c.l.b16 %v3295_v47  ;;  %v2648_v4 = vrot.slane %v2646_v56, 4 }
 0x117   : > { %v1870_v7 = vsel %vm12988_vm13, %v10889_v29, %v1869_v36  ;;  %v1873_v8 = vsel %vm12988_vm13, %v1871_v51, %v1872_v53  ;;  %v3018_v9 = vpack.c.b16 %v2988_v60, %v2987_v54  ;;  %v2652_v15 = vshll.u32 %v2544_v5, 16  ;;  %v1811_v36 = vld [vmem:[#allocation2 + $0x18] sm:$0xe] }
 0x118   : > { %v1991_v20 = vunpack.c.l.b16 %v1870_v7  ;;  %v1992_v45 = vunpack.c.l.b16 %v1873_v8  ;;  %v2657_v41 = vshrl.u32 %v2545_v30, 16  ;;  %v2666_v44 = vshll.u32 %v13043_v32, 16 }
 0x119   : > { %v2654_v28 = vrot.slane %v2652_v15, 5  ;;  %v2670_v29 = vshrl.u32 %v13043_v32, 16  ;;  %v10890_v47 = vrot.slane %v1811_v36, 9  ;;  %v1879_v58 = vrot.slane %v12335_v57, 5 }
 0x11a   : > { %v2022_v35 = vpack.c.b16 %v1992_v45, %v1991_v20  ;;  %v3305_v20 = vrot.slane %v13043_v32, 5  ;;  %vm10052_vm14 = vcmask 1041408   ;;  %vm10565_vm15 = vcmask 1041409  }
 0x11b   : > { %v2672_v43 = vrot.slane %v2670_v29, 4  ;;  %vm10567_vm0 = vcmask 1042434   ;;  %vm10569_vm1 = vcmask 1043459   ;;  %vm10571_vm2 = vcmask 1044484  }
 0x11c   : > { %v3307_v36 = vrot.slane %v3305_v20, 4  ;;  %vm10573_vm3 = vcmask 1045509   ;;  %vm10575_vm4 = vcmask 1046534   ;;  %vm10577_vm5 = vcmask 1047559  }
 0x11d   : > { %v1496_v12 = vpop.f32.mrf.mxu0 }
 0x11f   : > { %v1729_v17 = vpop.f32.mrf.mxu1 }
 0x120   : > { %v13007_v19 = vadd.f32 %v1729_v17, %v1496_v12  ;;  %3105 = vmatmul.bf16.vlgmr.msrb.gmra.mxu0 %v3017_v10  ;;  %v2639_v10 = vor.u32 %v2638_v63, %v2635_v61  ;;  %v12102_v12 = vld [vmem:[#allocation2 + $0x18] sm:$0xff]  ;;  %v3298_v17 = vrot.slane %v13009_v27, 5  ;;  %v3301_v27 = vrot.slane %v2544_v5, 5 }
 0x121   : > { %2423 = vmatmul.bf16.vlgmr.msrb.gmra.mxu3 %v12101_v13  ;;  %v3444_v13 = vpack.c.b16 %v3414_v3, %v3413_v2  ;;  %v2659_v63 = vrot.slane %v2657_v41, 4  ;;  %v2668_v2 = vrot.slane %v2666_v44, 5 }
 0x122   : > { %3531 = vmatmul.bf16.vlgmr.msrb.gmra.mxu1 %v3443_v14  ;;  %v2649_v14 = vor.u32 %v2648_v4, %v2644_v0  ;;  %v2640_v23 = vrot.slane %v2639_v10, 4  ;;  %v3300_v34 = vrot.slane %v3298_v17, 4 }
 0x123   : > { %v2673_v15 = vor.u32 %v2672_v43, %v2668_v2 }
 0x124   : > { %v1769_v37 = vpop.f32.mrf.mxu3  ;;  %2109 = vmatmul.bf16.vlgmr.msrb.gmra.mxu2 %v2021_v33  ;;  %v2650_v25 = vrot.slane %v2649_v14, 4  ;;  %v11114_v33 = vrot.slane %v3220_v21, 9  ;;  %v2645_v55 = vsel %vm12584_vm7, %v2640_v23, %v2644_v0  ;;  %v3302_v52 = vsel %vm12988_vm13, %v3300_v34, %v3301_v27  ;;  %v3221_v23 = vld [vmem:[#allocation2 + $0x30] sm:$0xe]  ;;  %v2548_v27 = vld [vmem:[#allocation2 + $0x3c] sm:$0xf] }
 0x125   : > { %v1498_v42 = vpop.f32.mrf.mxu0  ;;  %v3416_v5 = vunpack.c.l.b16 %v3302_v52  ;;  %v2681_v44 = vshrl.u32 %v2548_v27, 16 }
 0x126   : > { %v1536_v59 = vpop.f32.mrf.mxu2  ;;  %v3299_v51 = vsel %vm12988_vm13, %v11114_v33, %v3298_v17  ;;  %v2674_v33 = vrot.slane %v2673_v15, 4 }
 0x127   : > { %v1731_v62 = vpop.f32.mrf.mxu1  ;;  %v13029_v1 = vadd.f32 %v1769_v37, %v1536_v59  ;;  %v12334_v37 = vld [vmem:[#allocation2 + $0x1c] sm:$0xf]  ;;  %v2989_v59 = vunpack.c.l.b16 %v2645_v55  ;;  %v3415_v4 = vunpack.c.l.b16 %v3299_v51  ;;  %v2683_v43 = vrot.slane %v2681_v44, 4 }
 0x128   : > { %v13021_v49 = vadd.f32 %v1731_v62, %v1498_v42  ;;  %v1876_v38 = vrot.slane %v12334_v37, 5  ;;  %v2660_v42 = vshll.u32 %v2545_v30, 16  ;;  %v2655_v62 = vsel %vm12584_vm7, %v2650_v25, %v2654_v28 }
 0x129   : > { %v2990_v61 = vunpack.c.l.b16 %v2655_v62 }
 0x12a   : > { %v1878_v54 = vrot.slane %v1876_v38, 4  ;;  %v2662_v0 = vrot.slane %v2660_v42, 5  ;;  %v1877_v8 = vsel %vm12988_vm13, %v10890_v47, %v1876_v38  ;;  %v13068_v38 = vld [vmem:[#allocation2 + $0x40] sm:$0xf]  ;;  %v1812_v42 = vld [vmem:[#allocation2 + $0x24] sm:$0xe] }
 0x12b   : > { %v3019_v10 = vpack.c.b16 %v2990_v61, %v2989_v59  ;;  %v1993_v21 = vunpack.c.l.b16 %v1877_v8  ;;  %v2690_v47 = vshll.u32 %v13068_v38, 16  ;;  %v2694_v51 = vshrl.u32 %v13068_v38, 16  ;;  %v12337_v61 = vld [vmem:[#allocation2 + $0x2c] sm:$0x1] }
 0x12c   : > { %v1771_v6 = vpop.f32.mrf.mxu3  ;;  %v2663_v14 = vor.u32 %v2662_v0, %v2659_v63  ;;  %v10891_v59 = vrot.slane %v1812_v42, 9  ;;  %v1886_v63 = vrot.slane %v12337_v61, 5  ;;  %v12162_v0 = vld [vmem:[%s16436_s1 + $0x1a8] sm:$0xff] }
 0x12d   : > { %v1501_v11 = vpop.f32.mrf.mxu0  ;;  %3840 = vmatpush.bf16.msra.mxu2 %v12162_v0  ;;  %v2551_v42 = vld [vmem:[#allocation2 + $0x48] sm:$0xf] }
 0x12e   : > { %v1538_v22 = vpop.f32.mrf.mxu2  ;;  %v2664_v30 = vrot.slane %v2663_v14, 4  ;;  %v12178_v14 = vld [vmem:[%s16436_s1 + $0x228] sm:$0xff] }
 0x12f   : > { %v1734_v16 = vpop.f32.mrf.mxu1  ;;  %v13041_v24 = vadd.f32 %v1771_v6, %v1538_v22  ;;  %v2547_v6 = vld [vmem:[#allocation2 + $0x38] sm:$0x1]  ;;  %4948 = vmatpush.bf16.msra.mxu0 %v12178_v14 }
 0x130   : > { %v13039_v18 = vadd.f32 %v1734_v16, %v1501_v11  ;;  %3110 = vmatmul.bf16.gmra.mxu0 %v3018_v9  ;;  %v1880_v9 = vsel %vm12988_vm13, %v1878_v54, %v1879_v58  ;;  %v2676_v16 = vshll.u32 %v2547_v6, 16  ;;  %v3308_v37 = vrot.slane %v2547_v6, 5 }
 0x131   : > { %2428 = vmatmul.bf16.gmra.mxu3 %v12102_v12  ;;  %v12103_v12 = vld [vmem:[#allocation2 + $0x24] sm:$0xff]  ;;  %v1994_v22 = vunpack.c.l.b16 %v1880_v9  ;;  %v2669_v29 = vsel %vm12584_vm7, %v2664_v30, %v2668_v2  ;;  %v2692_v9 = vrot.slane %v2690_v47, 5 }
 0x132   : > { %3536 = vmatmul.bf16.gmra.mxu1 %v3444_v13  ;;  %v3445_v13 = vpack.c.b16 %v3416_v5, %v3415_v4  ;;  %v2678_v34 = vrot.slane %v2676_v16, 5  ;;  %v3309_v57 = vsel %vm12988_vm13, %v3307_v36, %v3308_v37  ;;  %v12170_v2 = vld [vmem:[%s16436_s1 + $0x1e8] sm:$0xff]  ;;  %v2991_v4 = vunpack.c.l.b16 %v2669_v29 }
 0x133   : > { %v2023_v32 = vpack.c.b16 %v1994_v22, %v1993_v21  ;;  %v3418_v8 = vunpack.c.l.b16 %v3309_v57  ;;  %4522 = vmatpush.bf16.msra.mxu3 %v12170_v2  ;;  %v12104_v22 = vld [vmem:[#allocation2 + $0x30] sm:$0xff] }
 0x134   : > { %v1774_v40 = vpop.f32.mrf.mxu3  ;;  %2114 = vmatmul.bf16.gmra.mxu2 %v2022_v35  ;;  %v11115_v35 = vrot.slane %v3221_v23, 9  ;;  %v1813_v57 = vld [vmem:[#allocation2 + $0x30] sm:$0xe] }
 0x135   : > { %v1503_v56 = vpop.f32.mrf.mxu0 }
 0x136   : > { %v1541_v60 = vpop.f32.mrf.mxu2  ;;  %v3306_v54 = vsel %vm12988_vm13, %v11115_v35, %v3305_v20 }
 0x137   : > { %v1736_v46 = vpop.f32.mrf.mxu1  ;;  %v13057_v3 = vadd.f32 %v1774_v40, %v1541_v60  ;;  %v12336_v40 = vld [vmem:[#allocation2 + $0x28] sm:$0xf] }
 0x138   : > { %v13055_v53 = vadd.f32 %v1736_v46, %v1503_v56  ;;  %v1883_v55 = vrot.slane %v12336_v40, 5  ;;  %v2684_v56 = vshll.u32 %v2548_v27, 16  ;;  %v2679_v46 = vsel %vm12584_vm7, %v2674_v33, %v2678_v34 }
 0x139   : > { %v2992_v5 = vunpack.c.l.b16 %v2679_v46  ;;  %v3312_v27 = vrot.slane %v13068_v38, 5  ;;  %v13100_v46 = vld [vmem:[#allocation2 + $0x4c] sm:$0xf] }
 0x13a   : > { %v1885_v60 = vrot.slane %v1883_v55, 4  ;;  %v2686_v6 = vrot.slane %v2684_v56, 5  ;;  %v1884_v16 = vsel %vm12988_vm13, %v10891_v59, %v1883_v55  ;;  %v2705_v59 = vshrl.u32 %v2551_v42, 16 }
 0x13b   : > { %v3020_v20 = vpack.c.b16 %v2992_v5, %v2991_v4  ;;  %v1995_v36 = vunpack.c.l.b16 %v1884_v16  ;;  %v2714_v2 = vshll.u32 %v13100_v46, 16  ;;  %v2718_v4 = vshrl.u32 %v13100_v46, 16 }
 0x13c   : > { %v1776_v7 = vpop.f32.mrf.mxu3 }
 0x13d   : > { %v1506_v11 = vpop.f32.mrf.mxu0 }
 0x13e   : > { %v1543_v25 = vpop.f32.mrf.mxu2 }
 0x13f   : > { %v1739_v17 = vpop.f32.mrf.mxu1  ;;  %v13066_v28 = vadd.f32 %v1776_v7, %v1543_v25  ;;  %v3417_v7 = vunpack.c.l.b16 %v3306_v54  ;;  %v2687_v25 = vor.u32 %v2686_v6, %v2683_v43 }
 0x140   : > { %v13064_v45 = vadd.f32 %v1739_v17, %v1506_v11  ;;  %3115 = vmatmul.bf16.gmra.mxu0 %v3019_v10  ;;  %v2696_v10 = vrot.slane %v2694_v51, 4  ;;  %v1887_v17 = vsel %vm12988_vm13, %v1885_v60, %v1886_v63  ;;  %v12338_v51 = vld [vmem:[#allocation2 + $0x34] sm:$0xf]  ;;  %v2708_v60 = vshll.u32 %v2551_v42, 16 }
 0x141   : > { %2433 = vmatmul.bf16.gmra.mxu3 %v12103_v12  ;;  %v2550_v12 = vld [vmem:[#allocation2 + $0x44] sm:$0x1]  ;;  %v3446_v23 = vpack.c.b16 %v3418_v8, %v3417_v7  ;;  %v1996_v37 = vunpack.c.l.b16 %v1887_v17  ;;  %v2688_v40 = vrot.slane %v2687_v25, 4  ;;  %v10892_v8 = vrot.slane %v1813_v57, 9  ;;  %v2553_v25 = vld [vmem:[#allocation2 + $0x50] sm:$0x1] }
 0x142   : > { %3541 = vmatmul.bf16.gmra.mxu1 %v3445_v13  ;;  %v2697_v30 = vor.u32 %v2696_v10, %v2692_v9  ;;  %v2700_v33 = vshll.u32 %v2550_v12, 16  ;;  %v3315_v29 = vrot.slane %v2550_v12, 5  ;;  %v2710_v16 = vrot.slane %v2708_v60, 5 }
 0x143   : > { %v2024_v38 = vpack.c.b16 %v1996_v37, %v1995_v36  ;;  %v2693_v63 = vsel %vm12584_vm7, %v2688_v40, %v2692_v9  ;;  %v12339_v9 = vld [vmem:[#allocation2 + $0x38] sm:$0x1]  ;;  %v2724_v42 = vshll.u32 %v2553_v25, 16 }
 0x144   : > { %v1779_v41 = vpop.f32.mrf.mxu3  ;;  %2119 = vmatmul.bf16.gmra.mxu2 %v2023_v32  ;;  %v3222_v32 = vld [vmem:[#allocation2 + $0x3c] sm:$0xe]  ;;  %v2698_v55 = vrot.slane %v2697_v30, 4  ;;  %v2993_v12 = vunpack.c.l.b16 %v2693_v63 }
 0x145   : > { %v1508_v62 = vpop.f32.mrf.mxu0  ;;  %v11116_v56 = vrot.slane %v3222_v32, 9  ;;  %v12105_v32 = vld [vmem:[#allocation2 + $0x3c] sm:$0xff]  ;;  %v2726_v57 = vrot.slane %v2724_v42, 5 }
 0x147   : > { %v1741_v52 = vpop.f32.mrf.mxu1  ;;  %v1546_v11 = vpop.f32.mrf.mxu2  ;;  %v3313_v43 = vsel %vm12988_vm13, %v11116_v56, %v3312_v27  ;;  %v3319_v56 = vrot.slane %v13100_v46, 5 }
 0x148   : > { %v13080_v58 = vadd.f32 %v1741_v52, %v1508_v62  ;;  %v13088_v13 = vadd.f32 %v1779_v41, %v1546_v11  ;;  %v2702_v41 = vrot.slane %v2700_v33, 5  ;;  %v3314_v62 = vrot.slane %v3312_v27, 4 }
 0x149   : > { %v1890_v52 = vrot.slane %v12338_v51, 5  ;;  %v1893_v11 = vrot.slane %v12339_v9, 5  ;;  %v3419_v17 = vunpack.c.l.b16 %v3313_v43  ;;  %v3223_v51 = vld [vmem:[#allocation2 + $0x48] sm:$0xe]  ;;  %v3321_v63 = vrot.slane %v3319_v56, 4 }
 0x14a   : > { %v2703_v0 = vsel %vm12584_vm7, %v2698_v55, %v2702_v41  ;;  %v3316_v6 = vsel %vm12988_vm13, %v3314_v62, %v3315_v29 }
 0x14b   : > { %v1892_v10 = vrot.slane %v1890_v52, 4  ;;  %v2994_v14 = vunpack.c.l.b16 %v2703_v0  ;;  %v3322_v0 = vrot.slane %v2553_v25, 5 }
 0x14c   : > { %v1781_v15 = vpop.f32.mrf.mxu3 }
 0x14d   : > { %v1511_v21 = vpop.f32.mrf.mxu0  ;;  %v1894_v27 = vsel %vm12988_vm13, %v1892_v10, %v1893_v11  ;;  %v3021_v36 = vpack.c.b16 %v2994_v14, %v2993_v12 }
 0x14f   : > { %v1744_v34 = vpop.f32.mrf.mxu1  ;;  %v1548_v44 = vpop.f32.mrf.mxu2 }
 0x150   : > { %v13098_v35 = vadd.f32 %v1744_v34, %v1511_v21  ;;  %3120 = vmatmul.bf16.gmra.mxu0 %v3020_v20  ;;  %v13102_v47 = vadd.f32 %v1781_v15, %v1548_v44  ;;  %v2707_v15 = vrot.slane %v2705_v59, 4  ;;  %v3420_v20 = vunpack.c.l.b16 %v3316_v6  ;;  %v2554_v59 = vld [vmem:[#allocation2 + $0x54] sm:$0xf] }
 0x151   : > { %2438 = vmatmul.bf16.gmra.mxu3 %v12104_v22  ;;  %v2716_v21 = vrot.slane %v2714_v2, 5  ;;  %v2720_v22 = vrot.slane %v2718_v4, 4  ;;  %v1891_v34 = vsel %vm12988_vm13, %v10892_v8, %v1890_v52  ;;  %v13125_v2 = vld [vmem:[#allocation2 + $0x58] sm:$0xf]  ;;  %v1814_v8 = vld [vmem:[#allocation2 + $0x3c] sm:$0xe] }
 0x152   : > { %3546 = vmatmul.bf16.gmra.mxu1 %v3446_v23  ;;  %v3447_v40 = vpack.c.b16 %v3420_v20, %v3419_v17  ;;  %v2711_v55 = vor.u32 %v2710_v16, %v2707_v15  ;;  %v1997_v29 = vunpack.c.l.b16 %v1891_v34  ;;  %v2729_v10 = vshrl.u32 %v2554_v59, 16 }
 0x153   : > { %v2721_v41 = vor.u32 %v2720_v22, %v2716_v21  ;;  %v2732_v9 = vshll.u32 %v2554_v59, 16  ;;  %v2738_v15 = vshll.u32 %v13125_v2, 16  ;;  %v2742_v16 = vshrl.u32 %v13125_v2, 16 }
 0x154   : > { %v1784_v54 = vpop.f32.mrf.mxu3  ;;  %2124 = vmatmul.bf16.gmra.mxu2 %v2024_v38  ;;  %v1998_v38 = vunpack.c.l.b16 %v1894_v27  ;;  %v2712_v52 = vrot.slane %v2711_v55, 4  ;;  %v3323_v22 = vsel %vm12988_vm13, %v3321_v63, %v3322_v0  ;;  %v10893_v25 = vrot.slane %v1814_v8, 9  ;;  %v12161_v27 = vld [vmem:[%s16436_s1 + $0x1a0] sm:$0xff]  ;;  %v12106_v63 = vld [vmem:[#allocation2 + $0x48] sm:$0xff] }
 0x155   : > { %v1513_v61 = vpop.f32.mrf.mxu0  ;;  %v2734_v55 = vrot.slane %v2732_v9, 5  ;;  %v3422_v42 = vunpack.c.l.b16 %v3323_v22  ;;  %3841 = vmatpush.bf16.msra.mxu2 %v12161_v27  ;;  %v12342_v27 = vld [vmem:[#allocation2 + $0x4c] sm:$0xf] }
 0x156   : > { %v2025_v46 = vpack.c.b16 %v1998_v38, %v1997_v29  ;;  %v2717_v12 = vsel %vm12584_vm7, %v2712_v52, %v2716_v21  ;;  %v12341_v21 = vld [vmem:[#allocation2 + $0x44] sm:$0x1]  ;;  %v2556_v38 = vld [vmem:[#allocation2 + $0x5c] sm:$0x1] }
 0x157   : > { %v1746_v5 = vpop.f32.mrf.mxu1  ;;  %v1551_v23 = vpop.f32.mrf.mxu2  ;;  %v1900_v34 = vrot.slane %v12341_v21, 5  ;;  %v12177_v52 = vld [vmem:[%s16436_s1 + $0x220] sm:$0xff]  ;;  %v2748_v8 = vshll.u32 %v2556_v38, 16 }
 0x158   : > { %v13114_v7 = vadd.f32 %v1746_v5, %v1513_v61  ;;  %v13116_v30 = vadd.f32 %v1784_v54, %v1551_v23  ;;  %v2722_v54 = vrot.slane %v2721_v41, 4  ;;  %v11117_v61 = vrot.slane %v3223_v51, 9  ;;  %v12340_v5 = vld [vmem:[#allocation2 + $0x40] sm:$0xf]  ;;  %4949 = vmatpush.bf16.msra.mxu0 %v12177_v52  ;;  %v13159_v21 = vld [vmem:[#allocation2 + $0x64] sm:$0xf] }
 0x159   : > { %v1897_v43 = vrot.slane %v12340_v5, 5 }
 0x15a   : > { %v2727_v14 = vsel %vm12584_vm7, %v2722_v54, %v2726_v57  ;;  %v3320_v20 = vsel %vm12988_vm13, %v11117_v61, %v3319_v56  ;;  %v2744_v56 = vrot.slane %v2742_v16, 4  ;;  %v2750_v16 = vrot.slane %v2748_v8, 5 }
 0x15b   : > { %v3421_v41 = vunpack.c.l.b16 %v3320_v20  ;;  %v1898_v57 = vsel %vm12988_vm13, %v10893_v25, %v1897_v43 }
 0x15c   : > { %v1786_v33 = vpop.f32.mrf.mxu3 }
 0x15d   : > { %v1516_v37 = vpop.f32.mrf.mxu0  ;;  %v3448_v0 = vpack.c.b16 %v3422_v42, %v3421_v41 }
 0x15f   : > { %v1749_v44 = vpop.f32.mrf.mxu1  ;;  %v1553_v60 = vpop.f32.mrf.mxu2 }
 0x160   : > { %v13123_v62 = vadd.f32 %v1749_v44, %v1516_v37  ;;  %3125 = vmatmul.bf16.gmra.mxu0 %v3021_v36  ;;  %v13127_v4 = vadd.f32 %v1786_v33, %v1553_v60  ;;  %v1899_v33 = vrot.slane %v1897_v43, 4  ;;  %v12169_v36 = vld [vmem:[%s16436_s1 + $0x1e0] sm:$0xff]  ;;  %v2995_v37 = vunpack.c.l.b16 %v2717_v12 }
 0x161   : > { %2443 = vmatmul.bf16.gmra.mxu3 %v12105_v32  ;;  %v2996_v32 = vunpack.c.l.b16 %v2727_v14  ;;  %v2740_v44 = vrot.slane %v2738_v15, 5  ;;  %v3224_v14 = vld [vmem:[#allocation2 + $0x54] sm:$0xe] }
 0x162   : > { %3551 = vmatmul.bf16.gmra.mxu1 %v3447_v40  ;;  %v2731_v40 = vrot.slane %v2729_v10, 4  ;;  %4523 = vmatpush.bf16.msra.mxu3 %v12169_v36  ;;  %v1901_v59 = vsel %vm12988_vm13, %v1899_v33, %v1900_v34  ;;  %v3326_v10 = vrot.slane %v13125_v2, 5  ;;  %v11118_v22 = vrot.slane %v3224_v14, 9 }
 0x163   : > { %v3022_v60 = vpack.c.b16 %v2996_v32, %v2995_v37  ;;  %v2745_v5 = vor.u32 %v2744_v56, %v2740_v44  ;;  %v2000_v12 = vunpack.c.l.b16 %v1901_v59  ;;  %v3329_v33 = vrot.slane %v2556_v38, 5  ;;  %v1815_v32 = vld [vmem:[#allocation2 + $0x48] sm:$0xe] }
 0x164   : > { %v1789_v6 = vpop.f32.mrf.mxu3  ;;  %2129 = vmatmul.bf16.gmra.mxu2 %v2025_v46  ;;  %v2735_v46 = vor.u32 %v2734_v55, %v2731_v40  ;;  %v3328_v25 = vrot.slane %v3326_v10, 4  ;;  %v1904_v36 = vrot.slane %v12342_v27, 5  ;;  %v2766_v38 = vshrl.u32 %v13159_v21, 16 }
 0x165   : > { %v1518_v11 = vpop.f32.mrf.mxu0  ;;  %v2746_v15 = vrot.slane %v2745_v5, 4 }
 0x166   : > { %v2736_v43 = vrot.slane %v2735_v46, 4  ;;  %v2768_v14 = vrot.slane %v2766_v38, 4 }
 0x167   : > { %v1751_v17 = vpop.f32.mrf.mxu1  ;;  %v1556_v29 = vpop.f32.mrf.mxu2  ;;  %v2751_v56 = vsel %vm12584_vm7, %v2746_v15, %v2750_v16 }
 0x168   : > { %v13139_v23 = vadd.f32 %v1751_v17, %v1518_v11  ;;  %v13147_v51 = vadd.f32 %v1789_v6, %v1556_v29  ;;  %v1999_v11 = vunpack.c.l.b16 %v1898_v57  ;;  %v2557_v17 = vld [vmem:[#allocation2 + $0x60] sm:$0xf]  ;;  %v2741_v42 = vsel %vm12584_vm7, %v2736_v43, %v2740_v44  ;;  %v12343_v44 = vld [vmem:[#allocation2 + $0x50] sm:$0x1] }
 0x169   : > { %v2753_v40 = vshrl.u32 %v2557_v17, 16  ;;  %v2756_v55 = vshll.u32 %v2557_v17, 16  ;;  %v2762_v29 = vshll.u32 %v13159_v21, 16  ;;  %v3330_v57 = vsel %vm12988_vm13, %v3328_v25, %v3329_v33  ;;  %v12107_v33 = vld [vmem:[#allocation2 + $0x54] sm:$0xff] }
 0x16a   : > { %v2026_v2 = vpack.c.b16 %v2000_v12, %v1999_v11  ;;  %v2998_v46 = vunpack.c.l.b16 %v2751_v56  ;;  %v3424_v11 = vunpack.c.l.b16 %v3330_v57 }
 0x16b   : > { %v2755_v5 = vrot.slane %v2753_v40, 4  ;;  %v2758_v8 = vrot.slane %v2756_v55, 5  ;;  %v2764_v12 = vrot.slane %v2762_v29, 5  ;;  %v3225_v29 = vld [vmem:[#allocation2 + $0x60] sm:$0xe] }
 0x16c   : > { %v1791_v54 = vpop.f32.mrf.mxu3 }
 0x16d   : > { %v1521_v61 = vpop.f32.mrf.mxu0  ;;  %v2759_v27 = vor.u32 %v2758_v8, %v2755_v5 }
 0x16f   : > { %v1754_v6 = vpop.f32.mrf.mxu1  ;;  %v1558_v20 = vpop.f32.mrf.mxu2 }
 0x170   : > { %v13157_v9 = vadd.f32 %v1754_v6, %v1521_v61  ;;  %3130 = vmatmul.bf16.gmra.mxu0 %v3022_v60  ;;  %v13161_v34 = vadd.f32 %v1791_v54, %v1558_v20  ;;  %v3327_v54 = vsel %vm12988_vm13, %v11118_v22, %v3326_v10  ;;  %v10894_v60 = vrot.slane %v1815_v32, 9  ;;  %v2559_v10 = vld [vmem:[#allocation2 + $0x68] sm:$0x1] }
 0x171   : > { %2448 = vmatmul.bf16.gmra.mxu3 %v12106_v63  ;;  %v1906_v61 = vrot.slane %v1904_v36, 4  ;;  %v1907_v63 = vrot.slane %v12343_v44, 5  ;;  %v3423_v6 = vunpack.c.l.b16 %v3327_v54  ;;  %v2769_v32 = vor.u32 %v2768_v14, %v2764_v12  ;;  %v2560_v54 = vld [vmem:[#allocation2 + $0x6c] sm:$0xf] }
 0x172   : > { %3556 = vmatmul.bf16.gmra.mxu1 %v3448_v0  ;;  %v2997_v0 = vunpack.c.l.b16 %v2741_v42  ;;  %v1905_v17 = vsel %vm12988_vm13, %v10894_v60, %v1904_v36  ;;  %v2772_v40 = vshll.u32 %v2559_v10, 16  ;;  %v2760_v36 = vrot.slane %v2759_v27, 4 }
 0x173   : > { %v1908_v20 = vsel %vm12988_vm13, %v1906_v61, %v1907_v63  ;;  %v2770_v38 = vrot.slane %v2769_v32, 4  ;;  %v11119_v60 = vrot.slane %v3225_v29, 9  ;;  %v3336_v44 = vrot.slane %v2559_v10, 5  ;;  %v13184_v63 = vld [vmem:[#allocation2 + $0x70] sm:$0xf] }
 0x174   : > { %v1794_v37 = vpop.f32.mrf.mxu3  ;;  %2134 = vmatmul.bf16.gmra.mxu2 %v2026_v2  ;;  %v3023_v22 = vpack.c.b16 %v2998_v46, %v2997_v0  ;;  %v3449_v2 = vpack.c.b16 %v3424_v11, %v3423_v6  ;;  %v2002_v56 = vunpack.c.l.b16 %v1908_v20  ;;  %v12344_v46 = vld [vmem:[#allocation2 + $0x58] sm:$0xf]  ;;  %v1816_v6 = vld [vmem:[#allocation2 + $0x54] sm:$0xe]  ;;  %v2777_v11 = vshrl.u32 %v2560_v54, 16 }
 0x175   : > { %v1523_v41 = vpop.f32.mrf.mxu0  ;;  %v1911_v5 = vrot.slane %v12344_v46, 5  ;;  %v2780_v14 = vshll.u32 %v2560_v54, 16  ;;  %v2786_v10 = vshll.u32 %v13184_v63, 16  ;;  %v10895_v27 = vrot.slane %v1816_v6, 9 }
 0x176   : > { %v2779_v29 = vrot.slane %v2777_v11, 4 }
 0x177   : > { %v1756_v52 = vpop.f32.mrf.mxu1  ;;  %v1561_v43 = vpop.f32.mrf.mxu2  ;;  %v1913_v32 = vrot.slane %v1911_v5, 4  ;;  %v2788_v54 = vrot.slane %v2786_v10, 5  ;;  %v1912_v46 = vsel %vm12988_vm13, %v10895_v27, %v1911_v5 }
 0x178   : > { %v13173_v59 = vadd.f32 %v1756_v52, %v1523_v41  ;;  %v13175_v15 = vadd.f32 %v1794_v37, %v1561_v43  ;;  %v3333_v41 = vrot.slane %v13159_v21, 5  ;;  %v2001_v37 = vunpack.c.l.b16 %v1905_v17 }
 0x179   : > { %v2774_v52 = vrot.slane %v2772_v40, 5  ;;  %v2765_v17 = vsel %vm12584_vm7, %v2760_v36, %v2764_v12  ;;  %v12345_v12 = vld [vmem:[#allocation2 + $0x5c] sm:$0x1]  ;;  %v2782_v36 = vrot.slane %v2780_v14, 5  ;;  %v12108_v14 = vld [vmem:[#allocation2 + $0x60] sm:$0xff] }
 0x17a   : > { %16458 = vst [vmem:[#allocation4_spill] sm:$0xff] %v13175_v15  ;;  %v3335_v61 = vrot.slane %v3333_v41, 4  ;;  %v2027_v21 = vpack.c.b16 %v2002_v56, %v2001_v37  ;;  %v1914_v40 = vrot.slane %v12345_v12, 5  ;;  %v12168_v37 = vld [vmem:[%s16436_s1 + $0x1d8] sm:$0xff]  ;;  %v2999_v56 = vunpack.c.l.b16 %v2765_v17  ;;  %v13266_v15 = vld [vmem:[#allocation2 + $0x8c] sm:$0x1] }
 0x17b   : > { %v2775_v20 = vsel %vm12584_vm7, %v2770_v38, %v2774_v52  ;;  %4524 = vmatpush.bf16.msra.mxu3 %v12168_v37  ;;  %v2563_v37 = vld [vmem:[#allocation2 + $0x78] sm:$0xf] }
 0x17c   : > { %v1796_v16 = vpop.f32.mrf.mxu3  ;;  %v1915_v6 = vsel %vm12988_vm13, %v1913_v32, %v1914_v40  ;;  %v12176_v40 = vld [vmem:[%s16436_s1 + $0x218] sm:$0xff] }
 0x17d   : > { %v1526_v25 = vpop.f32.mrf.mxu0  ;;  %v2004_v12 = vunpack.c.l.b16 %v1915_v6  ;;  %4950 = vmatpush.bf16.msra.mxu0 %v12176_v40  ;;  %v1817_v6 = vld [vmem:[#allocation2 + $0x60] sm:$0xe] }
 0x17f   : > { %v1759_v55 = vpop.f32.mrf.mxu1  ;;  %v1563_v57 = vpop.f32.mrf.mxu2 }
 0x180   : > { %v13182_v42 = vadd.f32 %v1759_v55, %v1526_v25  ;;  %3135 = vmatmul.bf16.gmra.mxu0 %v3023_v22  ;;  %v13186_v0 = vadd.f32 %v1796_v16, %v1563_v57  ;;  %v2790_v22 = vshrl.u32 %v13184_v63, 16  ;;  %v3334_v25 = vsel %vm12988_vm13, %v11119_v60, %v3333_v41  ;;  %v12160_v55 = vld [vmem:[%s16436_s1 + $0x198] sm:$0xff] }
 0x181   : > { %2453 = vmatmul.bf16.gmra.mxu3 %v12107_v33  ;;  %v3337_v33 = vsel %vm12988_vm13, %v3335_v61, %v3336_v44  ;;  %v3000_v41 = vunpack.c.l.b16 %v2775_v20  ;;  %v3425_v38 = vunpack.c.l.b16 %v3334_v25  ;;  %3842 = vmatpush.bf16.msra.mxu2 %v12160_v55  ;;  %v2562_v61 = vld [vmem:[#allocation2 + $0x74] sm:$0x1]  ;;  %v2783_v20 = vor.u32 %v2782_v36, %v2779_v29  ;;  %v3226_v55 = vld [vmem:[#allocation2 + $0x6c] sm:$0xe]  ;;  %v13218_v36 = vld [vmem:[#allocation2 + $0x7c] sm:$0xf] }
 0x182   : > { %3561 = vmatmul.bf16.gmra.mxu1 %v3449_v2  ;;  %16459 = vst [vmem:[#allocation5_spill] sm:$0xff] %v13186_v0  ;;  %v3426_v52 = vunpack.c.l.b16 %v3337_v33  ;;  %v2792_v57 = vrot.slane %v2790_v22, 4  ;;  %v2796_v22 = vshll.u32 %v2562_v61, 16  ;;  %v3340_v25 = vrot.slane %v13184_v63, 5 }
 0x183   : > { %v2784_v5 = vrot.slane %v2783_v20, 4  ;;  %v3343_v63 = vrot.slane %v2562_v61, 5  ;;  %v2810_v61 = vshll.u32 %v13218_v36, 16 }
 0x184   : > { %v1799_v8 = vpop.f32.mrf.mxu3  ;;  %2139 = vmatmul.bf16.gmra.mxu2 %v2027_v21  ;;  %v3450_v17 = vpack.c.b16 %v3426_v52, %v3425_v38  ;;  %v2793_v10 = vor.u32 %v2792_v57, %v2788_v54  ;;  %v2798_v32 = vrot.slane %v2796_v22, 5  ;;  %v3342_v29 = vrot.slane %v3340_v25, 4  ;;  %v12346_v57 = vld [vmem:[#allocation2 + $0x64] sm:$0xf] }
 0x185   : > { %v1528_v43 = vpop.f32.mrf.mxu0 }
 0x186   : > { %v2794_v27 = vrot.slane %v2793_v10, 4 }
 0x187   : > { %v1761_v16 = vpop.f32.mrf.mxu1  ;;  %v1566_v60 = vpop.f32.mrf.mxu2 }
 0x188   : > { %v13198_v2 = vadd.f32 %v1761_v16, %v1528_v43  ;;  %v13206_v44 = vadd.f32 %v1799_v8, %v1566_v60  ;;  %v3024_v43 = vpack.c.b16 %v3000_v41, %v2999_v56  ;;  %v2003_v8 = vunpack.c.l.b16 %v1912_v46 }
 0x189   : > { %v11120_v41 = vrot.slane %v3226_v55, 9  ;;  %v1918_v60 = vrot.slane %v12346_v57, 5  ;;  %v2799_v20 = vsel %vm12584_vm7, %v2794_v27, %v2798_v32 }
 0x18a   : > { %16460 = vst [vmem:[#allocation6_spill] sm:$0xff] %v13206_v44  ;;  %v2028_v52 = vpack.c.b16 %v2004_v12, %v2003_v8  ;;  %v10896_v12 = vrot.slane %v1817_v6, 9  ;;  %v3002_v27 = vunpack.c.l.b16 %v2799_v20 }
 0x18b   : > { %v3341_v22 = vsel %vm12988_vm13, %v11120_v41, %v3340_v25  ;;  %v1920_v55 = vrot.slane %v1918_v60, 4  ;;  %v2565_v25 = vld [vmem:[#allocation2 + $0x80] sm:$0x1] }
 0x18c   : > { %v1801_v21 = vpop.f32.mrf.mxu3 }
 0x18d   : > { %v1531_v11 = vpop.f32.mrf.mxu0 }
 0x18f   : > { %v1764_v16 = vpop.f32.mrf.mxu1  ;;  %v1568_v56 = vpop.f32.mrf.mxu2 }
 0x190   : > { %v13213_v33 = vadd.f32 %v1764_v16, %v1531_v11  ;;  %3140 = vmatmul.bf16.gmra.mxu0 %v3024_v43  ;;  %v13220_v38 = vadd.f32 %v1801_v21, %v1568_v56  ;;  %v2801_v43 = vshrl.u32 %v2563_v37, 16  ;;  %v2804_v11 = vshll.u32 %v2563_v37, 16 }
 0x191   : > { %2458 = vmatmul.bf16.gmra.mxu3 %v12108_v14  ;;  %v2814_v21 = vshrl.u32 %v13218_v36, 16  ;;  %v3344_v16 = vsel %vm12988_vm13, %v3342_v29, %v3343_v63  ;;  %v3427_v56 = vunpack.c.l.b16 %v3341_v22  ;;  %v1919_v63 = vsel %vm12988_vm13, %v10896_v12, %v1918_v60  ;;  %v3227_v22 = vld [vmem:[#allocation2 + $0x78] sm:$0xe] }
 0x192   : > { %3566 = vmatmul.bf16.gmra.mxu1 %v3450_v17  ;;  %16461 = vst [vmem:[#allocation7_spill] sm:$0xff] %v13220_v38  ;;  %v2789_v17 = vsel %vm12584_vm7, %v2784_v5, %v2788_v54  ;;  %v12347_v54 = vld [vmem:[#allocation2 + $0x68] sm:$0x1]  ;;  %v2803_v32 = vrot.slane %v2801_v43, 4  ;;  %v2806_v37 = vrot.slane %v2804_v11, 5  ;;  %v3428_v57 = vunpack.c.l.b16 %v3344_v16  ;;  %v12109_v43 = vld [vmem:[#allocation2 + $0x6c] sm:$0xff] }
 0x193   : > { %v1921_v5 = vrot.slane %v12347_v54, 5  ;;  %v3001_v40 = vunpack.c.l.b16 %v2789_v17  ;;  %v2812_v38 = vrot.slane %v2810_v61, 5  ;;  %v2816_v44 = vrot.slane %v2814_v21, 4 }
 0x194   : > { %v1804_v46 = vpop.f32.mrf.mxu3  ;;  %2144 = vmatmul.bf16.gmra.mxu2 %v2028_v52  ;;  %v3451_v11 = vpack.c.b16 %v3428_v57, %v3427_v56  ;;  %v2807_v17 = vor.u32 %v2806_v37, %v2803_v32  ;;  %v2820_v61 = vshll.u32 %v2565_v25, 16 }
 0x195   : > { %v1533_v14 = vpop.f32.mrf.mxu0  ;;  %v1922_v52 = vsel %vm12988_vm13, %v1920_v55, %v1921_v5  ;;  %v3025_v6 = vpack.c.b16 %v3002_v27, %v3001_v40  ;;  %v2817_v20 = vor.u32 %v2816_v44, %v2812_v38  ;;  %v2566_v55 = vld [vmem:[#allocation2 + $0x84] sm:$0xf]  ;;  %v11121_v5 = vrot.slane %v3227_v22, 9  ;;  %v13245_v44 = vld [vmem:[#allocation2 + $0x88] sm:$0xf] }
 0x196   : > { %v2808_v60 = vrot.slane %v2807_v17, 4  ;;  %v2822_v12 = vrot.slane %v2820_v61, 5  ;;  %v3350_v27 = vrot.slane %v2565_v25, 5  ;;  %v2834_v25 = vshll.u32 %v13245_v44, 16 }
 0x197   : > { %v1766_v10 = vpop.f32.mrf.mxu1  ;;  %v1571_v0 = vpop.f32.mrf.mxu2  ;;  %v2818_v16 = vrot.slane %v2817_v20, 4 }
 0x198   : > { %v13232_v8 = vadd.f32 %v1766_v10, %v1533_v14  ;;  %v13234_v41 = vadd.f32 %v1804_v46, %v1571_v0  ;;  %v3347_v0 = vrot.slane %v13218_v36, 5  ;;  %v2005_v46 = vunpack.c.l.b16 %v1919_v63  ;;  %v12348_v36 = vld [vmem:[#allocation2 + $0x70] sm:$0xf]  ;;  %v1818_v63 = vld [vmem:[#allocation2 + $0x6c] sm:$0xe] }
 0x199   : > { %v2006_v10 = vunpack.c.l.b16 %v1922_v52  ;;  %v1925_v56 = vrot.slane %v12348_v36, 5  ;;  %v2825_v52 = vshrl.u32 %v2566_v55, 16  ;;  %v2823_v17 = vsel %vm12584_vm7, %v2818_v16, %v2822_v12 }
 0x19a   : > { %16462 = vst [vmem:[#allocation8_spill] sm:$0xff] %v13234_v41  ;;  %v3349_v40 = vrot.slane %v3347_v0, 4  ;;  %v3348_v61 = vsel %vm12988_vm13, %v11121_v5, %v3347_v0  ;;  %v3004_v12 = vunpack.c.l.b16 %v2823_v17  ;;  %v13268_v0 = vrot.slane %v2834_v25, 5 }
 0x19b   : > { %v2029_v37 = vpack.c.b16 %v2006_v10, %v2005_v46  ;;  %v10897_v10 = vrot.slane %v1818_v63, 9  ;;  %v1927_v22 = vrot.slane %v1925_v56, 4  ;;  %v2844_v25 = vshll.u32 %v13266_v15, 16 }
 0x19c   : > { %v1806_v29 = vpop.f32.mrf.mxu3  ;;  %v3351_v46 = vsel %vm12988_vm13, %v3349_v40, %v3350_v27  ;;  %v12167_v40 = vld [vmem:[%s16436_s1 + $0x1d0] sm:$0xff] }
 0x19d   : > { %v13240_v14 = vpop.f32.mrf.mxu0  ;;  %v3430_v41 = vunpack.c.l.b16 %v3351_v46  ;;  %v1926_v63 = vsel %vm12988_vm13, %v10897_v10, %v1925_v56  ;;  %4525 = vmatpush.bf16.msra.mxu3 %v12167_v40  ;;  %v12110_v46 = vld [vmem:[#allocation2 + $0x78] sm:$0xff] }
 0x19e   : > { %v2007_v56 = vunpack.c.l.b16 %v1926_v63 }
 0x19f   : > { %v13242_v21 = vpop.f32.mrf.mxu1  ;;  %v1573_v54 = vpop.f32.mrf.mxu2 }
 0x1a0   : > { %3145 = vmatmul.bf16.gmra.mxu0 %v3025_v6  ;;  %v13247_v32 = vadd.f32 %v1806_v29, %v1573_v54  ;;  %v2828_v6 = vshll.u32 %v2566_v55, 16  ;;  %v2838_v29 = vshrl.u32 %v13245_v44, 16  ;;  %v12349_v55 = vld [vmem:[#allocation2 + $0x74] sm:$0x1]  ;;  %v2827_v54 = vrot.slane %v2825_v52, 4 }
 0x1a1   : > { %2463 = vmatmul.bf16.gmra.mxu3 %v12109_v43 }
 0x1a2   : > { %3571 = vmatmul.bf16.gmra.mxu1 %v3451_v11  ;;  %16463 = vst [vmem:[#allocation9_spill] sm:$0xff] %v13247_v32  ;;  %v2813_v11 = vsel %vm12584_vm7, %v2808_v60, %v2812_v38  ;;  %v1928_v38 = vrot.slane %v12349_v55, 5  ;;  %v12159_v60 = vld [vmem:[%s16436_s1 + $0x190] sm:$0xff]  ;;  %v2830_v36 = vrot.slane %v2828_v6, 5  ;;  %v3429_v32 = vunpack.c.l.b16 %v3348_v61 }
 0x1a3   : > { %v3003_v16 = vunpack.c.l.b16 %v2813_v11  ;;  %v2840_v5 = vrot.slane %v2838_v29, 4  ;;  %3843 = vmatpush.bf16.msra.mxu2 %v12159_v60 }
 0x1a4   : > { %v2424_v57 = vpop.f32.mrf.mxu3  ;;  %2149 = vmatmul.bf16.gmra.mxu2 %v2029_v37  ;;  %v1929_v52 = vsel %vm12988_vm13, %v1927_v22, %v1928_v38  ;;  %v2831_v17 = vor.u32 %v2830_v36, %v2827_v54  ;;  %v3452_v55 = vpack.c.b16 %v3430_v41, %v3429_v32  ;;  %v3354_v38 = vrot.slane %v13245_v44, 5  ;;  %v3228_v54 = vld [vmem:[#allocation2 + $0x84] sm:$0xe]  ;;  %v1819_v41 = vld [vmem:[#allocation2 + $0x78] sm:$0xe]  ;;  %v12175_v44 = vld [vmem:[%s16436_s1 + $0x210] sm:$0xff] }
 0x1a5   : > { %v13249_v43 = vpop.f32.mrf.mxu0  ;;  %v3026_v11 = vpack.c.b16 %v3004_v12, %v3003_v16  ;;  %v2841_v60 = vor.u32 %v2840_v5, %v13268_v0  ;;  %v2008_v10 = vunpack.c.l.b16 %v1929_v52  ;;  %v12350_v12 = vld [vmem:[#allocation2 + $0x7c] sm:$0xf]  ;;  %v2846_v36 = vrot.slane %v2844_v25, 5  ;;  %4951 = vmatpush.bf16.msra.mxu0 %v12175_v44 }
 0x1a6   : > { %v2832_v32 = vrot.slane %v2831_v17, 4  ;;  %v11122_v52 = vrot.slane %v3228_v54, 9  ;;  %v3357_v17 = vrot.slane %v13266_v15, 5 }
 0x1a7   : > { %v13257_v20 = vpop.f32.mrf.mxu1  ;;  %v2110_v27 = vpop.f32.mrf.mxu2  ;;  %v2842_v40 = vrot.slane %v2841_v60, 4  ;;  %v2030_v63 = vpack.c.b16 %v2008_v10, %v2007_v56 }
 0x1a8   : > { %v2190_v37 = vadd.f32 %v2110_v27, %v13007_v19  ;;  %v12212_v19 = vld [vmem:[%s16439_s4 + $0x78] sm:$0xff]  ;;  %v2569_v27 = vld [vmem:[#allocation2 + $0x90] sm:$0xf]  ;;  %v3355_v44 = vsel %vm12988_vm13, %v11122_v52, %v3354_v38 }
 0x1a9   : > { %6213 = vmatpush.bf16.msra.mxu1 %v12212_v19  ;;  %v2837_v19 = vsel %vm12584_vm7, %v2832_v32, %v13268_v0  ;;  %v3431_v52 = vunpack.c.l.b16 %v3355_v44 }
 0x1aa   : > { %v2504_v29 = vadd.f32 %v2424_v57, %v2190_v37  ;;  %v1932_v57 = vrot.slane %v12350_v12, 5  ;;  %v2852_v12 = vshll.u32 %v2569_v27, 16 }
 0x1ac   : > { %v2426_v6 = vpop.f32.mrf.mxu3  ;;  %v3186_v16 = vadd.f32 %v13240_v14, %v2504_v29  ;;  %v13295_v14 = vld [vmem:[#allocation2 + $0x94] sm:$0xf]  ;;  %v1934_v29 = vrot.slane %v1932_v57, 4 }
 0x1ad   : > { %v13279_v61 = vpop.f32.mrf.mxu0  ;;  %v2858_v56 = vshll.u32 %v13295_v14, 16  ;;  %v2862_v15 = vshrl.u32 %v13295_v14, 16 }
 0x1ae   : > { %v13290_v5 = vadd.f32 %v13242_v21, %v3186_v16  ;;  %v10898_v21 = vrot.slane %v1819_v41, 9  ;;  %v2849_v16 = vshrl.u32 %v2569_v27, 16 }
 0x1af   : > { %v13285_v22 = vpop.f32.mrf.mxu1  ;;  %v2112_v37 = vpop.f32.mrf.mxu2 }
 0x1b0   : > { %3150 = vmatmul.bf16.gmra.mxu0 %v3026_v11  ;;  %16464 = vst [vmem:[#allocation10_spill] sm:$0xff] %v13290_v5  ;;  %v3356_v11 = vrot.slane %v3354_v38, 4  ;;  %v2191_v25 = vadd.f32 %v2112_v37, %v13021_v49  ;;  %v2847_v49 = vsel %vm12584_vm7, %v2842_v40, %v2846_v36  ;;  %v3005_v36 = vunpack.c.l.b16 %v2837_v19 }
 0x1b1   : > { %2468 = vmatmul.bf16.gmra.mxu3 %v12110_v46  ;;  %v12351_v46 = vld [vmem:[#allocation2 + $0x80] sm:$0x1]  ;;  %v3006_v40 = vunpack.c.l.b16 %v2847_v49  ;;  %v2851_v37 = vrot.slane %v2849_v16, 4 }
 0x1b2   : > { %3576 = vmatmul.bf16.gmra.mxu1 %v3452_v55  ;;  %v1935_v55 = vrot.slane %v12351_v46, 5  ;;  %v2505_v10 = vadd.f32 %v2426_v6, %v2191_v25  ;;  %v3358_v0 = vsel %vm12988_vm13, %v3356_v11, %v3357_v17  ;;  %v1933_v6 = vsel %vm12988_vm13, %v10898_v21, %v1932_v57 }
 0x1b3   : > { %v2854_v25 = vrot.slane %v2852_v12, 5  ;;  %v13319_v46 = vrot.slane %v2858_v56, 5  ;;  %v3432_v11 = vunpack.c.l.b16 %v3358_v0  ;;  %v2864_v17 = vrot.slane %v2862_v15, 4  ;;  %v12111_v12 = vld [vmem:[#allocation2 + $0x84] sm:$0xff] }
 0x1b4   : > { %v2429_v60 = vpop.f32.mrf.mxu3  ;;  %2154 = vmatmul.bf16.gmra.mxu2 %v2030_v63  ;;  %v3187_v32 = vadd.f32 %v13249_v43, %v2505_v10  ;;  %v1936_v27 = vsel %vm12988_vm13, %v1934_v29, %v1935_v55  ;;  %v2571_v63 = vld [vmem:[#allocation2 + $0x98] sm:$0x1]  ;;  %v2009_v21 = vunpack.c.l.b16 %v1933_v6  ;;  %v3027_v29 = vpack.c.b16 %v3006_v40, %v3005_v36 }
 0x1b5   : > { %v13303_v54 = vpop.f32.mrf.mxu0  ;;  %v2010_v5 = vunpack.c.l.b16 %v1936_v27  ;;  %v2868_v55 = vshll.u32 %v2571_v63, 16  ;;  %v3453_v56 = vpack.c.b16 %v3432_v11, %v3431_v52  ;;  %v2855_v49 = vor.u32 %v2854_v25, %v2851_v37  ;;  %v12352_v27 = vld [vmem:[#allocation2 + $0x88] sm:$0xf]  ;;  %v1820_v37 = vld [vmem:[#allocation2 + $0x84] sm:$0xe] }
 0x1b6   : > { %v13322_v38 = vadd.f32 %v13257_v20, %v3187_v32  ;;  %v2865_v20 = vor.u32 %v2864_v17, %v13319_v46  ;;  %v3361_v15 = vrot.slane %v13295_v14, 5  ;;  %v2572_v32 = vld [vmem:[#allocation2 + $0x9c] sm:$0xf]  ;;  %v1939_v36 = vrot.slane %v12352_v27, 5 }
 0x1b7   : > { %v13308_v41 = vpop.f32.mrf.mxu1  ;;  %v2115_v43 = vpop.f32.mrf.mxu2  ;;  %v2031_v6 = vpack.c.b16 %v2010_v5, %v2009_v21  ;;  %v2856_v25 = vrot.slane %v2855_v49, 4  ;;  %v2870_v11 = vrot.slane %v2868_v55, 5  ;;  %v2876_v21 = vshll.u32 %v2572_v32, 16 }
 0x1b8   : > { %v2192_v10 = vadd.f32 %v2115_v43, %v13039_v18  ;;  %v3229_v18 = vld [vmem:[#allocation2 + $0x90] sm:$0xe]  ;;  %v2866_v52 = vrot.slane %v2865_v20, 4  ;;  %v3364_v43 = vrot.slane %v2571_v63, 5  ;;  %v1941_v49 = vrot.slane %v1939_v36, 4 }
 0x1b9   : > { %v11123_v17 = vrot.slane %v3229_v18, 9  ;;  %v2861_v55 = vsel %vm12584_vm7, %v2856_v25, %v13319_v46  ;;  %v12353_v20 = vld [vmem:[#allocation2 + $0x8c] sm:$0x1] }
 0x1ba   : > { %v2506_v19 = vadd.f32 %v2429_v60, %v2192_v10  ;;  %v13332_v60 = vld [vmem:[#allocation2 + $0xa0] sm:$0xf]  ;;  %v2873_v10 = vshrl.u32 %v2572_v32, 16  ;;  %v2871_v63 = vsel %vm12584_vm7, %v2866_v52, %v2870_v11  ;;  %v12158_v25 = vld [vmem:[%s16436_s1 + $0x188] sm:$0xff]  ;;  %v3007_v52 = vunpack.c.l.b16 %v2861_v55  ;;  %v12112_v55 = vld [vmem:[#allocation2 + $0x90] sm:$0xff] }
 0x1bb   : > { %v3362_v32 = vsel %vm12988_vm13, %v11123_v17, %v3361_v15  ;;  %v3008_v11 = vunpack.c.l.b16 %v2871_v63  ;;  %3844 = vmatpush.bf16.msra.mxu2 %v12158_v25 }
 0x1bc   : > { %v2431_v57 = vpop.f32.mrf.mxu3  ;;  %v3188_v0 = vadd.f32 %v13279_v61, %v2506_v19  ;;  %v3363_v61 = vrot.slane %v3361_v15, 4  ;;  %v2886_v19 = vshrl.u32 %v13332_v60, 16  ;;  %v2875_v27 = vrot.slane %v2873_v10, 4 }
 0x1bd   : > { %v13325_v16 = vpop.f32.mrf.mxu0  ;;  %v3433_v17 = vunpack.c.l.b16 %v3362_v32  ;;  %v3028_v63 = vpack.c.b16 %v3008_v11, %v3007_v52  ;;  %v3230_v52 = vld [vmem:[#allocation2 + $0x9c] sm:$0xe]  ;;  %v1821_v11 = vld [vmem:[#allocation2 + $0x90] sm:$0xe] }
 0x1be   : > { %v13335_v40 = vadd.f32 %v13285_v22, %v3188_v0  ;;  %v10899_v0 = vrot.slane %v1820_v37, 9  ;;  %v2888_v46 = vrot.slane %v2886_v19, 4 }
 0x1bf   : > { %v13328_v44 = vpop.f32.mrf.mxu1  ;;  %v2117_v14 = vpop.f32.mrf.mxu2 }
 0x1c0   : > { %3155 = vmatmul.bf16.gmra.mxu0 %v3027_v29  ;;  %16465 = vst [vmem:[#allocation11_spill] sm:$0xff] %v13335_v40  ;;  %v2193_v5 = vadd.f32 %v2117_v14, %v13055_v53  ;;  %v2882_v29 = vshll.u32 %v13332_v60, 16  ;;  %v1942_v53 = vrot.slane %v12353_v20, 5  ;;  %v2878_v14 = vrot.slane %v2876_v21, 5  ;;  %v13359_v20 = vld [vmem:[#allocation2 + $0xa4] sm:$0x1] }
 0x1c1   : > { %2473 = vmatmul.bf16.gmra.mxu3 %v12111_v12  ;;  %v2892_v19 = vshll.u32 %v13359_v20, 16 }
 0x1c2   : > { %3581 = vmatmul.bf16.gmra.mxu1 %v3453_v56  ;;  %v2507_v12 = vadd.f32 %v2431_v57, %v2193_v5  ;;  %v3365_v57 = vsel %vm12988_vm13, %v3363_v61, %v3364_v43  ;;  %v13354_v5 = vrot.slane %v2882_v29, 5  ;;  %v1940_v43 = vsel %vm12988_vm13, %v10899_v0, %v1939_v36  ;;  %v12211_v36 = vld [vmem:[%s16439_s4 + $0x70] sm:$0xff] }
 0x1c3   : > { %v3434_v61 = vunpack.c.l.b16 %v3365_v57  ;;  %v1943_v10 = vsel %vm12988_vm13, %v1941_v49, %v1942_v53  ;;  %v2879_v29 = vor.u32 %v2878_v14, %v2875_v27  ;;  %v3368_v0 = vrot.slane %v13332_v60, 5  ;;  %v13380_v49 = vld [vmem:[#allocation2 + $0xac] sm:$0xf]  ;;  %6214 = vmatpush.bf16.msra.mxu1 %v12211_v36 }
 0x1c4   : > { %v2434_v22 = vpop.f32.mrf.mxu3  ;;  %2159 = vmatmul.bf16.gmra.mxu2 %v2031_v6  ;;  %v3189_v37 = vadd.f32 %v13303_v54, %v2507_v12  ;;  %v12166_v54 = vld [vmem:[%s16436_s1 + $0x1c8] sm:$0xff]  ;;  %v2011_v53 = vunpack.c.l.b16 %v1940_v43  ;;  %v2012_v27 = vunpack.c.l.b16 %v1943_v10  ;;  %v2910_v43 = vshrl.u32 %v13380_v49, 16 }
 0x1c5   : > { %v13340_v56 = vpop.f32.mrf.mxu0  ;;  %4526 = vmatpush.bf16.msra.mxu3 %v12166_v54  ;;  %v2894_v54 = vrot.slane %v2892_v19, 5  ;;  %v3371_v19 = vrot.slane %v13359_v20, 5  ;;  %v10900_v36 = vrot.slane %v1821_v11, 9 }
 0x1c6   : > { %v13362_v15 = vadd.f32 %v13308_v41, %v3189_v37  ;;  %v2889_v41 = vor.u32 %v2888_v46, %v13354_v5  ;;  %v3454_v37 = vpack.c.b16 %v3434_v61, %v3433_v17  ;;  %v12354_v46 = vld [vmem:[#allocation2 + $0x94] sm:$0xf]  ;;  %v2880_v17 = vrot.slane %v2879_v29, 4 }
 0x1c7   : > { %v13347_v18 = vpop.f32.mrf.mxu1  ;;  %v2120_v6 = vpop.f32.mrf.mxu2  ;;  %v1946_v25 = vrot.slane %v12354_v46, 5  ;;  %v11124_v29 = vrot.slane %v3230_v52, 9  ;;  %v2912_v11 = vrot.slane %v2910_v43, 4 }
 0x1c8   : > { %16466 = vst [vmem:[#allocation12_spill] sm:$0xff] %v13362_v15  ;;  %v2194_v21 = vadd.f32 %v2120_v6, %v13064_v45  ;;  %v2575_v45 = vld [vmem:[#allocation2 + $0xa8] sm:$0xf]  ;;  %v2890_v61 = vrot.slane %v2889_v41, 4  ;;  %v3370_v41 = vrot.slane %v3368_v0, 4 }
 0x1c9   : > { %v2897_v6 = vshrl.u32 %v2575_v45, 16  ;;  %v2900_v60 = vshll.u32 %v2575_v45, 16  ;;  %v1948_v46 = vrot.slane %v1946_v25, 4  ;;  %v12355_v15 = vld [vmem:[#allocation2 + $0x98] sm:$0x1] }
 0x1ca   : > { %v2508_v32 = vadd.f32 %v2434_v22, %v2194_v21  ;;  %v2906_v21 = vshll.u32 %v13380_v49, 16  ;;  %v1949_v40 = vrot.slane %v12355_v15, 5  ;;  %v3372_v15 = vsel %vm12988_vm13, %v3370_v41, %v3371_v19 }
 0x1cb   : > { %v2899_v52 = vrot.slane %v2897_v6, 4 }
 0x1cc   : > { %v2436_v12 = vpop.f32.mrf.mxu3  ;;  %v3190_v22 = vadd.f32 %v13325_v16, %v2508_v32  ;;  %v12174_v16 = vld [vmem:[%s16436_s1 + $0x208] sm:$0xff]  ;;  %v2032_v32 = vpack.c.b16 %v2012_v27, %v2011_v53  ;;  %v13400_v20 = vrot.slane %v2906_v21, 5  ;;  %v3436_v21 = vunpack.c.l.b16 %v3372_v15 }
 0x1cd   : > { %v13374_v57 = vpop.f32.mrf.mxu0  ;;  %4952 = vmatpush.bf16.msra.mxu0 %v12174_v16  ;;  %v3231_v15 = vld [vmem:[#allocation2 + $0xa8] sm:$0xe] }
 0x1ce   : > { %v13388_v10 = vadd.f32 %v13328_v44, %v3190_v22  ;;  %v2885_v44 = vsel %vm12584_vm7, %v2880_v17, %v13354_v5  ;;  %v2902_v22 = vrot.slane %v2900_v60, 5  ;;  %v13410_v17 = vld [vmem:[#allocation2 + $0xb0] sm:$0x1] }
 0x1cf   : > { %v13382_v14 = vpop.f32.mrf.mxu1  ;;  %v3009_v6 = vunpack.c.l.b16 %v2885_v44  ;;  %v2916_v41 = vshll.u32 %v13410_v17, 16 }
 0x1d0   : > { %3160 = vmatmul.bf16.gmra.mxu0 %v3028_v63  ;;  %v2122_v63 = vpop.f32.mrf.mxu2  ;;  %v2903_v16 = vor.u32 %v2902_v22, %v2899_v52 }
 0x1d1   : > { %2478 = vmatmul.bf16.gmra.mxu3 %v12112_v55  ;;  %v2195_v45 = vadd.f32 %v2122_v63, %v13080_v58  ;;  %v3369_v58 = vsel %vm12988_vm13, %v11124_v29, %v3368_v0  ;;  %v2913_v29 = vor.u32 %v2912_v11, %v13400_v20  ;;  %v462_v63 = vld [vmem:[%s12436_s12 + $0x78] sm:$0xf] }
 0x1d2   : > { %3586 = vmatmul.bf16.gmra.mxu1 %v3454_v37  ;;  %v2895_v37 = vsel %vm12584_vm7, %v2890_v61, %v2894_v54  ;;  %v1950_v54 = vsel %vm12988_vm13, %v1948_v46, %v1949_v40  ;;  %v3435_v60 = vunpack.c.l.b16 %v3369_v58  ;;  %v2904_v52 = vrot.slane %v2903_v16, 4  ;;  %v13444_v16 = vld [vmem:[#allocation2 + $0xb8] sm:$0xf] }
 0x1d3   : > { %v2509_v53 = vadd.f32 %v2436_v12, %v2195_v45  ;;  %v1947_v12 = vsel %vm12988_vm13, %v10900_v36, %v1946_v25  ;;  %v3010_v0 = vunpack.c.l.b16 %v2895_v37  ;;  %v2014_v36 = vunpack.c.l.b16 %v1950_v54  ;;  %v12113_v37 = vld [vmem:[#allocation2 + $0x9c] sm:$0xff]  ;;  %v2578_v54 = vld [vmem:[#allocation2 + $0xb4] sm:$0xf] }
 0x1d4   : > { %v2439_v55 = vpop.f32.mrf.mxu3  ;;  %2164 = vmatmul.bf16.gmra.mxu2 %v2032_v32  ;;  %v2013_v32 = vunpack.c.l.b16 %v1947_v12  ;;  %v3455_v45 = vpack.c.b16 %v3436_v21, %v3435_v60  ;;  %v2914_v22 = vrot.slane %v2913_v29, 4  ;;  %v723_v11 = vshrl.u32 %v462_v63, 16  ;;  %v13432_v12 = vld [vmem:[#allocation2 + $0xa0] sm:$0xf] }
 0x1d5   : > { %v13402_v27 = vpop.f32.mrf.mxu0  ;;  %v3191_v61 = vadd.f32 %v13340_v56, %v2509_v53  ;;  %v3029_v40 = vpack.c.b16 %v3010_v0, %v3009_v6  ;;  %v2918_v53 = vrot.slane %v2916_v41, 5  ;;  %v11125_v21 = vrot.slane %v3231_v15, 9 }
 0x1d6   : > { %v2033_v6 = vpack.c.b16 %v2014_v36, %v2013_v32  ;;  %v463_v32 = vld [vmem:[%s12436_s12 + $0x7c] sm:$0xf] }
 0x1d7   : > { %v13408_v5 = vpop.f32.mrf.mxu1  ;;  %v13418_v43 = vadd.f32 %v13347_v18, %v3191_v61  ;;  %v13426_v18 = vld [vmem:[#allocation2 + $0x9c] sm:$0xe] }
 0x1d8   : > { %v2125_v19 = vpop.f32.mrf.mxu2  ;;  %v10901_v0 = vrot.slane %v13426_v18, 9 }
 0x1d9   : > { %16467 = vst [vmem:[#allocation13_spill] sm:$0xff] %v13418_v43  ;;  %v2196_v56 = vadd.f32 %v2125_v19, %v13098_v35  ;;  %v3375_v35 = vrot.slane %v13380_v49, 5  ;;  %v2909_v49 = vsel %vm12584_vm7, %v2904_v52, %v13400_v20  ;;  %v3378_v19 = vrot.slane %v13410_v17, 5 }
 0x1da   : > { %v3011_v18 = vunpack.c.l.b16 %v2909_v49  ;;  %v2930_v52 = vshll.u32 %v13444_v16, 16 }
 0x1db   : > { %v2510_v46 = vadd.f32 %v2439_v55, %v2196_v56  ;;  %v16444_v55 = vrot.slane %v13432_v12, 5  ;;  %v3377_v41 = vrot.slane %v3375_v35, 4  ;;  %v2921_v56 = vshrl.u32 %v2578_v54, 16 }
 0x1dc   : > { %v2441_v25 = vpop.f32.mrf.mxu3  ;;  %v13465_v43 = vrot.slane %v2930_v52, 5  ;;  %v2580_v52 = vld [vmem:[#allocation2 + $0xbc] sm:$0x1] }
 0x1dd   : > { %v13424_v44 = vpop.f32.mrf.mxu0  ;;  %v3192_v61 = vadd.f32 %v13374_v57, %v2510_v46  ;;  %v2919_v57 = vsel %vm12584_vm7, %v2914_v22, %v2918_v53  ;;  %v2924_v46 = vshll.u32 %v2578_v54, 16  ;;  %v2934_v22 = vshrl.u32 %v13444_v16, 16 }
 0x1de   : > { %v726_v53 = vshll.u32 %v462_v63, 16  ;;  %v3379_v54 = vsel %vm12988_vm13, %v3377_v41, %v3378_v19  ;;  %v2923_v49 = vrot.slane %v2921_v56, 4  ;;  %v902_v19 = vld [vmem:[#allocation2 + $0xc8] sm:$0x1] }
 0x1df   : > { %v13428_v58 = vpop.f32.mrf.mxu1  ;;  %v13437_v60 = vadd.f32 %v13382_v14, %v3192_v61  ;;  %v725_v14 = vrot.slane %v723_v11, 7  ;;  %v3012_v61 = vunpack.c.l.b16 %v2919_v57  ;;  %v731_v11 = vshrl.u32 %v463_v32, 16  ;;  %v12157_v57 = vld [vmem:[%s16436_s1 + $0x180] sm:$0xff] }
 0x1e0   : > { %3165 = vmatmul.bf16.gmra.mxu0 %v3029_v40  ;;  %v2127_v29 = vpop.f32.mrf.mxu2  ;;  %v1955_v40 = vrot.slane %v16444_v55, 4  ;;  %3845 = vmatpush.bf16.msra.mxu2 %v12157_v57 }
 0x1e1   : > { %16468 = vst [vmem:[#allocation14_spill] sm:$0xff] %v13437_v60  ;;  %2483 = vmatmul.bf16.gmra.mxu3 %v12113_v37  ;;  %v2197_v36 = vadd.f32 %v2127_v29, %v13114_v7  ;;  %v3376_v7 = vsel %vm12988_vm13, %v11125_v21, %v3375_v35  ;;  %v898_v29 = vld [vmem:[#allocation2 + $0xc0] sm:$0xf]  ;;  %v734_v60 = vshll.u32 %v463_v32, 16  ;;  %v733_v35 = vrot.slane %v731_v11, 7 }
 0x1e2   : > { %3591 = vmatmul.bf16.gmra.mxu1 %v3455_v45  ;;  %v12357_v45 = vld [vmem:[#allocation2 + $0xa4] sm:$0x1]  ;;  %v3437_v21 = vunpack.c.l.b16 %v3376_v7  ;;  %v16470_v7 = vrot.slane %v13432_v12, 5  ;;  %v12210_v12 = vld [vmem:[%s16439_s4 + $0x68] sm:$0xff] }
 0x1e3   : > { %v1956_v20 = vrot.slane %v12357_v45, 5  ;;  %v2511_v15 = vadd.f32 %v2441_v25, %v2197_v36  ;;  %v728_v45 = vor.u32 %v726_v53, %v725_v14  ;;  %v2926_v25 = vrot.slane %v2924_v46, 5  ;;  %6215 = vmatpush.bf16.msra.mxu1 %v12210_v12  ;;  %v12359_v12 = vld [vmem:[#allocation2 + $0xb0] sm:$0x1] }
 0x1e4   : > { %v2444_v37 = vpop.f32.mrf.mxu3  ;;  %2169 = vmatmul.bf16.gmra.mxu2 %v2033_v6  ;;  %v729_v36 = vrot.slane %v725_v14, 4  ;;  %v3438_v6 = vunpack.c.l.b16 %v3379_v54  ;;  %v736_v32 = vor.u32 %v734_v60, %v733_v35  ;;  %v738_v14 = vrot.slane %v733_v35, 4 }
 0x1e5   : > { %v13453_v17 = vpop.f32.mrf.mxu0  ;;  %v3193_v63 = vadd.f32 %v13402_v27, %v2511_v15  ;;  %v899_v41 = vsel %vm12600_vm9, %v728_v45, %v898_v29  ;;  %v12165_v27 = vld [vmem:[%s16436_s1 + $0x1c0] sm:$0xff]  ;;  %v1954_v11 = vsel %vm12988_vm13, %v10901_v0, %v16470_v7  ;;  %v1957_v60 = vsel %vm12988_vm13, %v1955_v40, %v1956_v20 }
 0x1e6   : > { %900 = vst [vmem:[#allocation2 + $0xc0] sm:$0xf] %v899_v41  ;;  %4527 = vmatpush.bf16.msra.mxu3 %v12165_v27  ;;  %v737_v53 = vsel %vm12590_vm8, %v729_v36, %v736_v32  ;;  %v3030_v29 = vpack.c.b16 %v3012_v61, %v3011_v18  ;;  %v2927_v54 = vor.u32 %v2926_v25, %v2923_v49  ;;  %v2940_v35 = vshll.u32 %v2580_v52, 16  ;;  %v3232_v61 = vld [vmem:[#allocation2 + $0xb4] sm:$0xe]  ;;  %v12173_v41 = vld [vmem:[%s16436_s1 + $0x200] sm:$0xff] }
 0x1e7   : > { %v13457_v55 = vpop.f32.mrf.mxu1  ;;  %v13470_v56 = vadd.f32 %v13408_v5, %v3193_v63  ;;  %v903_v5 = vsel %vm12610_vm10, %v738_v14, %v902_v19  ;;  %901 = vst [vmem:[#allocation2 + $0xc4] sm:$0xf] %v737_v53  ;;  %v12114_v63 = vld [vmem:[#allocation2 + $0xa8] sm:$0xff]  ;;  %v3456_v57 = vpack.c.b16 %v3438_v6, %v3437_v21  ;;  %v3382_v40 = vrot.slane %v13444_v16, 5  ;;  %4953 = vmatpush.bf16.msra.mxu0 %v12173_v41 }
 0x1e8   : > { %16469 = vst [vmem:[#allocation15_spill] sm:$0xff] %v13457_v55  ;;  %v2936_v55 = vrot.slane %v2934_v22, 4  ;;  %v2130_v46 = vpop.f32.mrf.mxu2  ;;  %v2015_v18 = vunpack.c.l.b16 %v1954_v11  ;;  %v2928_v49 = vrot.slane %v2927_v54, 4  ;;  %v2942_v21 = vrot.slane %v2940_v35, 5 }
 0x1e9   : > { %v2198_v22 = vadd.f32 %v2130_v46, %v13123_v62  ;;  %904 = vst [vmem:[#allocation2 + $0xc8] sm:$0x1] %v903_v5  ;;  %v3384_v6 = vrot.slane %v3382_v40, 4  ;;  %v3385_v27 = vrot.slane %v2580_v52, 5  ;;  %v12358_v46 = vld [vmem:[#allocation2 + $0xac] sm:$0xf] }
 0x1ea   : > { %v2937_v36 = vor.u32 %v2936_v55, %v13465_v43  ;;  %v1823_v5 = vld [vmem:[#allocation2 + $0xa8] sm:$0xe]  ;;  %v2933_v7 = vsel %vm12584_vm7, %v2928_v49, %v13465_v43 }
 0x1eb   : > { %v2512_v62 = vadd.f32 %v2444_v37, %v2198_v22  ;;  %v2016_v37 = vunpack.c.l.b16 %v1957_v60  ;;  %v1960_v22 = vrot.slane %v12358_v46, 5  ;;  %v3386_v43 = vsel %vm12988_vm13, %v3384_v6, %v3385_v27 }
 0x1ec   : > { %v2446_v15 = vpop.f32.mrf.mxu3  ;;  %v2938_v25 = vrot.slane %v2937_v36, 4  ;;  %v10902_v36 = vrot.slane %v1823_v5, 9 }
 0x1ed   : > { %v13486_v45 = vpop.f32.mrf.mxu0  ;;  %v3194_v20 = vadd.f32 %v13424_v44, %v2512_v62  ;;  %v2581_v16 = vld [vmem:[#allocation2 + $0xc0] sm:$0xf]  ;;  %v11126_v44 = vrot.slane %v3232_v61, 9  ;;  %v2034_v14 = vpack.c.b16 %v2016_v37, %v2015_v18  ;;  %v1962_v35 = vrot.slane %v1960_v22, 4 }
 0x1ee   : > { %v2945_v11 = vshrl.u32 %v2581_v16, 16  ;;  %v2948_v60 = vshll.u32 %v2581_v16, 16  ;;  %v3013_v18 = vunpack.c.l.b16 %v2933_v7  ;;  %v12115_v7 = vld [vmem:[#allocation2 + $0xb4] sm:$0xff] }
 0x1ef   : > { %v13492_v0 = vpop.f32.mrf.mxu1  ;;  %v13497_v55 = vadd.f32 %v13428_v58, %v3194_v20  ;;  %v13503_v58 = vld [vmem:[#allocation2 + $0xc4] sm:$0xf]  ;;  %v1963_v20 = vrot.slane %v12359_v12, 5  ;;  %v3959_v12 = vld [vmem:[#allocation2 + $0x18] sm:$0xf] }
 0x1f0   : > { %3170 = vmatmul.bf16.gmra.mxu0 %v3030_v29  ;;  %v2132_v19 = vpop.f32.mrf.mxu2  ;;  %v2954_v52 = vshll.u32 %v13503_v58, 16  ;;  %v2958_v62 = vshrl.u32 %v13503_v58, 16  ;;  %v2947_v61 = vrot.slane %v2945_v11, 4  ;;  %v2950_v49 = vrot.slane %v2948_v60, 5 }
 0x1f1   : > { %2488 = vmatmul.bf16.gmra.mxu3 %v12114_v63  ;;  %v2199_v32 = vadd.f32 %v2132_v19, %v13139_v23  ;;  %v2943_v23 = vsel %vm12584_vm7, %v2938_v25, %v2942_v21  ;;  %v3440_v21 = vunpack.c.l.b16 %v3386_v43  ;;  %v2583_v19 = vld [vmem:[#allocation2 + $0xc8] sm:$0x1]  ;;  %v1964_v27 = vsel %vm12988_vm13, %v1962_v35, %v1963_v20 }
 0x1f2   : > { %3596 = vmatmul.bf16.gmra.mxu1 %v3456_v57  ;;  %v3383_v57 = vsel %vm12988_vm13, %v11126_v44, %v3382_v40  ;;  %v3014_v37 = vunpack.c.l.b16 %v2943_v23  ;;  %v2956_v41 = vrot.slane %v2954_v52, 5  ;;  %v2960_v16 = vrot.slane %v2958_v62, 4 }
 0x1f3   : > { %v2513_v29 = vadd.f32 %v2446_v15, %v2199_v32  ;;  %v3439_v25 = vunpack.c.l.b16 %v3383_v57  ;;  %v3233_v57 = vld [vmem:[#allocation2 + $0xc0] sm:$0xe] }
 0x1f4   : > { %v2449_v53 = vpop.f32.mrf.mxu3  ;;  %2174 = vmatmul.bf16.gmra.mxu2 %v2034_v14  ;;  %v3031_v32 = vpack.c.b16 %v3014_v37, %v3013_v18  ;;  %v2951_v14 = vor.u32 %v2950_v49, %v2947_v61  ;;  %v2961_v60 = vor.u32 %v2960_v16, %v2956_v41  ;;  %v11127_v18 = vrot.slane %v3233_v57, 9 }
 0x1f5   : > { %v13508_v54 = vpop.f32.mrf.mxu0  ;;  %v13521_v15 = vadd.f32 %v13453_v17, %v2513_v29  ;;  %v1961_v17 = vsel %vm12988_vm13, %v10902_v36, %v1960_v22  ;;  %v3457_v11 = vpack.c.b16 %v3440_v21, %v3439_v25  ;;  %v2964_v29 = vshll.u32 %v2583_v19, 16  ;;  %v12360_v25 = vld [vmem:[#allocation2 + $0xb8] sm:$0xf] }
 0x1f6   : > { %v2017_v62 = vunpack.c.l.b16 %v1961_v17  ;;  %v2018_v22 = vunpack.c.l.b16 %v1964_v27  ;;  %v2952_v43 = vrot.slane %v2951_v14, 4  ;;  %v3392_v61 = vrot.slane %v2583_v19, 5 }
 0x1f7   : > { %v13514_v63 = vpop.f32.mrf.mxu1  ;;  %v2966_v35 = vrot.slane %v2964_v29, 5  ;;  %v1967_v21 = vrot.slane %v12360_v25, 5  ;;  %v4011_v17 = vshll.u32 %v3959_v12, 16  ;;  %v12361_v29 = vld [vmem:[#allocation2 + $0xbc] sm:$0x1] }
 0x1f8   : > { %v2135_v40 = vpop.f32.mrf.mxu2  ;;  %v2035_v49 = vpack.c.b16 %v2018_v22, %v2017_v62 }
 0x1f9   : > { %v2200_v44 = vadd.f32 %v2135_v40, %v13157_v9  ;;  %v3389_v9 = vrot.slane %v13503_v58, 5  ;;  %v13537_v58 = vld [vmem:[#allocation2 + $0x1c] sm:$0xf]  ;;  %v1824_v40 = vld [vmem:[#allocation2 + $0xb4] sm:$0xe] }
 0x1fa   : > { %v4017_v14 = vshll.u32 %v13537_v58, 16 }
 0x1fb   : > { %v2514_v46 = vadd.f32 %v2449_v53, %v2200_v44  ;;  %v2962_v53 = vrot.slane %v2961_v60, 4  ;;  %v3391_v37 = vrot.slane %v3389_v9, 4  ;;  %v4008_v44 = vshrl.u32 %v3959_v12, 16  ;;  %v3961_v12 = vld [vmem:[#allocation2 + $0x20] sm:$0x1] }
 0x1fc   : > { %v2451_v6 = vpop.f32.mrf.mxu3  ;;  %v1969_v60 = vrot.slane %v1967_v21, 4 }
 0x1fd   : > { %v13528_v5 = vpop.f32.mrf.mxu0  ;;  %v3196_v52 = vadd.f32 %v13486_v45, %v2514_v46  ;;  %v2967_v19 = vsel %vm12584_vm7, %v2962_v53, %v2966_v35  ;;  %v4010_v57 = vrot.slane %v4008_v44, 4 }
 0x1fe   : > { %v3016_v22 = vunpack.c.l.b16 %v2967_v19 }
 0x1ff   : > { %v13530_v23 = vpop.f32.mrf.mxu1  ;;  %v13535_v36 = vadd.f32 %v13492_v0, %v3196_v52  ;;  %v2957_v0 = vsel %vm12584_vm7, %v2952_v43, %v2956_v41  ;;  %v3393_v41 = vsel %vm12988_vm13, %v3391_v37, %v3392_v61  ;;  %v1970_v52 = vrot.slane %v12361_v29, 5 }
 0x200   : > { %3175 = vmatmul.bf16.gmra.mxu0 %v3031_v32  ;;  %v2137_v20 = vpop.f32.mrf.mxu2  ;;  %v3015_v62 = vunpack.c.l.b16 %v2957_v0  ;;  %v4013_v43 = vrot.slane %v4011_v17, 5  ;;  %v3442_v35 = vunpack.c.l.b16 %v3393_v41  ;;  %v12116_v17 = vld [vmem:[#allocation2 + $0xc0] sm:$0xff]  ;;  %v4710_v29 = vrot.slane %v3961_v12, 5 }
 0x201   : > { %2493 = vmatmul.bf16.gmra.mxu3 %v12115_v7  ;;  %v2201_v45 = vadd.f32 %v2137_v20, %v13173_v59  ;;  %v4021_v59 = vshrl.u32 %v13537_v58, 16  ;;  %v3390_v7 = vsel %vm12988_vm13, %v11127_v18, %v3389_v9  ;;  %v4019_v20 = vrot.slane %v4017_v14, 5  ;;  %v4641_v14 = vld [vmem:[#allocation2 + $0x18] sm:$0xe] }
 0x202   : > { %3601 = vmatmul.bf16.gmra.mxu1 %v3457_v11  ;;  %v10903_v11 = vrot.slane %v1824_v40, 9  ;;  %v3441_v53 = vunpack.c.l.b16 %v3390_v7  ;;  %v4014_v25 = vor.u32 %v4013_v43, %v4010_v57  ;;  %v4027_v40 = vshll.u32 %v3961_v12, 16 }
 0x203   : > { %v2515_v27 = vadd.f32 %v2451_v6, %v2201_v45  ;;  %v4023_v9 = vrot.slane %v4021_v59, 4  ;;  %v1971_v45 = vsel %vm12988_vm13, %v1969_v60, %v1970_v52  ;;  %v4707_v59 = vrot.slane %v13537_v58, 5 }
 0x204   : > { %v2454_v16 = vpop.f32.mrf.mxu3  ;;  %2179 = vmatmul.bf16.gmra.mxu2 %v2035_v49  ;;  %v3032_v49 = vpack.c.b16 %v3016_v22, %v3015_v62  ;;  %v11336_v60 = vrot.slane %v4641_v14, 9  ;;  %v4029_v62 = vrot.slane %v4027_v40, 5 }
 0x205   : > { %v13542_v32 = vpop.f32.mrf.mxu0  ;;  %v13555_v6 = vadd.f32 %v13508_v54, %v2515_v27  ;;  %v1968_v54 = vsel %vm12988_vm13, %v10903_v11, %v1967_v21  ;;  %v3458_v27 = vpack.c.b16 %v3442_v35, %v3441_v53  ;;  %v4024_v19 = vor.u32 %v4023_v9, %v4019_v20  ;;  %v3963_v35 = vld [vmem:[#allocation2 + $0x28] sm:$0xf] }
 0x206   : > { %v2019_v41 = vunpack.c.l.b16 %v1968_v54  ;;  %v2020_v11 = vunpack.c.l.b16 %v1971_v45  ;;  %v4709_v22 = vrot.slane %v4707_v59, 4  ;;  %v4041_v40 = vshll.u32 %v3963_v35, 16 }
 0x207   : > { %v13548_v46 = vpop.f32.mrf.mxu1  ;;  %v4025_v58 = vrot.slane %v4024_v19, 4 }
 0x208   : > { %v2140_v18 = vpop.f32.mrf.mxu2  ;;  %v2036_v53 = vpack.c.b16 %v2020_v11, %v2019_v41  ;;  %v4711_v45 = vsel %vm12988_vm13, %v4709_v22, %v4710_v29 }
 0x209   : > { %v2202_v37 = vadd.f32 %v2140_v18, %v13182_v42  ;;  %v12209_v42 = vld [vmem:[%s16439_s4 + $0x60] sm:$0xff]  ;;  %v4708_v18 = vsel %vm12988_vm13, %v11336_v60, %v4707_v59  ;;  %v4030_v54 = vsel %vm12584_vm7, %v4025_v58, %v4029_v62  ;;  %v4714_v60 = vrot.slane %v3963_v35, 5 }
 0x20a   : > { %6216 = vmatpush.bf16.msra.mxu1 %v12209_v42  ;;  %v4642_v62 = vld [vmem:[#allocation2 + $0x24] sm:$0xe] }
 0x20b   : > { %v2516_v0 = vadd.f32 %v2454_v16, %v2202_v37  ;;  %v4015_v16 = vrot.slane %v4014_v25, 4 }
 0x20c   : > { %v2456_v61 = vpop.f32.mrf.mxu3 }
 0x20d   : > { %v13562_v44 = vpop.f32.mrf.mxu0  ;;  %v3198_v7 = vadd.f32 %v13528_v5, %v2516_v0  ;;  %v3962_v5 = vld [vmem:[#allocation2 + $0x24] sm:$0xf]  ;;  %v4045_v0 = vshrl.u32 %v3963_v35, 16  ;;  %v13590_v35 = vld [vmem:[#allocation2 + $0x34] sm:$0xf] }
 0x20e   : > { %v4035_v25 = vshll.u32 %v3962_v5, 16 }
 0x20f   : > { %v3567_v21 = vpop.f32.mrf.mxu1  ;;  %v13570_v52 = vadd.f32 %v13530_v23, %v3198_v7  ;;  %v4020_v23 = vsel %vm12584_vm7, %v4015_v16, %v4019_v20  ;;  %v4409_v20 = vunpack.c.l.b16 %v4030_v54  ;;  %v4043_v7 = vrot.slane %v4041_v40, 5  ;;  %v3964_v16 = vld [vmem:[#allocation2 + $0x2c] sm:$0x1] }
 0x210   : > { %3180 = vmatmul.bf16.gmra.mxu0 %v3032_v49  ;;  %v2142_v57 = vpop.f32.mrf.mxu2  ;;  %v4408_v19 = vunpack.c.l.b16 %v4020_v23  ;;  %v4037_v42 = vrot.slane %v4035_v25, 5  ;;  %v4047_v41 = vrot.slane %v4045_v0, 4  ;;  %v11337_v23 = vrot.slane %v4642_v62, 9 }
 0x211   : > { %2498 = vmatmul.bf16.gmra.mxu3 %v12116_v17  ;;  %v2203_v43 = vadd.f32 %v2142_v57, %v13198_v2  ;;  %v4032_v2 = vshrl.u32 %v3962_v5, 16  ;;  %v4716_v54 = vrot.slane %v4714_v60, 4 }
 0x212   : > { %3606 = vmatmul.bf16.gmra.mxu1 %v3458_v27  ;;  %v4835_v27 = vunpack.c.l.b16 %v4711_v45  ;;  %v4048_v5 = vor.u32 %v4047_v41, %v4043_v7  ;;  %v4717_v45 = vrot.slane %v3964_v16, 5 }
 0x213   : > { %v2517_v37 = vadd.f32 %v2456_v61, %v2203_v43  ;;  %v4834_v61 = vunpack.c.l.b16 %v4708_v18  ;;  %v4034_v59 = vrot.slane %v4032_v2, 4  ;;  %v4051_v18 = vshll.u32 %v3964_v16, 16 }
 0x214   : > { %v2459_v9 = vpop.f32.mrf.mxu3  ;;  %2184 = vmatmul.bf16.gmra.mxu2 %v2036_v53  ;;  %v4049_v40 = vrot.slane %v4048_v5, 4 }
 0x215   : > { %v3143_v12 = vpop.f32.mrf.mxu0  ;;  %v13584_v17 = vadd.f32 %v13542_v32, %v2517_v37  ;;  %v4866_v58 = vpack.c.b16 %v4835_v27, %v4834_v61  ;;  %v4440_v32 = vpack.c.b16 %v4409_v20, %v4408_v19  ;;  %v4038_v53 = vor.u32 %v4037_v42, %v4034_v59  ;;  %v12141_v27 = vld [vmem:[#allocation2 + $0x18] sm:$0xff] }
 0x216   : > { %v4053_v0 = vrot.slane %v4051_v18, 5  ;;  %v4718_v19 = vsel %vm12988_vm13, %v4716_v54, %v4717_v45  ;;  %v4065_v59 = vshll.u32 %v13590_v35, 16  ;;  %v4069_v42 = vshrl.u32 %v13590_v35, 16 }
 0x217   : > { %v13581_v49 = vpop.f32.mrf.mxu1 }
 0x218   : > { %v2145_v14 = vpop.f32.mrf.mxu2  ;;  %v4067_v5 = vrot.slane %v4065_v59, 5  ;;  %v4071_v18 = vrot.slane %v4069_v42, 4 }
 0x219   : > { %v2204_v11 = vadd.f32 %v2145_v14, %v13213_v33  ;;  %v3965_v33 = vld [vmem:[#allocation2 + $0x30] sm:$0xf] }
 0x21a   : > { %v4059_v14 = vshll.u32 %v3965_v33, 16 }
 0x21b   : > { %v2518_v22 = vadd.f32 %v2459_v9, %v2204_v11  ;;  %v4039_v9 = vrot.slane %v4038_v53, 4 }
 0x21c   : > { %v2461_v29 = vpop.f32.mrf.mxu3  ;;  %v4061_v53 = vrot.slane %v4059_v14, 5 }
 0x21d   : > { %v3146_v57 = vpop.f32.mrf.mxu0  ;;  %v3200_v37 = vadd.f32 %v13562_v44, %v2518_v22  ;;  %v4715_v44 = vsel %vm12988_vm13, %v11337_v23, %v4714_v60  ;;  %v4044_v16 = vsel %vm12584_vm7, %v4039_v9, %v4043_v7  ;;  %v4837_v22 = vunpack.c.l.b16 %v4718_v19  ;;  %v3967_v23 = vld [vmem:[#allocation2 + $0x38] sm:$0x1] }
 0x21e   : > { %v4836_v62 = vunpack.c.l.b16 %v4715_v44  ;;  %v4072_v9 = vor.u32 %v4071_v18, %v4067_v5  ;;  %v12208_v44 = vld [vmem:[%s16439_s4 + $0x58] sm:$0xff] }
 0x21f   : > { %v3572_v43 = vpop.f32.mrf.mxu1  ;;  %v13588_v2 = vadd.f32 %v3567_v21, %v3200_v37  ;;  %v4056_v21 = vshrl.u32 %v3965_v33, 16  ;;  %v4410_v37 = vunpack.c.l.b16 %v4044_v16  ;;  %6217 = vmatpush.bf16.msra.mxu1 %v12208_v44 }
 0x220   : > { %4954 = vmatmul.bf16.vlgmr.msra.gmra.mxu0 %v4866_v58  ;;  %v2147_v25 = vpop.f32.mrf.mxu2  ;;  %v4867_v33 = vpack.c.b16 %v4837_v22, %v4836_v62  ;;  %v4073_v59 = vrot.slane %v4072_v9, 4  ;;  %v12142_v22 = vld [vmem:[#allocation2 + $0x24] sm:$0xff] }
 0x221   : > { %4528 = vmatmul.bf16.vlgmr.msra.gmra.mxu3 %v4440_v32  ;;  %v2205_v61 = vadd.f32 %v2147_v25, %v13232_v8  ;;  %v4054_v8 = vsel %vm12584_vm7, %v4049_v40, %v4053_v0  ;;  %v4058_v32 = vrot.slane %v4056_v21, 4  ;;  %v4075_v40 = vshll.u32 %v3967_v23, 16  ;;  %v4643_v21 = vld [vmem:[#allocation2 + $0x30] sm:$0xe] }
 0x223   : > { %v2519_v41 = vadd.f32 %v2461_v29, %v2205_v61  ;;  %v4411_v29 = vunpack.c.l.b16 %v4054_v8  ;;  %v4062_v25 = vor.u32 %v4061_v53, %v4058_v32  ;;  %v4077_v42 = vrot.slane %v4075_v40, 5  ;;  %v3968_v32 = vld [vmem:[#allocation2 + $0x3c] sm:$0xf]  ;;  %v3969_v53 = vld [vmem:[#allocation2 + $0x40] sm:$0xf] }
 0x224   : > { %v2464_v20 = vpop.f32.mrf.mxu3  ;;  %3846 = vmatmul.bf16.vlgmr.msra.gmra.mxu2 %v12141_v27  ;;  %v4721_v27 = vrot.slane %v13590_v35, 5  ;;  %v4724_v8 = vrot.slane %v3967_v23, 5  ;;  %v4093_v9 = vshrl.u32 %v3969_v53, 16 }
 0x225   : > { %v3148_v11 = vpop.f32.mrf.mxu0  ;;  %v13605_v60 = vadd.f32 %v3143_v12, %v2519_v41  ;;  %v4441_v61 = vpack.c.b16 %v4411_v29, %v4410_v37 }
 0x226   : > { %v4723_v16 = vrot.slane %v4721_v27, 4 }
 0x227   : > { %v13603_v58 = vpop.f32.mrf.mxu1 }
 0x228   : > { %v2150_v54 = vpop.f32.mrf.mxu2  ;;  %v4725_v23 = vsel %vm12988_vm13, %v4723_v16, %v4724_v8 }
 0x229   : > { %v2206_v7 = vadd.f32 %v2150_v54, %v13029_v1  ;;  %v4063_v1 = vrot.slane %v4062_v25, 4  ;;  %v4089_v25 = vshll.u32 %v3969_v53, 16 }
 0x22b   : > { %v2520_v0 = vadd.f32 %v2464_v20, %v2206_v7  ;;  %v11338_v20 = vrot.slane %v4643_v21, 9 }
 0x22c   : > { %v2466_v45 = vpop.f32.mrf.mxu3 }
 0x22d   : > { %v3151_v12 = vpop.f32.mrf.mxu0  ;;  %v3202_v14 = vadd.f32 %v3146_v57, %v2520_v0  ;;  %v4068_v57 = vsel %vm12584_vm7, %v4063_v1, %v4067_v5  ;;  %v4722_v54 = vsel %vm12988_vm13, %v11338_v20, %v4721_v27  ;;  %v4091_v27 = vrot.slane %v4089_v25, 5 }
 0x22e   : > { %v4838_v5 = vunpack.c.l.b16 %v4722_v54  ;;  %v4412_v0 = vunpack.c.l.b16 %v4068_v57  ;;  %v4095_v1 = vrot.slane %v4093_v9, 4  ;;  %v4728_v20 = vrot.slane %v3969_v53, 5  ;;  %v13630_v53 = vld [vmem:[#allocation2 + $0x4c] sm:$0xf] }
 0x22f   : > { %v3577_v19 = vpop.f32.mrf.mxu1  ;;  %v13612_v41 = vadd.f32 %v3572_v43, %v3202_v14  ;;  %v4078_v43 = vsel %vm12584_vm7, %v4073_v59, %v4077_v42  ;;  %v3970_v42 = vld [vmem:[#allocation2 + $0x44] sm:$0x1] }
 0x230   : > { %4959 = vmatmul.bf16.gmra.mxu0 %v4867_v33  ;;  %v2152_v62 = vpop.f32.mrf.mxu2  ;;  %v4083_v33 = vshll.u32 %v3968_v32, 16  ;;  %v4096_v54 = vor.u32 %v4095_v1, %v4091_v27  ;;  %v4099_v57 = vshll.u32 %v3970_v42, 16  ;;  %v4113_v1 = vshll.u32 %v13630_v53, 16 }
 0x231   : > { %4533 = vmatmul.bf16.gmra.mxu3 %v4441_v61  ;;  %v2207_v35 = vadd.f32 %v2152_v62, %v13041_v24  ;;  %v4080_v24 = vshrl.u32 %v3968_v32, 16  ;;  %v4413_v61 = vunpack.c.l.b16 %v4078_v43  ;;  %v4644_v62 = vld [vmem:[#allocation2 + $0x3c] sm:$0xe] }
 0x232   : > { %v4085_v14 = vrot.slane %v4083_v33, 5  ;;  %v4731_v33 = vrot.slane %v3970_v42, 5 }
 0x233   : > { %v2521_v37 = vadd.f32 %v2466_v45, %v2207_v35  ;;  %v4839_v45 = vunpack.c.l.b16 %v4725_v23  ;;  %v4082_v21 = vrot.slane %v4080_v24, 4  ;;  %v11339_v23 = vrot.slane %v4644_v62, 9 }
 0x234   : > { %v2469_v18 = vpop.f32.mrf.mxu3  ;;  %3851 = vmatmul.bf16.gmra.mxu2 %v12142_v22  ;;  %v4730_v24 = vrot.slane %v4728_v20, 4 }
 0x235   : > { %v3153_v29 = vpop.f32.mrf.mxu0  ;;  %v13625_v40 = vadd.f32 %v3148_v11, %v2521_v37  ;;  %v4868_v8 = vpack.c.b16 %v4839_v45, %v4838_v5  ;;  %v4442_v11 = vpack.c.b16 %v4413_v61, %v4412_v0  ;;  %v4086_v37 = vor.u32 %v4085_v14, %v4082_v21  ;;  %v12143_v61 = vld [vmem:[#allocation2 + $0x30] sm:$0xff] }
 0x236   : > { %v4101_v45 = vrot.slane %v4099_v57, 5 }
 0x237   : > { %v13623_v7 = vpop.f32.mrf.mxu1  ;;  %v4087_v5 = vrot.slane %v4086_v37, 4 }
 0x238   : > { %v2155_v44 = vpop.f32.mrf.mxu2 }
 0x239   : > { %v2208_v59 = vadd.f32 %v2155_v44, %v13057_v3  ;;  %v3971_v3 = vld [vmem:[#allocation2 + $0x48] sm:$0xf]  ;;  %v4732_v44 = vsel %vm12988_vm13, %v4730_v24, %v4731_v33  ;;  %v4092_v62 = vsel %vm12584_vm7, %v4087_v5, %v4091_v27  ;;  %v3973_v33 = vld [vmem:[#allocation2 + $0x50] sm:$0x1] }
 0x23a   : > { %v4107_v14 = vshll.u32 %v3971_v3, 16  ;;  %v4841_v37 = vunpack.c.l.b16 %v4732_v44  ;;  %v4414_v24 = vunpack.c.l.b16 %v4092_v62  ;;  %v12207_v44 = vld [vmem:[%s16439_s4 + $0x50] sm:$0xff] }
 0x23b   : > { %v2522_v35 = vadd.f32 %v2469_v18, %v2208_v59  ;;  %v4097_v18 = vrot.slane %v4096_v54, 4  ;;  %v4117_v59 = vshrl.u32 %v13630_v53, 16  ;;  %6218 = vmatpush.bf16.msra.mxu1 %v12207_v44 }
 0x23c   : > { %v2471_v16 = vpop.f32.mrf.mxu3  ;;  %v4109_v57 = vrot.slane %v4107_v14, 5  ;;  %v4645_v14 = vld [vmem:[#allocation2 + $0x48] sm:$0xe] }
 0x23d   : > { %v3156_v22 = vpop.f32.mrf.mxu0  ;;  %v3204_v43 = vadd.f32 %v3151_v12, %v2522_v35  ;;  %v4729_v12 = vsel %vm12988_vm13, %v11339_v23, %v4728_v20  ;;  %v4119_v23 = vrot.slane %v4117_v59, 4 }
 0x23f   : > { %v3582_v32 = vpop.f32.mrf.mxu1  ;;  %v13628_v25 = vadd.f32 %v3577_v19, %v3204_v43  ;;  %v4104_v19 = vshrl.u32 %v3971_v3, 16  ;;  %v4115_v43 = vrot.slane %v4113_v1, 5 }
 0x240   : > { %4964 = vmatmul.bf16.gmra.mxu0 %v4868_v8  ;;  %v2157_v9 = vpop.f32.mrf.mxu2 }
 0x241   : > { %16471 = vst [vmem:[#allocation16_spill] sm:$0xff] %v13628_v25  ;;  %4538 = vmatmul.bf16.gmra.mxu3 %v4442_v11  ;;  %v2209_v0 = vadd.f32 %v2157_v9, %v13066_v28  ;;  %v4102_v28 = vsel %vm12584_vm7, %v4097_v18, %v4101_v45  ;;  %v4840_v11 = vunpack.c.l.b16 %v4729_v12  ;;  %v4106_v54 = vrot.slane %v4104_v19, 4 }
 0x242   : > { %v4120_v45 = vor.u32 %v4119_v23, %v4115_v43  ;;  %v4735_v12 = vrot.slane %v13630_v53, 5  ;;  %v3974_v23 = vld [vmem:[#allocation2 + $0x54] sm:$0xf] }
 0x243   : > { %v2523_v42 = vadd.f32 %v2471_v16, %v2209_v0  ;;  %v4415_v16 = vunpack.c.l.b16 %v4102_v28  ;;  %v4869_v5 = vpack.c.b16 %v4841_v37, %v4840_v11  ;;  %v4110_v18 = vor.u32 %v4109_v57, %v4106_v54  ;;  %v12144_v57 = vld [vmem:[#allocation2 + $0x3c] sm:$0xff] }
 0x244   : > { %v2474_v21 = vpop.f32.mrf.mxu3  ;;  %3856 = vmatmul.bf16.gmra.mxu2 %v12143_v61  ;;  %v4123_v0 = vshll.u32 %v3973_v33, 16  ;;  %v4121_v59 = vrot.slane %v4120_v45, 4  ;;  %v4737_v11 = vrot.slane %v4735_v12, 4  ;;  %v4738_v37 = vrot.slane %v3973_v33, 5 }
 0x245   : > { %v3158_v8 = vpop.f32.mrf.mxu0  ;;  %v13645_v20 = vadd.f32 %v3153_v29, %v2523_v42  ;;  %v4443_v42 = vpack.c.b16 %v4415_v16, %v4414_v24  ;;  %v3975_v24 = vld [vmem:[#allocation2 + $0x58] sm:$0xf] }
 0x246   : > { %v4125_v62 = vrot.slane %v4123_v0, 5  ;;  %v4739_v33 = vsel %vm12988_vm13, %v4737_v11, %v4738_v37  ;;  %v4137_v45 = vshll.u32 %v3975_v24, 16  ;;  %v4141_v0 = vshrl.u32 %v3975_v24, 16  ;;  %v3976_v11 = vld [vmem:[#allocation2 + $0x5c] sm:$0x1] }
 0x247   : > { %v13643_v35 = vpop.f32.mrf.mxu1  ;;  %v4742_v37 = vrot.slane %v3975_v24, 5 }
 0x248   : > { %16472 = vst [vmem:[#allocation17_spill] sm:$0xff] %v13643_v35  ;;  %v2160_v3 = vpop.f32.mrf.mxu2 }
 0x249   : > { %v2210_v27 = vadd.f32 %v2160_v3, %v13088_v13  ;;  %v4111_v13 = vrot.slane %v4110_v18, 4  ;;  %v4128_v18 = vshrl.u32 %v3974_v23, 16  ;;  %v4744_v35 = vrot.slane %v4742_v37, 4 }
 0x24b   : > { %v2524_v61 = vadd.f32 %v2474_v21, %v2210_v27  ;;  %v11340_v21 = vrot.slane %v4645_v14, 9 }
 0x24c   : > { %v2476_v9 = vpop.f32.mrf.mxu3 }
 0x24d   : > { %v3161_v29 = vpop.f32.mrf.mxu0  ;;  %v3206_v1 = vadd.f32 %v3156_v22, %v2524_v61  ;;  %v4116_v22 = vsel %vm12584_vm7, %v4111_v13, %v4115_v43  ;;  %v4843_v43 = vunpack.c.l.b16 %v4739_v33  ;;  %v4130_v13 = vrot.slane %v4128_v18, 4 }
 0x24e   : > { %v4416_v44 = vunpack.c.l.b16 %v4116_v22  ;;  %v4745_v18 = vrot.slane %v3976_v11, 5 }
 0x24f   : > { %v3587_v19 = vpop.f32.mrf.mxu1  ;;  %v13652_v28 = vadd.f32 %v3582_v32, %v3206_v1  ;;  %v4126_v32 = vsel %vm12584_vm7, %v4121_v59, %v4125_v62  ;;  %v4143_v62 = vrot.slane %v4141_v0, 4 }
 0x250   : > { %4969 = vmatmul.bf16.gmra.mxu0 %v4869_v5  ;;  %v2162_v54 = vpop.f32.mrf.mxu2  ;;  %v4736_v5 = vsel %vm12988_vm13, %v11340_v21, %v4735_v12  ;;  %v4417_v14 = vunpack.c.l.b16 %v4126_v32  ;;  %v4139_v12 = vrot.slane %v4137_v45, 5  ;;  %v13670_v45 = vld [vmem:[#allocation2 + $0x64] sm:$0xf] }
 0x251   : > { %16473 = vst [vmem:[#allocation18_spill] sm:$0xff] %v13652_v28  ;;  %4543 = vmatmul.bf16.gmra.mxu3 %v4443_v42  ;;  %v2211_v53 = vadd.f32 %v2162_v54, %v13102_v47  ;;  %v4131_v47 = vshll.u32 %v3974_v23, 16  ;;  %v4842_v42 = vunpack.c.l.b16 %v4736_v5 }
 0x252   : > { %v4144_v33 = vor.u32 %v4143_v62, %v4139_v12  ;;  %v4161_v62 = vshll.u32 %v13670_v45, 16 }
 0x253   : > { %v2525_v3 = vadd.f32 %v2476_v9, %v2211_v53  ;;  %v4133_v59 = vrot.slane %v4131_v47, 5  ;;  %v4870_v53 = vpack.c.b16 %v4843_v43, %v4842_v42 }
 0x254   : > { %v2479_v16 = vpop.f32.mrf.mxu3  ;;  %3861 = vmatmul.bf16.gmra.mxu2 %v12144_v57  ;;  %v4646_v57 = vld [vmem:[#allocation2 + $0x54] sm:$0xe] }
 0x255   : > { %v3163_v27 = vpop.f32.mrf.mxu0  ;;  %v13663_v61 = vadd.f32 %v3158_v8, %v2525_v3  ;;  %v4444_v3 = vpack.c.b16 %v4417_v14, %v4416_v44  ;;  %v4134_v5 = vor.u32 %v4133_v59, %v4130_v13  ;;  %v11341_v32 = vrot.slane %v4646_v57, 9  ;;  %v12145_v14 = vld [vmem:[#allocation2 + $0x48] sm:$0xff] }
 0x257   : > { %16474 = vst [vmem:[#allocation19_spill] sm:$0xff] %v13663_v61  ;;  %v13665_v9 = vpop.f32.mrf.mxu1  ;;  %v4135_v42 = vrot.slane %v4134_v5, 4  ;;  %v4163_v5 = vrot.slane %v4161_v62, 5 }
 0x258   : > { %16475 = vst [vmem:[#allocation20_spill] sm:$0xff] %v13665_v9  ;;  %v2165_v1 = vpop.f32.mrf.mxu2  ;;  %v4147_v9 = vshll.u32 %v3976_v11, 16 }
 0x259   : > { %v2212_v21 = vadd.f32 %v2165_v1, %v13116_v30  ;;  %v3977_v30 = vld [vmem:[#allocation2 + $0x60] sm:$0xf]  ;;  %v4746_v1 = vsel %vm12988_vm13, %v4744_v35, %v4745_v18  ;;  %v3979_v18 = vld [vmem:[#allocation2 + $0x68] sm:$0x1] }
 0x25a   : > { %v4149_v43 = vrot.slane %v4147_v9, 5  ;;  %v4152_v13 = vshrl.u32 %v3977_v30, 16  ;;  %v4155_v59 = vshll.u32 %v3977_v30, 16  ;;  %v4140_v9 = vsel %vm12584_vm7, %v4135_v42, %v4139_v12 }
 0x25b   : > { %v2526_v8 = vadd.f32 %v2479_v16, %v2212_v21  ;;  %v4145_v16 = vrot.slane %v4144_v33, 4  ;;  %v4165_v21 = vshrl.u32 %v13670_v45, 16  ;;  %v4845_v35 = vunpack.c.l.b16 %v4746_v1 }
 0x25c   : > { %v2481_v54 = vpop.f32.mrf.mxu3  ;;  %v4749_v1 = vrot.slane %v13670_v45, 5 }
 0x25d   : > { %v3166_v23 = vpop.f32.mrf.mxu0  ;;  %v3208_v22 = vadd.f32 %v3161_v29, %v2526_v8  ;;  %v4743_v29 = vsel %vm12988_vm13, %v11341_v32, %v4742_v37  ;;  %v4154_v8 = vrot.slane %v4152_v13, 4  ;;  %v4167_v33 = vrot.slane %v4165_v21, 4  ;;  %v12206_v13 = vld [vmem:[%s16439_s4 + $0x48] sm:$0xff] }
 0x25e   : > { %v4844_v57 = vunpack.c.l.b16 %v4743_v29  ;;  %6219 = vmatpush.bf16.msra.mxu1 %v12206_v13 }
 0x25f   : > { %v13668_v47 = vadd.f32 %v3587_v19, %v3208_v22  ;;  %v3592_v0 = vpop.f32.mrf.mxu1  ;;  %v4418_v22 = vunpack.c.l.b16 %v4140_v9 }
 0x260   : > { %4974 = vmatmul.bf16.gmra.mxu0 %v4870_v53  ;;  %v2167_v24 = vpop.f32.mrf.mxu2  ;;  %v4871_v12 = vpack.c.b16 %v4845_v35, %v4844_v57  ;;  %v4752_v57 = vrot.slane %v3979_v18, 5 }
 0x261   : > { %16476 = vst [vmem:[#allocation21_spill] sm:$0xff] %v13668_v47  ;;  %4548 = vmatmul.bf16.gmra.mxu3 %v4444_v3  ;;  %v2213_v44 = vadd.f32 %v2167_v24, %v13127_v4  ;;  %v4150_v4 = vsel %vm12584_vm7, %v4145_v16, %v4149_v43  ;;  %v4157_v3 = vrot.slane %v4155_v59, 5  ;;  %v4168_v43 = vor.u32 %v4167_v33, %v4163_v5  ;;  %v4647_v59 = vld [vmem:[#allocation2 + $0x60] sm:$0xe]  ;;  %v3981_v33 = vld [vmem:[#allocation2 + $0x70] sm:$0xf] }
 0x262   : > { %v4419_v32 = vunpack.c.l.b16 %v4150_v4  ;;  %v11342_v4 = vrot.slane %v4647_v59, 9 }
 0x263   : > { %v2527_v11 = vadd.f32 %v2481_v54, %v2213_v44  ;;  %v4158_v16 = vor.u32 %v4157_v3, %v4154_v8  ;;  %v4169_v21 = vrot.slane %v4168_v43, 4  ;;  %v12146_v8 = vld [vmem:[#allocation2 + $0x54] sm:$0xff]  ;;  %v3980_v3 = vld [vmem:[#allocation2 + $0x6c] sm:$0xf]  ;;  %v4185_v43 = vshll.u32 %v3981_v33, 16 }
 0x264   : > { %v2484_v19 = vpop.f32.mrf.mxu3  ;;  %3866 = vmatmul.bf16.gmra.mxu2 %v12145_v14  ;;  %v4445_v29 = vpack.c.b16 %v4419_v32, %v4418_v22 }
 0x265   : > { %v3168_v53 = vpop.f32.mrf.mxu0  ;;  %v13683_v37 = vadd.f32 %v3163_v27, %v2527_v11  ;;  %v4171_v27 = vshll.u32 %v3979_v18, 16 }
 0x267   : > { %16477 = vst [vmem:[#allocation22_spill] sm:$0xff] %v13683_v37  ;;  %v13686_v42 = vpop.f32.mrf.mxu1  ;;  %v4173_v11 = vrot.slane %v4171_v27, 5  ;;  %v4189_v27 = vshrl.u32 %v3981_v33, 16 }
 0x268   : > { %v2170_v54 = vpop.f32.mrf.mxu2  ;;  %16478 = vst [vmem:[#allocation23_spill] sm:$0xff] %v13686_v42 }
 0x269   : > { %v2214_v30 = vadd.f32 %v2170_v54, %v13147_v51  ;;  %v4159_v51 = vrot.slane %v4158_v16, 4  ;;  %v4179_v16 = vshll.u32 %v3980_v3, 16 }
 0x26b   : > { %v2528_v44 = vadd.f32 %v2484_v19, %v2214_v30  ;;  %v4751_v19 = vrot.slane %v4749_v1, 4  ;;  %v4750_v30 = vsel %vm12988_vm13, %v11342_v4, %v4749_v1  ;;  %v4191_v1 = vrot.slane %v4189_v27, 4  ;;  %v13710_v27 = vld [vmem:[#allocation2 + $0x7c] sm:$0xf] }
 0x26c   : > { %v2486_v24 = vpop.f32.mrf.mxu3 }
 0x26d   : > { %v3171_v14 = vpop.f32.mrf.mxu0  ;;  %v3210_v62 = vadd.f32 %v3166_v23, %v2528_v44  ;;  %v4164_v23 = vsel %vm12584_vm7, %v4159_v51, %v4163_v5  ;;  %v4753_v18 = vsel %vm12988_vm13, %v4751_v19, %v4752_v57  ;;  %v4846_v5 = vunpack.c.l.b16 %v4750_v30  ;;  %v3982_v19 = vld [vmem:[#allocation2 + $0x74] sm:$0x1] }
 0x26e   : > { %v4181_v51 = vrot.slane %v4179_v16, 5  ;;  %v4756_v57 = vrot.slane %v3981_v33, 5  ;;  %v3983_v33 = vld [vmem:[#allocation2 + $0x78] sm:$0xf] }
 0x26f   : > { %v13692_v9 = vadd.f32 %v3592_v0, %v3210_v62  ;;  %v4174_v0 = vsel %vm12584_vm7, %v4169_v21, %v4173_v11  ;;  %v4187_v21 = vrot.slane %v4185_v43, 5  ;;  %v16481_v11 = vld [vmem:[#allocation4_spill] sm:$0xff] }
 0x270   : > { %4979 = vmatmul.bf16.gmra.mxu0 %v4871_v12  ;;  %v2172_v35 = vpop.f32.mrf.mxu2  ;;  %v3597_v12 = vpop.f32.mrf.mxu1  ;;  %v4421_v13 = vunpack.c.l.b16 %v4174_v0 }
 0x271   : > { %16479 = vst [vmem:[#allocation24_spill] sm:$0xff] %v13692_v9  ;;  %4553 = vmatmul.bf16.gmra.mxu3 %v4445_v29  ;;  %v2215_v45 = vadd.f32 %v2172_v35, %v13161_v34  ;;  %v4176_v34 = vshrl.u32 %v3980_v3, 16  ;;  %v4420_v29 = vunpack.c.l.b16 %v4164_v23  ;;  %v4648_v3 = vld [vmem:[#allocation2 + $0x6c] sm:$0xe]  ;;  %v4192_v30 = vor.u32 %v4191_v1, %v4187_v21  ;;  %v4650_v9 = vld [vmem:[#allocation2 + $0x84] sm:$0xe] }
 0x272   : > { %v11343_v0 = vrot.slane %v4648_v3, 9  ;;  %v4203_v1 = vshll.u32 %v3983_v33, 16 }
 0x273   : > { %v2529_v32 = vadd.f32 %v2486_v24, %v2215_v45  ;;  %v4847_v24 = vunpack.c.l.b16 %v4753_v18  ;;  %v4178_v62 = vrot.slane %v4176_v34, 4  ;;  %v4195_v18 = vshll.u32 %v3982_v19, 16 }
 0x274   : > { %v2489_v22 = vpop.f32.mrf.mxu3  ;;  %3871 = vmatmul.bf16.gmra.mxu2 %v12146_v8  ;;  %v4759_v34 = vrot.slane %v3982_v19, 5 }
 0x275   : > { %v3173_v54 = vpop.f32.mrf.mxu0  ;;  %v13703_v44 = vadd.f32 %v3168_v53, %v2529_v32  ;;  %v4872_v45 = vpack.c.b16 %v4847_v24, %v4846_v5  ;;  %v4446_v53 = vpack.c.b16 %v4421_v13, %v4420_v29  ;;  %v4182_v32 = vor.u32 %v4181_v51, %v4178_v62  ;;  %v16484_v13 = vld [vmem:[#allocation5_spill] sm:$0xff]  ;;  %v12147_v62 = vld [vmem:[#allocation2 + $0x60] sm:$0xff] }
 0x276   : > { %v4193_v24 = vrot.slane %v4192_v30, 4  ;;  %v4197_v29 = vrot.slane %v4195_v18, 5  ;;  %v4205_v18 = vrot.slane %v4203_v1, 5 }
 0x277   : > { %16480 = vst [vmem:[#allocation25_spill] sm:$0xff] %v13703_v44  ;;  %v4758_v44 = vrot.slane %v4756_v57, 4 }
 0x278   : > { %v2175_v59 = vpop.f32.mrf.mxu2  ;;  %v13706_v16 = vpop.f32.mrf.mxu1 }
 0x279   : > { %v2216_v4 = vadd.f32 %v2175_v59, %v16481_v11  ;;  %16482 = vst [vmem:[#allocation4_spill] sm:$0xff] %v13706_v16  ;;  %v4209_v11 = vshll.u32 %v13710_v27, 16 }
 0x27b   : > { %v2530_v42 = vadd.f32 %v2489_v22, %v2216_v4  ;;  %v4183_v22 = vrot.slane %v4182_v32, 4  ;;  %v4213_v4 = vshrl.u32 %v13710_v27, 16 }
 0x27c   : > { %v2491_v35 = vpop.f32.mrf.mxu3 }
 0x27d   : > { %v3176_v8 = vpop.f32.mrf.mxu0  ;;  %v3212_v23 = vadd.f32 %v3171_v14, %v2530_v42  ;;  %v4757_v42 = vsel %vm12988_vm13, %v11343_v0, %v4756_v57  ;;  %v4760_v14 = vsel %vm12988_vm13, %v4758_v44, %v4759_v34  ;;  %v4188_v3 = vsel %vm12584_vm7, %v4183_v22, %v4187_v21 }
 0x27e   : > { %v4848_v32 = vunpack.c.l.b16 %v4757_v42  ;;  %v4849_v44 = vunpack.c.l.b16 %v4760_v14  ;;  %v4215_v0 = vrot.slane %v4213_v4, 4  ;;  %v4422_v34 = vunpack.c.l.b16 %v4188_v3 }
 0x27f   : > { %v13708_v43 = vadd.f32 %v3597_v12, %v3212_v23  ;;  %v4200_v12 = vshrl.u32 %v3983_v33, 16  ;;  %v4211_v23 = vrot.slane %v4209_v11, 5  ;;  %v4763_v14 = vrot.slane %v13710_v27, 5  ;;  %v3986_v11 = vld [vmem:[#allocation2 + $0x84] sm:$0xf] }
 0x280   : > { %4984 = vmatmul.bf16.gmra.mxu0 %v4872_v45  ;;  %v2177_v5 = vpop.f32.mrf.mxu2  ;;  %v4873_v22 = vpack.c.b16 %v4849_v44, %v4848_v32 }
 0x281   : > { %16483 = vst [vmem:[#allocation26_spill] sm:$0xff] %v13708_v43  ;;  %4558 = vmatmul.bf16.gmra.mxu3 %v4446_v53  ;;  %v2217_v59 = vadd.f32 %v2177_v5, %v16484_v13  ;;  %v4198_v53 = vsel %vm12584_vm7, %v4193_v24, %v4197_v29  ;;  %v4202_v30 = vrot.slane %v4200_v12, 4  ;;  %v3985_v5 = vld [vmem:[#allocation2 + $0x80] sm:$0x1]  ;;  %v3602_v13 = vpop.f32.mrf.mxu1  ;;  %v4216_v24 = vor.u32 %v4215_v0, %v4211_v23  ;;  %v4649_v12 = vld [vmem:[#allocation2 + $0x78] sm:$0xe] }
 0x282   : > { %v4423_v33 = vunpack.c.l.b16 %v4198_v53  ;;  %v4219_v29 = vshll.u32 %v3985_v5, 16  ;;  %v11344_v32 = vrot.slane %v4649_v12, 9  ;;  %v4765_v44 = vrot.slane %v4763_v14, 4 }
 0x283   : > { %v2531_v19 = vadd.f32 %v2491_v35, %v2217_v59  ;;  %v16486_v59 = vld [vmem:[#allocation6_spill] sm:$0xff]  ;;  %v4206_v43 = vor.u32 %v4205_v18, %v4202_v30  ;;  %v4766_v30 = vrot.slane %v3985_v5, 5  ;;  %v13731_v18 = vld [vmem:[#allocation2 + $0x88] sm:$0xf]  ;;  %v4227_v0 = vshll.u32 %v3986_v11, 16 }
 0x284   : > { %v2494_v51 = vpop.f32.mrf.mxu3  ;;  %3876 = vmatmul.bf16.gmra.mxu2 %v12147_v62  ;;  %v4447_v42 = vpack.c.b16 %v4423_v33, %v4422_v34  ;;  %v4221_v3 = vrot.slane %v4219_v29, 5  ;;  %v16488_v34 = vld [vmem:[#allocation7_spill] sm:$0xff]  ;;  %v4237_v5 = vshrl.u32 %v13731_v18, 16  ;;  %v4764_v29 = vsel %vm12988_vm13, %v11344_v32, %v4763_v14 }
 0x285   : > { %v3178_v45 = vpop.f32.mrf.mxu0  ;;  %v13723_v57 = vadd.f32 %v3173_v54, %v2531_v19  ;;  %v4207_v4 = vrot.slane %v4206_v43, 4  ;;  %v4217_v19 = vrot.slane %v4216_v24, 4  ;;  %v12148_v33 = vld [vmem:[#allocation2 + $0x6c] sm:$0xff]  ;;  %v4229_v12 = vrot.slane %v4227_v0, 5 }
 0x286   : > { %v16491_v0 = vld [vmem:[#allocation8_spill] sm:$0xff] }
 0x287   : > { %16485 = vst [vmem:[#allocation5_spill] sm:$0xff] %v13723_v57  ;;  %v4212_v43 = vsel %vm12584_vm7, %v4207_v4, %v4211_v23  ;;  %v13750_v4 = vld [vmem:[#allocation2 + $0x8c] sm:$0x1] }
 0x288   : > { %v2180_v35 = vpop.f32.mrf.mxu2 }
 0x289   : > { %v2218_v16 = vadd.f32 %v2180_v35, %v16486_v59  ;;  %v4233_v59 = vshll.u32 %v13731_v18, 16 }
 0x28b   : > { %v2532_v54 = vadd.f32 %v2494_v51, %v2218_v16  ;;  %v4224_v51 = vshrl.u32 %v3986_v11, 16 }
 0x28c   : > { %v2496_v21 = vpop.f32.mrf.mxu3 }
 0x28d   : > { %v13726_v62 = vpop.f32.mrf.mxu0  ;;  %v3214_v1 = vadd.f32 %v3176_v8, %v2532_v54  ;;  %v13734_v8 = vpop.f32.mrf.mxu1  ;;  %v4767_v54 = vsel %vm12988_vm13, %v4765_v44, %v4766_v30 }
 0x28e   : > { %16489 = vst [vmem:[#allocation7_spill] sm:$0xff] %v13734_v8 }
 0x28f   : > { %v13729_v53 = vadd.f32 %v3602_v13, %v3214_v1  ;;  %v4222_v13 = vsel %vm12584_vm7, %v4217_v19, %v4221_v3  ;;  %v4424_v1 = vunpack.c.l.b16 %v4212_v43  ;;  %v4850_v19 = vunpack.c.l.b16 %v4764_v29 }
 0x290   : > { %4989 = vmatmul.bf16.gmra.mxu0 %v4873_v22  ;;  %v2182_v16 = vpop.f32.mrf.mxu2  ;;  %v4425_v11 = vunpack.c.l.b16 %v4222_v13  ;;  %v4851_v3 = vunpack.c.l.b16 %v4767_v54 }
 0x291   : > { %16487 = vst [vmem:[#allocation6_spill] sm:$0xff] %v13729_v53  ;;  %4563 = vmatmul.bf16.gmra.mxu3 %v4447_v42  ;;  %v2219_v27 = vadd.f32 %v2182_v16, %v16488_v34  ;;  %v4226_v42 = vrot.slane %v4224_v51, 4  ;;  %v4239_v16 = vrot.slane %v4237_v5, 4  ;;  %v5636_v34 = vld [vmem:[#allocation3] sm:$0xf]  ;;  %v4243_v51 = vshll.u32 %v13750_v4, 16 }
 0x292   : > { %v5701_v14 = vshrl.u32 %v5636_v34, 16  ;;  %v5704_v32 = vshll.u32 %v5636_v34, 16  ;;  %v4448_v54 = vpack.c.b16 %v4425_v11, %v4424_v1 }
 0x293   : > { %v2533_v22 = vadd.f32 %v2496_v21, %v2219_v27  ;;  %v13752_v21 = vrot.slane %v4233_v59, 5  ;;  %v5637_v27 = vld [vmem:[#allocation3 + $0x4] sm:$0xf]  ;;  %v4230_v30 = vor.u32 %v4229_v12, %v4226_v42  ;;  %v4874_v59 = vpack.c.b16 %v4851_v3, %v4850_v19  ;;  %v3989_v19 = vld [vmem:[#allocation2 + $0x90] sm:$0xf] }
 0x294   : > { %v2499_v35 = vpop.f32.mrf.mxu3  ;;  %3881 = vmatmul.bf16.gmra.mxu2 %v12148_v33  ;;  %v5710_v8 = vshll.u32 %v5637_v27, 16  ;;  %v5703_v43 = vrot.slane %v5701_v14, 4  ;;  %v5706_v13 = vrot.slane %v5704_v32, 5  ;;  %v4770_v42 = vrot.slane %v13731_v18, 5  ;;  %v13764_v18 = vld [vmem:[#allocation2 + $0x94] sm:$0xf] }
 0x295   : > { %v13742_v24 = vpop.f32.mrf.mxu0  ;;  %v13748_v23 = vadd.f32 %v3178_v45, %v2533_v22  ;;  %v5714_v45 = vshrl.u32 %v5637_v27, 16  ;;  %v4240_v5 = vor.u32 %v4239_v16, %v13752_v21  ;;  %v3607_v37 = vpop.f32.mrf.mxu1  ;;  %v4245_v32 = vrot.slane %v4243_v51, 5 }
 0x296   : > { %v5712_v22 = vrot.slane %v5710_v8, 5  ;;  %v5707_v12 = vor.u32 %v5706_v13, %v5703_v43  ;;  %v11345_v16 = vrot.slane %v4650_v9, 9  ;;  %v4251_v9 = vshll.u32 %v3989_v19, 16  ;;  %v16493_v43 = vld [vmem:[#allocation9_spill] sm:$0xff] }
 0x297   : > { %16490 = vst [vmem:[#allocation27_spill] sm:$0xff] %v13748_v23  ;;  %v5684_v23 = vld [vmem:[#allocation3 + $0x8] sm:$0x1]  ;;  %v5716_v53 = vrot.slane %v5714_v45, 4  ;;  %v4241_v3 = vrot.slane %v4240_v5, 4  ;;  %v4261_v5 = vshrl.u32 %v13764_v18, 16 }
 0x298   : > { %v2185_v44 = vpop.f32.mrf.mxu2  ;;  %v5720_v27 = vshll.u32 %v5684_v23, 16  ;;  %v5708_v1 = vrot.slane %v5707_v12, 4 }
 0x299   : > { %v2220_v33 = vadd.f32 %v2185_v44, %v16491_v0  ;;  %v4231_v44 = vrot.slane %v4230_v30, 4  ;;  %v5717_v14 = vor.u32 %v5716_v53, %v5712_v22  ;;  %v4772_v53 = vrot.slane %v4770_v42, 4 }
 0x29a   : > { %v5722_v11 = vrot.slane %v5720_v27, 5 }
 0x29b   : > { %v2534_v57 = vadd.f32 %v2499_v35, %v2220_v33  ;;  %v12205_v35 = vld [vmem:[%s16439_s4 + $0x40] sm:$0xff]  ;;  %v5718_v45 = vrot.slane %v5717_v14, 4  ;;  %v4248_v33 = vshrl.u32 %v3989_v19, 16 }
 0x29c   : > { %v2501_v29 = vpop.f32.mrf.mxu3  ;;  %6220 = vmatpush.bf16.msra.mxu1 %v12205_v35  ;;  %v4253_v35 = vrot.slane %v4251_v9, 5  ;;  %v4651_v9 = vld [vmem:[#allocation2 + $0x90] sm:$0xe] }
 0x29d   : > { %v13757_v34 = vpop.f32.mrf.mxu0  ;;  %v3216_v8 = vadd.f32 %v13726_v62, %v2534_v57  ;;  %v4773_v57 = vrot.slane %v13750_v4, 5  ;;  %v5713_v62 = vsel %vm12584_vm7, %v5708_v1, %v5712_v22  ;;  %v5723_v51 = vsel %vm12584_vm7, %v5718_v45, %v5722_v11  ;;  %v3991_v45 = vld [vmem:[#allocation2 + $0x98] sm:$0x1] }
 0x29e   : > { %v6101_v0 = vunpack.c.l.b16 %v5713_v62  ;;  %v4771_v22 = vsel %vm12988_vm13, %v11345_v16, %v4770_v42  ;;  %v4236_v1 = vsel %vm12584_vm7, %v4231_v44, %v13752_v21  ;;  %v4246_v11 = vsel %vm12584_vm7, %v4241_v3, %v4245_v32  ;;  %v3992_v44 = vld [vmem:[#allocation2 + $0x9c] sm:$0xf]  ;;  %v16495_v32 = vld [vmem:[#allocation10_spill] sm:$0xff] }
 0x29f   : > { %v13766_v23 = vadd.f32 %v3607_v37, %v3216_v8  ;;  %v6102_v37 = vunpack.c.l.b16 %v5723_v51  ;;  %v4774_v14 = vsel %vm12988_vm13, %v4772_v53, %v4773_v57  ;;  %v4250_v19 = vrot.slane %v4248_v33, 4 }
 0x2a0   : > { %4994 = vmatmul.bf16.gmra.mxu0 %v4874_v59  ;;  %v2187_v30 = vpop.f32.mrf.mxu2  ;;  %v12149_v59 = vld [vmem:[#allocation2 + $0x78] sm:$0xff]  ;;  %v4263_v16 = vrot.slane %v4261_v5, 4  ;;  %v4852_v62 = vunpack.c.l.b16 %v4771_v22  ;;  %v4853_v53 = vunpack.c.l.b16 %v4774_v14  ;;  %v4426_v57 = vunpack.c.l.b16 %v4236_v1 }
 0x2a1   : > { %16492 = vst [vmem:[#allocation8_spill] sm:$0xff] %v13766_v23  ;;  %4568 = vmatmul.bf16.gmra.mxu3 %v4448_v54  ;;  %v2221_v13 = vadd.f32 %v2187_v30, %v16493_v43  ;;  %v4257_v54 = vshll.u32 %v13764_v18, 16  ;;  %v6133_v8 = vpack.c.b16 %v6102_v37, %v6101_v0  ;;  %v4427_v30 = vunpack.c.l.b16 %v4246_v11  ;;  %v13790_v43 = vld [vmem:[#allocation2 + $0xa0] sm:$0xf] }
 0x2a2   : > { %v4254_v0 = vor.u32 %v4253_v35, %v4250_v19  ;;  %v4267_v21 = vshll.u32 %v3991_v45, 16  ;;  %v4272_v37 = vshrl.u32 %v3992_v44, 16  ;;  %v4285_v1 = vshrl.u32 %v13790_v43, 16 }
 0x2a3   : > { %v2535_v12 = vadd.f32 %v2501_v29, %v2221_v13  ;;  %6221 = vmatmul.bf16.vlgmr.msra.gmra.mxu1 %v6133_v8  ;;  %v4259_v42 = vrot.slane %v4257_v54, 5  ;;  %v4275_v54 = vshll.u32 %v3992_v44, 16  ;;  %v4449_v14 = vpack.c.b16 %v4427_v30, %v4426_v57  ;;  %v12204_v57 = vld [vmem:[%s16439_s4 + $0x38] sm:$0xff] }
 0x2a4   : > { %v4529_v4 = vpop.f32.mrf.mxu3  ;;  %3886 = vmatmul.bf16.gmra.mxu2 %v12149_v59  ;;  %v4875_v59 = vpack.c.b16 %v4853_v53, %v4852_v62  ;;  %v4281_v8 = vshll.u32 %v13790_v43, 16  ;;  %v4255_v11 = vrot.slane %v4254_v0, 4  ;;  %v4269_v19 = vrot.slane %v4267_v21, 5  ;;  %v13813_v21 = vld [vmem:[#allocation2 + $0xa4] sm:$0x1] }
 0x2a5   : > { %v13776_v27 = vpop.f32.mrf.mxu0  ;;  %v13788_v29 = vadd.f32 %v13742_v24, %v2535_v12  ;;  %v4264_v33 = vor.u32 %v4263_v16, %v4259_v42  ;;  %v4777_v24 = vrot.slane %v13764_v18, 5  ;;  %v13797_v12 = vld [vmem:[%s16437_s2] ss:$0 sm:$0xff]  ;;  %v11346_v18 = vrot.slane %v4651_v9, 9  ;;  %6446 = vmatpush.bf16.msrb.mxu2 %v12204_v57 }
 0x2a6   : > { %v4780_v53 = vrot.slane %v3991_v45, 5  ;;  %v4274_v30 = vrot.slane %v4272_v37, 4  ;;  %v4287_v44 = vrot.slane %v4285_v1, 4  ;;  %v4260_v45 = vsel %vm12584_vm7, %v4255_v11, %v4259_v42 }
 0x2a7   : > { %16494 = vst [vmem:[#allocation9_spill] sm:$0xff] %v13788_v29  ;;  %v4265_v16 = vrot.slane %v4264_v33, 4  ;;  %v4779_v62 = vrot.slane %v4777_v24, 4 }
 0x2a8   : > { %v3847_v51 = vpop.f32.mrf.mxu2 }
 0x2a9   : > { %v3927_v3 = vadd.f32 %v3847_v51, %v16495_v32  ;;  %v4277_v51 = vrot.slane %v4275_v54, 5  ;;  %v4270_v37 = vsel %vm12584_vm7, %v4265_v16, %v4269_v19  ;;  %v4781_v54 = vsel %vm12988_vm13, %v4779_v62, %v4780_v53 }
 0x2aa   : > { %v4855_v57 = vunpack.c.l.b16 %v4781_v54  ;;  %v4784_v19 = vrot.slane %v13790_v43, 5  ;;  %v3995_v54 = vld [vmem:[#allocation2 + $0xa8] sm:$0xf] }
 0x2ab   : > { %v4609_v5 = vadd.f32 %v4529_v4, %v3927_v3  ;;  %v13807_v4 = vld [vmem:[%s16438_s3] ss:$0 sm:$0xff]  ;;  %v4778_v3 = vsel %vm12988_vm13, %v11346_v18, %v4777_v24 }
 0x2ac   : > { %v4531_v13 = vpop.f32.mrf.mxu3  ;;  %v4854_v24 = vunpack.c.l.b16 %v4778_v3  ;;  %v4786_v43 = vrot.slane %v4784_v19, 4 }
 0x2ad   : > { %v13799_v22 = vpop.f32.mrf.mxu0  ;;  %v5035_v35 = vadd.f32 %v13757_v34, %v4609_v5  ;;  %v13815_v34 = vrot.slane %v4281_v8, 5  ;;  %v4291_v8 = vshll.u32 %v13813_v21, 16 }
 0x2af   : > { %v5070_v0 = vmul.f32 %v13797_v12, %v5035_v35  ;;  %v4288_v18 = vor.u32 %v4287_v44, %v13815_v34  ;;  %v4428_v35 = vunpack.c.l.b16 %v4260_v45 }
 0x2b0   : > { %4999 = vmatmul.bf16.gmra.mxu0 %v4875_v59  ;;  %v3849_v32 = vpop.f32.mrf.mxu2  ;;  %v12150_v59 = vld [vmem:[#allocation2 + $0x84] sm:$0xff] }
 0x2b1   : > { %4573 = vmatmul.bf16.gmra.mxu3 %v4449_v14  ;;  %v5105_v33 = vadd.f32 %v13807_v4, %v5070_v0  ;;  %v3928_v9 = vadd.f32 %v3849_v32, %v13322_v38  ;;  %v4278_v14 = vor.u32 %v4277_v51, %v4274_v30  ;;  %v4429_v38 = vunpack.c.l.b16 %v4270_v37  ;;  %v4652_v0 = vld [vmem:[#allocation2 + $0x9c] sm:$0xe] }
 0x2b2   : > { %v4293_v30 = vrot.slane %v4291_v8, 5  ;;  %v12220_v32 = vld [vmem:[%s16439_s4 + $0xb8] sm:$0xff]  ;;  %v4289_v44 = vrot.slane %v4288_v18, 4  ;;  %v11347_v45 = vrot.slane %v4652_v0, 9  ;;  %v4876_v37 = vpack.c.b16 %v4855_v57, %v4854_v24 }
 0x2b3   : > { %v5137_v1 = vmax.f32 %v5105_v33, 0.0  ;;  %v4610_v42 = vadd.f32 %v4531_v13, %v3928_v9  ;;  %v4279_v53 = vrot.slane %v4278_v14, 4  ;;  %v4450_v9 = vpack.c.b16 %v4429_v38, %v4428_v35  ;;  %v16496_v14 = vld [vmem:[#allocation11_spill] sm:$0xff]  ;;  %6824 = vmatpush.bf16.msrb.mxu3 %v12220_v32  ;;  %v13852_v32 = vld [vmem:[#allocation2 + $0xb0] sm:$0x1] }
 0x2b4   : > { %v4534_v5 = vpop.f32.mrf.mxu3  ;;  %3891 = vmatmul.bf16.gmra.mxu2 %v12150_v59  ;;  %v4787_v18 = vrot.slane %v13813_v21, 5  ;;  %v4299_v0 = vshll.u32 %v3995_v54, 16 }
 0x2b5   : > { %v13828_v11 = vpop.f32.mrf.mxu0  ;;  %v5169_v16 = vpack.c.bf16 %v5137_v1, %v5137_v1  ;;  %v5036_v62 = vadd.f32 %v13776_v27, %v4610_v42  ;;  %v13837_v1 = vld [vmem:[#allocation2 + $0xac] sm:$0xf]  ;;  %v4296_v42 = vshrl.u32 %v3995_v54, 16 }
 0x2b6   : > { %v4305_v35 = vshll.u32 %v13837_v1, 16  ;;  %v4309_v24 = vshrl.u32 %v13837_v1, 16 }
 0x2b7   : > { %v5202_v51 = vshrl.u32 %v5169_v16, 16  ;;  %v5071_v13 = vmul.f32 %v13797_v12, %v5036_v62  ;;  %v5205_v3 = vshll.u32 %v5169_v16, 16  ;;  %v5522_v62 = vld [vmem:[#allocation3 + $0xc] sm:$0xf] }
 0x2b8   : > { %v3852_v33 = vpop.f32.mrf.mxu2  ;;  %v13854_v21 = vrot.slane %v4305_v35, 5  ;;  %v4311_v54 = vrot.slane %v4309_v24, 4  ;;  %v4788_v35 = vsel %vm12988_vm13, %v4786_v43, %v4787_v18 }
 0x2b9   : > { %v13839_v27 = vrot.slane %v5202_v51, 7  ;;  %v5106_v59 = vadd.f32 %v13807_v4, %v5071_v13  ;;  %v3929_v8 = vadd.f32 %v3852_v33, %v16496_v14  ;;  %v4284_v13 = vsel %vm12584_vm7, %v4279_v53, %v13815_v34  ;;  %v12244_v34 = vld [vmem:[%s16439_s4 + $0xf8] sm:$0xff] }
 0x2ba   : > { %v4298_v33 = vrot.slane %v4296_v42, 4  ;;  %v4301_v14 = vrot.slane %v4299_v0, 5  ;;  %v12252_v53 = vld [vmem:[%s16439_s4 + $0x138] sm:$0xff]  ;;  %v4315_v42 = vshll.u32 %v13852_v32, 16  ;;  %7138 = vmatpush.bf16.msrb.mxu0 %v12244_v34 }
 0x2bb   : > { %v5207_v38 = vor.u32 %v5205_v3, %v13839_v27  ;;  %v5138_v57 = vmax.f32 %v5106_v59, 0.0  ;;  %v4611_v16 = vadd.f32 %v4534_v5, %v3929_v8  ;;  %v4294_v5 = vsel %vm12584_vm7, %v4289_v44, %v4293_v30  ;;  %7820 = vmatpush.bf16.msrb.mxu1 %v12252_v53 }
 0x2bc   : > { %v4536_v29 = vpop.f32.mrf.mxu3  ;;  %v4302_v59 = vor.u32 %v4301_v14, %v4298_v33  ;;  %v4312_v8 = vor.u32 %v4311_v54, %v13854_v21  ;;  %v5208_v30 = vrot.slane %v13839_v27, 4  ;;  %v13875_v0 = vunpack.c.l.b16 %v4294_v5  ;;  %v12151_v33 = vld [vmem:[#allocation2 + $0x90] sm:$0xff] }
 0x2bd   : > { %v13847_v51 = vpop.f32.mrf.mxu0  ;;  %v5523_v23 = vsel %vm12600_vm9, %v5207_v38, %v5522_v62  ;;  %v5170_v47 = vpack.c.bf16 %v5138_v57, %v5138_v57  ;;  %v5037_v3 = vadd.f32 %v13799_v22, %v4611_v16 }
 0x2be   : > { %5524 = vst [vmem:[#allocation3 + $0xc] sm:$0xf] %v5523_v23  ;;  %v4785_v23 = vsel %vm12988_vm13, %v11347_v45, %v4784_v19  ;;  %v4653_v19 = vld [vmem:[#allocation2 + $0xa8] sm:$0xe]  ;;  %v5526_v45 = vld [vmem:[#allocation3 + $0x14] sm:$0x1] }
 0x2bf   : > { %v5210_v62 = vshrl.u32 %v5170_v47, 16  ;;  %v5072_v22 = vmul.f32 %v13797_v12, %v5037_v3  ;;  %v5213_v38 = vshll.u32 %v5170_v47, 16  ;;  %v4303_v14 = vrot.slane %v4302_v59, 4 }
 0x2c0   : > { %5004 = vmatmul.bf16.gmra.mxu0 %v4876_v37  ;;  %v3854_v44 = vpop.f32.mrf.mxu2  ;;  %v13873_v37 = vunpack.c.l.b16 %v4284_v13  ;;  %v4313_v54 = vrot.slane %v4312_v8, 4  ;;  %v4317_v3 = vrot.slane %v4315_v42, 5  ;;  %v4791_v13 = vrot.slane %v13837_v1, 5 }
 0x2c1   : > { %4578 = vmatmul.bf16.gmra.mxu3 %v4450_v9  ;;  %v5212_v24 = vrot.slane %v5210_v62, 7  ;;  %v5107_v57 = vadd.f32 %v13807_v4, %v5072_v22  ;;  %v16497_v9 = vld [vmem:[#allocation12_spill] sm:$0xff]  ;;  %v4856_v18 = vunpack.c.l.b16 %v4785_v23  ;;  %v4857_v62 = vunpack.c.l.b16 %v4788_v35 }
 0x2c2   : > { %v3930_v16 = vadd.f32 %v3854_v44, %v16497_v9  ;;  %v4451_v47 = vpack.c.b16 %v13875_v0, %v13873_v37  ;;  %v11348_v22 = vrot.slane %v4653_v19, 9  ;;  %v4794_v37 = vrot.slane %v13852_v32, 5 }
 0x2c3   : > { %v5215_v5 = vor.u32 %v5213_v38, %v5212_v24  ;;  %v5217_v34 = vrot.slane %v5212_v24, 4  ;;  %v5139_v53 = vmax.f32 %v5107_v57, 0.0  ;;  %v4793_v38 = vrot.slane %v4791_v13, 4 }
 0x2c4   : > { %v4539_v27 = vpop.f32.mrf.mxu3  ;;  %v4612_v61 = vadd.f32 %v4536_v29, %v3930_v16  ;;  %3896 = vmatmul.bf16.gmra.mxu2 %v12151_v33  ;;  %v4318_v35 = vsel %vm12584_vm7, %v4313_v54, %v4317_v3  ;;  %v13900_v16 = vsel %vm12988_vm13, %v11348_v22, %v4791_v13  ;;  %v3998_v13 = vld [vmem:[#allocation2 + $0xb4] sm:$0xf] }
 0x2c5   : > { %v13882_v43 = vpop.f32.mrf.mxu0  ;;  %v5216_v44 = vsel %vm12590_vm8, %v5208_v30, %v5215_v5  ;;  %v5527_v59 = vsel %vm12610_vm10, %v5217_v34, %v5526_v45  ;;  %v5171_v8 = vpack.c.bf16 %v5139_v53, %v5139_v53  ;;  %v5638_v42 = vld [vmem:[#allocation3 + $0xc] sm:$0xf]  ;;  %v4308_v30 = vsel %vm12584_vm7, %v4303_v14, %v13854_v21  ;;  %v5529_v5 = vld [vmem:[#allocation3 + $0x18] sm:$0xf]  ;;  %v13914_v53 = vld [vmem:[#allocation2 + $0xb8] sm:$0xf] }
 0x2c6   : > { %v5038_v1 = vadd.f32 %v13828_v11, %v4612_v61  ;;  %5525 = vst [vmem:[#allocation3 + $0x10] sm:$0xf] %v5216_v44  ;;  %v5725_v29 = vshrl.u32 %v5638_v42, 16  ;;  %v5728_v24 = vshll.u32 %v5638_v42, 16  ;;  %v4877_v11 = vpack.c.b16 %v4857_v62, %v4856_v18 }
 0x2c7   : > { %5528 = vst [vmem:[#allocation3 + $0x14] sm:$0x1] %v5527_v59  ;;  %v5219_v23 = vshrl.u32 %v5171_v8, 16  ;;  %v5222_v33 = vshll.u32 %v5171_v8, 16  ;;  %v13906_v34 = vunpack.c.l.b16 %v4308_v30  ;;  %v13908_v54 = vunpack.c.l.b16 %v4318_v35 }
 0x2c8   : > { %v5073_v0 = vmul.f32 %v13797_v12, %v5038_v1  ;;  %v3857_v61 = vpop.f32.mrf.mxu2  ;;  %v5727_v57 = vrot.slane %v5725_v29, 4  ;;  %v5730_v9 = vrot.slane %v5728_v24, 5  ;;  %v13912_v3 = vsel %vm12988_vm13, %v4793_v38, %v4794_v37 }
 0x2c9   : > { %v13902_v32 = vrot.slane %v5219_v23, 7  ;;  %v3931_v45 = vadd.f32 %v3857_v61, %v13388_v10  ;;  %v4320_v1 = vshrl.u32 %v3998_v13, 16  ;;  %v4323_v42 = vshll.u32 %v3998_v13, 16 }
 0x2ca   : > { %v5108_v19 = vadd.f32 %v13807_v4, %v5073_v0  ;;  %v5731_v14 = vor.u32 %v5730_v9, %v5727_v57  ;;  %v4329_v23 = vshll.u32 %v13914_v53, 16 }
 0x2cb   : > { %v5224_v18 = vor.u32 %v5222_v33, %v13902_v32  ;;  %v4613_v22 = vadd.f32 %v4539_v27, %v3931_v45  ;;  %v5225_v59 = vrot.slane %v13902_v32, 4  ;;  %v12203_v32 = vld [vmem:[%s16439_s4 + $0x30] sm:$0xff] }
 0x2cc   : > { %v4541_v21 = vpop.f32.mrf.mxu3  ;;  %v5140_v62 = vmax.f32 %v5108_v19, 0.0  ;;  %v5732_v8 = vrot.slane %v5731_v14, 4  ;;  %v4325_v14 = vrot.slane %v4323_v42, 5  ;;  %6447 = vmatpush.bf16.msrb.mxu2 %v12203_v32  ;;  %v4331_v25 = vrot.slane %v4329_v23, 5 }
 0x2cd   : > { %v13917_v44 = vpop.f32.mrf.mxu0  ;;  %v5530_v29 = vsel %vm12600_vm9, %v5224_v18, %v5529_v5  ;;  %v5039_v38 = vadd.f32 %v13847_v51, %v4613_v22  ;;  %v13924_v37 = vld [vmem:[#allocation3 + $0x10] sm:$0xf]  ;;  %v4322_v5 = vrot.slane %v4320_v1, 4  ;;  %v16498_v22 = vld [vmem:[#allocation13_spill] sm:$0xff] }
 0x2ce   : > { %v5172_v24 = vpack.c.bf16 %v5140_v62, %v5140_v62  ;;  %5531 = vst [vmem:[#allocation3 + $0x18] sm:$0xf] %v5530_v29  ;;  %v5685_v27 = vld [vmem:[#allocation3 + $0x14] sm:$0x1]  ;;  %v5734_v0 = vshll.u32 %v13924_v37, 16  ;;  %v5738_v30 = vshrl.u32 %v13924_v37, 16 }
 0x2cf   : > { %v5074_v9 = vmul.f32 %v13797_v12, %v5039_v38  ;;  %v5744_v51 = vshll.u32 %v5685_v27, 16  ;;  %v12152_v38 = vld [vmem:[#allocation2 + $0x9c] sm:$0xff]  ;;  %v4326_v28 = vor.u32 %v4325_v14, %v4322_v5 }
 0x2d0   : > { %5009 = vmatmul.bf16.gmra.mxu0 %v4877_v11  ;;  %v5227_v57 = vshrl.u32 %v5172_v24, 16  ;;  %v4333_v11 = vshrl.u32 %v13914_v53, 16  ;;  %v3859_v33 = vpop.f32.mrf.mxu2  ;;  %v5736_v19 = vrot.slane %v5734_v0, 5  ;;  %v5740_v45 = vrot.slane %v5738_v30, 4 }
 0x2d1   : > { %4583 = vmatmul.bf16.gmra.mxu3 %v4451_v47  ;;  %v5230_v18 = vshll.u32 %v5172_v24, 16  ;;  %v5109_v62 = vadd.f32 %v13807_v4, %v5074_v9  ;;  %v3932_v29 = vadd.f32 %v3859_v33, %v16498_v22  ;;  %v5533_v47 = vld [vmem:[#allocation3 + $0x20] sm:$0x1]  ;;  %v5746_v10 = vrot.slane %v5744_v51, 5 }
 0x2d2   : > { %v5229_v13 = vrot.slane %v5227_v57, 7  ;;  %v5737_v35 = vsel %vm12584_vm7, %v5732_v8, %v5736_v19  ;;  %v5741_v61 = vor.u32 %v5740_v45, %v5736_v19  ;;  %v4335_v33 = vrot.slane %v4333_v11, 4  ;;  %v13948_v45 = vld [vmem:[#allocation2 + $0xbc] sm:$0x1] }
 0x2d3   : > { %v5141_v1 = vmax.f32 %v5109_v62, 0.0  ;;  %v4614_v42 = vadd.f32 %v4541_v21, %v3932_v29  ;;  %v6103_v9 = vunpack.c.l.b16 %v5737_v35 }
 0x2d4   : > { %v4544_v27 = vpop.f32.mrf.mxu3  ;;  %v5232_v0 = vor.u32 %v5230_v18, %v5229_v13  ;;  %v5234_v30 = vrot.slane %v5229_v13, 4  ;;  %v5742_v24 = vrot.slane %v5741_v61, 4  ;;  %3901 = vmatmul.bf16.gmra.mxu2 %v12152_v38  ;;  %v4327_v61 = vrot.slane %v4326_v28, 4 }
 0x2d5   : > { %v13941_v57 = vpop.f32.mrf.mxu0  ;;  %v5173_v8 = vpack.c.bf16 %v5141_v1, %v5141_v1  ;;  %v5040_v51 = vadd.f32 %v13882_v43, %v4614_v42  ;;  %v5640_v19 = vld [vmem:[#allocation3 + $0x18] sm:$0xf]  ;;  %v4336_v29 = vor.u32 %v4335_v33, %v4331_v25  ;;  %v4339_v38 = vshll.u32 %v13948_v45, 16  ;;  %v4654_v1 = vld [vmem:[#allocation2 + $0xb4] sm:$0xe] }
 0x2d6   : > { %v5233_v32 = vsel %vm12590_vm8, %v5225_v59, %v5232_v0  ;;  %v5534_v22 = vsel %vm12610_vm10, %v5234_v30, %v5533_v47  ;;  %v5747_v21 = vsel %vm12584_vm7, %v5742_v24, %v5746_v10  ;;  %v5749_v35 = vshrl.u32 %v5640_v19, 16  ;;  %v12219_v43 = vld [vmem:[%s16439_s4 + $0xb0] sm:$0xff]  ;;  %v16499_v47 = vld [vmem:[#allocation14_spill] sm:$0xff]  ;;  %v5536_v42 = vld [vmem:[#allocation3 + $0x24] sm:$0xf] }
 0x2d7   : > { %5532 = vst [vmem:[#allocation3 + $0x1c] sm:$0xf] %v5233_v32  ;;  %v5752_v23 = vshll.u32 %v5640_v19, 16  ;;  %v5236_v11 = vshrl.u32 %v5173_v8, 16  ;;  %v5239_v59 = vshll.u32 %v5173_v8, 16  ;;  %v5075_v5 = vmul.f32 %v13797_v12, %v5040_v51  ;;  %6825 = vmatpush.bf16.msrb.mxu3 %v12219_v43 }
 0x2d8   : > { %5535 = vst [vmem:[#allocation3 + $0x20] sm:$0x1] %v5534_v22  ;;  %v6104_v14 = vunpack.c.l.b16 %v5747_v21  ;;  %v3862_v13 = vpop.f32.mrf.mxu2  ;;  %v5751_v18 = vrot.slane %v5749_v35, 4  ;;  %v16500_v32 = vunpack.c.l.b16 %v13900_v16  ;;  %v16501_v22 = vunpack.c.l.b16 %v13912_v3 }
 0x2d9   : > { %v5754_v62 = vrot.slane %v5752_v23, 5  ;;  %v13957_v10 = vrot.slane %v5236_v11, 7  ;;  %v5110_v28 = vadd.f32 %v13807_v4, %v5075_v5  ;;  %v3933_v0 = vadd.f32 %v3862_v13, %v16499_v47 }
 0x2da   : > { %v6134_v30 = vpack.c.b16 %v6104_v14, %v6103_v9  ;;  %v4878_v8 = vpack.c.b16 %v16501_v22, %v16500_v32  ;;  %v4337_v33 = vrot.slane %v4336_v29, 4  ;;  %v4341_v19 = vrot.slane %v4339_v38, 5 }
 0x2db   : > { %v5755_v51 = vor.u32 %v5754_v62, %v5751_v18  ;;  %v5241_v21 = vor.u32 %v5239_v59, %v13957_v10  ;;  %v5142_v35 = vmax.f32 %v5110_v28, 0.0  ;;  %v4615_v23 = vadd.f32 %v4544_v27, %v3933_v0  ;;  %v12251_v28 = vld [vmem:[%s16439_s4 + $0x130] sm:$0xff] }
 0x2dc   : > { %v4546_v24 = vpop.f32.mrf.mxu3  ;;  %6226 = vmatmul.bf16.gmra.mxu1 %v6134_v30  ;;  %v4332_v9 = vsel %vm12584_vm7, %v4327_v61, %v4331_v25  ;;  %v5242_v5 = vrot.slane %v13957_v10, 4  ;;  %v11349_v14 = vrot.slane %v4654_v1, 9  ;;  %v4798_v16 = vrot.slane %v13914_v53, 5  ;;  %v12243_v25 = vld [vmem:[%s16439_s4 + $0xf0] sm:$0xff] }
 0x2dd   : > { %v13966_v11 = vpop.f32.mrf.mxu0  ;;  %v5537_v3 = vsel %vm12600_vm9, %v5241_v21, %v5536_v42  ;;  %v5174_v43 = vpack.c.bf16 %v5142_v35, %v5142_v35  ;;  %v5041_v13 = vadd.f32 %v13917_v44, %v4615_v23  ;;  %v5756_v27 = vrot.slane %v5755_v51, 4  ;;  %7139 = vmatpush.bf16.msrb.mxu0 %v12243_v25  ;;  %7821 = vmatpush.bf16.msrb.mxu1 %v12251_v28 }
 0x2de   : > { %v13975_v59 = vld [vmem:[#allocation3 + $0x1c] sm:$0xf]  ;;  %5538 = vst [vmem:[#allocation3 + $0x24] sm:$0xf] %v5537_v3  ;;  %v4342_v53 = vsel %vm12584_vm7, %v4337_v33, %v4341_v19  ;;  %v13985_v62 = vunpack.c.l.b16 %v4332_v9  ;;  %v16502_v38 = vpack.c.b16 %v13908_v54, %v13906_v34  ;;  %v4799_v47 = vsel %vm12988_vm13, %v11349_v14, %v4798_v16  ;;  %v4001_v33 = vld [vmem:[#allocation2 + $0xc0] sm:$0xf] }
 0x2df   : > { %v13980_v61 = vld [vmem:[#allocation3 + $0x20] sm:$0x1]  ;;  %v5758_v18 = vshll.u32 %v13975_v59, 16  ;;  %v5244_v29 = vshrl.u32 %v5174_v43, 16  ;;  %v5076_v44 = vmul.f32 %v13797_v12, %v5041_v13  ;;  %v5762_v10 = vshrl.u32 %v13975_v59, 16 }
 0x2e0   : > { %5014 = vmatmul.bf16.gmra.mxu0 %v4878_v8  ;;  %v5247_v0 = vshll.u32 %v5174_v43, 16  ;;  %v3864_v30 = vpop.f32.mrf.mxu2  ;;  %v5768_v42 = vshll.u32 %v13980_v61, 16  ;;  %v4800_v32 = vrot.slane %v4798_v16, 4  ;;  %v12153_v8 = vld [vmem:[#allocation2 + $0xa8] sm:$0xff]  ;;  %v5540_v19 = vld [vmem:[#allocation3 + $0x2c] sm:$0x1]  ;;  %v14002_v9 = vunpack.c.l.b16 %v4342_v53 }
 0x2e1   : > { %4588 = vmatmul.bf16.gmra.mxu3 %v16502_v38  ;;  %v5760_v1 = vrot.slane %v5758_v18, 5  ;;  %v5246_v22 = vrot.slane %v5244_v29, 7  ;;  %v5111_v34 = vadd.f32 %v13807_v4, %v5076_v44  ;;  %v3934_v54 = vadd.f32 %v3864_v30, %v13470_v56 }
 0x2e2   : > { %v5764_v51 = vrot.slane %v5762_v10, 4  ;;  %v5770_v23 = vrot.slane %v5768_v42, 5  ;;  %v4801_v14 = vrot.slane %v13948_v45, 5  ;;  %v4860_v29 = vunpack.c.l.b16 %v4799_v47 }
 0x2e3   : > { %v5761_v35 = vsel %vm12584_vm7, %v5756_v27, %v5760_v1  ;;  %v5249_v16 = vor.u32 %v5247_v0, %v5246_v22  ;;  %v5251_v3 = vrot.slane %v5246_v22, 4  ;;  %v5143_v43 = vmax.f32 %v5111_v34, 0.0 }
 0x2e4   : > { %v4549_v21 = vpop.f32.mrf.mxu3  ;;  %v4616_v13 = vadd.f32 %v4546_v24, %v3934_v54  ;;  %v5765_v56 = vor.u32 %v5764_v51, %v5760_v1  ;;  %v4802_v18 = vsel %vm12988_vm13, %v4800_v32, %v4801_v14  ;;  %v4344_v44 = vshrl.u32 %v4001_v33, 16  ;;  %3906 = vmatmul.bf16.gmra.mxu2 %v12153_v8  ;;  %v14014_v1 = vld [vmem:[#allocation2 + $0xc4] sm:$0xf] }
 0x2e5   : > { %v14005_v25 = vpop.f32.mrf.mxu0  ;;  %v5250_v27 = vsel %vm12590_vm8, %v5242_v5, %v5249_v16  ;;  %v5541_v53 = vsel %vm12610_vm10, %v5251_v3, %v5540_v19  ;;  %v5175_v38 = vpack.c.bf16 %v5143_v43, %v5143_v43  ;;  %v5642_v10 = vld [vmem:[#allocation3 + $0x24] sm:$0xf]  ;;  %v6105_v28 = vunpack.c.l.b16 %v5761_v35  ;;  %v5543_v16 = vld [vmem:[#allocation3 + $0x30] sm:$0xf] }
 0x2e6   : > { %v5042_v45 = vadd.f32 %v13941_v57, %v4616_v13  ;;  %5539 = vst [vmem:[#allocation3 + $0x28] sm:$0xf] %v5250_v27  ;;  %v5766_v24 = vrot.slane %v5765_v56, 4  ;;  %v4861_v0 = vunpack.c.l.b16 %v4802_v18  ;;  %v5773_v30 = vshrl.u32 %v5642_v10, 16 }
 0x2e7   : > { %5542 = vst [vmem:[#allocation3 + $0x2c] sm:$0x1] %v5541_v53  ;;  %v5253_v47 = vshrl.u32 %v5175_v38, 16  ;;  %v5256_v42 = vshll.u32 %v5175_v38, 16  ;;  %v5776_v32 = vshll.u32 %v5642_v10, 16  ;;  %v4346_v8 = vrot.slane %v4344_v44, 4 }
 0x2e8   : > { %v5077_v5 = vmul.f32 %v13797_v12, %v5042_v45  ;;  %v3867_v22 = vpop.f32.mrf.mxu2  ;;  %v5771_v34 = vsel %vm12584_vm7, %v5766_v24, %v5770_v23  ;;  %v4879_v57 = vpack.c.b16 %v4861_v0, %v4860_v29  ;;  %v5775_v54 = vrot.slane %v5773_v30, 4 }
 0x2e9   : > { %v14019_v51 = vrot.slane %v5253_v47, 7  ;;  %v3935_v35 = vadd.f32 %v3867_v22, %v13497_v55  ;;  %v6106_v14 = vunpack.c.l.b16 %v5771_v34  ;;  %v5778_v43 = vrot.slane %v5776_v32, 5 }
 0x2ea   : > { %v5112_v19 = vadd.f32 %v13807_v4, %v5077_v5  ;;  %v4347_v13 = vshll.u32 %v4001_v33, 16  ;;  %v4353_v56 = vshll.u32 %v14014_v1, 16  ;;  %v4357_v18 = vshrl.u32 %v14014_v1, 16 }
 0x2eb   : > { %v5258_v23 = vor.u32 %v5256_v42, %v14019_v51  ;;  %v4617_v27 = vadd.f32 %v4549_v21, %v3935_v35  ;;  %v4453_v53 = vpack.c.b16 %v14002_v9, %v13985_v62  ;;  %v6135_v38 = vpack.c.b16 %v6106_v14, %v6105_v28  ;;  %v16503_v21 = vld [vmem:[#allocation15_spill] sm:$0xff] }
 0x2ec   : > { %v4551_v3 = vpop.f32.mrf.mxu3  ;;  %v5144_v29 = vmax.f32 %v5112_v19, 0.0  ;;  %v5779_v55 = vor.u32 %v5778_v43, %v5775_v54  ;;  %v4349_v45 = vrot.slane %v4347_v13, 5  ;;  %v4355_v10 = vrot.slane %v4353_v56, 5  ;;  %v12242_v54 = vld [vmem:[%s16439_s4 + $0xe8] sm:$0xff] }
 0x2ed   : > { %v14026_v44 = vpop.f32.mrf.mxu0  ;;  %v5544_v33 = vsel %vm12600_vm9, %v5258_v23, %v5543_v16  ;;  %v5043_v0 = vadd.f32 %v13966_v11, %v4617_v27  ;;  %v14033_v30 = vld [vmem:[#allocation3 + $0x28] sm:$0xf]  ;;  %v4359_v47 = vrot.slane %v4357_v18, 4  ;;  %v3621_v42 = vadd.f32 %v16503_v21, %v13521_v15  ;;  %6231 = vmatmul.bf16.gmra.mxu1 %v6135_v38  ;;  %v12202_v15 = vld [vmem:[%s16439_s4 + $0x28] sm:$0xff]  ;;  %v12154_v18 = vld [vmem:[#allocation2 + $0xb4] sm:$0xff]  ;;  %7140 = vmatpush.bf16.msrb.mxu0 %v12242_v54 }
 0x2ee   : > { %v5176_v24 = vpack.c.bf16 %v5144_v29, %v5144_v29  ;;  %5545 = vst [vmem:[#allocation3 + $0x30] sm:$0xf] %v5544_v33  ;;  %v14037_v62 = vld [vmem:[#allocation3 + $0x2c] sm:$0x1]  ;;  %v5780_v9 = vrot.slane %v5779_v55, 4  ;;  %v5782_v28 = vshll.u32 %v14033_v30, 16  ;;  %v4350_v5 = vor.u32 %v4349_v45, %v4346_v8  ;;  %6448 = vmatpush.bf16.msrb.mxu2 %v12202_v15 }
 0x2ef   : > { %v5078_v34 = vmul.f32 %v13797_v12, %v5043_v0  ;;  %v5786_v11 = vshrl.u32 %v14033_v30, 16  ;;  %v5792_v35 = vshll.u32 %v14037_v62, 16  ;;  %v4360_v16 = vor.u32 %v4359_v47, %v4355_v10  ;;  %v14053_v29 = vld [vmem:[#allocation2 + $0xc8] sm:$0x1] }
 0x2f0   : > { %5019 = vmatmul.bf16.gmra.mxu0 %v4879_v57  ;;  %v5261_v32 = vshrl.u32 %v5176_v24, 16  ;;  %v5264_v22 = vshll.u32 %v5176_v24, 16  ;;  %v12218_v57 = vld [vmem:[%s16439_s4 + $0xa8] sm:$0xff]  ;;  %v3869_v8 = vpop.f32.mrf.mxu2  ;;  %v5784_v19 = vrot.slane %v5782_v28, 5  ;;  %v4351_v14 = vrot.slane %v4350_v5, 4 }
 0x2f1   : > { %4593 = vmatmul.bf16.gmra.mxu3 %v4453_v53  ;;  %v5113_v13 = vadd.f32 %v13807_v4, %v5078_v34  ;;  %v3936_v56 = vadd.f32 %v3869_v8, %v3621_v42  ;;  %v5788_v23 = vrot.slane %v5786_v11, 4  ;;  %v5259_v27 = vrot.slane %v14019_v51, 4  ;;  %v5547_v53 = vld [vmem:[#allocation3 + $0x38] sm:$0x1] }
 0x2f2   : > { %v5263_v43 = vrot.slane %v5261_v32, 7  ;;  %6826 = vmatpush.bf16.msrb.mxu3 %v12218_v57  ;;  %v5785_v55 = vsel %vm12584_vm7, %v5780_v9, %v5784_v19  ;;  %v4356_v45 = vsel %vm12584_vm7, %v4351_v14, %v4355_v10  ;;  %v5794_v28 = vrot.slane %v5792_v35, 5  ;;  %v4655_v32 = vld [vmem:[#allocation2 + $0xc0] sm:$0xe] }
 0x2f3   : > { %v5145_v0 = vmax.f32 %v5113_v13, 0.0  ;;  %v4618_v47 = vadd.f32 %v4551_v3, %v3936_v56  ;;  %v5789_v42 = vor.u32 %v5788_v23, %v5784_v19  ;;  %v4361_v5 = vrot.slane %v4360_v16, 4  ;;  %v12217_v23 = vld [vmem:[%s16439_s4 + $0xa0] sm:$0xff] }
 0x2f4   : > { %v4554_v38 = vpop.f32.mrf.mxu3  ;;  %v5266_v33 = vor.u32 %v5264_v22, %v5263_v43  ;;  %v5268_v24 = vrot.slane %v5263_v43, 4  ;;  %v4363_v51 = vshll.u32 %v14053_v29, 16  ;;  %3911 = vmatmul.bf16.gmra.mxu2 %v12154_v18  ;;  %v6107_v11 = vunpack.c.l.b16 %v5785_v55  ;;  %v12201_v18 = vld [vmem:[%s16439_s4 + $0x20] sm:$0xff] }
 0x2f5   : > { %v14060_v21 = vpop.f32.mrf.mxu0  ;;  %v5177_v10 = vpack.c.bf16 %v5145_v0, %v5145_v0  ;;  %v5044_v22 = vadd.f32 %v14005_v25, %v4618_v47  ;;  %v5790_v3 = vrot.slane %v5789_v42, 4  ;;  %v4436_v57 = vunpack.c.l.b16 %v4356_v45  ;;  %v5644_v54 = vld [vmem:[#allocation3 + $0x30] sm:$0xf]  ;;  %6449 = vmatpush.bf16.msrb.mxu2 %v12201_v18 }
 0x2f6   : > { %v5267_v34 = vsel %vm12590_vm8, %v5259_v27, %v5266_v33  ;;  %v5548_v9 = vsel %vm12610_vm10, %v5268_v24, %v5547_v53  ;;  %v4365_v15 = vrot.slane %v4363_v51, 5  ;;  %v11350_v14 = vrot.slane %v4655_v32, 9  ;;  %v12241_v27 = vld [vmem:[%s16439_s4 + $0xe0] sm:$0xff]  ;;  %6827 = vmatpush.bf16.msrb.mxu3 %v12217_v23 }
 0x2f7   : > { %5546 = vst [vmem:[#allocation3 + $0x34] sm:$0xf] %v5267_v34  ;;  %v5270_v8 = vshrl.u32 %v5177_v10, 16  ;;  %v5273_v19 = vshll.u32 %v5177_v10, 16  ;;  %v5079_v35 = vmul.f32 %v13797_v12, %v5044_v22  ;;  %v5795_v43 = vsel %vm12584_vm7, %v5790_v3, %v5794_v28  ;;  %7141 = vmatpush.bf16.msrb.mxu0 %v12241_v27  ;;  %v12200_v3 = vld [vmem:[%s16439_s4 + $0x18] sm:$0xff]  ;;  %v12199_v27 = vld [vmem:[%s16439_s4 + $0x10] sm:$0xff] }
 0x2f8   : > { %5549 = vst [vmem:[#allocation3 + $0x38] sm:$0x1] %v5548_v9  ;;  %v3872_v16 = vpop.f32.mrf.mxu2  ;;  %v4366_v25 = vsel %vm12584_vm7, %v4361_v5, %v4365_v15  ;;  %v4805_v13 = vrot.slane %v14014_v1, 5  ;;  %v4808_v56 = vrot.slane %v14053_v29, 5  ;;  %v6108_v45 = vunpack.c.l.b16 %v5795_v43  ;;  %v5550_v29 = vld [vmem:[#allocation3 + $0x3c] sm:$0xf] }
 0x2f9   : > { %v14084_v53 = vrot.slane %v5270_v8, 7  ;;  %v5114_v55 = vadd.f32 %v13807_v4, %v5079_v35  ;;  %v3937_v1 = vadd.f32 %v3872_v16, %v13535_v36  ;;  %v4437_v24 = vunpack.c.l.b16 %v4366_v25  ;;  %v4004_v43 = vld [vmem:[#allocation2 + $0xcc] sm:$0xf]  ;;  %6450 = vmatpush.bf16.msrb.mxu2 %v12200_v3 }
 0x2fa   : > { %v4806_v0 = vsel %vm12988_vm13, %v11350_v14, %v4805_v13  ;;  %v4807_v47 = vrot.slane %v4805_v13, 4  ;;  %v5797_v42 = vshrl.u32 %v5644_v54, 16  ;;  %v3623_v28 = vadd.f32 %v13514_v63, %v13555_v6  ;;  %v12216_v63 = vld [vmem:[%s16439_s4 + $0x98] sm:$0xff] }
 0x2fb   : > { %v5275_v5 = vor.u32 %v5273_v19, %v14084_v53  ;;  %v5146_v51 = vmax.f32 %v5114_v55, 0.0  ;;  %v4619_v32 = vadd.f32 %v4554_v38, %v3937_v1  ;;  %v6136_v34 = vpack.c.b16 %v6108_v45, %v6107_v11  ;;  %v12240_v6 = vld [vmem:[%s16439_s4 + $0xd8] sm:$0xff]  ;;  %6828 = vmatpush.bf16.msrb.mxu3 %v12216_v63 }
 0x2fc   : > { %v14088_v33 = vpop.f32.mrf.mxu3  ;;  %v4454_v9 = vpack.c.b16 %v4437_v24, %v4436_v57  ;;  %v4809_v10 = vsel %vm12988_vm13, %v4807_v47, %v4808_v56  ;;  %v4862_v22 = vunpack.c.l.b16 %v4806_v0  ;;  %v14115_v19 = vadd.f32 %v13548_v46, %v13584_v17  ;;  %v12250_v46 = vld [vmem:[%s16439_s4 + $0x128] sm:$0xff]  ;;  %7142 = vmatpush.bf16.msrb.mxu0 %v12240_v6  ;;  %v12239_v0 = vld [vmem:[%s16439_s4 + $0xd0] sm:$0xff]  ;;  %v5554_v47 = vld [vmem:[#allocation3 + $0x44] sm:$0x1] }
 0x2fd   : > { %v14095_v36 = vpop.f32.mrf.mxu0  ;;  %v5551_v38 = vsel %vm12600_vm9, %v5275_v5, %v5550_v29  ;;  %v5178_v11 = vpack.c.bf16 %v5146_v51, %v5146_v51  ;;  %v5045_v15 = vadd.f32 %v14026_v44, %v4619_v32  ;;  %v4863_v57 = vunpack.c.l.b16 %v4809_v10  ;;  %6236 = vmatmul.bf16.gmra.mxu1 %v6136_v34  ;;  %v12155_v29 = vld [vmem:[#allocation2 + $0xc0] sm:$0xff]  ;;  %6451 = vmatpush.bf16.msrb.mxu2 %v12199_v27 }
 0x2fe   : > { %v14111_v8 = vld [vmem:[#allocation3 + $0x34] sm:$0xf]  ;;  %v14119_v35 = vadd.f32 %v13581_v49, %v13605_v60  ;;  %5552 = vst [vmem:[#allocation3 + $0x3c] sm:$0xf] %v5551_v38  ;;  %v5799_v14 = vrot.slane %v5797_v42, 4  ;;  %v5800_v16 = vshll.u32 %v5644_v54, 16  ;;  %7822 = vmatpush.bf16.msrb.mxu1 %v12250_v46 }
 0x2ff   : > { %v5276_v25 = vrot.slane %v14084_v53, 4  ;;  %v5278_v44 = vshrl.u32 %v5178_v11, 16  ;;  %v5080_v13 = vmul.f32 %v13797_v12, %v5045_v15  ;;  %v4880_v56 = vpack.c.b16 %v4863_v57, %v4862_v22  ;;  %v14123_v18 = vld [vmem:[#allocation3 + $0x38] sm:$0x1] }
 0x300   : > { %v5281_v49 = vshll.u32 %v5178_v11, 16  ;;  %v3874_v17 = vpop.f32.mrf.mxu2  ;;  %v5802_v60 = vrot.slane %v5800_v16, 5  ;;  %v5806_v54 = vshll.u32 %v14111_v8, 16  ;;  %v5810_v23 = vshrl.u32 %v14111_v8, 16  ;;  %v12215_v53 = vld [vmem:[%s16439_s4 + $0x90] sm:$0xff]  ;;  %7143 = vmatpush.bf16.msrb.mxu0 %v12239_v0 }
 0x301   : > { %4598 = vmatmul.bf16.gmra.mxu3 %v4454_v9  ;;  %v5280_v55 = vrot.slane %v5278_v44, 7  ;;  %v5115_v1 = vadd.f32 %v13807_v4, %v5080_v13  ;;  %v3938_v45 = vadd.f32 %v3874_v17, %v3623_v28  ;;  %5024 = vmatmul.bf16.gmra.mxu0 %v4880_v56  ;;  %v4368_v24 = vshrl.u32 %v4004_v43, 16  ;;  %v14149_v16 = vld [vmem:[#allocation2 + $0xd0] sm:$0xf] }
 0x302   : > { %v5803_v5 = vor.u32 %v5802_v60, %v5799_v14  ;;  %v5808_v51 = vrot.slane %v5806_v54, 5  ;;  %v5812_v32 = vrot.slane %v5810_v23, 4  ;;  %v5816_v34 = vshll.u32 %v14123_v18, 16  ;;  %6829 = vmatpush.bf16.msrb.mxu3 %v12215_v53  ;;  %v12214_v60 = vld [vmem:[%s16439_s4 + $0x88] sm:$0xff] }
 0x303   : > { %v5283_v9 = vor.u32 %v5281_v49, %v5280_v55  ;;  %v5285_v10 = vrot.slane %v5280_v55, 4  ;;  %v5147_v4 = vmax.f32 %v5115_v1, 0.0  ;;  %v4620_v28 = vadd.f32 %v14088_v33, %v3938_v45  ;;  %v14151_v33 = vld [vmem:[#allocation2 + $0xd4] sm:$0x1]  ;;  %v5557_v45 = vld [vmem:[#allocation3 + $0x48] sm:$0xf] }
 0x304   : > { %v4559_v42 = vpop.f32.mrf.mxu3  ;;  %v5804_v3 = vrot.slane %v5803_v5, 4  ;;  %v5813_v63 = vor.u32 %v5812_v32, %v5808_v51  ;;  %v4370_v6 = vrot.slane %v4368_v24, 4  ;;  %v4371_v38 = vshll.u32 %v4004_v43, 16  ;;  %3916 = vmatmul.bf16.gmra.mxu2 %v12155_v29  ;;  %v14174_v29 = vld [vmem:[%s16438_s3] ss:$0 sm:$0xff] }
 0x305   : > { %v14142_v22 = vpop.f32.mrf.mxu0  ;;  %v5284_v11 = vsel %vm12590_vm8, %v5276_v25, %v5283_v9  ;;  %v5555_v15 = vsel %vm12610_vm10, %v5285_v10, %v5554_v47  ;;  %v5179_v57 = vpack.c.bf16 %v5147_v4, %v5147_v4  ;;  %v5046_v14 = vadd.f32 %v14060_v21, %v4620_v28  ;;  %v12198_v21 = vld [vmem:[%s16439_s4 + $0x8] sm:$0xff]  ;;  %v12197_v10 = vld [vmem:[%s16439_s4] sm:$0xff] }
 0x306   : > { %5553 = vst [vmem:[#allocation3 + $0x40] sm:$0xf] %v5284_v11  ;;  %v5809_v44 = vsel %vm12584_vm7, %v5804_v3, %v5808_v51  ;;  %v5814_v43 = vrot.slane %v5813_v63, 4  ;;  %v5818_v13 = vrot.slane %v5816_v34, 5  ;;  %v4373_v56 = vrot.slane %v4371_v38, 5  ;;  %6452 = vmatpush.bf16.msrb.mxu2 %v12198_v21  ;;  %6830 = vmatpush.bf16.msrb.mxu3 %v12214_v60  ;;  %v12213_v4 = vld [vmem:[%s16439_s4 + $0x80] sm:$0xff] }
 0x307   : > { %5556 = vst [vmem:[#allocation3 + $0x44] sm:$0x1] %v5555_v15  ;;  %v5287_v25 = vshrl.u32 %v5179_v57, 16  ;;  %v5290_v46 = vshll.u32 %v5179_v57, 16  ;;  %v5081_v49 = vmul.f32 %v13797_v12, %v5046_v14  ;;  %v6109_v17 = vunpack.c.l.b16 %v5809_v44  ;;  %v12238_v12 = vld [vmem:[%s16439_s4 + $0xc8] sm:$0xff]  ;;  %v12237_v11 = vld [vmem:[%s16439_s4 + $0xc0] sm:$0xff] }
 0x308   : > { %v3877_v54 = vpop.f32.mrf.mxu2  ;;  %v5819_v23 = vsel %vm12584_vm7, %v5814_v43, %v5818_v13  ;;  %v4374_v27 = vor.u32 %v4373_v56, %v4370_v6  ;;  %v4377_v53 = vshll.u32 %v14149_v16, 16  ;;  %v4381_v55 = vshrl.u32 %v14149_v16, 16  ;;  %7144 = vmatpush.bf16.msrb.mxu0 %v12238_v12  ;;  %v4656_v38 = vld [vmem:[#allocation2 + $0xcc] sm:$0xe]  ;;  %v5646_v43 = vld [vmem:[#allocation3 + $0x3c] sm:$0xf] }
 0x309   : > { %v14169_v1 = vrot.slane %v5287_v25, 7  ;;  %v5116_v24 = vadd.f32 %v14174_v29, %v5081_v49  ;;  %v3939_v0 = vadd.f32 %v3877_v54, %v13570_v52  ;;  %v6110_v47 = vunpack.c.l.b16 %v5819_v23  ;;  %v14202_v23 = vld [vmem:[%s16437_s2] ss:$0 sm:$0xff] }
 0x30a   : > { %v4375_v51 = vrot.slane %v4374_v27, 4  ;;  %v4379_v32 = vrot.slane %v4377_v53, 5  ;;  %v4383_v34 = vrot.slane %v4381_v55, 4  ;;  %v4387_v9 = vshll.u32 %v14151_v33, 16  ;;  %6453 = vmatpush.bf16.msrb.mxu2 %v12197_v10  ;;  %6831 = vmatpush.bf16.msrb.mxu3 %v12213_v4 }
 0x30b   : > { %v5292_v52 = vor.u32 %v5290_v46, %v14169_v1  ;;  %v5293_v28 = vrot.slane %v14169_v1, 4  ;;  %v5148_v3 = vmax.f32 %v5116_v24, 0.0  ;;  %v4621_v63 = vadd.f32 %v4559_v42, %v3939_v0  ;;  %v12156_v0 = vld [vmem:[#allocation2 + $0xcc] sm:$0xff] }
 0x30c   : > { %v4561_v5 = vpop.f32.mrf.mxu3  ;;  %v6137_v15 = vpack.c.b16 %v6110_v47, %v6109_v17  ;;  %v4380_v57 = vsel %vm12584_vm7, %v4375_v51, %v4379_v32  ;;  %v4384_v14 = vor.u32 %v4383_v34, %v4379_v32  ;;  %v4389_v44 = vrot.slane %v4387_v9, 5  ;;  %7145 = vmatpush.bf16.msrb.mxu0 %v12237_v11  ;;  %v5561_v32 = vld [vmem:[#allocation3 + $0x50] sm:$0x1] }
 0x30d   : > { %v14187_v6 = vpop.f32.mrf.mxu0  ;;  %v5558_v13 = vsel %vm12600_vm9, %v5292_v52, %v5557_v45  ;;  %v5180_v56 = vpack.c.bf16 %v5148_v3, %v5148_v3  ;;  %v5047_v42 = vadd.f32 %v14095_v36, %v4621_v63  ;;  %v4438_v25 = vunpack.c.l.b16 %v4380_v57  ;;  %v14211_v51 = vld [vmem:[#allocation3 + $0x40] sm:$0xf] }
 0x30e   : > { %5559 = vst [vmem:[#allocation3 + $0x48] sm:$0xf] %v5558_v13  ;;  %6241 = vmatmul.bf16.gmra.mxu1 %v6137_v15  ;;  %v4385_v46 = vrot.slane %v4384_v14, 4  ;;  %v11351_v49 = vrot.slane %v4656_v38, 9  ;;  %v4812_v17 = vrot.slane %v14149_v16, 5  ;;  %v4815_v21 = vrot.slane %v14151_v33, 5 }
 0x30f   : > { %v5295_v60 = vshrl.u32 %v5180_v56, 16  ;;  %v5298_v54 = vshll.u32 %v5180_v56, 16  ;;  %v5082_v36 = vmul.f32 %v14202_v23, %v5047_v42  ;;  %v5821_v27 = vshrl.u32 %v5646_v43, 16  ;;  %v14217_v14 = vld [vmem:[#allocation3 + $0x44] sm:$0x1] }
 0x310   : > { %v3879_v53 = vpop.f32.mrf.mxu2  ;;  %v4390_v55 = vsel %vm12584_vm7, %v4385_v46, %v4389_v44  ;;  %v4813_v16 = vsel %vm12988_vm13, %v11351_v49, %v4812_v17  ;;  %v4814_v12 = vrot.slane %v4812_v17, 4  ;;  %v5824_v33 = vshll.u32 %v5646_v43, 16 }
 0x311   : > { %v5297_v1 = vrot.slane %v5295_v60, 7  ;;  %v5117_v45 = vadd.f32 %v14174_v29, %v5082_v36  ;;  %v3940_v24 = vadd.f32 %v3879_v53, %v14115_v19  ;;  %v4439_v47 = vunpack.c.l.b16 %v4390_v55 }
 0x312   : > { %v4816_v34 = vsel %vm12988_vm13, %v4814_v12, %v4815_v21  ;;  %v4864_v9 = vunpack.c.l.b16 %v4813_v16  ;;  %v5823_v4 = vrot.slane %v5821_v27, 4  ;;  %v5826_v52 = vrot.slane %v5824_v33, 5  ;;  %v12364_v16 = vld [vmem:[#allocation3 + $0x4] sm:$0xf] }
 0x313   : > { %v5300_v3 = vor.u32 %v5298_v54, %v5297_v1  ;;  %v5302_v63 = vrot.slane %v5297_v1, 4  ;;  %v5149_v38 = vmax.f32 %v5117_v45, 0.0  ;;  %v4622_v11 = vadd.f32 %v4561_v5, %v3940_v24  ;;  %v6535_v5 = vld [vmem:[#allocation3] sm:$0xe] }
 0x314   : > { %v4564_v10 = vpop.f32.mrf.mxu3  ;;  %v4455_v57 = vpack.c.b16 %v4439_v47, %v4438_v25  ;;  %v4865_v19 = vunpack.c.l.b16 %v4816_v34  ;;  %v5827_v44 = vor.u32 %v5826_v52, %v5823_v4  ;;  %v5830_v43 = vshll.u32 %v14211_v51, 16  ;;  %3921 = vmatmul.bf16.gmra.mxu2 %v12156_v0  ;;  %v5564_v47 = vld [vmem:[#allocation3 + $0x54] sm:$0xf] }
 0x315   : > { %v14215_v15 = vpop.f32.mrf.mxu0  ;;  %v5301_v13 = vsel %vm12590_vm8, %v5293_v28, %v5300_v3  ;;  %v5562_v56 = vsel %vm12610_vm10, %v5302_v63, %v5561_v32  ;;  %v5181_v42 = vpack.c.bf16 %v5149_v38, %v5149_v38  ;;  %v5048_v46 = vadd.f32 %v14142_v22, %v4622_v11  ;;  %v5648_v0 = vld [vmem:[#allocation3 + $0x48] sm:$0xf] }
 0x316   : > { %5560 = vst [vmem:[#allocation3 + $0x4c] sm:$0xf] %v5301_v13  ;;  %4603 = vmatmul.bf16.gmra.mxu3 %v4455_v57  ;;  %v4881_v25 = vpack.c.b16 %v4865_v19, %v4864_v9  ;;  %v5828_v49 = vrot.slane %v5827_v44, 4  ;;  %v5832_v17 = vrot.slane %v5830_v43, 5  ;;  %v5834_v21 = vshrl.u32 %v14211_v51, 16 }
 0x317   : > { %5563 = vst [vmem:[#allocation3 + $0x50] sm:$0x1] %v5562_v56  ;;  %v5304_v60 = vshrl.u32 %v5181_v42, 16  ;;  %v5307_v54 = vshll.u32 %v5181_v42, 16  ;;  %v5083_v28 = vmul.f32 %v14202_v23, %v5048_v46  ;;  %v5840_v36 = vshll.u32 %v14217_v14, 16 }
 0x318   : > { %5029 = vmatmul.bf16.gmra.mxu0 %v4881_v25  ;;  %v3882_v27 = vpop.f32.mrf.mxu2  ;;  %v5833_v22 = vsel %vm12584_vm7, %v5828_v49, %v5832_v17  ;;  %v5836_v53 = vrot.slane %v5834_v21, 4  ;;  %v11544_v55 = vrot.slane %v6535_v5, 9  ;;  %v6585_v12 = vrot.slane %v12364_v16, 5 }
 0x319   : > { %v14230_v33 = vrot.slane %v5304_v60, 7  ;;  %v5118_v1 = vadd.f32 %v14174_v29, %v5083_v28  ;;  %v3941_v45 = vadd.f32 %v3882_v27, %v13588_v2  ;;  %v5842_v24 = vrot.slane %v5840_v36, 5  ;;  %v12365_v2 = vld [vmem:[#allocation3 + $0x8] sm:$0x1] }
 0x31a   : > { %v5837_v32 = vor.u32 %v5836_v53, %v5832_v17  ;;  %v6111_v34 = vunpack.c.l.b16 %v5833_v22  ;;  %v6586_v4 = vsel %vm12988_vm13, %v11544_v55, %v6585_v12  ;;  %v6587_v52 = vrot.slane %v6585_v12, 4 }
 0x31b   : > { %v5309_v3 = vor.u32 %v5307_v54, %v14230_v33  ;;  %v5310_v63 = vrot.slane %v14230_v33, 4  ;;  %v5150_v38 = vmax.f32 %v5118_v1, 0.0  ;;  %v4623_v11 = vadd.f32 %v4564_v10, %v3941_v45 }
 0x31c   : > { %v4566_v9 = vpop.f32.mrf.mxu3  ;;  %v5838_v19 = vrot.slane %v5837_v32, 4  ;;  %v6588_v44 = vrot.slane %v12365_v2, 5  ;;  %v6712_v43 = vunpack.c.l.b16 %v6586_v4  ;;  %v5845_v13 = vshrl.u32 %v5648_v0, 16 }
 0x31d   : > { %v14238_v57 = vpop.f32.mrf.mxu0  ;;  %v5565_v56 = vsel %vm12600_vm9, %v5309_v3, %v5564_v47  ;;  %v5182_v42 = vpack.c.bf16 %v5150_v38, %v5150_v38  ;;  %v5049_v46 = vadd.f32 %v14187_v6, %v4623_v11  ;;  %v14243_v5 = vld [vmem:[#allocation3 + $0x4c] sm:$0xf]  ;;  %v5848_v25 = vshll.u32 %v5648_v0, 16  ;;  %v12181_v0 = vld [vmem:[#allocation3] sm:$0xff]  ;;  %v5568_v47 = vld [vmem:[#allocation3 + $0x5c] sm:$0x1] }
 0x31e   : > { %5566 = vst [vmem:[#allocation3 + $0x54] sm:$0xf] %v5565_v56  ;;  %v5843_v10 = vsel %vm12584_vm7, %v5838_v19, %v5842_v24  ;;  %v6589_v49 = vsel %vm12988_vm13, %v6587_v52, %v6588_v44  ;;  %v5847_v17 = vrot.slane %v5845_v13, 4  ;;  %v5854_v21 = vshll.u32 %v14243_v5, 16  ;;  %v14251_v27 = vld [vmem:[#allocation3 + $0x50] sm:$0x1] }
 0x31f   : > { %v5312_v60 = vshrl.u32 %v5182_v42, 16  ;;  %v5315_v54 = vshll.u32 %v5182_v42, 16  ;;  %v5084_v28 = vmul.f32 %v14202_v23, %v5049_v46  ;;  %v6112_v36 = vunpack.c.l.b16 %v5843_v10  ;;  %v12249_v6 = vld [vmem:[%s16439_s4 + $0x120] sm:$0xff] }
 0x320   : > { %v3884_v22 = vpop.f32.mrf.mxu2  ;;  %v6713_v53 = vunpack.c.l.b16 %v6589_v49  ;;  %v5850_v55 = vrot.slane %v5848_v25, 5  ;;  %v5856_v16 = vrot.slane %v5854_v21, 5  ;;  %v5858_v12 = vshrl.u32 %v14243_v5, 16  ;;  %7823 = vmatpush.bf16.msrb.mxu1 %v12249_v6  ;;  %v12221_v25 = vld [vmem:[#allocation3 + $0xc] sm:$0xff] }
 0x321   : > { %v5314_v33 = vrot.slane %v5312_v60, 7  ;;  %v5119_v1 = vadd.f32 %v14174_v29, %v5084_v28  ;;  %v6138_v45 = vpack.c.b16 %v6112_v36, %v6111_v34  ;;  %v3942_v24 = vadd.f32 %v3884_v22, %v14119_v35  ;;  %v6536_v10 = vld [vmem:[#allocation3 + $0xc] sm:$0xe]  ;;  %v12366_v36 = vld [vmem:[#allocation3 + $0x14] sm:$0x1] }
 0x322   : > { %v6744_v32 = vpack.c.b16 %v6713_v53, %v6712_v43  ;;  %v5851_v52 = vor.u32 %v5850_v55, %v5847_v17  ;;  %v5860_v3 = vrot.slane %v5858_v12, 4  ;;  %v5864_v38 = vshll.u32 %v14251_v27, 16 }
 0x323   : > { %v5317_v11 = vor.u32 %v5315_v54, %v5314_v33  ;;  %v5319_v19 = vrot.slane %v5314_v33, 4  ;;  %v5151_v2 = vmax.f32 %v5119_v1, 0.0  ;;  %6246 = vmatmul.bf16.gmra.mxu1 %v6138_v45  ;;  %v4624_v44 = vadd.f32 %v4566_v9, %v3942_v24  ;;  %v5571_v33 = vld [vmem:[#allocation3 + $0x60] sm:$0xf] }
 0x324   : > { %v4569_v4 = vpop.f32.mrf.mxu3  ;;  %v5861_v56 = vor.u32 %v5860_v3, %v5856_v16  ;;  %v6592_v34 = vrot.slane %v13924_v37, 5  ;;  %6454 = vmatmul.bf16.vlgmr.msrb.gmra.mxu2 %v12181_v0  ;;  %v5852_v9 = vrot.slane %v5851_v52, 4  ;;  %v5866_v17 = vrot.slane %v5864_v38, 5 }
 0x325   : > { %v14260_v13 = vpop.f32.mrf.mxu0  ;;  %v5318_v35 = vsel %vm12590_vm8, %v5310_v63, %v5317_v11  ;;  %v5569_v43 = vsel %vm12610_vm10, %v5319_v19, %v5568_v47  ;;  %v5183_v42 = vpack.c.bf16 %v5151_v2, %v5151_v2  ;;  %v5050_v46 = vadd.f32 %v14215_v15, %v4624_v44 }
 0x326   : > { %5567 = vst [vmem:[#allocation3 + $0x58] sm:$0xf] %v5318_v35  ;;  %6832 = vmatmul.bf16.vlgmr.msrb.gmra.mxu3 %v6744_v32  ;;  %v5862_v49 = vrot.slane %v5861_v56, 4  ;;  %v6594_v21 = vrot.slane %v6592_v34, 4  ;;  %v5857_v54 = vsel %vm12584_vm7, %v5852_v9, %v5856_v16  ;;  %v11545_v28 = vrot.slane %v6536_v10, 9 }
 0x327   : > { %5570 = vst [vmem:[#allocation3 + $0x5c] sm:$0x1] %v5569_v43  ;;  %v5321_v37 = vshrl.u32 %v5183_v42, 16  ;;  %v5085_v60 = vmul.f32 %v14202_v23, %v5050_v46  ;;  %v6595_v6 = vrot.slane %v12366_v36, 5  ;;  %v5324_v53 = vshll.u32 %v5183_v42, 16 }
 0x328   : > { %7146 = vmatmul.bf16.vlgmr.msrb.gmra.mxu0 %v12221_v25  ;;  %v3887_v63 = vpop.f32.mrf.mxu2  ;;  %v5867_v15 = vsel %vm12584_vm7, %v5862_v49, %v5866_v17  ;;  %v6593_v24 = vsel %vm12988_vm13, %v11545_v28, %v6592_v34  ;;  %v6599_v3 = vrot.slane %v13975_v59, 5  ;;  %v6113_v38 = vunpack.c.l.b16 %v5857_v54  ;;  %v5575_v54 = vld [vmem:[#allocation3 + $0x68] sm:$0x1] }
 0x329   : > { %v5323_v22 = vrot.slane %v5321_v37, 7  ;;  %v5120_v55 = vadd.f32 %v14174_v29, %v5085_v60  ;;  %v3943_v12 = vadd.f32 %v3887_v63, %v13612_v41  ;;  %v6114_v1 = vunpack.c.l.b16 %v5867_v15 }
 0x32a   : > { %v6596_v16 = vsel %vm12988_vm13, %v6594_v21, %v6595_v6  ;;  %v3629_v44 = vadd.f32 %v13603_v58, %v13625_v40  ;;  %v6714_v34 = vunpack.c.l.b16 %v6593_v24  ;;  %v6601_v9 = vrot.slane %v6599_v3, 4 }
 0x32b   : > { %v5326_v0 = vor.u32 %v5324_v53, %v5323_v22  ;;  %v5152_v47 = vmax.f32 %v5120_v55, 0.0  ;;  %v4625_v32 = vadd.f32 %v4569_v4, %v3943_v12  ;;  %v5327_v11 = vrot.slane %v5323_v22, 4  ;;  %v5650_v4 = vld [vmem:[#allocation3 + $0x54] sm:$0xf] }
 0x32c   : > { %v4571_v45 = vpop.f32.mrf.mxu3  ;;  %v6139_v56 = vpack.c.b16 %v6114_v1, %v6113_v38  ;;  %v6715_v35 = vunpack.c.l.b16 %v6596_v16  ;;  %v5869_v10 = vshrl.u32 %v5650_v4, 16  ;;  %v5872_v17 = vshll.u32 %v5650_v4, 16  ;;  %v12182_v1 = vld [vmem:[#allocation3 + $0xc] sm:$0xff]  ;;  %v6537_v16 = vld [vmem:[#allocation3 + $0x18] sm:$0xe] }
 0x32d   : > { %v14279_v52 = vpop.f32.mrf.mxu0  ;;  %v5572_v41 = vsel %vm12600_vm9, %v5326_v0, %v5571_v33  ;;  %v5184_v19 = vpack.c.bf16 %v5152_v47, %v5152_v47  ;;  %v5051_v2 = vadd.f32 %v14238_v57, %v4625_v32  ;;  %v14287_v43 = vld [vmem:[#allocation3 + $0x58] sm:$0xf]  ;;  %v6602_v38 = vrot.slane %v13980_v61, 5 }
 0x32e   : > { %5573 = vst [vmem:[#allocation3 + $0x60] sm:$0xf] %v5572_v41  ;;  %v14290_v25 = vld [vmem:[#allocation3 + $0x5c] sm:$0x1]  ;;  %v5878_v58 = vshll.u32 %v14287_v43, 16  ;;  %v5882_v40 = vshrl.u32 %v14287_v43, 16  ;;  %v6745_v0 = vpack.c.b16 %v6715_v35, %v6714_v34 }
 0x32f   : > { %v5329_v42 = vshrl.u32 %v5184_v19, 16  ;;  %v5086_v46 = vmul.f32 %v14202_v23, %v5051_v2  ;;  %v5332_v57 = vshll.u32 %v5184_v19, 16  ;;  %v5871_v63 = vrot.slane %v5869_v10, 4 }
 0x330   : > { %v3889_v49 = vpop.f32.mrf.mxu2  ;;  %v5874_v28 = vrot.slane %v5872_v17, 5  ;;  %v5880_v36 = vrot.slane %v5878_v58, 5  ;;  %v5884_v6 = vrot.slane %v5882_v40, 4  ;;  %v5888_v22 = vshll.u32 %v14290_v25, 16  ;;  %v16504_v40 = vld [vmem:[#allocation16_spill] sm:$0xff] }
 0x331   : > { %v5331_v21 = vrot.slane %v5329_v42, 7  ;;  %v5121_v37 = vadd.f32 %v14174_v29, %v5086_v46  ;;  %v3944_v60 = vadd.f32 %v3889_v49, %v3629_v44  ;;  %v11546_v61 = vrot.slane %v6537_v16, 9 }
 0x332   : > { %v5875_v47 = vor.u32 %v5874_v28, %v5871_v63  ;;  %v5885_v32 = vor.u32 %v5884_v6, %v5880_v36  ;;  %v5890_v35 = vrot.slane %v5888_v22, 5  ;;  %v6603_v46 = vsel %vm12988_vm13, %v6601_v9, %v6602_v38 }
 0x333   : > { %v5334_v53 = vor.u32 %v5332_v57, %v5331_v21  ;;  %v5336_v55 = vrot.slane %v5331_v21, 4  ;;  %v5153_v12 = vmax.f32 %v5121_v37, 0.0  ;;  %6251 = vmatmul.bf16.gmra.mxu1 %v6139_v56  ;;  %v4626_v33 = vadd.f32 %v4571_v45, %v3944_v60  ;;  %v12222_v56 = vld [vmem:[#allocation3 + $0x18] sm:$0xff]  ;;  %v6539_v37 = vld [vmem:[#allocation3 + $0x30] sm:$0xe] }
 0x334   : > { %v4574_v15 = vpop.f32.mrf.mxu3  ;;  %6459 = vmatmul.bf16.gmra.mxu2 %v12182_v1  ;;  %v14308_v45 = vadd.f32 %v13623_v7, %v13645_v20  ;;  %v5886_v34 = vrot.slane %v5885_v32, 4  ;;  %v5876_v42 = vrot.slane %v5875_v47, 4  ;;  %v6600_v20 = vsel %vm12988_vm13, %v11546_v61, %v6599_v3  ;;  %v5578_v60 = vld [vmem:[#allocation3 + $0x6c] sm:$0xf]  ;;  %v14336_v32 = vpop.f32.mrf.mxu1  ;;  %v12248_v61 = vld [vmem:[%s16439_s4 + $0x118] sm:$0xff] }
 0x335   : > { %v14298_v24 = vpop.f32.mrf.mxu0  ;;  %v5335_v41 = vsel %vm12590_vm8, %v5327_v11, %v5334_v53  ;;  %v5576_v19 = vsel %vm12610_vm10, %v5336_v55, %v5575_v54  ;;  %v5185_v2 = vpack.c.bf16 %v5153_v12, %v5153_v12  ;;  %v5052_v44 = vadd.f32 %v14260_v13, %v4626_v33  ;;  %v6538_v13 = vld [vmem:[#allocation3 + $0x24] sm:$0xe]  ;;  %7824 = vmatpush.bf16.msrb.mxu1 %v12248_v61 }
 0x336   : > { %5574 = vst [vmem:[#allocation3 + $0x64] sm:$0xf] %v5335_v41  ;;  %6837 = vmatmul.bf16.gmra.mxu3 %v6745_v0  ;;  %v5891_v7 = vsel %vm12584_vm7, %v5886_v34, %v5890_v35  ;;  %v6606_v49 = vrot.slane %v14033_v30, 5  ;;  %v5881_v21 = vsel %vm12584_vm7, %v5876_v42, %v5880_v36  ;;  %v6717_v28 = vunpack.c.l.b16 %v6603_v46  ;;  %v5652_v41 = vld [vmem:[#allocation3 + $0x60] sm:$0xf] }
 0x337   : > { %5577 = vst [vmem:[#allocation3 + $0x68] sm:$0x1] %v5576_v19  ;;  %v5338_v4 = vshrl.u32 %v5185_v2, 16  ;;  %v5087_v11 = vmul.f32 %v14202_v23, %v5052_v44  ;;  %v5341_v10 = vshll.u32 %v5185_v2, 16  ;;  %v6116_v63 = vunpack.c.l.b16 %v5891_v7 }
 0x338   : > { %7151 = vmatmul.bf16.gmra.mxu0 %v12222_v56  ;;  %v3892_v57 = vpop.f32.mrf.mxu2  ;;  %v11547_v59 = vrot.slane %v6538_v13, 9  ;;  %v6613_v6 = vrot.slane %v14111_v8, 5  ;;  %v6716_v55 = vunpack.c.l.b16 %v6600_v20  ;;  %v6115_v33 = vunpack.c.l.b16 %v5881_v21 }
 0x339   : > { %v14320_v17 = vrot.slane %v5338_v4, 7  ;;  %v5122_v58 = vadd.f32 %v14174_v29, %v5087_v11  ;;  %v3945_v9 = vadd.f32 %v3892_v57, %v16504_v40  ;;  %v14331_v1 = vrot.slane %v6606_v49, 4 }
 0x33a   : > { %v11548_v36 = vrot.slane %v6539_v37, 9  ;;  %v6615_v8 = vrot.slane %v6613_v6, 4  ;;  %v6746_v38 = vpack.c.b16 %v6717_v28, %v6716_v55  ;;  %v14342_v2 = vsel %vm12988_vm13, %v11547_v59, %v6606_v49  ;;  %v12183_v59 = vld [vmem:[#allocation3 + $0x18] sm:$0xff] }
 0x33b   : > { %v5343_v3 = vor.u32 %v5341_v10, %v14320_v17  ;;  %v5154_v30 = vmax.f32 %v5122_v58, 0.0  ;;  %v4627_v22 = vadd.f32 %v4574_v15, %v3945_v9  ;;  %v5344_v12 = vrot.slane %v14320_v17, 4  ;;  %v5582_v17 = vld [vmem:[#allocation3 + $0x74] sm:$0x1]  ;;  %v6540_v55 = vld [vmem:[#allocation3 + $0x3c] sm:$0xe] }
 0x33c   : > { %v4576_v54 = vpop.f32.mrf.mxu3  ;;  %v6140_v15 = vpack.c.b16 %v6116_v63, %v6115_v33  ;;  %v6614_v44 = vsel %vm12988_vm13, %v11548_v36, %v6613_v6  ;;  %v5893_v35 = vshrl.u32 %v5652_v41, 16  ;;  %v6616_v4 = vrot.slane %v14123_v18, 5 }
 0x33d   : > { %v14328_v53 = vpop.f32.mrf.mxu0  ;;  %v5579_v16 = vsel %vm12600_vm9, %v5343_v3, %v5578_v60  ;;  %v5186_v0 = vpack.c.bf16 %v5154_v30, %v5154_v30  ;;  %v5053_v47 = vadd.f32 %v14279_v52, %v4627_v22  ;;  %v14338_v19 = vld [vmem:[#allocation3 + $0x64] sm:$0xf]  ;;  %v5896_v46 = vshll.u32 %v5652_v41, 16 }
 0x33e   : > { %5580 = vst [vmem:[#allocation3 + $0x6c] sm:$0xf] %v5579_v16  ;;  %v14347_v52 = vld [vmem:[#allocation3 + $0x68] sm:$0x1]  ;;  %v5902_v13 = vshll.u32 %v14338_v19, 16  ;;  %v5906_v10 = vshrl.u32 %v14338_v19, 16  ;;  %v6617_v22 = vsel %vm12988_vm13, %v6615_v8, %v6616_v4  ;;  %v6720_v41 = vunpack.c.l.b16 %v6614_v44 }
 0x33f   : > { %v5346_v56 = vshrl.u32 %v5186_v0, 16  ;;  %v5088_v34 = vmul.f32 %v14202_v23, %v5053_v47  ;;  %v5349_v11 = vshll.u32 %v5186_v0, 16  ;;  %v5895_v49 = vrot.slane %v5893_v35, 4  ;;  %v14368_v0 = vpop.f32.mrf.mxu1  ;;  %v12223_v47 = vld [vmem:[#allocation3 + $0x24] sm:$0xff] }
 0x340   : > { %v3894_v42 = vpop.f32.mrf.mxu2  ;;  %v5898_v40 = vrot.slane %v5896_v46, 5  ;;  %v5904_v9 = vrot.slane %v5902_v13, 5  ;;  %v5908_v21 = vrot.slane %v5906_v10, 4  ;;  %v5912_v18 = vshll.u32 %v14347_v52, 16  ;;  %v16505_v46 = vld [vmem:[#allocation18_spill] sm:$0xff] }
 0x341   : > { %v5348_v57 = vrot.slane %v5346_v56, 7  ;;  %v5123_v7 = vadd.f32 %v14174_v29, %v5088_v34  ;;  %v3946_v20 = vadd.f32 %v3894_v42, %v14308_v45  ;;  %v6609_v45 = vrot.slane %v14037_v62, 5 }
 0x342   : > { %v5899_v3 = vor.u32 %v5898_v40, %v5895_v49  ;;  %v5909_v30 = vor.u32 %v5908_v21, %v5904_v9  ;;  %v6721_v8 = vunpack.c.l.b16 %v6617_v22  ;;  %v11549_v35 = vrot.slane %v6540_v55, 9 }
 0x343   : > { %v5351_v37 = vor.u32 %v5349_v11, %v5348_v57  ;;  %v5353_v60 = vrot.slane %v5348_v57, 4  ;;  %v5155_v63 = vmax.f32 %v5123_v7, 0.0  ;;  %6256 = vmatmul.bf16.gmra.mxu1 %v6140_v15  ;;  %v4628_v28 = vadd.f32 %v4576_v54, %v3946_v20  ;;  %v5585_v57 = vld [vmem:[#allocation3 + $0x78] sm:$0xf] }
 0x344   : > { %v4579_v58 = vpop.f32.mrf.mxu3  ;;  %6464 = vmatmul.bf16.gmra.mxu2 %v12183_v59  ;;  %v5910_v62 = vrot.slane %v5909_v30, 4  ;;  %v5914_v15 = vrot.slane %v5912_v18, 5  ;;  %v5900_v34 = vrot.slane %v5899_v3, 4  ;;  %v14373_v11 = vpack.c.b16 %v6721_v8, %v6720_v41 }
 0x345   : > { %v14358_v6 = vpop.f32.mrf.mxu0  ;;  %v5352_v33 = vsel %vm12590_vm8, %v5344_v12, %v5351_v37  ;;  %v5583_v36 = vsel %vm12610_vm10, %v5353_v60, %v5582_v17  ;;  %v5187_v16 = vpack.c.bf16 %v5155_v63, %v5155_v63  ;;  %v5054_v54 = vadd.f32 %v14298_v24, %v4628_v28  ;;  %v16507_v63 = vld [vmem:[#allocation17_spill] sm:$0xff] }
 0x346   : > { %5581 = vst [vmem:[#allocation3 + $0x70] sm:$0xf] %v5352_v33  ;;  %6842 = vmatmul.bf16.gmra.mxu3 %v6746_v38  ;;  %v5915_v24 = vsel %vm12584_vm7, %v5910_v62, %v5914_v15  ;;  %v6620_v38 = vrot.slane %v14211_v51, 5  ;;  %v5905_v10 = vsel %vm12584_vm7, %v5900_v34, %v5904_v9  ;;  %v6610_v49 = vsel %vm12988_vm13, %v14331_v1, %v6609_v45  ;;  %v16506_v9 = vld [vmem:[#allocation19_spill] sm:$0xff]  ;;  %v5654_v33 = vld [vmem:[#allocation3 + $0x6c] sm:$0xf] }
 0x347   : > { %5584 = vst [vmem:[#allocation3 + $0x74] sm:$0x1] %v5583_v36  ;;  %v5355_v56 = vshrl.u32 %v5187_v16, 16  ;;  %v5089_v12 = vmul.f32 %v14202_v23, %v5054_v54  ;;  %v5358_v61 = vshll.u32 %v5187_v16, 16  ;;  %v6118_v7 = vunpack.c.l.b16 %v5915_v24 }
 0x348   : > { %7156 = vmatmul.bf16.gmra.mxu0 %v12223_v47  ;;  %v3897_v4 = vpop.f32.mrf.mxu2  ;;  %v6622_v17 = vrot.slane %v6620_v38, 4  ;;  %v6623_v40 = vrot.slane %v14217_v14, 5  ;;  %v6621_v60 = vsel %vm12988_vm13, %v11549_v35, %v6620_v38  ;;  %v3633_v28 = vadd.f32 %v16507_v63, %v16506_v9  ;;  %v5589_v38 = vld [vmem:[#allocation3 + $0x80] sm:$0x1] }
 0x349   : > { %v14376_v42 = vrot.slane %v5355_v56, 7  ;;  %v5124_v44 = vadd.f32 %v14174_v29, %v5089_v12  ;;  %v3947_v13 = vadd.f32 %v3897_v4, %v16505_v46  ;;  %v6117_v59 = vunpack.c.l.b16 %v5905_v10  ;;  %v14405_v56 = vpop.f32.mrf.mxu1 }
 0x34a   : > { %v6624_v3 = vsel %vm12988_vm13, %v6622_v17, %v6623_v40  ;;  %v6718_v22 = vunpack.c.l.b16 %v14342_v2  ;;  %v6719_v55 = vunpack.c.l.b16 %v6610_v49  ;;  %v6722_v16 = vunpack.c.l.b16 %v6621_v60  ;;  %v12184_v40 = vld [vmem:[#allocation3 + $0x24] sm:$0xff] }
 0x34b   : > { %v5360_v51 = vor.u32 %v5358_v61, %v14376_v42  ;;  %v5156_v21 = vmax.f32 %v5124_v44, 0.0  ;;  %v4629_v18 = vadd.f32 %v4579_v58, %v3947_v13  ;;  %v5361_v1 = vrot.slane %v14376_v42, 4 }
 0x34c   : > { %v4581_v20 = vpop.f32.mrf.mxu3  ;;  %v6141_v45 = vpack.c.b16 %v6118_v7, %v6117_v59  ;;  %v5917_v15 = vshrl.u32 %v5654_v33, 16  ;;  %v6723_v41 = vunpack.c.l.b16 %v6624_v3  ;;  %v5920_v12 = vshll.u32 %v5654_v33, 16 }
 0x34d   : > { %v14387_v37 = vpop.f32.mrf.mxu0  ;;  %v5586_v14 = vsel %vm12600_vm9, %v5360_v51, %v5585_v57  ;;  %v5188_v30 = vpack.c.bf16 %v5156_v21, %v5156_v21  ;;  %v5055_v58 = vadd.f32 %v14328_v53, %v4629_v18  ;;  %v14400_v36 = vld [vmem:[#allocation3 + $0x70] sm:$0xf]  ;;  %v6747_v21 = vpack.c.b16 %v6719_v55, %v6718_v22 }
 0x34e   : > { %5587 = vst [vmem:[#allocation3 + $0x78] sm:$0xf] %v5586_v14  ;;  %v14403_v62 = vld [vmem:[#allocation3 + $0x74] sm:$0x1]  ;;  %v5926_v34 = vshll.u32 %v14400_v36, 16  ;;  %v5930_v2 = vshrl.u32 %v14400_v36, 16  ;;  %v14413_v9 = vpack.c.b16 %v6723_v41, %v6722_v16 }
 0x34f   : > { %v5363_v54 = vshrl.u32 %v5188_v30, 16  ;;  %v5090_v47 = vmul.f32 %v14202_v23, %v5055_v58  ;;  %v5366_v8 = vshll.u32 %v5188_v30, 16  ;;  %v5919_v24 = vrot.slane %v5917_v15, 4  ;;  %v6541_v14 = vld [vmem:[#allocation3 + $0x48] sm:$0xe] }
 0x350   : > { %v3899_v53 = vpop.f32.mrf.mxu2  ;;  %v5922_v44 = vrot.slane %v5920_v12, 5  ;;  %v5928_v46 = vrot.slane %v5926_v34, 5  ;;  %v5932_v13 = vrot.slane %v5930_v2, 4  ;;  %v5936_v10 = vshll.u32 %v14403_v62, 16  ;;  %v5592_v34 = vld [vmem:[#allocation3 + $0x84] sm:$0xf] }
 0x351   : > { %v5365_v35 = vrot.slane %v5363_v54, 7  ;;  %v5125_v61 = vadd.f32 %v14174_v29, %v5090_v47  ;;  %v3948_v4 = vadd.f32 %v3899_v53, %v3633_v28  ;;  %v11550_v54 = vrot.slane %v6541_v14, 9 }
 0x352   : > { %v5923_v18 = vor.u32 %v5922_v44, %v5919_v24  ;;  %v5933_v60 = vor.u32 %v5932_v13, %v5928_v46  ;;  %v5938_v58 = vrot.slane %v5936_v10, 5  ;;  %v6627_v47 = vrot.slane %v14243_v5, 5 }
 0x353   : > { %v5368_v57 = vor.u32 %v5366_v8, %v5365_v35  ;;  %v5370_v7 = vrot.slane %v5365_v35, 4  ;;  %v5157_v49 = vmax.f32 %v5125_v61, 0.0  ;;  %6261 = vmatmul.bf16.gmra.mxu1 %v6141_v45  ;;  %v4630_v17 = vadd.f32 %v4581_v20, %v3948_v4  ;;  %v12224_v20 = vld [vmem:[#allocation3 + $0x30] sm:$0xff]  ;;  %v16508_v8 = vld [vmem:[#allocation21_spill] sm:$0xff] }
 0x354   : > { %v4584_v42 = vpop.f32.mrf.mxu3  ;;  %6469 = vmatmul.bf16.gmra.mxu2 %v12184_v40  ;;  %v5934_v30 = vrot.slane %v5933_v60, 4  ;;  %v5924_v55 = vrot.slane %v5923_v18, 4  ;;  %v6629_v61 = vrot.slane %v6627_v47, 4  ;;  %v6630_v4 = vrot.slane %v14251_v27, 5  ;;  %v16509_v27 = vld [vmem:[#allocation22_spill] sm:$0xff]  ;;  %v16510_v40 = vld [vmem:[#allocation20_spill] sm:$0xff] }
 0x355   : > { %v14411_v51 = vpop.f32.mrf.mxu0  ;;  %v5369_v63 = vsel %vm12590_vm8, %v5361_v1, %v5368_v57  ;;  %v5590_v28 = vsel %vm12610_vm10, %v5370_v7, %v5589_v38  ;;  %v5189_v59 = vpack.c.bf16 %v5157_v49, %v5157_v49  ;;  %v5056_v3 = vadd.f32 %v14358_v6, %v4630_v17  ;;  %v5656_v18 = vld [vmem:[#allocation3 + $0x78] sm:$0xf] }
 0x356   : > { %5588 = vst [vmem:[#allocation3 + $0x7c] sm:$0xf] %v5369_v63  ;;  %6847 = vmatmul.bf16.gmra.mxu3 %v6747_v21  ;;  %v5939_v6 = vsel %vm12584_vm7, %v5934_v30, %v5938_v58  ;;  %v5929_v12 = vsel %vm12584_vm7, %v5924_v55, %v5928_v46  ;;  %v6628_v5 = vsel %vm12988_vm13, %v11550_v54, %v6627_v47  ;;  %v5941_v14 = vshrl.u32 %v5656_v18, 16 }
 0x357   : > { %5591 = vst [vmem:[#allocation3 + $0x80] sm:$0x1] %v5590_v28  ;;  %v5372_v45 = vshrl.u32 %v5189_v59, 16  ;;  %v5091_v22 = vmul.f32 %v14202_v23, %v5056_v3  ;;  %v5375_v33 = vshll.u32 %v5189_v59, 16  ;;  %v6120_v2 = vunpack.c.l.b16 %v5939_v6 }
 0x358   : > { %7161 = vmatmul.bf16.gmra.mxu0 %v12224_v20  ;;  %v3902_v1 = vpop.f32.mrf.mxu2  ;;  %v6119_v10 = vunpack.c.l.b16 %v5929_v12  ;;  %v6631_v57 = vsel %vm12988_vm13, %v6629_v61, %v6630_v4  ;;  %v3635_v21 = vadd.f32 %v16510_v40, %v16509_v27  ;;  %v6724_v63 = vunpack.c.l.b16 %v6628_v5  ;;  %v12247_v20 = vld [vmem:[%s16439_s4 + $0x110] sm:$0xff]  ;;  %v6542_v40 = vld [vmem:[#allocation3 + $0x54] sm:$0xe] }
 0x359   : > { %v14421_v16 = vpop.f32.mrf.mxu1  ;;  %v5374_v15 = vrot.slane %v5372_v45, 7  ;;  %v5126_v41 = vadd.f32 %v14174_v29, %v5091_v22  ;;  %v3949_v53 = vadd.f32 %v3902_v1, %v16508_v8  ;;  %v5944_v45 = vshll.u32 %v5656_v18, 16  ;;  %7825 = vmatpush.bf16.msrb.mxu1 %v12247_v20 }
 0x35a   : > { %v5943_v47 = vrot.slane %v5941_v14, 4  ;;  %v6634_v20 = vrot.slane %v14287_v43, 5 }
 0x35b   : > { %v5377_v24 = vor.u32 %v5375_v33, %v5374_v15  ;;  %v5158_v38 = vmax.f32 %v5126_v41, 0.0  ;;  %v4631_v44 = vadd.f32 %v4584_v42, %v3949_v53  ;;  %v5378_v7 = vrot.slane %v5374_v15, 4  ;;  %v5596_v15 = vld [vmem:[#allocation3 + $0x8c] sm:$0x1] }
 0x35c   : > { %v4586_v35 = vpop.f32.mrf.mxu3  ;;  %v6142_v42 = vpack.c.b16 %v6120_v2, %v6119_v10  ;;  %v5946_v8 = vrot.slane %v5944_v45, 5 }
 0x35d   : > { %v14431_v13 = vpop.f32.mrf.mxu0  ;;  %v5593_v46 = vsel %vm12600_vm9, %v5377_v24, %v5592_v34  ;;  %v5190_v49 = vpack.c.bf16 %v5158_v38, %v5158_v38  ;;  %v5057_v17 = vadd.f32 %v14387_v37, %v4631_v44  ;;  %v14442_v60 = vld [vmem:[#allocation3 + $0x7c] sm:$0xf]  ;;  %v6725_v37 = vunpack.c.l.b16 %v6631_v57  ;;  %v12185_v38 = vld [vmem:[#allocation3 + $0x30] sm:$0xff] }
 0x35e   : > { %5594 = vst [vmem:[#allocation3 + $0x84] sm:$0xf] %v5593_v46  ;;  %v14445_v3 = vld [vmem:[#allocation3 + $0x80] sm:$0x1]  ;;  %v5950_v22 = vshll.u32 %v14442_v60, 16  ;;  %v5954_v55 = vshrl.u32 %v14442_v60, 16  ;;  %v5947_v5 = vor.u32 %v5946_v8, %v5943_v47 }
 0x35f   : > { %v5380_v28 = vshrl.u32 %v5190_v49, 16  ;;  %v5092_v59 = vmul.f32 %v14202_v23, %v5057_v17  ;;  %v5383_v30 = vshll.u32 %v5190_v49, 16  ;;  %v5960_v34 = vshll.u32 %v14445_v3, 16 }
 0x360   : > { %v3904_v58 = vpop.f32.mrf.mxu2  ;;  %v5952_v53 = vrot.slane %v5950_v22, 5  ;;  %v5956_v12 = vrot.slane %v5954_v55, 4  ;;  %v14458_v57 = vpack.c.b16 %v6725_v37, %v6724_v63  ;;  %v5599_v22 = vld [vmem:[#allocation3 + $0x90] sm:$0xf] }
 0x361   : > { %v5382_v33 = vrot.slane %v5380_v28, 7  ;;  %v5127_v1 = vadd.f32 %v14174_v29, %v5092_v59  ;;  %v3950_v6 = vadd.f32 %v3904_v58, %v3635_v21  ;;  %v14453_v54 = vpop.f32.mrf.mxu1  ;;  %v5948_v28 = vrot.slane %v5947_v5, 4 }
 0x362   : > { %v5957_v10 = vor.u32 %v5956_v12, %v5952_v53 }
 0x363   : > { %v5385_v2 = vor.u32 %v5383_v30, %v5382_v33  ;;  %v5387_v61 = vrot.slane %v5382_v33, 4  ;;  %v5159_v4 = vmax.f32 %v5127_v1, 0.0  ;;  %6266 = vmatmul.bf16.gmra.mxu1 %v6142_v42  ;;  %v4632_v24 = vadd.f32 %v4586_v35, %v3950_v6  ;;  %v12225_v35 = vld [vmem:[#allocation3 + $0x3c] sm:$0xff] }
 0x364   : > { %v4589_v41 = vpop.f32.mrf.mxu3  ;;  %6474 = vmatmul.bf16.gmra.mxu2 %v12185_v38  ;;  %v5958_v21 = vrot.slane %v5957_v10, 4  ;;  %v5962_v42 = vrot.slane %v5960_v34, 5  ;;  %v16511_v30 = vld [vmem:[#allocation24_spill] sm:$0xff]  ;;  %v5953_v45 = vsel %vm12584_vm7, %v5948_v28, %v5952_v53  ;;  %v6636_v1 = vrot.slane %v6634_v20, 4 }
 0x365   : > { %v14456_v44 = vpop.f32.mrf.mxu0  ;;  %v5386_v46 = vsel %vm12590_vm8, %v5378_v7, %v5385_v2  ;;  %v5597_v49 = vsel %vm12610_vm10, %v5387_v61, %v5596_v15  ;;  %v5191_v17 = vpack.c.bf16 %v5159_v4, %v5159_v4  ;;  %v5058_v27 = vadd.f32 %v14411_v51, %v4632_v24  ;;  %v16512_v24 = vld [vmem:[#allocation25_spill] sm:$0xff] }
 0x366   : > { %5595 = vst [vmem:[#allocation3 + $0x88] sm:$0xf] %v5386_v46  ;;  %6852 = vmatmul.bf16.gmra.mxu3 %v14373_v11  ;;  %v5963_v14 = vsel %vm12584_vm7, %v5958_v21, %v5962_v42  ;;  %v11551_v51 = vrot.slane %v6542_v40, 9  ;;  %v6637_v6 = vrot.slane %v14290_v25, 5  ;;  %v5658_v10 = vld [vmem:[#allocation3 + $0x84] sm:$0xf] }
 0x367   : > { %5598 = vst [vmem:[#allocation3 + $0x8c] sm:$0x1] %v5597_v49  ;;  %v5389_v18 = vshrl.u32 %v5191_v17, 16  ;;  %v5093_v63 = vmul.f32 %v14202_v23, %v5058_v27  ;;  %v5392_v7 = vshll.u32 %v5191_v17, 16  ;;  %v6122_v55 = vunpack.c.l.b16 %v5963_v14 }
 0x368   : > { %7166 = vmatmul.bf16.gmra.mxu0 %v12225_v35  ;;  %v3907_v59 = vpop.f32.mrf.mxu2  ;;  %v6635_v43 = vsel %vm12988_vm13, %v11551_v51, %v6634_v20  ;;  %v6638_v34 = vsel %vm12988_vm13, %v6636_v1, %v6637_v6  ;;  %v5965_v35 = vshrl.u32 %v5658_v10, 16  ;;  %v5603_v20 = vld [vmem:[#allocation3 + $0x98] sm:$0x1] }
 0x369   : > { %v5391_v37 = vrot.slane %v5389_v18, 7  ;;  %v5128_v11 = vadd.f32 %v14174_v29, %v5093_v63  ;;  %v3951_v58 = vadd.f32 %v3907_v59, %v16511_v30  ;;  %v6121_v29 = vunpack.c.l.b16 %v5953_v45  ;;  %v14498_v59 = vld [vmem:[%s16438_s3] ss:$0 sm:$0xff] }
 0x36a   : > { %v14475_v12 = vpop.f32.mrf.mxu1  ;;  %v6726_v49 = vunpack.c.l.b16 %v6635_v43  ;;  %v6727_v21 = vunpack.c.l.b16 %v6638_v34  ;;  %v5968_v18 = vshll.u32 %v5658_v10, 16  ;;  %v5967_v51 = vrot.slane %v5965_v35, 4 }
 0x36b   : > { %v5394_v47 = vor.u32 %v5392_v7, %v5391_v37  ;;  %v5160_v15 = vmax.f32 %v5128_v11, 0.0  ;;  %v4633_v8 = vadd.f32 %v4589_v41, %v3951_v58  ;;  %v5395_v2 = vrot.slane %v5391_v37, 4  ;;  %v16513_v41 = vld [vmem:[#allocation23_spill] sm:$0xff] }
 0x36c   : > { %v4591_v33 = vpop.f32.mrf.mxu3  ;;  %v3637_v38 = vadd.f32 %v16513_v41, %v16512_v24  ;;  %v6143_v5 = vpack.c.b16 %v6122_v55, %v6121_v29  ;;  %v5970_v11 = vrot.slane %v5968_v18, 5  ;;  %v14504_v29 = vpack.c.b16 %v6727_v21, %v6726_v49  ;;  %v6543_v24 = vld [vmem:[#allocation3 + $0x60] sm:$0xe]  ;;  %v16514_v18 = vld [vmem:[#allocation26_spill] sm:$0xff] }
 0x36d   : > { %v5600_v53 = vsel %vm12600_vm9, %v5394_v47, %v5599_v22  ;;  %v5192_v61 = vpack.c.bf16 %v5160_v15, %v5160_v15  ;;  %v5059_v4 = vadd.f32 %v14431_v13, %v4633_v8  ;;  %v14484_v25 = vpop.f32.mrf.mxu0  ;;  %v14488_v46 = vld [vmem:[#allocation3 + $0x88] sm:$0xf]  ;;  %v12186_v15 = vld [vmem:[#allocation3 + $0x3c] sm:$0xff]  ;;  %v11552_v35 = vrot.slane %v6543_v24, 9 }
 0x36e   : > { %5601 = vst [vmem:[#allocation3 + $0x90] sm:$0xf] %v5600_v53  ;;  %v14491_v40 = vld [vmem:[#allocation3 + $0x8c] sm:$0x1]  ;;  %v5974_v63 = vshll.u32 %v14488_v46, 16  ;;  %v5978_v28 = vshrl.u32 %v14488_v46, 16  ;;  %v5971_v8 = vor.u32 %v5970_v11, %v5967_v51 }
 0x36f   : > { %v5397_v17 = vshrl.u32 %v5192_v61, 16  ;;  %v5094_v27 = vmul.f32 %v14202_v23, %v5059_v4  ;;  %v5400_v42 = vshll.u32 %v5192_v61, 16  ;;  %v5984_v45 = vshll.u32 %v14491_v40, 16 }
 0x370   : > { %v3909_v13 = vpop.f32.mrf.mxu2  ;;  %v5976_v30 = vrot.slane %v5974_v63, 5  ;;  %v5980_v58 = vrot.slane %v5978_v28, 4  ;;  %v6641_v21 = vrot.slane %v14338_v19, 5  ;;  %v6644_v51 = vrot.slane %v14347_v52, 5 }
 0x371   : > { %v5399_v7 = vrot.slane %v5397_v17, 7  ;;  %v5129_v14 = vadd.f32 %v14498_v59, %v5094_v27  ;;  %v3952_v23 = vadd.f32 %v3909_v13, %v3637_v38  ;;  %v5986_v38 = vrot.slane %v5984_v45, 5 }
 0x372   : > { %v14502_v47 = vpop.f32.mrf.mxu1  ;;  %v5981_v43 = vor.u32 %v5980_v58, %v5976_v30  ;;  %v6642_v19 = vsel %vm12988_vm13, %v11552_v35, %v6641_v21 }
 0x373   : > { %v5402_v22 = vor.u32 %v5400_v42, %v5399_v7  ;;  %v5404_v55 = vrot.slane %v5399_v7, 4  ;;  %v5161_v1 = vmax.f32 %v5129_v14, 0.0  ;;  %6271 = vmatmul.bf16.gmra.mxu1 %v6143_v5  ;;  %v4634_v6 = vadd.f32 %v4591_v33, %v3952_v23  ;;  %v12226_v33 = vld [vmem:[#allocation3 + $0x48] sm:$0xff]  ;;  %v5606_v7 = vld [vmem:[#allocation3 + $0x9c] sm:$0xf] }
 0x374   : > { %v4594_v37 = vpop.f32.mrf.mxu3  ;;  %6479 = vmatmul.bf16.gmra.mxu2 %v12186_v15  ;;  %v5982_v41 = vrot.slane %v5981_v43, 4  ;;  %v6643_v23 = vrot.slane %v6641_v21, 4  ;;  %v16516_v43 = vld [vmem:[#allocation4_spill] sm:$0xff] }
 0x375   : > { %v5403_v34 = vsel %vm12590_vm8, %v5395_v2, %v5402_v22  ;;  %v5604_v53 = vsel %vm12610_vm10, %v5404_v55, %v5603_v20  ;;  %v5193_v61 = vpack.c.bf16 %v5161_v1, %v5161_v1  ;;  %v5060_v4 = vadd.f32 %v14456_v44, %v4634_v6  ;;  %v14515_v2 = vld [vmem:[%s16437_s2] ss:$0 sm:$0xff]  ;;  %v14518_v49 = vpop.f32.mrf.mxu0 }
 0x376   : > { %5602 = vst [vmem:[#allocation3 + $0x94] sm:$0xf] %v5403_v34  ;;  %6857 = vmatmul.bf16.gmra.mxu3 %v14413_v9  ;;  %v5972_v44 = vrot.slane %v5971_v8, 4  ;;  %v5987_v9 = vsel %vm12584_vm7, %v5982_v41, %v5986_v38  ;;  %v6645_v1 = vsel %vm12988_vm13, %v6643_v23, %v6644_v51  ;;  %v16515_v8 = vld [vmem:[#allocation5_spill] sm:$0xff] }
 0x377   : > { %5605 = vst [vmem:[#allocation3 + $0x98] sm:$0x1] %v5604_v53  ;;  %v5406_v5 = vshrl.u32 %v5193_v61, 16  ;;  %v5095_v10 = vmul.f32 %v14515_v2, %v5060_v4  ;;  %v5409_v17 = vshll.u32 %v5193_v61, 16  ;;  %v6124_v14 = vunpack.c.l.b16 %v5987_v9  ;;  %v5660_v53 = vld [vmem:[#allocation3 + $0x90] sm:$0xf] }
 0x378   : > { %7171 = vmatmul.bf16.gmra.mxu0 %v12226_v33  ;;  %v3912_v27 = vpop.f32.mrf.mxu2  ;;  %v5977_v28 = vsel %vm12584_vm7, %v5972_v44, %v5976_v30  ;;  %v6728_v4 = vunpack.c.l.b16 %v6642_v19  ;;  %v5989_v38 = vshrl.u32 %v5660_v53, 16 }
 0x379   : > { %v5408_v42 = vrot.slane %v5406_v5, 7  ;;  %v5130_v13 = vadd.f32 %v14498_v59, %v5095_v10  ;;  %v3953_v63 = vadd.f32 %v3912_v27, %v16514_v18  ;;  %v6123_v55 = vunpack.c.l.b16 %v5977_v28  ;;  %v12246_v5 = vld [vmem:[%s16439_s4 + $0x108] sm:$0xff] }
 0x37a   : > { %v14528_v45 = vpop.f32.mrf.mxu1  ;;  %v5991_v18 = vrot.slane %v5989_v38, 4  ;;  %7826 = vmatpush.bf16.msrb.mxu1 %v12246_v5 }
 0x37b   : > { %v5411_v20 = vor.u32 %v5409_v17, %v5408_v42  ;;  %v5162_v11 = vmax.f32 %v5130_v13, 0.0  ;;  %v4635_v58 = vadd.f32 %v4594_v37, %v3953_v63  ;;  %v5412_v6 = vrot.slane %v5408_v42, 4  ;;  %v5610_v63 = vld [vmem:[#allocation3 + $0xa4] sm:$0x1] }
 0x37c   : > { %v4596_v22 = vpop.f32.mrf.mxu3  ;;  %v3639_v37 = vadd.f32 %v16516_v43, %v16515_v8  ;;  %v6144_v34 = vpack.c.b16 %v6124_v14, %v6123_v55  ;;  %v5992_v17 = vshll.u32 %v5660_v53, 16  ;;  %v12187_v55 = vld [vmem:[#allocation3 + $0x48] sm:$0xff] }
 0x37d   : > { %v5607_v30 = vsel %vm12600_vm9, %v5411_v20, %v5606_v7  ;;  %v5194_v15 = vpack.c.bf16 %v5162_v11, %v5162_v11  ;;  %v5061_v52 = vadd.f32 %v14484_v25, %v4635_v58  ;;  %v14539_v61 = vld [vmem:[#allocation3 + $0x94] sm:$0xf]  ;;  %v6729_v25 = vunpack.c.l.b16 %v6645_v1 }
 0x37e   : > { %5608 = vst [vmem:[#allocation3 + $0x9c] sm:$0xf] %v5607_v30  ;;  %v14542_v41 = vld [vmem:[#allocation3 + $0x98] sm:$0x1]  ;;  %v5998_v27 = vshll.u32 %v14539_v61, 16  ;;  %v6002_v9 = vshrl.u32 %v14539_v61, 16  ;;  %v5025_v13 = vpop.f32.mrf.mxu0 }
 0x37f   : > { %v5414_v24 = vshrl.u32 %v5194_v15, 16  ;;  %v5096_v33 = vmul.f32 %v14515_v2, %v5061_v52  ;;  %v5417_v10 = vshll.u32 %v5194_v15, 16  ;;  %v5994_v28 = vrot.slane %v5992_v17, 5 }
 0x380   : > { %v3914_v44 = vpop.f32.mrf.mxu2  ;;  %v6000_v7 = vrot.slane %v5998_v27, 5  ;;  %v6004_v14 = vrot.slane %v6002_v9, 4  ;;  %v6008_v23 = vshll.u32 %v14542_v41, 16  ;;  %v14553_v15 = vpack.c.b16 %v6729_v25, %v6728_v4  ;;  %v16517_v27 = vld [vmem:[#allocation6_spill] sm:$0xff] }
 0x381   : > { %v5416_v35 = vrot.slane %v5414_v24, 7  ;;  %v5131_v21 = vadd.f32 %v14498_v59, %v5096_v33  ;;  %v3954_v42 = vadd.f32 %v3914_v44, %v3639_v37  ;;  %v5995_v1 = vor.u32 %v5994_v28, %v5991_v18 }
 0x382   : > { %v14551_v19 = vpop.f32.mrf.mxu1  ;;  %v6005_v30 = vor.u32 %v6004_v14, %v6000_v7  ;;  %v6010_v33 = vrot.slane %v6008_v23, 5  ;;  %v6648_v44 = vrot.slane %v14400_v36, 5 }
 0x383   : > { %v5419_v51 = vor.u32 %v5417_v10, %v5416_v35  ;;  %v5421_v20 = vrot.slane %v5416_v35, 4  ;;  %v5163_v11 = vmax.f32 %v5131_v21, 0.0  ;;  %6276 = vmatmul.bf16.gmra.mxu1 %v6144_v34  ;;  %v4636_v58 = vadd.f32 %v4596_v22, %v3954_v42  ;;  %v6544_v34 = vld [vmem:[#allocation3 + $0x6c] sm:$0xe]  ;;  %v12227_v22 = vld [vmem:[#allocation3 + $0x54] sm:$0xff] }
 0x384   : > { %6484 = vmatmul.bf16.gmra.mxu2 %v12187_v55  ;;  %v4599_v53 = vpop.f32.mrf.mxu3  ;;  %v6006_v24 = vrot.slane %v6005_v30, 4  ;;  %v11553_v10 = vrot.slane %v6544_v34, 9  ;;  %v5613_v21 = vld [vmem:[#allocation3 + $0xa8] sm:$0xf]  ;;  %v6650_v18 = vrot.slane %v6648_v44, 4 }
 0x385   : > { %v5420_v52 = vsel %vm12590_vm8, %v5412_v6, %v5419_v51  ;;  %v5611_v8 = vsel %vm12610_vm10, %v5421_v20, %v5610_v63  ;;  %v5195_v43 = vpack.c.bf16 %v5163_v11, %v5163_v11  ;;  %v5062_v37 = vadd.f32 %v14518_v49, %v4636_v58 }
 0x386   : > { %5609 = vst [vmem:[#allocation3 + $0xa0] sm:$0xf] %v5420_v52  ;;  %6862 = vmatmul.bf16.gmra.mxu3 %v14458_v57  ;;  %v5996_v6 = vrot.slane %v5995_v1, 4  ;;  %v6011_v49 = vsel %vm12584_vm7, %v6006_v24, %v6010_v33  ;;  %v6651_v63 = vrot.slane %v14403_v62, 5  ;;  %v5027_v51 = vpop.f32.mrf.mxu0  ;;  %v6649_v36 = vsel %vm12988_vm13, %v11553_v10, %v6648_v44  ;;  %v16518_v62 = vld [vmem:[#allocation27_spill] sm:$0xff] }
 0x387   : > { %5612 = vst [vmem:[#allocation3 + $0xa4] sm:$0x1] %v5611_v8  ;;  %v5423_v4 = vshrl.u32 %v5195_v43, 16  ;;  %v5097_v38 = vmul.f32 %v14515_v2, %v5062_v37  ;;  %v5426_v5 = vshll.u32 %v5195_v43, 16  ;;  %v6126_v42 = vunpack.c.l.b16 %v6011_v49  ;;  %v16519_v52 = vld [vmem:[#allocation7_spill] sm:$0xff] }
 0x388   : > { %7176 = vmatmul.bf16.gmra.mxu0 %v12227_v22  ;;  %v3917_v25 = vpop.f32.mrf.mxu2  ;;  %v6001_v35 = vsel %vm12584_vm7, %v5996_v6, %v6000_v7  ;;  %v6652_v58 = vsel %vm12988_vm13, %v6650_v18, %v6651_v63  ;;  %v3641_v8 = vadd.f32 %v16519_v52, %v16518_v62  ;;  %v5662_v37 = vld [vmem:[#allocation3 + $0x9c] sm:$0xf]  ;;  %v6730_v34 = vunpack.c.l.b16 %v6649_v36  ;;  %v12188_v36 = vld [vmem:[#allocation3 + $0x54] sm:$0xff] }
 0x389   : > { %v5425_v17 = vrot.slane %v5423_v4, 7  ;;  %v5132_v57 = vadd.f32 %v14498_v59, %v5097_v38  ;;  %v3955_v9 = vadd.f32 %v3917_v25, %v16517_v27  ;;  %v6125_v11 = vunpack.c.l.b16 %v6001_v35 }
 0x38a   : > { %v6013_v38 = vshrl.u32 %v5662_v37, 16  ;;  %v6731_v6 = vunpack.c.l.b16 %v6652_v58 }
 0x38b   : > { %v5428_v28 = vor.u32 %v5426_v5, %v5425_v17  ;;  %v5164_v14 = vmax.f32 %v5132_v57, 0.0  ;;  %v4637_v23 = vadd.f32 %v4599_v53, %v3955_v9  ;;  %v14572_v20 = vpop.f32.mrf.mxu1  ;;  %v5429_v55 = vrot.slane %v5425_v17, 4  ;;  %v5617_v9 = vld [vmem:[#allocation3 + $0xb0] sm:$0x1] }
 0x38c   : > { %v6145_v43 = vpack.c.b16 %v6126_v42, %v6125_v11  ;;  %v4601_v33 = vpop.f32.mrf.mxu3  ;;  %v6015_v27 = vrot.slane %v6013_v38, 4 }
 0x38d   : > { %v5614_v7 = vsel %vm12600_vm9, %v5428_v28, %v5613_v21  ;;  %v5196_v1 = vpack.c.bf16 %v5164_v14, %v5164_v14  ;;  %v5063_v30 = vadd.f32 %v5025_v13, %v4637_v23  ;;  %v14580_v53 = vld [vmem:[#allocation3 + $0xa0] sm:$0xf]  ;;  %v6016_v13 = vshll.u32 %v5662_v37, 16 }
 0x38e   : > { %5615 = vst [vmem:[#allocation3 + $0xa8] sm:$0xf] %v5614_v7  ;;  %v14583_v4 = vld [vmem:[#allocation3 + $0xa4] sm:$0x1]  ;;  %v6022_v49 = vshll.u32 %v14580_v53, 16  ;;  %v6026_v10 = vshrl.u32 %v14580_v53, 16  ;;  %v14589_v7 = vpack.c.b16 %v6731_v6, %v6730_v34 }
 0x38f   : > { %v5431_v22 = vshrl.u32 %v5196_v1, 16  ;;  %v5098_v24 = vmul.f32 %v14515_v2, %v5063_v30  ;;  %v5434_v5 = vshll.u32 %v5196_v1, 16  ;;  %v6018_v35 = vrot.slane %v6016_v13, 5 }
 0x390   : > { %v3919_v25 = vpop.f32.mrf.mxu2  ;;  %v6024_v21 = vrot.slane %v6022_v49, 5  ;;  %v6028_v42 = vrot.slane %v6026_v10, 4  ;;  %v6032_v18 = vshll.u32 %v14583_v4, 16  ;;  %v16520_v49 = vld [vmem:[#allocation8_spill] sm:$0xff] }
 0x391   : > { %v5433_v44 = vrot.slane %v5431_v22, 7  ;;  %v5133_v17 = vadd.f32 %v14498_v59, %v5098_v24  ;;  %v3956_v57 = vadd.f32 %v3919_v25, %v3641_v8  ;;  %v6019_v11 = vor.u32 %v6018_v35, %v6015_v27  ;;  %v12245_v25 = vld [vmem:[%s16439_s4 + $0x100] sm:$0xff]  ;;  %v6545_v35 = vld [vmem:[#allocation3 + $0x78] sm:$0xe] }
 0x392   : > { %v6029_v58 = vor.u32 %v6028_v42, %v6024_v21  ;;  %v6034_v24 = vrot.slane %v6032_v18, 5  ;;  %7827 = vmatpush.bf16.msrb.mxu1 %v12245_v25  ;;  %v6655_v42 = vrot.slane %v14442_v60, 5 }
 0x393   : > { %v5436_v63 = vor.u32 %v5434_v5, %v5433_v44  ;;  %v5438_v28 = vrot.slane %v5433_v44, 4  ;;  %v5165_v14 = vmax.f32 %v5133_v17, 0.0  ;;  %6281 = vmatmul.bf16.gmra.mxu1 %v6145_v43  ;;  %v4638_v23 = vadd.f32 %v4601_v33, %v3956_v57  ;;  %v14595_v37 = vpop.f32.mrf.mxu1  ;;  %v12228_v43 = vld [vmem:[#allocation3 + $0x60] sm:$0xff]  ;;  %v5620_v57 = vld [vmem:[#allocation3 + $0xb4] sm:$0xf] }
 0x394   : > { %6489 = vmatmul.bf16.gmra.mxu2 %v12188_v36  ;;  %v6030_v22 = vrot.slane %v6029_v58, 4  ;;  %v6657_v58 = vrot.slane %v6655_v42, 4 }
 0x395   : > { %v5437_v1 = vsel %vm12590_vm8, %v5429_v55, %v5436_v63  ;;  %v5618_v30 = vsel %vm12610_vm10, %v5438_v28, %v5617_v9  ;;  %v5197_v62 = vpack.c.bf16 %v5165_v14, %v5165_v14  ;;  %v5064_v52 = vadd.f32 %v5027_v51, %v4638_v23  ;;  %v5030_v8 = vpop.f32.mrf.mxu0  ;;  %v5664_v38 = vld [vmem:[#allocation3 + $0xa8] sm:$0xf]  ;;  %v16521_v14 = vld [vmem:[#allocation9_spill] sm:$0xff] }
 0x396   : > { %5616 = vst [vmem:[#allocation3 + $0xac] sm:$0xf] %v5437_v1  ;;  %6867 = vmatmul.bf16.gmra.mxu3 %v14504_v29  ;;  %v6020_v55 = vrot.slane %v6019_v11, 4  ;;  %v6035_v51 = vsel %vm12584_vm7, %v6030_v22, %v6034_v24  ;;  %v6037_v9 = vshrl.u32 %v5664_v38, 16  ;;  %v3643_v23 = vadd.f32 %v14336_v32, %v16521_v14 }
 0x397   : > { %5619 = vst [vmem:[#allocation3 + $0xb0] sm:$0x1] %v5618_v30  ;;  %v5440_v34 = vshrl.u32 %v5197_v62, 16  ;;  %v5099_v33 = vmul.f32 %v14515_v2, %v5064_v52  ;;  %v5443_v6 = vshll.u32 %v5197_v62, 16  ;;  %v6128_v27 = vunpack.c.l.b16 %v6035_v51 }
 0x398   : > { %7181 = vmatmul.bf16.gmra.mxu0 %v12228_v43  ;;  %v3922_v5 = vpop.f32.mrf.mxu2  ;;  %v6025_v17 = vsel %vm12584_vm7, %v6020_v55, %v6024_v21  ;;  %v6040_v11 = vshll.u32 %v5664_v38, 16  ;;  %v11554_v43 = vrot.slane %v6545_v35, 9  ;;  %v6039_v22 = vrot.slane %v6037_v9, 4  ;;  %v5624_v9 = vld [vmem:[#allocation3 + $0xbc] sm:$0x1] }
 0x399   : > { %v5442_v29 = vrot.slane %v5440_v34, 7  ;;  %v5134_v13 = vadd.f32 %v14498_v59, %v5099_v33  ;;  %v3957_v10 = vadd.f32 %v3922_v5, %v16520_v49  ;;  %v4604_v44 = vpop.f32.mrf.mxu3  ;;  %v6127_v36 = vunpack.c.l.b16 %v6025_v17 }
 0x39a   : > { %v6658_v34 = vrot.slane %v14445_v3, 5  ;;  %v6042_v25 = vrot.slane %v6040_v11, 5  ;;  %v12189_v11 = vld [vmem:[#allocation3 + $0x60] sm:$0xff] }
 0x39b   : > { %v5445_v18 = vor.u32 %v5443_v6, %v5442_v29  ;;  %v5166_v63 = vmax.f32 %v5134_v13, 0.0  ;;  %v4639_v28 = vadd.f32 %v4604_v44, %v3957_v10  ;;  %v6146_v60 = vpack.c.b16 %v6128_v27, %v6127_v36 }
 0x39c   : > { %v6659_v49 = vsel %vm12988_vm13, %v6657_v58, %v6658_v34  ;;  %v5446_v27 = vrot.slane %v5442_v29, 4  ;;  %v12260_v58 = vld [vmem:[%s16439_s4 + $0x178] sm:$0xff] }
 0x39d   : > { %v5621_v1 = vsel %vm12600_vm9, %v5445_v18, %v5620_v57  ;;  %v5198_v21 = vpack.c.bf16 %v5166_v63, %v5166_v63  ;;  %v5065_v30 = vadd.f32 %v5030_v8, %v4639_v28  ;;  %v5032_v62 = vpop.f32.mrf.mxu0  ;;  %v14613_v52 = vld [vmem:[#allocation3 + $0xac] sm:$0xf]  ;;  %v6656_v8 = vsel %vm12988_vm13, %v11554_v43, %v6655_v42  ;;  %8246 = vmatpush.bf16.msra.mxu2 %v12260_v58 }
 0x39e   : > { %5622 = vst [vmem:[#allocation3 + $0xb4] sm:$0xf] %v5621_v1  ;;  %v6046_v24 = vshll.u32 %v14613_v52, 16  ;;  %v14618_v55 = vld [vmem:[#allocation3 + $0xb0] sm:$0x1]  ;;  %v6050_v38 = vshrl.u32 %v14613_v52, 16  ;;  %v6732_v42 = vunpack.c.l.b16 %v6656_v8  ;;  %v6733_v18 = vunpack.c.l.b16 %v6659_v49 }
 0x39f   : > { %v5448_v32 = vshrl.u32 %v5198_v21, 16  ;;  %v5100_v33 = vmul.f32 %v14515_v2, %v5065_v30  ;;  %v5451_v6 = vshll.u32 %v5198_v21, 16  ;;  %v6056_v35 = vshll.u32 %v14618_v55, 16 }
 0x3a0   : > { %v14623_v5 = vpop.f32.mrf.mxu1  ;;  %v3924_v51 = vpop.f32.mrf.mxu2  ;;  %v6048_v13 = vrot.slane %v6046_v24, 5  ;;  %v6052_v57 = vrot.slane %v6050_v38, 4  ;;  %v6043_v1 = vor.u32 %v6042_v25, %v6039_v22  ;;  %v14632_v21 = vpack.c.b16 %v6733_v18, %v6732_v42 }
 0x3a1   : > { %v5450_v3 = vrot.slane %v5448_v32, 7  ;;  %v5135_v10 = vadd.f32 %v14498_v59, %v5100_v33  ;;  %v3958_v44 = vadd.f32 %v3924_v51, %v3643_v23  ;;  %v4606_v17 = vpop.f32.mrf.mxu3  ;;  %v6058_v22 = vrot.slane %v6056_v35, 5 }
 0x3a2   : > { %v6053_v23 = vor.u32 %v6052_v57, %v6048_v13  ;;  %v6044_v51 = vrot.slane %v6043_v1, 4 }
 0x3a3   : > { %v5453_v63 = vor.u32 %v5451_v6, %v5450_v3  ;;  %v5455_v28 = vrot.slane %v5450_v3, 4  ;;  %v5167_v14 = vmax.f32 %v5135_v10, 0.0  ;;  %6286 = vmatmul.bf16.gmra.mxu1 %v6146_v60  ;;  %v4640_v36 = vadd.f32 %v4606_v17, %v3958_v44  ;;  %v12229_v60 = vld [vmem:[#allocation3 + $0x6c] sm:$0xff]  ;;  %v5627_v17 = vld [vmem:[#allocation3 + $0xc0] sm:$0xf] }
 0x3a4   : > { %6494 = vmatmul.bf16.gmra.mxu2 %v12189_v11  ;;  %v6054_v32 = vrot.slane %v6053_v23, 4  ;;  %v6049_v57 = vsel %vm12584_vm7, %v6044_v51, %v6048_v13  ;;  %v5631_v51 = vld [vmem:[#allocation3 + $0xc8] sm:$0x1] }
 0x3a5   : > { %v5454_v29 = vsel %vm12590_vm8, %v5446_v27, %v5453_v63  ;;  %v5625_v30 = vsel %vm12610_vm10, %v5455_v28, %v5624_v9  ;;  %v5199_v43 = vpack.c.bf16 %v5167_v14, %v5167_v14  ;;  %v5066_v24 = vadd.f32 %v5032_v62, %v4640_v36  ;;  %v14638_v34 = vpop.f32.mrf.mxu0 }
 0x3a6   : > { %5623 = vst [vmem:[#allocation3 + $0xb8] sm:$0xf] %v5454_v29  ;;  %6872 = vmatmul.bf16.gmra.mxu3 %v14553_v15  ;;  %v6059_v62 = vsel %vm12584_vm7, %v6054_v32, %v6058_v22  ;;  %v12284_v15 = vld [vmem:[%s16439_s4 + $0x1b8] sm:$0xff] }
 0x3a7   : > { %5626 = vst [vmem:[#allocation3 + $0xbc] sm:$0x1] %v5625_v30  ;;  %v5457_v33 = vshrl.u32 %v5199_v43, 16  ;;  %v5101_v38 = vmul.f32 %v14515_v2, %v5066_v24  ;;  %v5460_v49 = vshll.u32 %v5199_v43, 16  ;;  %v5666_v2 = vld [vmem:[#allocation3 + $0xb4] sm:$0xf]  ;;  %8561 = vmatpush.bf16.msra.mxu3 %v12284_v15  ;;  %v6130_v42 = vunpack.c.l.b16 %v6059_v62 }
 0x3a8   : > { %v14642_v8 = vpop.f32.mrf.mxu1  ;;  %7186 = vmatmul.bf16.gmra.mxu0 %v12229_v60  ;;  %v6455_v6 = vpop.f32.mrf.mxu2  ;;  %v6061_v18 = vshrl.u32 %v5666_v2, 16  ;;  %v6064_v63 = vshll.u32 %v5666_v2, 16  ;;  %v12292_v32 = vld [vmem:[%s16439_s4 + $0x1f8] sm:$0xff]  ;;  %v12190_v2 = vld [vmem:[#allocation3 + $0x6c] sm:$0xff] }
 0x3a9   : > { %v5459_v25 = vrot.slane %v5457_v33, 7  ;;  %v5136_v3 = vadd.f32 %v14498_v59, %v5101_v38  ;;  %v6456_v10 = vadd.f32 %v6455_v6, %v14368_v0  ;;  %v6833_v44 = vpop.f32.mrf.mxu3  ;;  %v6129_v0 = vunpack.c.l.b16 %v6049_v57  ;;  %9243 = vmatpush.bf16.msra.mxu0 %v12292_v32 }
 0x3aa   : > { %v6063_v39 = vrot.slane %v6061_v18, 4  ;;  %v6066_v43 = vrot.slane %v6064_v63, 5  ;;  %v14684_v63 = vld [vmem:[#allocation3 + $0x10] sm:$0xf] }
 0x3ab   : > { %v5462_v27 = vor.u32 %v5460_v49, %v5459_v25  ;;  %v5168_v9 = vmax.f32 %v5136_v3, 0.0  ;;  %v14653_v35 = vadd.f32 %v6833_v44, %v6456_v10  ;;  %v6147_v1 = vpack.c.b16 %v6130_v42, %v6129_v0 }
 0x3ac   : > { %v5463_v49 = vrot.slane %v5459_v25, 4  ;;  %v6067_v57 = vor.u32 %v6066_v43, %v6063_v39  ;;  %v12230_v25 = vld [vmem:[#allocation3 + $0x78] sm:$0xff] }
 0x3ad   : > { %v5628_v28 = vsel %vm12600_vm9, %v5462_v27, %v5627_v17  ;;  %v5200_v59 = vpack.c.bf16 %v5168_v9, %v5168_v9  ;;  %v14657_v14 = vpop.f32.mrf.mxu0  ;;  %v14659_v36 = vld [vmem:[#allocation3 + $0xb8] sm:$0xf]  ;;  %v12300_v17 = vld [vmem:[%s16439_s4 + $0x238] sm:$0xff] }
 0x3ae   : > { %5629 = vst [vmem:[#allocation3 + $0xc0] sm:$0xf] %v5628_v28  ;;  %v6070_v13 = vshll.u32 %v14659_v36, 16  ;;  %v6074_v11 = vshrl.u32 %v14659_v36, 16  ;;  %v14663_v23 = vld [vmem:[#allocation3 + $0xbc] sm:$0x1]  ;;  %9669 = vmatpush.bf16.msra.mxu1 %v12300_v17 }
 0x3af   : > { %v5465_v58 = vshrl.u32 %v5200_v59, 16  ;;  %v5468_v33 = vshll.u32 %v5200_v59, 16  ;;  %v6080_v15 = vshll.u32 %v14663_v23, 16  ;;  %v6068_v59 = vrot.slane %v6067_v57, 4  ;;  %v12191_v17 = vld [vmem:[#allocation3 + $0x78] sm:$0xff] }
 0x3b0   : > { %v14665_v29 = vpop.f32.mrf.mxu1  ;;  %v6457_v30 = vpop.f32.mrf.mxu2  ;;  %v6072_v24 = vrot.slane %v6070_v13, 5  ;;  %v6076_v60 = vrot.slane %v6074_v11, 4  ;;  %v12259_v57 = vld [vmem:[%s16439_s4 + $0x170] sm:$0xff] }
 0x3b1   : > { %v5467_v22 = vrot.slane %v5465_v58, 7  ;;  %v6458_v38 = vadd.f32 %v6457_v30, %v14405_v56  ;;  %v6835_v6 = vpop.f32.mrf.mxu3  ;;  %v6082_v18 = vrot.slane %v6080_v15, 5  ;;  %v7317_v58 = vshll.u32 %v14684_v63, 16  ;;  %v14702_v15 = vld [vmem:[#allocation3 + $0x14] sm:$0x1]  ;;  %8247 = vmatpush.bf16.msra.mxu2 %v12259_v57 }
 0x3b2   : > { %v6077_v62 = vor.u32 %v6076_v60, %v6072_v24  ;;  %v6073_v11 = vsel %vm12584_vm7, %v6068_v59, %v6072_v24 }
 0x3b3   : > { %v5470_v3 = vor.u32 %v5468_v33, %v5467_v22  ;;  %v5472_v10 = vrot.slane %v5467_v22, 4  ;;  %6291 = vmatmul.bf16.gmra.mxu1 %v6147_v1  ;;  %v14672_v44 = vadd.f32 %v6835_v6, %v6458_v38  ;;  %v7321_v1 = vshrl.u32 %v14684_v63, 16 }
 0x3b4   : > { %v6078_v27 = vrot.slane %v6077_v62, 4  ;;  %6499 = vmatmul.bf16.gmra.mxu2 %v12190_v2  ;;  %v6131_v60 = vunpack.c.l.b16 %v6073_v11  ;;  %v7319_v33 = vrot.slane %v7317_v58, 5 }
 0x3b5   : > { %v5471_v56 = vsel %vm12590_vm8, %v5463_v49, %v5470_v3  ;;  %v5632_v9 = vsel %vm12610_vm10, %v5472_v10, %v5631_v51  ;;  %v14681_v42 = vpop.f32.mrf.mxu0  ;;  %v7323_v38 = vrot.slane %v7321_v1, 4  ;;  %v6546_v1 = vld [vmem:[#allocation3 + $0x84] sm:$0xe] }
 0x3b6   : > { %16522 = vst [vmem:[#allocation10_spill] sm:$0xff] %v14681_v42  ;;  %6877 = vmatmul.bf16.gmra.mxu3 %v14589_v7  ;;  %v6083_v48 = vsel %vm12584_vm7, %v6078_v27, %v6082_v18  ;;  %v7259_v7 = vld [vmem:[#allocation3 + $0xc] sm:$0xf]  ;;  %v7327_v27 = vshll.u32 %v14702_v15, 16 }
 0x3b7   : > { %5630 = vst [vmem:[#allocation3 + $0xc4] sm:$0xf] %v5471_v56  ;;  %v6132_v39 = vunpack.c.l.b16 %v6083_v48  ;;  %v7308_v32 = vshrl.u32 %v7259_v7, 16  ;;  %v7311_v22 = vshll.u32 %v7259_v7, 16  ;;  %v7324_v10 = vor.u32 %v7323_v38, %v7319_v33 }
 0x3b8   : > { %5633 = vst [vmem:[#allocation3 + $0xc8] sm:$0x1] %v5632_v9  ;;  %v14686_v28 = vpop.f32.mrf.mxu1  ;;  %7191 = vmatmul.bf16.gmra.mxu0 %v12230_v25  ;;  %v6460_v31 = vpop.f32.mrf.mxu2  ;;  %v6662_v9 = vrot.slane %v14488_v46, 5  ;;  %v12231_v25 = vld [vmem:[#allocation3 + $0x84] sm:$0xff]  ;;  %v6665_v38 = vrot.slane %v14491_v40, 5 }
 0x3b9   : > { %v6461_v0 = vadd.f32 %v6460_v31, %v14421_v16  ;;  %v6838_v13 = vpop.f32.mrf.mxu3  ;;  %v6148_v16 = vpack.c.b16 %v6132_v39, %v6131_v60  ;;  %v7310_v49 = vrot.slane %v7308_v32, 4  ;;  %v7313_v3 = vrot.slane %v7311_v22, 5  ;;  %v7263_v31 = vld [vmem:[#allocation3 + $0x1c] sm:$0xf]  ;;  %v7262_v39 = vld [vmem:[#allocation3 + $0x18] sm:$0xf] }
 0x3ba   : > { %v7325_v18 = vrot.slane %v7324_v10, 4  ;;  %v6664_v46 = vrot.slane %v6662_v9, 4  ;;  %v7341_v60 = vshll.u32 %v7263_v31, 16  ;;  %v7345_v32 = vshrl.u32 %v7263_v31, 16 }
 0x3bb   : > { %v14695_v30 = vadd.f32 %v6838_v13, %v6461_v0  ;;  %v7329_v0 = vrot.slane %v7327_v27, 5  ;;  %v12283_v13 = vld [vmem:[%s16439_s4 + $0x1b0] sm:$0xff] }
 0x3bc   : > { %8562 = vmatpush.bf16.msra.mxu3 %v12283_v13  ;;  %v14731_v10 = vrot.slane %v7341_v60, 5  ;;  %v12299_v60 = vld [vmem:[%s16439_s4 + $0x230] sm:$0xff] }
 0x3bd   : > { %v14697_v43 = vpop.f32.mrf.mxu0  ;;  %9670 = vmatpush.bf16.msra.mxu1 %v12299_v60 }
 0x3be   : > { %16523 = vst [vmem:[#allocation11_spill] sm:$0xff] %v14697_v43 }
 0x3c0   : > { %v14699_v6 = vpop.f32.mrf.mxu1  ;;  %v6462_v51 = vpop.f32.mrf.mxu2 }
 0x3c1   : > { %v6463_v24 = vadd.f32 %v6462_v51, %v14453_v54  ;;  %v6840_v62 = vpop.f32.mrf.mxu3  ;;  %v7314_v54 = vor.u32 %v7313_v3, %v7310_v49  ;;  %v7332_v49 = vshrl.u32 %v7262_v39, 16  ;;  %v7335_v3 = vshll.u32 %v7262_v39, 16  ;;  %v12192_v39 = vld [vmem:[#allocation3 + $0x84] sm:$0xff] }
 0x3c3   : > { %6296 = vmatmul.bf16.gmra.mxu1 %v6148_v16  ;;  %v14704_v2 = vadd.f32 %v6840_v62, %v6463_v24  ;;  %v7315_v58 = vrot.slane %v7314_v54, 4  ;;  %v11555_v24 = vrot.slane %v6546_v1, 9  ;;  %v6666_v62 = vsel %vm12988_vm13, %v6664_v46, %v6665_v38 }
 0x3c4   : > { %6504 = vmatmul.bf16.gmra.mxu2 %v12191_v17  ;;  %v7347_v17 = vrot.slane %v7345_v32, 4  ;;  %v7337_v46 = vrot.slane %v7335_v3, 5  ;;  %v12232_v3 = vld [vmem:[#allocation3 + $0x90] sm:$0xff] }
 0x3c5   : > { %16524 = vst [vmem:[#allocation12_spill] sm:$0xff] %v14704_v2  ;;  %v14710_v56 = vpop.f32.mrf.mxu0  ;;  %v7320_v16 = vsel %vm12584_vm7, %v7315_v58, %v7319_v33  ;;  %v6663_v27 = vsel %vm12988_vm13, %v11555_v24, %v6662_v9  ;;  %v6735_v33 = vunpack.c.l.b16 %v6666_v62  ;;  %v8014_v9 = vrot.slane %v7263_v31, 5  ;;  %v7266_v62 = vld [vmem:[#allocation3 + $0x28] sm:$0xf] }
 0x3c6   : > { %16525 = vst [vmem:[#allocation13_spill] sm:$0xff] %v14710_v56  ;;  %6882 = vmatmul.bf16.gmra.mxu3 %v14632_v21  ;;  %v7330_v21 = vsel %vm12584_vm7, %v7325_v18, %v7329_v0  ;;  %v7708_v57 = vunpack.c.l.b16 %v7320_v16  ;;  %v7942_v18 = vld [vmem:[#allocation3 + $0x18] sm:$0xe]  ;;  %v6734_v58 = vunpack.c.l.b16 %v6663_v27  ;;  %v6669_v24 = vrot.slane %v14539_v61, 5 }
 0x3c7   : > { %v11769_v32 = vrot.slane %v7942_v18, 9  ;;  %v8016_v16 = vrot.slane %v8014_v9, 4  ;;  %v7265_v18 = vld [vmem:[#allocation3 + $0x24] sm:$0xf]  ;;  %v7365_v61 = vshll.u32 %v7266_v62, 16 }
 0x3c8   : > { %v14714_v59 = vpop.f32.mrf.mxu1  ;;  %7196 = vmatmul.bf16.gmra.mxu0 %v12231_v25  ;;  %v6465_v48 = vpop.f32.mrf.mxu2  ;;  %v12291_v25 = vld [vmem:[%s16439_s4 + $0x1f0] sm:$0xff]  ;;  %v6755_v38 = vpack.c.b16 %v6735_v33, %v6734_v58 }
 0x3c9   : > { %v6466_v11 = vadd.f32 %v6465_v48, %v14475_v12  ;;  %v6843_v7 = vpop.f32.mrf.mxu3  ;;  %v7709_v12 = vunpack.c.l.b16 %v7330_v21  ;;  %v7348_v21 = vor.u32 %v7347_v17, %v14731_v10  ;;  %9244 = vmatpush.bf16.msra.mxu0 %v12291_v25  ;;  %v8015_v31 = vsel %vm12988_vm13, %v11769_v32, %v8014_v9 }
 0x3ca   : > { %v7369_v9 = vshrl.u32 %v7266_v62, 16  ;;  %v6672_v32 = vrot.slane %v14542_v41, 5 }
 0x3cb   : > { %v14722_v22 = vadd.f32 %v6843_v7, %v6466_v11  ;;  %v7740_v48 = vpack.c.b16 %v7709_v12, %v7708_v57  ;;  %v7264_v11 = vld [vmem:[#allocation3 + $0x20] sm:$0x1]  ;;  %v7334_v7 = vrot.slane %v7332_v49, 4  ;;  %v7349_v57 = vrot.slane %v7348_v21, 4 }
 0x3cc   : > { %v8017_v49 = vrot.slane %v7264_v11, 5 }
 0x3cd   : > { %16526 = vst [vmem:[#allocation14_spill] sm:$0xff] %v14722_v22  ;;  %v14727_v51 = vpop.f32.mrf.mxu0  ;;  %v7338_v17 = vor.u32 %v7337_v46, %v7334_v7  ;;  %v6547_v46 = vld [vmem:[#allocation3 + $0x90] sm:$0xe] }
 0x3ce   : > { %16527 = vst [vmem:[#allocation15_spill] sm:$0xff] %v14727_v51  ;;  %v8018_v27 = vsel %vm12988_vm13, %v8016_v16, %v8017_v49  ;;  %v14767_v16 = vrot.slane %v7365_v61, 5 }
 0x3d0   : > { %v14735_v40 = vpop.f32.mrf.mxu1  ;;  %v6467_v54 = vpop.f32.mrf.mxu2 }
 0x3d1   : > { %v6468_v0 = vadd.f32 %v6467_v54, %v14502_v47  ;;  %v6845_v13 = vpop.f32.mrf.mxu3  ;;  %v7351_v47 = vshll.u32 %v7264_v11, 16  ;;  %v6671_v11 = vrot.slane %v6669_v24, 4 }
 0x3d3   : > { %7828 = vmatmul.bf16.vlgmr.msrb.gmra.mxu1 %v7740_v48  ;;  %v14742_v1 = vadd.f32 %v6845_v13, %v6468_v0  ;;  %v7353_v25 = vrot.slane %v7351_v47, 5  ;;  %v8136_v48 = vunpack.c.l.b16 %v8015_v31  ;;  %v8137_v0 = vunpack.c.l.b16 %v8018_v27  ;;  %v7943_v27 = vld [vmem:[#allocation3 + $0x24] sm:$0xe] }
 0x3d4   : > { %6509 = vmatmul.bf16.gmra.mxu2 %v12192_v39  ;;  %v7339_v39 = vrot.slane %v7338_v17, 4  ;;  %v6673_v17 = vsel %vm12988_vm13, %v6671_v11, %v6672_v32 }
 0x3d5   : > { %16528 = vst [vmem:[#allocation16_spill] sm:$0xff] %v14742_v1  ;;  %v14747_v12 = vpop.f32.mrf.mxu0  ;;  %v7354_v7 = vsel %vm12584_vm7, %v7349_v57, %v7353_v25  ;;  %v14759_v21 = vpack.c.b16 %v8137_v0, %v8136_v48  ;;  %v7371_v57 = vrot.slane %v7369_v9, 4  ;;  %v7267_v25 = vld [vmem:[#allocation3 + $0x2c] sm:$0x1]  ;;  %v6549_v1 = vld [vmem:[#allocation3 + $0xa8] sm:$0xe] }
 0x3d6   : > { %16529 = vst [vmem:[#allocation18_spill] sm:$0xff] %v14747_v12  ;;  %6887 = vmatmul.bf16.gmra.mxu3 %v6755_v38  ;;  %v7356_v38 = vshrl.u32 %v7265_v18, 16  ;;  %v7344_v47 = vsel %vm12584_vm7, %v7339_v39, %v14731_v10  ;;  %v7711_v49 = vunpack.c.l.b16 %v7354_v7  ;;  %v11558_v43 = vrot.slane %v6549_v1, 9 }
 0x3d7   : > { %v7372_v11 = vor.u32 %v7371_v57, %v14767_v16 }
 0x3d8   : > { %v14754_v54 = vpop.f32.mrf.mxu1  ;;  %7201 = vmatmul.bf16.gmra.mxu0 %v12232_v3  ;;  %v6470_v33 = vpop.f32.mrf.mxu2  ;;  %v11556_v3 = vrot.slane %v6547_v46, 9  ;;  %v7358_v48 = vrot.slane %v7356_v38, 4 }
 0x3d9   : > { %v6471_v13 = vadd.f32 %v6470_v33, %v14528_v45  ;;  %v6848_v58 = vpop.f32.mrf.mxu3  ;;  %v7359_v45 = vshll.u32 %v7265_v18, 16  ;;  %v7710_v33 = vunpack.c.l.b16 %v7344_v47  ;;  %v6737_v18 = vunpack.c.l.b16 %v6673_v17 }
 0x3da   : > { %v6670_v41 = vsel %vm12988_vm13, %v11556_v3, %v6669_v24  ;;  %v8024_v47 = vrot.slane %v7267_v25, 5  ;;  %v12193_v3 = vld [vmem:[#allocation3 + $0x90] sm:$0xff]  ;;  %v7375_v17 = vshll.u32 %v7267_v25, 16  ;;  %v12233_v25 = vld [vmem:[#allocation3 + $0x9c] sm:$0xff] }
 0x3db   : > { %v14761_v60 = vadd.f32 %v6848_v58, %v6471_v13  ;;  %v7361_v61 = vrot.slane %v7359_v45, 5  ;;  %v11770_v13 = vrot.slane %v7943_v27, 9  ;;  %v8021_v58 = vrot.slane %v7266_v62, 5  ;;  %v7269_v45 = vld [vmem:[#allocation3 + $0x34] sm:$0xf] }
 0x3dc   : > { %v7741_v39 = vpack.c.b16 %v7711_v49, %v7710_v33  ;;  %v6736_v9 = vunpack.c.l.b16 %v6670_v41  ;;  %v12258_v62 = vld [vmem:[%s16439_s4 + $0x168] sm:$0xff]  ;;  %v7373_v33 = vrot.slane %v7372_v11, 4  ;;  %v6676_v41 = vrot.slane %v14580_v53, 5 }
 0x3dd   : > { %16530 = vst [vmem:[#allocation19_spill] sm:$0xff] %v14761_v60  ;;  %v14769_v31 = vpop.f32.mrf.mxu0  ;;  %v8022_v32 = vsel %vm12988_vm13, %v11770_v13, %v8021_v58  ;;  %v8023_v24 = vrot.slane %v8021_v58, 4  ;;  %v7362_v49 = vor.u32 %v7361_v61, %v7358_v48  ;;  %v7944_v58 = vld [vmem:[#allocation3 + $0x30] sm:$0xe]  ;;  %8248 = vmatpush.bf16.msra.mxu2 %v12258_v62  ;;  %v7389_v48 = vshll.u32 %v7269_v45, 16 }
 0x3de   : > { %16531 = vst [vmem:[#allocation17_spill] sm:$0xff] %v14769_v31  ;;  %v7393_v61 = vshrl.u32 %v7269_v45, 16  ;;  %v7946_v60 = vld [vmem:[#allocation3 + $0x48] sm:$0xe] }
 0x3df   : > { %v8025_v57 = vsel %vm12988_vm13, %v8023_v24, %v8024_v47  ;;  %v7363_v53 = vrot.slane %v7362_v49, 4  ;;  %v11771_v47 = vrot.slane %v7944_v58, 9  ;;  %v6679_v58 = vrot.slane %v14583_v4, 5 }
 0x3e0   : > { %v14775_v0 = vpop.f32.mrf.mxu1  ;;  %v6472_v10 = vpop.f32.mrf.mxu2  ;;  %v8139_v13 = vunpack.c.l.b16 %v8025_v57  ;;  %v6548_v57 = vld [vmem:[#allocation3 + $0x9c] sm:$0xe]  ;;  %v11773_v22 = vrot.slane %v7946_v60, 9 }
 0x3e1   : > { %v6473_v7 = vadd.f32 %v6472_v10, %v14551_v19  ;;  %v6850_v46 = vpop.f32.mrf.mxu3  ;;  %v6756_v19 = vpack.c.b16 %v6737_v18, %v6736_v9  ;;  %v8138_v10 = vunpack.c.l.b16 %v8022_v32  ;;  %v14791_v18 = vld [vmem:[#allocation3 + $0x38] sm:$0x1]  ;;  %v12282_v32 = vld [vmem:[%s16439_s4 + $0x1a8] sm:$0xff] }
 0x3e2   : > { %8563 = vmatpush.bf16.msra.mxu3 %v12282_v32 }
 0x3e3   : > { %7833 = vmatmul.bf16.gmra.mxu1 %v7741_v39  ;;  %v14781_v38 = vadd.f32 %v6850_v46, %v6473_v7  ;;  %v7268_v39 = vld [vmem:[#allocation3 + $0x30] sm:$0xf]  ;;  %v8028_v7 = vrot.slane %v7269_v45, 5  ;;  %v7377_v46 = vrot.slane %v7375_v17, 5  ;;  %v14793_v9 = vpack.c.b16 %v8139_v13, %v8138_v10 }
 0x3e4   : > { %6514 = vmatmul.bf16.gmra.mxu2 %v12193_v3  ;;  %v7380_v45 = vshrl.u32 %v7268_v39, 16  ;;  %v7383_v10 = vshll.u32 %v7268_v39, 16 }
 0x3e5   : > { %16532 = vst [vmem:[#allocation21_spill] sm:$0xff] %v14781_v38  ;;  %v14788_v27 = vpop.f32.mrf.mxu0  ;;  %v7378_v17 = vsel %vm12584_vm7, %v7373_v33, %v7377_v46  ;;  %v8029_v13 = vsel %vm12988_vm13, %v11771_v47, %v8028_v7  ;;  %v8030_v49 = vrot.slane %v8028_v7, 4  ;;  %v7368_v33 = vsel %vm12584_vm7, %v7363_v53, %v14767_v16  ;;  %v14823_v53 = vld [vmem:[#allocation3 + $0x40] sm:$0xf] }
 0x3e6   : > { %16533 = vst [vmem:[#allocation22_spill] sm:$0xff] %v14788_v27  ;;  %6892 = vmatmul.bf16.gmra.mxu3 %v6756_v19  ;;  %v6678_v19 = vrot.slane %v6676_v41, 4  ;;  %v7713_v46 = vunpack.c.l.b16 %v7378_v17  ;;  %v11557_v7 = vrot.slane %v6548_v57, 9  ;;  %v7382_v4 = vrot.slane %v7380_v45, 4  ;;  %v12290_v45 = vld [vmem:[%s16439_s4 + $0x1e8] sm:$0xff] }
 0x3e7   : > { %9245 = vmatpush.bf16.msra.mxu0 %v12290_v45  ;;  %v12234_v45 = vld [vmem:[#allocation3 + $0xa8] sm:$0xff] }
 0x3e8   : > { %v14795_v24 = vpop.f32.mrf.mxu1  ;;  %7206 = vmatmul.bf16.gmra.mxu0 %v12233_v25  ;;  %v6475_v11 = vpop.f32.mrf.mxu2  ;;  %v8031_v25 = vrot.slane %v14791_v18, 5  ;;  %v6680_v47 = vsel %vm12988_vm13, %v6678_v19, %v6679_v58  ;;  %v6677_v31 = vsel %vm12988_vm13, %v11557_v7, %v6676_v41 }
 0x3e9   : > { %v6476_v3 = vadd.f32 %v6475_v11, %v14572_v20  ;;  %v6853_v62 = vpop.f32.mrf.mxu3  ;;  %v14809_v20 = vrot.slane %v7389_v48, 5  ;;  %v7395_v11 = vrot.slane %v7393_v61, 4  ;;  %v7385_v48 = vrot.slane %v7383_v10, 5 }
 0x3ea   : > { %v8032_v39 = vsel %vm12988_vm13, %v8030_v49, %v8031_v25  ;;  %v7712_v61 = vunpack.c.l.b16 %v7368_v33  ;;  %v7945_v49 = vld [vmem:[#allocation3 + $0x3c] sm:$0xe]  ;;  %v6739_v19 = vunpack.c.l.b16 %v6680_v47  ;;  %v6738_v7 = vunpack.c.l.b16 %v6677_v31 }
 0x3eb   : > { %v14806_v27 = vadd.f32 %v6853_v62, %v6476_v3  ;;  %v8140_v3 = vunpack.c.l.b16 %v8029_v13  ;;  %v8141_v62 = vunpack.c.l.b16 %v8032_v39  ;;  %v7396_v16 = vor.u32 %v7395_v11, %v14809_v20  ;;  %v14834_v11 = vld [vmem:[#allocation3 + $0x44] sm:$0x1] }
 0x3ec   : > { %v7399_v13 = vshll.u32 %v14791_v18, 16  ;;  %v7742_v10 = vpack.c.b16 %v7713_v46, %v7712_v61  ;;  %v8035_v47 = vrot.slane %v14823_v53, 5  ;;  %v6757_v46 = vpack.c.b16 %v6739_v19, %v6738_v7  ;;  %v14842_v61 = vld [vmem:[#allocation3 + $0x1c] sm:$0xf] }
 0x3ed   : > { %16534 = vst [vmem:[#allocation20_spill] sm:$0xff] %v14806_v27  ;;  %v14816_v32 = vpop.f32.mrf.mxu0  ;;  %v7271_v27 = vld [vmem:[#allocation3 + $0x3c] sm:$0xf]  ;;  %v14825_v17 = vpack.c.b16 %v8141_v62, %v8140_v3  ;;  %v7386_v3 = vor.u32 %v7385_v48, %v7382_v4  ;;  %v11772_v62 = vrot.slane %v7945_v49, 9  ;;  %v7397_v38 = vrot.slane %v7396_v16, 4 }
 0x3ee   : > { %16535 = vst [vmem:[#allocation24_spill] sm:$0xff] %v14816_v32  ;;  %v7404_v33 = vshrl.u32 %v7271_v27, 16  ;;  %v7407_v39 = vshll.u32 %v7271_v27, 16  ;;  %v12194_v32 = vld [vmem:[#allocation3 + $0x9c] sm:$0xff]  ;;  %v8037_v27 = vrot.slane %v8035_v47, 4  ;;  %v8038_v4 = vrot.slane %v14834_v11, 5 }
 0x3ef   : > { %v8036_v31 = vsel %vm12988_vm13, %v11772_v62, %v8035_v47  ;;  %v7401_v49 = vrot.slane %v7399_v13, 5  ;;  %v14850_v16 = vld [vmem:[#allocation3 + $0xc] sm:$0xe]  ;;  %v7387_v19 = vrot.slane %v7386_v3, 4  ;;  %v9364_v47 = vld [vmem:[#allocation3 + $0x18] sm:$0xe] }
 0x3f0   : > { %v14827_v57 = vpop.f32.mrf.mxu1  ;;  %v6477_v25 = vpop.f32.mrf.mxu2  ;;  %v8142_v13 = vunpack.c.l.b16 %v8036_v31  ;;  %v7417_v3 = vshrl.u32 %v14823_v53, 16  ;;  %v12289_v31 = vld [vmem:[%s16439_s4 + $0x1e0] sm:$0xff]  ;;  %v7423_v2 = vshll.u32 %v14834_v11, 16  ;;  %v12286_v11 = vld [vmem:[%s16439_s4 + $0x1c8] sm:$0xff] }
 0x3f1   : > { %v6478_v41 = vadd.f32 %v6477_v25, %v14595_v37  ;;  %v6855_v58 = vpop.f32.mrf.mxu3  ;;  %v12298_v37 = vld [vmem:[%s16439_s4 + $0x228] sm:$0xff]  ;;  %v16445_v25 = vrot.slane %v14613_v52, 5  ;;  %v7402_v7 = vsel %vm12584_vm7, %v7397_v38, %v7401_v49  ;;  %v12281_v38 = vld [vmem:[%s16439_s4 + $0x1a0] sm:$0xff]  ;;  %9246 = vmatpush.bf16.msra.mxu0 %v12289_v31 }
 0x3f2   : > { %9671 = vmatpush.bf16.msra.mxu1 %v12298_v37  ;;  %v9430_v37 = vrot.slane %v14842_v61, 5  ;;  %v7715_v51 = vunpack.c.l.b16 %v7402_v7  ;;  %8564 = vmatpush.bf16.msra.mxu3 %v12281_v38  ;;  %v14904_v7 = vld [vmem:[#allocation3 + $0x50] sm:$0x1]  ;;  %v7419_v56 = vrot.slane %v7417_v3, 4 }
 0x3f3   : > { %7838 = vmatmul.bf16.gmra.mxu1 %v7742_v10  ;;  %v14837_v18 = vadd.f32 %v6855_v58, %v6478_v41  ;;  %v14852_v10 = vrot.slane %v7404_v33, 4  ;;  %v14854_v41 = vrot.slane %v7407_v39, 5  ;;  %v8039_v58 = vsel %vm12988_vm13, %v8037_v27, %v8038_v4  ;;  %v12257_v27 = vld [vmem:[%s16439_s4 + $0x160] sm:$0xff] }
 0x3f4   : > { %6519 = vmatmul.bf16.gmra.mxu2 %v12194_v32  ;;  %v14860_v32 = vld [vmem:[#allocation3 + $0x4c] sm:$0xf]  ;;  %v8143_v62 = vunpack.c.l.b16 %v8039_v58  ;;  %v7413_v39 = vshll.u32 %v14823_v53, 16  ;;  %v7392_v53 = vsel %vm12584_vm7, %v7387_v19, %v14809_v20  ;;  %v6685_v58 = vrot.slane %v16445_v25, 4  ;;  %v12256_v20 = vld [vmem:[%s16439_s4 + $0x158] sm:$0xff] }
 0x3f5   : > { %16536 = vst [vmem:[#allocation25_spill] sm:$0xff] %v14837_v18  ;;  %v14847_v48 = vpop.f32.mrf.mxu0  ;;  %v14885_v18 = vld [vmem:[#allocation3 + $0x20] sm:$0x1]  ;;  %v6686_v4 = vrot.slane %v14618_v55, 5  ;;  %8249 = vmatpush.bf16.msra.mxu2 %v12257_v27  ;;  %v11992_v27 = vrot.slane %v9364_v47, 9  ;;  %v9432_v38 = vrot.slane %v9430_v37, 4 }
 0x3f6   : > { %16537 = vst [vmem:[#allocation23_spill] sm:$0xff] %v14847_v48  ;;  %6897 = vmatmul.bf16.gmra.mxu3 %v6757_v46  ;;  %v14883_v48 = vld [vmem:[#allocation3 + $0x18] sm:$0xf]  ;;  %v14887_v12 = vpack.c.b16 %v8143_v62, %v8142_v13  ;;  %v12280_v19 = vld [vmem:[%s16439_s4 + $0x198] sm:$0xff]  ;;  %v14907_v25 = vrot.slane %v7413_v39, 5  ;;  %v8045_v3 = vrot.slane %v14904_v7, 5 }
 0x3f7   : > { %v12288_v55 = vld [vmem:[%s16439_s4 + $0x1d8] sm:$0xff]  ;;  %v9431_v31 = vsel %vm12988_vm13, %v11992_v27, %v9430_v37  ;;  %8565 = vmatpush.bf16.msra.mxu3 %v12280_v19  ;;  %v8731_v13 = vshrl.u32 %v14883_v48, 16 }
 0x3f8   : > { %v14863_v46 = vpop.f32.mrf.mxu1  ;;  %7211 = vmatmul.bf16.gmra.mxu0 %v12234_v45  ;;  %v6480_v33 = vpop.f32.mrf.mxu2  ;;  %16538 = vst [vmem:[#allocation26_spill] sm:$0xff] %v14887_v12  ;;  %v14945_v12 = vld [vmem:[#allocation3 + $0x2c] sm:$0x1] }
 0x3f9   : > { %v6481_v49 = vadd.f32 %v6480_v33, %v14623_v5  ;;  %v6858_v45 = vpop.f32.mrf.mxu3  ;;  %v8042_v33 = vrot.slane %v14860_v32, 5  ;;  %v7714_v5 = vunpack.c.l.b16 %v7392_v53  ;;  %8250 = vmatpush.bf16.msra.mxu2 %v12256_v20  ;;  %9247 = vmatpush.bf16.msra.mxu0 %v12288_v55  ;;  %v8734_v53 = vshll.u32 %v14883_v48, 16 }
 0x3fb   : > { %v14899_v62 = vadd.f32 %v6858_v45, %v6481_v49  ;;  %v6687_v49 = vsel %vm12988_vm13, %v6685_v58, %v6686_v4  ;;  %v9433_v45 = vrot.slane %v14885_v18, 5  ;;  %v8043_v47 = vsel %vm12988_vm13, %v11773_v22, %v8042_v33  ;;  %v14925_v58 = vld [vmem:[#allocation3 + $0x28] sm:$0xf] }
 0x3fc   : > { %v8044_v39 = vrot.slane %v8042_v33, 4  ;;  %v7743_v1 = vpack.c.b16 %v7715_v51, %v7714_v5  ;;  %v16541_v4 = vrot.slane %v14613_v52, 5  ;;  %v6741_v33 = vunpack.c.l.b16 %v6687_v49  ;;  %v12255_v51 = vld [vmem:[%s16439_s4 + $0x150] sm:$0xff] }
 0x3fd   : > { %16539 = vst [vmem:[#allocation5_spill] sm:$0xff] %v14899_v62  ;;  %v14918_v60 = vpop.f32.mrf.mxu0  ;;  %v9434_v20 = vsel %vm12988_vm13, %v9432_v38, %v9433_v45  ;;  %v12279_v52 = vld [vmem:[%s16439_s4 + $0x190] sm:$0xff]  ;;  %v9557_v5 = vunpack.c.l.b16 %v9431_v31  ;;  %v7420_v49 = vor.u32 %v7419_v56, %v14907_v25  ;;  %v8144_v45 = vunpack.c.l.b16 %v8043_v47  ;;  %8251 = vmatpush.bf16.msra.mxu2 %v12255_v51  ;;  %v12278_v56 = vld [vmem:[%s16439_s4 + $0x188] sm:$0xff] }
 0x3fe   : > { %16540 = vst [vmem:[#allocation4_spill] sm:$0xff] %v14918_v60  ;;  %v6684_v37 = vsel %vm12988_vm13, %v11558_v43, %v16541_v4  ;;  %v12287_v43 = vld [vmem:[%s16439_s4 + $0x1d0] sm:$0xff]  ;;  %v8046_v48 = vsel %vm12988_vm13, %v8044_v39, %v8045_v3  ;;  %v9558_v55 = vunpack.c.l.b16 %v9434_v20  ;;  %v12195_v60 = vld [vmem:[#allocation3 + $0xa8] sm:$0xff]  ;;  %8566 = vmatpush.bf16.msra.mxu3 %v12279_v52  ;;  %v16446_v31 = vrot.slane %v14925_v58, 5 }
 0x3ff   : > { %v8145_v4 = vunpack.c.l.b16 %v8046_v48  ;;  %v6740_v62 = vunpack.c.l.b16 %v6684_v37  ;;  %9248 = vmatpush.bf16.msra.mxu0 %v12287_v43  ;;  %v16544_v47 = vrot.slane %v14684_v63, 5  ;;  %v14969_v52 = vld [vmem:[#allocation3 + $0x48] sm:$0xf]  ;;  %v16548_v48 = vrot.slane %v14850_v16, 9 }
 0x400   : > { %v14929_v22 = vpop.f32.mrf.mxu1  ;;  %v6482_v19 = vpop.f32.mrf.mxu2  ;;  %v14947_v42 = vpack.c.b16 %v9558_v55, %v9557_v5  ;;  %v8740_v55 = vshll.u32 %v14842_v61, 16  ;;  %v14984_v63 = vrot.slane %v8734_v53, 5  ;;  %v9439_v16 = vrot.slane %v16446_v31, 4  ;;  %v9365_v53 = vld [vmem:[#allocation3 + $0x24] sm:$0xe] }
 0x401   : > { %v6483_v27 = vadd.f32 %v6482_v19, %v14642_v8  ;;  %v6860_v38 = vpop.f32.mrf.mxu3  ;;  %v12254_v8 = vld [vmem:[%s16439_s4 + $0x148] sm:$0xff]  ;;  %v8009_v3 = vrot.slane %v16544_v47, 4  ;;  %v14964_v37 = vpack.c.b16 %v8145_v4, %v8144_v45  ;;  %v6758_v20 = vpack.c.b16 %v6741_v33, %v6740_v62 }
 0x402   : > { %16542 = vst [vmem:[#allocation6_spill] sm:$0xff] %v14947_v42  ;;  %v16546_v19 = vor.u32 %v14854_v41, %v14852_v10  ;;  %v16547_v43 = vmov %v16544_v47  ;;  %v6690_v62 = vrot.slane %v14659_v36, 5  ;;  %v14981_v33 = vrot.slane %v8731_v13, 4  ;;  %v12235_v41 = vld [vmem:[#allocation3 + $0xb4] sm:$0xff]  ;;  %8252 = vmatpush.bf16.msra.mxu2 %v12254_v8  ;;  %8567 = vmatpush.bf16.msra.mxu3 %v12278_v56  ;;  %v12253_v8 = vld [vmem:[%s16439_s4 + $0x140] sm:$0xff] }
 0x403   : > { %7843 = vmatmul.bf16.gmra.mxu1 %v7743_v1  ;;  %v14950_v39 = vadd.f32 %v6860_v38, %v6483_v27  ;;  %v8010_v1 = vrot.slane %v14702_v15, 5  ;;  %16545 = vst [vmem:[#allocation7_spill] sm:$0xff] %v14964_v37  ;;  %v14977_v5 = vsel %vm12988_vm13, %v16548_v48, %v16547_v43  ;;  %v7421_v15 = vrot.slane %v7420_v49, 4  ;;  %v6550_v36 = vld [vmem:[#allocation3 + $0xb4] sm:$0xe]  ;;  %9249 = vmatpush.bf16.msra.mxu0 %v12286_v11  ;;  %v12277_v56 = vld [vmem:[%s16439_s4 + $0x180] sm:$0xff] }
 0x404   : > { %v7411_v51 = vrot.slane %v16546_v19, 4  ;;  %6524 = vmatmul.bf16.gmra.mxu2 %v12195_v60  ;;  %v8744_v10 = vshrl.u32 %v14842_v61, 16  ;;  %v7425_v27 = vrot.slane %v7423_v2, 5  ;;  %v9440_v38 = vrot.slane %v14945_v12, 5  ;;  %v12285_v11 = vld [vmem:[%s16439_s4 + $0x1c0] sm:$0xff] }
 0x405   : > { %16543 = vst [vmem:[#allocation27_spill] sm:$0xff] %v14950_v39  ;;  %v7428_v13 = vshrl.u32 %v14969_v52, 16  ;;  %v7431_v61 = vshll.u32 %v14969_v52, 16  ;;  %v14996_v2 = vsel %vm12988_vm13, %v8009_v3, %v8010_v1  ;;  %v7437_v4 = vshll.u32 %v14860_v32, 16  ;;  %v15015_v1 = vpop.f32.mrf.mxu0 }
 0x406   : > { %6902 = vmatmul.bf16.gmra.mxu3 %v6758_v20  ;;  %v7416_v60 = vsel %vm12584_vm7, %v7411_v51, %v14907_v25  ;;  %v7441_v25 = vshrl.u32 %v14860_v32, 16  ;;  %v15011_v47 = vrot.slane %v8740_v55, 5  ;;  %v9441_v3 = vsel %vm12988_vm13, %v9439_v16, %v9440_v38  ;;  %16549 = vst [vmem:[#allocation8_spill] sm:$0xff] %v15015_v1  ;;  %8253 = vmatpush.bf16.msra.mxu2 %v12253_v8  ;;  %v15026_v16 = vld [vmem:[#allocation3 + $0x58] sm:$0xf] }
 0x407   : > { %v7426_v19 = vsel %vm12584_vm7, %v7421_v15, %v7425_v27  ;;  %v6692_v51 = vrot.slane %v6690_v62, 4  ;;  %v15020_v52 = vrot.slane %v8744_v10, 4  ;;  %v7716_v43 = vunpack.c.l.b16 %v7416_v60  ;;  %v15028_v38 = vld [vmem:[#allocation3 + $0x34] sm:$0xf]  ;;  %8568 = vmatpush.bf16.msra.mxu3 %v12277_v56  ;;  %9250 = vmatpush.bf16.msra.mxu0 %v12285_v11  ;;  %v15033_v27 = vld [vmem:[#allocation3 + $0x5c] sm:$0x1] }
 0x408   : > { %v14998_v49 = vpop.f32.mrf.mxu1  ;;  %7216 = vmatmul.bf16.gmra.mxu0 %v12235_v41  ;;  %v6485_v45 = vpop.f32.mrf.mxu2  ;;  %v8134_v48 = vunpack.c.l.b16 %v14977_v5  ;;  %v8135_v55 = vunpack.c.l.b16 %v14996_v2  ;;  %v11559_v15 = vrot.slane %v6550_v36, 9  ;;  %v6693_v10 = vrot.slane %v14663_v23, 5 }
 0x409   : > { %v6486_v32 = vadd.f32 %v6485_v45, %v14665_v29  ;;  %v6863_v20 = vpop.f32.mrf.mxu3  ;;  %v7947_v29 = vld [vmem:[#allocation3 + $0x54] sm:$0xe]  ;;  %v11993_v5 = vrot.slane %v9365_v53, 9  ;;  %v7717_v60 = vunpack.c.l.b16 %v7426_v19  ;;  %v15035_v2 = vrot.slane %v7437_v4, 5 }
 0x40a   : > { %v7443_v8 = vrot.slane %v7441_v25, 4  ;;  %v8049_v41 = vrot.slane %v15026_v16, 5  ;;  %v6691_v31 = vsel %vm12988_vm13, %v11559_v15, %v6690_v62  ;;  %v11774_v36 = vrot.slane %v7947_v29, 9  ;;  %v9366_v29 = vld [vmem:[#allocation3 + $0x30] sm:$0xe] }
 0x40b   : > { %v15030_v45 = vadd.f32 %v6863_v20, %v6486_v32  ;;  %v6694_v32 = vsel %vm12988_vm13, %v6692_v51, %v6693_v10  ;;  %v16551_v23 = vrot.slane %v14925_v58, 5  ;;  %v8052_v53 = vrot.slane %v15033_v27, 5 }
 0x40c   : > { %v8051_v11 = vrot.slane %v8049_v41, 4  ;;  %v9560_v4 = vunpack.c.l.b16 %v9441_v3  ;;  %v9444_v25 = vrot.slane %v15028_v38, 5  ;;  %v7430_v20 = vrot.slane %v7428_v13, 4 }
 0x40d   : > { %16550 = vst [vmem:[#allocation9_spill] sm:$0xff] %v15030_v45  ;;  %v9438_v56 = vsel %vm12988_vm13, %v11993_v5, %v16551_v23  ;;  %v7433_v19 = vrot.slane %v7431_v61, 5  ;;  %v8747_v62 = vor.u32 %v15020_v52, %v15011_v47  ;;  %v8050_v51 = vsel %vm12988_vm13, %v11774_v36, %v8049_v41  ;;  %v15058_v52 = vld [vmem:[#allocation3 + $0x38] sm:$0x1] }
 0x40e   : > { %v7744_v10 = vpack.c.b16 %v7717_v60, %v7716_v43  ;;  %v6743_v5 = vunpack.c.l.b16 %v6694_v32  ;;  %v8053_v23 = vsel %vm12988_vm13, %v8051_v11, %v8052_v53  ;;  %v9559_v3 = vunpack.c.l.b16 %v9438_v56  ;;  %v15062_v60 = vpop.f32.mrf.mxu0  ;;  %v12196_v56 = vld [vmem:[#allocation3 + $0xb4] sm:$0xff] }
 0x40f   : > { %v6742_v61 = vunpack.c.l.b16 %v6691_v31  ;;  %v7444_v45 = vor.u32 %v7443_v8, %v15035_v2  ;;  %v8147_v39 = vunpack.c.l.b16 %v8053_v23  ;;  %v8146_v41 = vunpack.c.l.b16 %v8050_v51  ;;  %16553 = vst [vmem:[#allocation29_spill] sm:$0xff] %v15062_v60  ;;  %v12297_v31 = vld [vmem:[%s16439_s4 + $0x220] sm:$0xff]  ;;  %v8685_v8 = vld [vmem:[#allocation3 + $0x24] sm:$0xf] }
 0x410   : > { %v15052_v15 = vpop.f32.mrf.mxu1  ;;  %v6487_v42 = vpop.f32.mrf.mxu2  ;;  %v15060_v36 = vpack.c.b16 %v9560_v4, %v9559_v3  ;;  %v11994_v37 = vrot.slane %v9366_v29, 9  ;;  %v9446_v43 = vrot.slane %v9444_v25, 4  ;;  %v7434_v11 = vor.u32 %v7433_v19, %v7430_v20  ;;  %9672 = vmatpush.bf16.msra.mxu1 %v12297_v31  ;;  %v15081_v3 = vld [vmem:[#allocation3 + $0x40] sm:$0xf]  ;;  %v7277_v31 = vld [vmem:[#allocation3 + $0x54] sm:$0xf] }
 0x411   : > { %v6488_v1 = vadd.f32 %v6487_v42, %v14686_v28  ;;  %v6865_v13 = vpop.f32.mrf.mxu3  ;;  %v7447_v42 = vshll.u32 %v14904_v7, 16  ;;  %v8750_v28 = vshll.u32 %v14885_v18, 16  ;;  %v6759_v53 = vpack.c.b16 %v6743_v5, %v6742_v61  ;;  %v12236_v18 = vld [vmem:[#allocation3 + $0xc0] sm:$0xff] }
 0x412   : > { %16552 = vst [vmem:[#allocation28_spill] sm:$0xff] %v15060_v36  ;;  %v15071_v4 = vpack.c.b16 %v8147_v39, %v8146_v41  ;;  %v9445_v51 = vsel %vm12988_vm13, %v11994_v37, %v9444_v25  ;;  %v7445_v29 = vrot.slane %v7444_v45, 4  ;;  %v15076_v20 = vpack.c.b16 %v8135_v55, %v8134_v48 }
 0x413   : > { %7848 = vmatmul.bf16.gmra.mxu1 %v7744_v10  ;;  %v15064_v32 = vadd.f32 %v6865_v13, %v6488_v1  ;;  %v9447_v1 = vrot.slane %v15058_v52, 5  ;;  %v8748_v7 = vrot.slane %v8747_v62, 4  ;;  %v8755_v19 = vshrl.u32 %v8685_v8, 16 }
 0x414   : > { %6529 = vmatmul.bf16.gmra.mxu2 %v12196_v56  ;;  %v8758_v10 = vshll.u32 %v8685_v8, 16  ;;  %v7449_v39 = vrot.slane %v7447_v42, 5  ;;  %v8764_v23 = vshll.u32 %v14925_v58, 16  ;;  %v9561_v37 = vunpack.c.l.b16 %v9445_v51 }
 0x415   : > { %16554 = vst [vmem:[#allocation30_spill] sm:$0xff] %v15064_v32  ;;  %v9448_v5 = vsel %vm12988_vm13, %v9446_v43, %v9447_v1  ;;  %v7435_v55 = vrot.slane %v7434_v11, 4  ;;  %v16555_v45 = vor.u32 %v14984_v63, %v14981_v33  ;;  %v8752_v61 = vrot.slane %v8750_v28, 5  ;;  %v15101_v63 = vld [vmem:[#allocation3 + $0x64] sm:$0xf] }
 0x416   : > { %6907 = vmatmul.bf16.gmra.mxu3 %v6759_v53  ;;  %v9562_v25 = vunpack.c.l.b16 %v9448_v5  ;;  %v8768_v41 = vshrl.u32 %v14925_v58, 16  ;;  %v7450_v42 = vsel %vm12584_vm7, %v7445_v29, %v7449_v39  ;;  %v7461_v8 = vshll.u32 %v15026_v16, 16 }
 0x417   : > { %v8738_v62 = vrot.slane %v16555_v45, 4  ;;  %v7440_v11 = vsel %vm12584_vm7, %v7435_v55, %v15035_v2  ;;  %v8753_v33 = vsel %vm12584_vm7, %v8748_v7, %v8752_v61  ;;  %v7465_v58 = vshrl.u32 %v15026_v16, 16  ;;  %v15108_v2 = vld [vmem:[#allocation3 + $0x68] sm:$0x1]  ;;  %v15116_v45 = vld [vmem:[#allocation3 + $0x44] sm:$0x1] }
 0x418   : > { %v15083_v13 = vpop.f32.mrf.mxu1  ;;  %7221 = vmatmul.bf16.gmra.mxu0 %v12236_v18  ;;  %v6490_v48 = vpop.f32.mrf.mxu2  ;;  %v15093_v53 = vpack.c.b16 %v9562_v25, %v9561_v37  ;;  %v9451_v28 = vrot.slane %v15081_v3, 5  ;;  %v8757_v1 = vrot.slane %v8755_v19, 4  ;;  %v8760_v29 = vrot.slane %v8758_v10, 5 }
 0x419   : > { %v6491_v43 = vadd.f32 %v6490_v48, %v14699_v6  ;;  %v6868_v56 = vpop.f32.mrf.mxu3  ;;  %v7948_v6 = vld [vmem:[#allocation3 + $0x60] sm:$0xe]  ;;  %v15106_v18 = vrot.slane %v8764_v23, 5  ;;  %v7719_v5 = vunpack.c.l.b16 %v7450_v42  ;;  %v7452_v39 = vshrl.u32 %v7277_v31, 16  ;;  %v15111_v25 = vpop.f32.mrf.mxu0 }
 0x41a   : > { %16556 = vst [vmem:[#allocation31_spill] sm:$0xff] %v15093_v53  ;;  %v8770_v37 = vrot.slane %v8768_v41, 4  ;;  %v8056_v7 = vrot.slane %v15101_v63, 5  ;;  %v7718_v16 = vunpack.c.l.b16 %v7440_v11  ;;  %v8743_v48 = vsel %vm12584_vm7, %v8738_v62, %v15011_v47  ;;  %v9367_v41 = vld [vmem:[#allocation3 + $0x3c] sm:$0xe] }
 0x41b   : > { %v15104_v51 = vadd.f32 %v6868_v56, %v6491_v43  ;;  %16558 = vst [vmem:[#allocation33_spill] sm:$0xff] %v15111_v25  ;;  %v7455_v55 = vshll.u32 %v7277_v31, 16  ;;  %v11775_v19 = vrot.slane %v7948_v6, 9  ;;  %v15118_v10 = vrot.slane %v7461_v8, 5 }
 0x41c   : > { %v7467_v23 = vrot.slane %v7465_v58, 4  ;;  %v8058_v61 = vrot.slane %v8056_v7, 4  ;;  %v9453_v43 = vrot.slane %v9451_v28, 4  ;;  %v9132_v56 = vunpack.c.l.b16 %v8753_v33 }
 0x41d   : > { %16557 = vst [vmem:[#allocation32_spill] sm:$0xff] %v15104_v51  ;;  %v8761_v42 = vor.u32 %v8760_v29, %v8757_v1  ;;  %v8057_v53 = vsel %vm12988_vm13, %v11775_v19, %v8056_v7  ;;  %v8059_v11 = vrot.slane %v15108_v2, 5  ;;  %v7745_v47 = vpack.c.b16 %v7719_v5, %v7718_v16  ;;  %v8688_v7 = vld [vmem:[#allocation3 + $0x30] sm:$0xf] }
 0x41e   : > { %v7454_v31 = vrot.slane %v7452_v39, 4  ;;  %v8771_v6 = vor.u32 %v8770_v37, %v15106_v18  ;;  %v9454_v8 = vrot.slane %v15116_v45, 5  ;;  %v7457_v51 = vrot.slane %v7455_v55, 5  ;;  %v12261_v55 = vld [vmem:[#allocation3 + $0x18] sm:$0xff] }
 0x41f   : > { %v8060_v33 = vsel %vm12988_vm13, %v8058_v61, %v8059_v11  ;;  %v11995_v1 = vrot.slane %v9367_v41, 9  ;;  %v7468_v29 = vor.u32 %v7467_v23, %v15118_v10  ;;  %v8148_v19 = vunpack.c.l.b16 %v8057_v53 }
 0x420   : > { %v15123_v36 = vpop.f32.mrf.mxu1  ;;  %v6492_v62 = vpop.f32.mrf.mxu2  ;;  %v8149_v60 = vunpack.c.l.b16 %v8060_v33  ;;  %v9455_v5 = vsel %vm12988_vm13, %v9453_v43, %v9454_v8  ;;  %v9131_v37 = vunpack.c.l.b16 %v8743_v48  ;;  %v7471_v61 = vshll.u32 %v15033_v27, 16 }
 0x421   : > { %v6493_v58 = vadd.f32 %v6492_v62, %v14714_v59  ;;  %v6870_v25 = vpop.f32.mrf.mxu3  ;;  %v8774_v59 = vshll.u32 %v14945_v12, 16  ;;  %v9452_v16 = vsel %vm12988_vm13, %v11995_v1, %v9451_v28  ;;  %v7458_v23 = vor.u32 %v7457_v51, %v7454_v31  ;;  %v15142_v12 = vpop.f32.mrf.mxu0 }
 0x422   : > { %v15139_v41 = vpack.c.b16 %v8149_v60, %v8148_v19  ;;  %v9163_v53 = vpack.c.b16 %v9132_v56, %v9131_v37  ;;  %v8772_v11 = vrot.slane %v8771_v6, 4  ;;  %v8779_v43 = vshrl.u32 %v8688_v7, 16  ;;  %16560 = vst [vmem:[#allocation35_spill] sm:$0xff] %v15142_v12  ;;  %v15146_v60 = vld [vmem:[#allocation3 + $0x4c] sm:$0xf] }
 0x423   : > { %7853 = vmatmul.bf16.gmra.mxu1 %v7745_v47  ;;  %v15133_v39 = vadd.f32 %v6870_v25, %v6493_v58  ;;  %v7469_v25 = vrot.slane %v7468_v29, 4  ;;  %v8762_v47 = vrot.slane %v8761_v42, 4  ;;  %v9563_v48 = vunpack.c.l.b16 %v9452_v16  ;;  %v7280_v29 = vld [vmem:[#allocation3 + $0x60] sm:$0xf] }
 0x424   : > { %8254 = vmatmul.bf16.vlgmr.msra.gmra.mxu2 %v15076_v20  ;;  %v9564_v62 = vunpack.c.l.b16 %v9455_v5  ;;  %v8776_v8 = vrot.slane %v8774_v59, 5  ;;  %v8782_v28 = vshll.u32 %v8688_v7, 16  ;;  %v8788_v58 = vshll.u32 %v15028_v38, 16  ;;  %v15162_v59 = vld [vmem:[#allocation3 + $0x70] sm:$0xf] }
 0x425   : > { %16559 = vst [vmem:[#allocation34_spill] sm:$0xff] %v15133_v39  ;;  %v8792_v27 = vshrl.u32 %v15028_v38, 16  ;;  %v7473_v56 = vrot.slane %v7471_v61, 5  ;;  %v8767_v42 = vsel %vm12584_vm7, %v8762_v47, %v15106_v18  ;;  %v7459_v1 = vrot.slane %v7458_v23, 4 }
 0x426   : > { %8569 = vmatmul.bf16.vlgmr.msra.gmra.mxu3 %v12261_v55  ;;  %v15153_v31 = vpack.c.b16 %v9564_v62, %v9563_v48  ;;  %v8777_v38 = vsel %vm12584_vm7, %v8772_v11, %v8776_v8  ;;  %v8781_v7 = vrot.slane %v8779_v43, 4  ;;  %v7485_v5 = vshll.u32 %v15101_v63, 16  ;;  %v7949_v43 = vld [vmem:[#allocation3 + $0x6c] sm:$0xe]  ;;  %v15174_v48 = vld [vmem:[#allocation3 + $0x74] sm:$0x1] }
 0x427   : > { %v7474_v19 = vsel %vm12584_vm7, %v7469_v25, %v7473_v56  ;;  %v7489_v37 = vshrl.u32 %v15101_v63, 16  ;;  %v9458_v18 = vrot.slane %v15146_v60, 5  ;;  %v15167_v55 = vrot.slane %v8788_v58, 5  ;;  %v15176_v62 = vld [vmem:[#allocation3 + $0x50] sm:$0x1] }
 0x428   : > { %v15148_v20 = vpop.f32.mrf.mxu1  ;;  %9251 = vmatmul.bf16.vlgmr.msra.gmra.mxu0 %v9163_v53  ;;  %v6495_v51 = vpop.f32.mrf.mxu2  ;;  %16561 = vst [vmem:[#allocation36_spill] sm:$0xff] %v15153_v31  ;;  %v8794_v61 = vrot.slane %v8792_v27, 4  ;;  %v7464_v53 = vsel %vm12584_vm7, %v7459_v1, %v15118_v10  ;;  %v15172_v23 = vunpack.c.l.b16 %v8767_v42  ;;  %v7476_v11 = vshrl.u32 %v7280_v29, 16 }
 0x429   : > { %v6496_v6 = vadd.f32 %v6495_v51, %v14735_v40  ;;  %v6873_v33 = vpop.f32.mrf.mxu3  ;;  %v8784_v40 = vrot.slane %v8782_v28, 5  ;;  %v7721_v25 = vunpack.c.l.b16 %v7474_v19  ;;  %v9134_v63 = vunpack.c.l.b16 %v8777_v38 }
 0x42a   : > { %v7479_v47 = vshll.u32 %v7280_v29, 16  ;;  %v8063_v8 = vrot.slane %v15162_v59, 5  ;;  %v15179_v28 = vrot.slane %v7485_v5, 5  ;;  %v7491_v58 = vrot.slane %v7489_v37, 4 }
 0x42b   : > { %v15165_v16 = vadd.f32 %v6873_v33, %v6496_v6  ;;  %v8798_v27 = vshll.u32 %v15058_v52, 16  ;;  %v9460_v51 = vrot.slane %v9458_v18, 4  ;;  %v7720_v10 = vunpack.c.l.b16 %v7464_v53  ;;  %v9368_v33 = vld [vmem:[#allocation3 + $0x48] sm:$0xe] }
 0x42c   : > { %v8785_v56 = vor.u32 %v8784_v40, %v8781_v7  ;;  %v8795_v42 = vor.u32 %v8794_v61, %v15167_v55  ;;  %v11776_v6 = vrot.slane %v7949_v43, 9  ;;  %v7478_v29 = vrot.slane %v7476_v11, 4  ;;  %v15190_v40 = vld [vmem:[#allocation3 + $0x58] sm:$0xf] }
 0x42d   : > { %16562 = vst [vmem:[#allocation37_spill] sm:$0xff] %v15165_v16  ;;  %v8065_v19 = vrot.slane %v8063_v8, 4  ;;  %v8066_v31 = vrot.slane %v15174_v48, 5  ;;  %v9461_v5 = vrot.slane %v15176_v62, 5  ;;  %v15187_v16 = vpop.f32.mrf.mxu0  ;;  %v7746_v37 = vpack.c.b16 %v7721_v25, %v7720_v10  ;;  %v12296_v10 = vld [vmem:[%s16439_s4 + $0x218] sm:$0xff] }
 0x42e   : > { %16563 = vst [vmem:[#allocation38_spill] sm:$0xff] %v15187_v16  ;;  %v7481_v7 = vrot.slane %v7479_v47, 5  ;;  %v8064_v61 = vsel %vm12988_vm13, %v11776_v6, %v8063_v8  ;;  %v7492_v43 = vor.u32 %v7491_v58, %v15179_v28  ;;  %v11996_v12 = vrot.slane %v9368_v33, 9  ;;  %v12262_v58 = vld [vmem:[#allocation3 + $0x24] sm:$0xff]  ;;  %v8691_v6 = vld [vmem:[#allocation3 + $0x3c] sm:$0xf]  ;;  %9673 = vmatpush.bf16.msra.mxu1 %v12296_v10 }
 0x42f   : > { %v8067_v11 = vsel %vm12988_vm13, %v8065_v19, %v8066_v31  ;;  %v9462_v39 = vsel %vm12988_vm13, %v9460_v51, %v9461_v5  ;;  %v8786_v47 = vrot.slane %v8785_v56, 4  ;;  %v8812_v8 = vshll.u32 %v15081_v3, 16 }
 0x430   : > { %v15183_v1 = vpop.f32.mrf.mxu1  ;;  %v6497_v38 = vpop.f32.mrf.mxu2  ;;  %v8151_v31 = vunpack.c.l.b16 %v8067_v11  ;;  %v9459_v33 = vsel %vm12988_vm13, %v11996_v12, %v9458_v18  ;;  %v16447_v51 = vrot.slane %v15190_v40, 5  ;;  %v15214_v19 = vrot.slane %v8795_v42, 4  ;;  %v7283_v42 = vld [vmem:[#allocation3 + $0x6c] sm:$0xf] }
 0x431   : > { %v6498_v52 = vadd.f32 %v6497_v38, %v14754_v54  ;;  %v6875_v53 = vpop.f32.mrf.mxu3  ;;  %v7495_v54 = vshll.u32 %v15108_v2, 16  ;;  %v8150_v38 = vunpack.c.l.b16 %v8064_v61  ;;  %v9164_v2 = vpack.c.b16 %v9134_v63, %v15172_v23 }
 0x432   : > { %v8791_v56 = vsel %vm12584_vm7, %v8786_v47, %v15167_v55  ;;  %v15216_v5 = vrot.slane %v8798_v27, 5  ;;  %v7493_v12 = vrot.slane %v7492_v43, 4  ;;  %v8816_v18 = vshrl.u32 %v15081_v3, 16 }
 0x433   : > { %7858 = vmatmul.bf16.gmra.mxu1 %v7746_v37  ;;  %v15199_v25 = vadd.f32 %v6875_v53, %v6498_v52  ;;  %v15218_v37 = vld [vmem:[#allocation3 + $0x5c] sm:$0x1]  ;;  %v7482_v52 = vor.u32 %v7481_v7, %v7478_v29  ;;  %v15221_v53 = vpack.c.b16 %v8151_v31, %v8150_v38  ;;  %v8806_v23 = vshll.u32 %v8691_v6, 16 }
 0x434   : > { %8259 = vmatmul.bf16.gmra.mxu2 %v14759_v21  ;;  %v8803_v21 = vshrl.u32 %v8691_v6, 16  ;;  %v9565_v63 = vunpack.c.l.b16 %v9459_v33  ;;  %v9566_v61 = vunpack.c.l.b16 %v9462_v39  ;;  %v7497_v27 = vrot.slane %v7495_v54, 5  ;;  %v15237_v38 = vld [vmem:[#allocation3 + $0x7c] sm:$0xf] }
 0x435   : > { %16564 = vst [vmem:[#allocation39_spill] sm:$0xff] %v15199_v25  ;;  %v15225_v47 = vrot.slane %v8812_v8, 5  ;;  %v9467_v29 = vrot.slane %v16447_v51, 4  ;;  %v9468_v7 = vrot.slane %v15218_v37, 5  ;;  %v7509_v10 = vshll.u32 %v15162_v59, 16  ;;  %v15241_v33 = vpop.f32.mrf.mxu0 }
 0x436   : > { %8574 = vmatmul.bf16.gmra.mxu3 %v12262_v58  ;;  %v7513_v39 = vshrl.u32 %v15162_v59, 16  ;;  %v15233_v58 = vpack.c.b16 %v9566_v61, %v9565_v63  ;;  %v7483_v6 = vrot.slane %v7482_v52, 4  ;;  %v7498_v54 = vsel %vm12584_vm7, %v7493_v12, %v7497_v27  ;;  %16566 = vst [vmem:[#allocation41_spill] sm:$0xff] %v15241_v33  ;;  %v8694_v51 = vld [vmem:[#allocation3 + $0x48] sm:$0xf] }
 0x437   : > { %v8818_v8 = vrot.slane %v8816_v18, 4  ;;  %v9469_v31 = vsel %vm12988_vm13, %v9467_v29, %v9468_v7  ;;  %v8801_v52 = vsel %vm12584_vm7, %v15214_v19, %v15216_v5  ;;  %v7503_v12 = vshll.u32 %v7283_v42, 16  ;;  %v7950_v63 = vld [vmem:[#allocation3 + $0x78] sm:$0xe]  ;;  %v9369_v61 = vld [vmem:[#allocation3 + $0x54] sm:$0xe] }
 0x438   : > { %v15223_v11 = vpop.f32.mrf.mxu1  ;;  %9256 = vmatmul.bf16.gmra.mxu0 %v9164_v2  ;;  %v6500_v55 = vpop.f32.mrf.mxu2  ;;  %16565 = vst [vmem:[#allocation40_spill] sm:$0xff] %v15233_v58  ;;  %v9135_v2 = vunpack.c.l.b16 %v8791_v56  ;;  %v7488_v59 = vsel %vm12584_vm7, %v7483_v6, %v15179_v28  ;;  %v8822_v18 = vshll.u32 %v15116_v45, 16  ;;  %v7723_v27 = vunpack.c.l.b16 %v7498_v54  ;;  %v15255_v7 = vld [vmem:[#allocation3 + $0x80] sm:$0x1] }
 0x439   : > { %v6501_v3 = vadd.f32 %v6500_v55, %v14775_v0  ;;  %v6878_v43 = vpop.f32.mrf.mxu3  ;;  %v7500_v55 = vshrl.u32 %v7283_v42, 16  ;;  %v15253_v29 = vrot.slane %v7509_v10, 5  ;;  %v7515_v56 = vrot.slane %v7513_v39, 4 }
 0x43a   : > { %v8808_v28 = vrot.slane %v8806_v23, 5  ;;  %v8819_v6 = vor.u32 %v8818_v8, %v15225_v47  ;;  %v8827_v58 = vshrl.u32 %v8694_v51, 16  ;;  %v8830_v5 = vshll.u32 %v8694_v51, 16 }
 0x43b   : > { %v15243_v0 = vadd.f32 %v6878_v43, %v6501_v3  ;;  %v8070_v3 = vrot.slane %v15237_v38, 5  ;;  %v8805_v43 = vrot.slane %v8803_v21, 4  ;;  %v7502_v19 = vrot.slane %v7500_v55, 4 }
 0x43c   : > { %v11777_v42 = vrot.slane %v7950_v63, 9  ;;  %v7505_v54 = vrot.slane %v7503_v12, 5  ;;  %v8073_v39 = vrot.slane %v15255_v7, 5  ;;  %v11997_v25 = vrot.slane %v9369_v61, 9 }
 0x43d   : > { %16567 = vst [vmem:[#allocation42_spill] sm:$0xff] %v15243_v0  ;;  %v7722_v0 = vunpack.c.l.b16 %v7488_v59  ;;  %v8072_v10 = vrot.slane %v8070_v3, 4  ;;  %v7516_v23 = vor.u32 %v7515_v56, %v15253_v29  ;;  %v9136_v55 = vunpack.c.l.b16 %v8801_v52 }
 0x43e   : > { %v8071_v8 = vsel %vm12988_vm13, %v11777_v42, %v8070_v3  ;;  %v8809_v51 = vor.u32 %v8808_v28, %v8805_v43  ;;  %v16568_v12 = vrot.slane %v15190_v40, 5  ;;  %v9568_v61 = vunpack.c.l.b16 %v9469_v31  ;;  %v15275_v28 = vpop.f32.mrf.mxu0 }
 0x43f   : > { %v7747_v16 = vpack.c.b16 %v7723_v27, %v7722_v0  ;;  %v8074_v59 = vsel %vm12988_vm13, %v8072_v10, %v8073_v39  ;;  %v12263_v27 = vld [vmem:[#allocation3 + $0x30] sm:$0xff]  ;;  %v8829_v56 = vrot.slane %v8827_v58, 4  ;;  %v8832_v3 = vrot.slane %v8830_v5, 5 }
 0x440   : > { %v15259_v45 = vpop.f32.mrf.mxu1  ;;  %v6502_v33 = vpop.f32.mrf.mxu2  ;;  %v9466_v63 = vsel %vm12988_vm13, %v11997_v25, %v16568_v12  ;;  %v8152_v52 = vunpack.c.l.b16 %v8071_v8  ;;  %v8153_v43 = vunpack.c.l.b16 %v8074_v59  ;;  %v7506_v42 = vor.u32 %v7505_v54, %v7502_v19  ;;  %v15296_v12 = vld [vmem:[#allocation3 + $0x88] sm:$0xf] }
 0x441   : > { %v6503_v32 = vadd.f32 %v6502_v33, %v14795_v24  ;;  %v6880_v21 = vpop.f32.mrf.mxu3  ;;  %v7519_v24 = vshll.u32 %v15174_v48, 16  ;;  %v8820_v33 = vrot.slane %v8819_v6, 4  ;;  %v7517_v10 = vrot.slane %v7516_v23, 4 }
 0x442   : > { %v9567_v39 = vunpack.c.l.b16 %v9466_v63  ;;  %v8824_v25 = vrot.slane %v8822_v18, 5  ;;  %v8833_v5 = vor.u32 %v8832_v3, %v8829_v56  ;;  %v7507_v23 = vrot.slane %v7506_v42, 4  ;;  %v7951_v3 = vld [vmem:[#allocation3 + $0x84] sm:$0xe]  ;;  %v15313_v42 = vld [vmem:[#allocation3 + $0x8c] sm:$0x1] }
 0x443   : > { %7863 = vmatmul.bf16.gmra.mxu1 %v7747_v16  ;;  %v15272_v0 = vadd.f32 %v6880_v21, %v6503_v32  ;;  %v9165_v16 = vpack.c.b16 %v9136_v55, %v9135_v2  ;;  %v8810_v32 = vrot.slane %v8809_v51, 4  ;;  %v15278_v21 = vpack.c.b16 %v8153_v43, %v8152_v52  ;;  %v7286_v55 = vld [vmem:[#allocation3 + $0x78] sm:$0xf] }
 0x444   : > { %8264 = vmatmul.bf16.gmra.mxu2 %v14793_v9  ;;  %v7521_v48 = vrot.slane %v7519_v24, 5  ;;  %v15280_v31 = vpack.c.b16 %v9568_v61, %v9567_v39  ;;  %v8825_v19 = vsel %vm12584_vm7, %v8820_v33, %v8824_v25  ;;  %v8836_v2 = vshll.u32 %v15146_v60, 16  ;;  %v15305_v33 = vld [vmem:[#allocation3 + $0x64] sm:$0xf] }
 0x445   : > { %v8815_v9 = vsel %vm12584_vm7, %v8810_v32, %v15225_v47  ;;  %v8840_v51 = vshrl.u32 %v15146_v60, 16  ;;  %v7533_v59 = vshll.u32 %v15237_v38, 16  ;;  %v7537_v47 = vshrl.u32 %v15237_v38, 16 }
 0x446   : > { %8579 = vmatmul.bf16.gmra.mxu3 %v12263_v27  ;;  %16569 = vst [vmem:[#allocation43_spill] sm:$0xff] %v15280_v31  ;;  %v7522_v8 = vsel %vm12584_vm7, %v7517_v10, %v7521_v48  ;;  %v15303_v24 = vunpack.c.l.b16 %v8825_v19  ;;  %v15307_v27 = vunpack.c.l.b16 %v8815_v9  ;;  %v7524_v60 = vshrl.u32 %v7286_v55, 16  ;;  %v15319_v25 = vpop.f32.mrf.mxu0  ;;  %v8697_v19 = vld [vmem:[#allocation3 + $0x54] sm:$0xf] }
 0x447   : > { %v7725_v61 = vunpack.c.l.b16 %v7522_v8  ;;  %v15309_v56 = vrot.slane %v8833_v5, 4  ;;  %v7527_v38 = vshll.u32 %v7286_v55, 16  ;;  %v15311_v52 = vrot.slane %v8836_v2, 5 }
 0x448   : > { %v15282_v58 = vpop.f32.mrf.mxu1  ;;  %9261 = vmatmul.bf16.gmra.mxu0 %v9165_v16  ;;  %v6505_v6 = vpop.f32.mrf.mxu2  ;;  %v8842_v43 = vrot.slane %v8840_v51, 4  ;;  %v8077_v10 = vrot.slane %v15296_v12, 5  ;;  %v15316_v39 = vrot.slane %v7533_v59, 5  ;;  %v7539_v16 = vrot.slane %v7537_v47, 4  ;;  %v9370_v51 = vld [vmem:[#allocation3 + $0x60] sm:$0xe] }
 0x449   : > { %v6506_v18 = vadd.f32 %v6505_v6, %v14827_v57  ;;  %v6883_v54 = vpop.f32.mrf.mxu3  ;;  %v7512_v57 = vsel %vm12584_vm7, %v7507_v23, %v15253_v29  ;;  %v9472_v32 = vrot.slane %v15305_v33, 5  ;;  %v7227_v48 = vadd.f32 %v14638_v34, %v14653_v35 }
 0x44a   : > { %v7724_v29 = vunpack.c.l.b16 %v7512_v57  ;;  %v9166_v6 = vpack.c.b16 %v15303_v24, %v15307_v27  ;;  %v8846_v9 = vshll.u32 %v15176_v62, 16  ;;  %v11778_v5 = vrot.slane %v7951_v3, 9  ;;  %v15330_v57 = vld [vmem:[#allocation3 + $0x68] sm:$0x1] }
 0x44b   : > { %v15298_v63 = vadd.f32 %v6883_v54, %v6506_v18  ;;  %v7526_v23 = vrot.slane %v7524_v60, 4  ;;  %v8079_v8 = vrot.slane %v8077_v10, 4  ;;  %v8080_v55 = vrot.slane %v15313_v42, 5 }
 0x44c   : > { %v7748_v18 = vpack.c.b16 %v7725_v61, %v7724_v29  ;;  %v7529_v35 = vrot.slane %v7527_v38, 5  ;;  %v8078_v62 = vsel %vm12988_vm13, %v11778_v5, %v8077_v10  ;;  %v7540_v24 = vor.u32 %v7539_v16, %v15316_v39 }
 0x44d   : > { %v8843_v61 = vor.u32 %v8842_v43, %v15311_v52  ;;  %v8081_v27 = vsel %vm12988_vm13, %v8079_v8, %v8080_v55  ;;  %v9474_v60 = vrot.slane %v9472_v32, 4  ;;  %v8851_v38 = vshrl.u32 %v8697_v19, 16 }
 0x44e   : > { %v8854_v29 = vshll.u32 %v8697_v19, 16  ;;  %v7543_v10 = vshll.u32 %v15255_v7, 16  ;;  %v8154_v16 = vunpack.c.l.b16 %v8078_v62  ;;  %v8155_v5 = vunpack.c.l.b16 %v8081_v27  ;;  %v9371_v27 = vld [vmem:[#allocation3 + $0x6c] sm:$0xe] }
 0x44f   : > { %v9475_v43 = vrot.slane %v15330_v57, 5  ;;  %v8848_v8 = vrot.slane %v8846_v9, 5  ;;  %v7541_v55 = vrot.slane %v7540_v24, 4  ;;  %v8844_v7 = vrot.slane %v8843_v61, 4 }
 0x450   : > { %v7829_v2 = vpop.f32.mrf.mxu1  ;;  %v6507_v54 = vpop.f32.mrf.mxu2  ;;  %v8864_v62 = vshrl.u32 %v15190_v40, 16 }
 0x451   : > { %v15327_v59 = vadd.f32 %v7829_v2, %v7227_v48  ;;  %v6508_v47 = vadd.f32 %v6507_v54, %v14863_v46  ;;  %v6885_v34 = vpop.f32.mrf.mxu3  ;;  %v12295_v46 = vld [vmem:[%s16439_s4 + $0x210] sm:$0xff]  ;;  %v11998_v48 = vrot.slane %v9370_v51, 9  ;;  %v7530_v54 = vor.u32 %v7529_v35, %v7526_v23  ;;  %v15352_v51 = vld [vmem:[#allocation3 + $0x70] sm:$0xf] }
 0x452   : > { %v12264_v2 = vld [vmem:[#allocation3 + $0x3c] sm:$0xff]  ;;  %9674 = vmatpush.bf16.msra.mxu1 %v12295_v46  ;;  %v7228_v23 = vadd.f32 %v14657_v14, %v14672_v44  ;;  %v7545_v35 = vrot.slane %v7543_v10, 5  ;;  %v15362_v46 = vpop.f32.mrf.mxu0  ;;  %v15372_v10 = vld [vmem:[#allocation3 + $0x74] sm:$0x1] }
 0x453   : > { %7868 = vmatmul.bf16.gmra.mxu1 %v7748_v18  ;;  %v15338_v3 = vadd.f32 %v6885_v34, %v6508_v47  ;;  %v8839_v18 = vsel %vm12584_vm7, %v15309_v56, %v15311_v52  ;;  %v9473_v19 = vsel %vm12988_vm13, %v11998_v48, %v9472_v32  ;;  %v15354_v47 = vpack.c.b16 %v8155_v5, %v8154_v16 }
 0x454   : > { %8269 = vmatmul.bf16.gmra.mxu2 %v14825_v17  ;;  %v9476_v17 = vsel %vm12988_vm13, %v9474_v60, %v9475_v43  ;;  %v8853_v34 = vrot.slane %v8851_v38, 4  ;;  %v8856_v56 = vrot.slane %v8854_v29, 5  ;;  %v8860_v52 = vshll.u32 %v15190_v40, 16  ;;  %16571 = vst [vmem:[#allocation45_spill] sm:$0xff] %v15362_v46  ;;  %v7289_v38 = vld [vmem:[#allocation3 + $0x84] sm:$0xf] }
 0x455   : > { %16570 = vst [vmem:[#allocation44_spill] sm:$0xff] %v15338_v3  ;;  %v9569_v24 = vunpack.c.l.b16 %v9473_v19  ;;  %v9570_v61 = vunpack.c.l.b16 %v9476_v17  ;;  %v7531_v44 = vrot.slane %v7530_v54, 4  ;;  %v9479_v29 = vrot.slane %v15352_v51, 5 }
 0x456   : > { %8584 = vmatmul.bf16.gmra.mxu3 %v12264_v2  ;;  %v7557_v2 = vshll.u32 %v15296_v12, 16  ;;  %v7561_v40 = vshrl.u32 %v15296_v12, 16  ;;  %v8857_v43 = vor.u32 %v8856_v56, %v8853_v34  ;;  %v11999_v54 = vrot.slane %v9371_v27, 9  ;;  %v16574_v34 = vld [vmem:[#allocation10_spill] sm:$0xff] }
 0x457   : > { %v15374_v16 = vpack.c.b16 %v9570_v61, %v9569_v24  ;;  %v7536_v19 = vsel %vm12584_vm7, %v7531_v44, %v15316_v39  ;;  %v15383_v17 = vrot.slane %v8860_v52, 5  ;;  %v9139_v24 = vunpack.c.l.b16 %v8839_v18  ;;  %v15392_v52 = vld [vmem:[#allocation3 + $0x7c] sm:$0xf] }
 0x458   : > { %v7831_v9 = vpop.f32.mrf.mxu1  ;;  %9266 = vmatmul.bf16.gmra.mxu0 %v9166_v6  ;;  %v6510_v32 = vpop.f32.mrf.mxu2  ;;  %v7546_v6 = vsel %vm12584_vm7, %v7541_v55, %v7545_v35  ;;  %v7548_v55 = vshrl.u32 %v7289_v38, 16  ;;  %v9482_v35 = vrot.slane %v15372_v10, 5  ;;  %v7551_v61 = vshll.u32 %v7289_v38, 16  ;;  %v8700_v38 = vld [vmem:[#allocation3 + $0x60] sm:$0xf] }
 0x459   : > { %v15364_v48 = vadd.f32 %v7831_v9, %v7228_v23  ;;  %v6511_v60 = vadd.f32 %v6510_v32, %v14929_v22  ;;  %v6888_v14 = vpop.f32.mrf.mxu3  ;;  %16572 = vst [vmem:[#allocation46_spill] sm:$0xff] %v15374_v16  ;;  %v8849_v22 = vsel %vm12584_vm7, %v8844_v7, %v8848_v8  ;;  %v8866_v23 = vrot.slane %v8864_v62, 4 }
 0x45a   : > { %v7727_v12 = vunpack.c.l.b16 %v7546_v6  ;;  %v9480_v9 = vsel %vm12988_vm13, %v11999_v54, %v9479_v29  ;;  %v9481_v32 = vrot.slane %v9479_v29, 4  ;;  %v15388_v8 = vrot.slane %v7557_v2, 5  ;;  %v9372_v2 = vld [vmem:[#allocation3 + $0x78] sm:$0xe]  ;;  %v15408_v16 = vpop.f32.mrf.mxu0 }
 0x45b   : > { %v15376_v5 = vadd.f32 %v6888_v14, %v6511_v60  ;;  %v7563_v7 = vrot.slane %v7561_v40, 4  ;;  %v7229_v56 = vadd.f32 %v16574_v34, %v14695_v30  ;;  %v7726_v39 = vunpack.c.l.b16 %v7536_v19  ;;  %16576 = vst [vmem:[#allocation48_spill] sm:$0xff] %v15408_v16  ;;  %v15479_v16 = vld [vmem:[#allocation3 + $0xa0] sm:$0xf] }
 0x45c   : > { %v9140_v27 = vunpack.c.l.b16 %v8849_v22  ;;  %v9483_v62 = vsel %vm12988_vm13, %v9481_v32, %v9482_v35  ;;  %v15396_v44 = vrot.slane %v8857_v43, 4  ;;  %v8867_v18 = vor.u32 %v8866_v23, %v15383_v17  ;;  %v15403_v35 = vld [vmem:[#allocation3 + $0x80] sm:$0x1] }
 0x45d   : > { %16573 = vst [vmem:[#allocation47_spill] sm:$0xff] %v15376_v5  ;;  %v9571_v29 = vunpack.c.l.b16 %v9480_v9  ;;  %v9572_v6 = vunpack.c.l.b16 %v9483_v62  ;;  %v7749_v30 = vpack.c.b16 %v7727_v12, %v7726_v39  ;;  %v7550_v19 = vrot.slane %v7548_v55, 4  ;;  %v12265_v39 = vld [vmem:[#allocation3 + $0x48] sm:$0xff] }
 0x45e   : > { %v7553_v34 = vrot.slane %v7551_v61, 5  ;;  %v7564_v32 = vor.u32 %v7563_v7, %v15388_v8  ;;  %v9486_v23 = vrot.slane %v15392_v52, 5  ;;  %v7567_v12 = vshll.u32 %v15313_v42, 16 }
 0x45f   : > { %v15405_v43 = vpack.c.b16 %v9572_v6, %v9571_v29  ;;  %v9167_v55 = vpack.c.b16 %v9140_v27, %v9139_v24  ;;  %v8863_v61 = vsel %vm12584_vm7, %v15396_v44, %v15383_v17  ;;  %v8870_v7 = vshll.u32 %v15218_v37, 16  ;;  %v16579_v37 = vld [vmem:[#allocation12_spill] sm:$0xff]  ;;  %v16580_v44 = vld [vmem:[#allocation11_spill] sm:$0xff] }
 0x460   : > { %v7834_v60 = vpop.f32.mrf.mxu1  ;;  %v6512_v14 = vpop.f32.mrf.mxu2  ;;  %v8878_v62 = vshll.u32 %v8700_v38, 16  ;;  %v8884_v29 = vshll.u32 %v15305_v33, 16  ;;  %v9488_v6 = vrot.slane %v9486_v23, 4  ;;  %v9489_v24 = vrot.slane %v15403_v35, 5 }
 0x461   : > { %v15399_v40 = vadd.f32 %v7834_v60, %v7229_v56  ;;  %v6513_v22 = vadd.f32 %v6512_v14, %v14998_v49  ;;  %v6890_v54 = vpop.f32.mrf.mxu3  ;;  %16575 = vst [vmem:[#allocation10_spill] sm:$0xff] %v15405_v43  ;;  %v8875_v56 = vshrl.u32 %v8700_v38, 16  ;;  %v12000_v49 = vrot.slane %v9372_v2, 9  ;;  %v16578_v60 = vld [vmem:[#allocation26_spill] sm:$0xff]  ;;  %v15419_v14 = vld [vmem:[#allocation3 + $0x94] sm:$0xf] }
 0x462   : > { %v7554_v27 = vor.u32 %v7553_v34, %v7550_v19  ;;  %v7565_v2 = vrot.slane %v7564_v32, 4  ;;  %v8888_v17 = vshrl.u32 %v15305_v33, 16  ;;  %v7230_v38 = vadd.f32 %v16580_v44, %v16579_v37 }
 0x463   : > { %7873 = vmatmul.bf16.gmra.mxu1 %v7749_v30  ;;  %v15410_v9 = vadd.f32 %v6890_v54, %v6513_v22  ;;  %v9487_v42 = vsel %vm12988_vm13, %v12000_v49, %v9486_v23  ;;  %v8868_v30 = vrot.slane %v8867_v18, 4  ;;  %v7569_v22 = vrot.slane %v7567_v12, 5  ;;  %v7292_v23 = vld [vmem:[#allocation3 + $0x90] sm:$0xf] }
 0x464   : > { %8274 = vmatmul.bf16.gmra.mxu2 %v16578_v60  ;;  %v8877_v54 = vrot.slane %v8875_v56, 4  ;;  %v9490_v60 = vsel %vm12988_vm13, %v9488_v6, %v9489_v24  ;;  %v7581_v31 = vshll.u32 %v15419_v14, 16  ;;  %v7585_v19 = vshrl.u32 %v15419_v14, 16 }
 0x465   : > { %16577 = vst [vmem:[#allocation49_spill] sm:$0xff] %v15410_v9  ;;  %v9573_v34 = vunpack.c.l.b16 %v9487_v42  ;;  %v9574_v18 = vunpack.c.l.b16 %v9490_v60  ;;  %v8880_v12 = vrot.slane %v8878_v62, 5  ;;  %v15435_v56 = vrot.slane %v8884_v29, 5  ;;  %v15443_v60 = vld [vmem:[#allocation3 + $0x88] sm:$0xf] }
 0x466   : > { %8589 = vmatmul.bf16.gmra.mxu3 %v12265_v39  ;;  %v7555_v37 = vrot.slane %v7554_v27, 4  ;;  %v8890_v6 = vrot.slane %v8888_v17, 4  ;;  %v8872_v9 = vrot.slane %v8870_v7, 5  ;;  %v7572_v42 = vshrl.u32 %v7292_v23, 16  ;;  %v9373_v27 = vld [vmem:[#allocation3 + $0x84] sm:$0xe] }
 0x467   : > { %v15439_v24 = vpack.c.b16 %v9574_v18, %v9573_v34  ;;  %v15448_v62 = vrot.slane %v7581_v31, 5  ;;  %v7587_v29 = vrot.slane %v7585_v19, 4  ;;  %v15454_v7 = vld [vmem:[#allocation3 + $0x8c] sm:$0x1]  ;;  %v8894_v18 = vshll.u32 %v15330_v57, 16 }
 0x468   : > { %v7836_v43 = vpop.f32.mrf.mxu1  ;;  %9271 = vmatmul.bf16.gmra.mxu0 %v9167_v55  ;;  %v6515_v49 = vpop.f32.mrf.mxu2  ;;  %v7570_v55 = vsel %vm12584_vm7, %v7565_v2, %v7569_v22  ;;  %v8873_v17 = vsel %vm12584_vm7, %v8868_v30, %v8872_v9  ;;  %v9141_v22 = vunpack.c.l.b16 %v8863_v61  ;;  %v8891_v34 = vor.u32 %v8890_v6, %v15435_v56  ;;  %v16584_v31 = vld [vmem:[#allocation14_spill] sm:$0xff] }
 0x469   : > { %v15432_v32 = vadd.f32 %v7836_v43, %v7230_v38  ;;  %v6516_v33 = vadd.f32 %v6515_v49, %v15052_v15  ;;  %v6893_v39 = vpop.f32.mrf.mxu3  ;;  %16581 = vst [vmem:[#allocation26_spill] sm:$0xff] %v15439_v24  ;;  %v7560_v15 = vsel %vm12584_vm7, %v7555_v37, %v15388_v8  ;;  %v7575_v43 = vshll.u32 %v7292_v23, 16  ;;  %v15450_v38 = vpop.f32.mrf.mxu0  ;;  %v16585_v23 = vld [vmem:[#allocation13_spill] sm:$0xff] }
 0x46a   : > { %16583 = vst [vmem:[#allocation11_spill] sm:$0xff] %v15450_v38  ;;  %v7729_v2 = vunpack.c.l.b16 %v7570_v55  ;;  %v8881_v49 = vor.u32 %v8880_v12, %v8877_v54  ;;  %v9493_v8 = vrot.slane %v15443_v60, 5  ;;  %v7231_v19 = vadd.f32 %v16585_v23, %v16584_v31  ;;  %v8703_v54 = vld [vmem:[#allocation3 + $0x6c] sm:$0xf] }
 0x46b   : > { %v15441_v44 = vadd.f32 %v6893_v39, %v6516_v33  ;;  %v7728_v33 = vunpack.c.l.b16 %v7560_v15  ;;  %v15461_v39 = vld [vmem:[#allocation3 + $0x98] sm:$0x1]  ;;  %v7574_v37 = vrot.slane %v7572_v42, 4  ;;  %v12001_v55 = vrot.slane %v9373_v27, 9 }
 0x46c   : > { %v7577_v61 = vrot.slane %v7575_v43, 5  ;;  %v7588_v30 = vor.u32 %v7587_v29, %v15448_v62  ;;  %v9495_v12 = vrot.slane %v9493_v8, 4  ;;  %v9496_v6 = vrot.slane %v15454_v7, 5 }
 0x46d   : > { %16582 = vst [vmem:[#allocation12_spill] sm:$0xff] %v15441_v44  ;;  %v7750_v44 = vpack.c.b16 %v7729_v2, %v7728_v33  ;;  %v9494_v15 = vsel %vm12988_vm13, %v12001_v55, %v9493_v8  ;;  %v9142_v42 = vunpack.c.l.b16 %v8873_v17  ;;  %v7591_v27 = vshll.u32 %v15461_v39, 16 }
 0x46e   : > { %v8882_v23 = vrot.slane %v8881_v49, 4  ;;  %v9497_v43 = vsel %vm12988_vm13, %v9495_v12, %v9496_v6  ;;  %v8892_v5 = vrot.slane %v8891_v34, 4  ;;  %v8902_v2 = vshll.u32 %v8703_v54, 16 }
 0x46f   : > { %v7578_v33 = vor.u32 %v7577_v61, %v7574_v37  ;;  %v7589_v8 = vrot.slane %v7588_v30, 4  ;;  %v9575_v17 = vunpack.c.l.b16 %v9494_v15  ;;  %v9576_v55 = vunpack.c.l.b16 %v9497_v43 }
 0x470   : > { %v7839_v24 = vpop.f32.mrf.mxu1  ;;  %v6517_v9 = vpop.f32.mrf.mxu2  ;;  %v8896_v49 = vrot.slane %v8894_v18, 5  ;;  %v9168_v34 = vpack.c.b16 %v9142_v42, %v9141_v22  ;;  %v7593_v12 = vrot.slane %v7591_v27, 5  ;;  %v8887_v37 = vsel %vm12584_vm7, %v8882_v23, %v15435_v56  ;;  %v16591_v18 = vld [vmem:[#allocation15_spill] sm:$0xff]  ;;  %v7295_v23 = vld [vmem:[#allocation3 + $0x9c] sm:$0xf] }
 0x471   : > { %v15465_v57 = vadd.f32 %v7839_v24, %v7231_v19  ;;  %v6518_v38 = vadd.f32 %v6517_v9, %v15083_v13  ;;  %v6895_v31 = vpop.f32.mrf.mxu3  ;;  %v12294_v24 = vld [vmem:[%s16439_s4 + $0x208] sm:$0xff]  ;;  %v8899_v13 = vshrl.u32 %v8703_v54, 16  ;;  %v15486_v61 = vpack.c.b16 %v9576_v55, %v9575_v17  ;;  %v15488_v30 = vpop.f32.mrf.mxu0  ;;  %v16590_v54 = vld [vmem:[#allocation16_spill] sm:$0xff] }
 0x472   : > { %v12266_v19 = vld [vmem:[#allocation3 + $0x54] sm:$0xff]  ;;  %9675 = vmatpush.bf16.msra.mxu1 %v12294_v24  ;;  %v7232_v6 = vadd.f32 %v16591_v18, %v16590_v54  ;;  %v7579_v27 = vrot.slane %v7578_v33, 4  ;;  %v7594_v56 = vsel %vm12584_vm7, %v7589_v8, %v7593_v12  ;;  %v7605_v43 = vshll.u32 %v15479_v16, 16 }
 0x473   : > { %7878 = vmatmul.bf16.gmra.mxu1 %v7750_v44  ;;  %v15473_v29 = vadd.f32 %v6895_v31, %v6518_v38  ;;  %v16587_v9 = vld [vmem:[#allocation7_spill] sm:$0xff]  ;;  %v8908_v44 = vshll.u32 %v15352_v51, 16  ;;  %v8912_v38 = vshrl.u32 %v15352_v51, 16  ;;  %16588 = vst [vmem:[#allocation13_spill] sm:$0xff] %v15486_v61  ;;  %v8897_v31 = vsel %vm12584_vm7, %v8892_v5, %v8896_v49  ;;  %v8706_v8 = vld [vmem:[#allocation3 + $0x78] sm:$0xf] }
 0x474   : > { %8279 = vmatmul.bf16.gmra.mxu2 %v16587_v9  ;;  %16589 = vst [vmem:[#allocation7_spill] sm:$0xff] %v15488_v30  ;;  %v15494_v15 = vrot.slane %v8899_v13, 4  ;;  %v15496_v51 = vrot.slane %v8902_v2, 5  ;;  %v7609_v24 = vshrl.u32 %v15479_v16, 16  ;;  %v7584_v33 = vsel %vm12584_vm7, %v7579_v27, %v15448_v62  ;;  %v15514_v54 = vld [vmem:[#allocation3 + $0x94] sm:$0xf] }
 0x475   : > { %16586 = vst [vmem:[#allocation14_spill] sm:$0xff] %v15473_v29  ;;  %v15505_v17 = vrot.slane %v8908_v44, 5  ;;  %v8914_v2 = vrot.slane %v8912_v38, 4  ;;  %v15510_v55 = vunpack.c.l.b16 %v8887_v37  ;;  %v7731_v49 = vunpack.c.l.b16 %v7594_v56  ;;  %v9374_v27 = vld [vmem:[#allocation3 + $0x90] sm:$0xe] }
 0x476   : > { %8594 = vmatmul.bf16.gmra.mxu3 %v12266_v19  ;;  %v7599_v12 = vshll.u32 %v7295_v23, 16  ;;  %v9144_v18 = vunpack.c.l.b16 %v8897_v31  ;;  %v7611_v44 = vrot.slane %v7609_v24, 4  ;;  %v8918_v37 = vshll.u32 %v15372_v10, 16  ;;  %v16593_v56 = vld [vmem:[#allocation19_spill] sm:$0xff] }
 0x477   : > { %v8915_v62 = vor.u32 %v8914_v2, %v15505_v17  ;;  %v8926_v31 = vshll.u32 %v8706_v8, 16  ;;  %v9500_v24 = vrot.slane %v15514_v54, 5 }
 0x478   : > { %v7841_v22 = vpop.f32.mrf.mxu1  ;;  %9276 = vmatmul.bf16.gmra.mxu0 %v9168_v34  ;;  %v6520_v42 = vpop.f32.mrf.mxu2  ;;  %v7596_v34 = vshrl.u32 %v7295_v23, 16 }
 0x479   : > { %v15502_v19 = vadd.f32 %v7841_v22, %v7232_v6  ;;  %v6521_v5 = vadd.f32 %v6520_v42, %v15123_v36  ;;  %v6898_v13 = vpop.f32.mrf.mxu3  ;;  %v15516_v36 = vrot.slane %v7605_v43, 5  ;;  %v7952_v6 = vld [vmem:[#allocation3 + $0x90] sm:$0xe]  ;;  %v7730_v22 = vunpack.c.l.b16 %v7584_v33  ;;  %v15528_v33 = vld [vmem:[#allocation3 + $0x98] sm:$0x1]  ;;  %v15532_v46 = vpop.f32.mrf.mxu0 }
 0x47a   : > { %v8923_v42 = vshrl.u32 %v8706_v8, 16  ;;  %v8084_v43 = vrot.slane %v15419_v14, 5  ;;  %v7598_v38 = vrot.slane %v7596_v34, 4  ;;  %v11779_v2 = vrot.slane %v7952_v6, 9  ;;  %16595 = vst [vmem:[#allocation15_spill] sm:$0xff] %v15532_v46 }
 0x47b   : > { %v15512_v9 = vadd.f32 %v6898_v13, %v6521_v5  ;;  %v16594_v5 = vld [vmem:[#allocation18_spill] sm:$0xff]  ;;  %v15524_v13 = vld [vmem:[#allocation3 + $0xa4] sm:$0x1]  ;;  %v7751_v61 = vpack.c.b16 %v7731_v49, %v7730_v22  ;;  %v7612_v30 = vor.u32 %v7611_v44, %v15516_v36  ;;  %v9503_v22 = vrot.slane %v15528_v33, 5 }
 0x47c   : > { %v7233_v23 = vadd.f32 %v16594_v5, %v16593_v56  ;;  %v8086_v3 = vrot.slane %v8084_v43, 4  ;;  %v8087_v56 = vrot.slane %v15461_v39, 5  ;;  %v12002_v5 = vrot.slane %v9374_v27, 9 }
 0x47d   : > { %16592 = vst [vmem:[#allocation16_spill] sm:$0xff] %v15512_v9  ;;  %v7601_v9 = vrot.slane %v7599_v12, 5  ;;  %v7615_v34 = vshll.u32 %v15524_v13, 16  ;;  %v8085_v12 = vsel %vm12988_vm13, %v11779_v2, %v8084_v43  ;;  %v9502_v39 = vrot.slane %v9500_v24, 4 }
 0x47e   : > { %v8088_v6 = vsel %vm12988_vm13, %v8086_v3, %v8087_v56  ;;  %v9501_v44 = vsel %vm12988_vm13, %v12002_v5, %v9500_v24  ;;  %v7613_v46 = vrot.slane %v7612_v30, 4  ;;  %v8156_v43 = vunpack.c.l.b16 %v8085_v12  ;;  %v16597_v30 = vld [vmem:[#allocation21_spill] sm:$0xff] }
 0x47f   : > { %v7602_v27 = vor.u32 %v7601_v9, %v7598_v38  ;;  %v8157_v2 = vunpack.c.l.b16 %v8088_v6  ;;  %v9504_v3 = vsel %vm12988_vm13, %v9502_v39, %v9503_v22  ;;  %v9169_v24 = vpack.c.b16 %v9144_v18, %v15510_v55  ;;  %v15553_v38 = vld [vmem:[#allocation3 + $0xac] sm:$0xf]  ;;  %v16598_v12 = vld [vmem:[#allocation17_spill] sm:$0xff] }
 0x480   : > { %v7844_v29 = vpop.f32.mrf.mxu1  ;;  %v6522_v10 = vpop.f32.mrf.mxu2  ;;  %v8916_v56 = vrot.slane %v8915_v62, 4  ;;  %v9578_v5 = vunpack.c.l.b16 %v9504_v3  ;;  %v7617_v9 = vrot.slane %v7615_v34, 5  ;;  %v7234_v6 = vadd.f32 %v16598_v12, %v16597_v30 }
 0x481   : > { %v15534_v8 = vadd.f32 %v7844_v29, %v7233_v23  ;;  %v6523_v14 = vadd.f32 %v6522_v10, %v15148_v20  ;;  %v6900_v49 = vpop.f32.mrf.mxu3  ;;  %v8932_v20 = vshll.u32 %v15392_v52, 16  ;;  %v8936_v23 = vshrl.u32 %v15392_v52, 16  ;;  %v12267_v10 = vld [vmem:[#allocation3 + $0x60] sm:$0xff] }
 0x482   : > { %v8928_v52 = vrot.slane %v8926_v31, 5  ;;  %v7603_v62 = vrot.slane %v7602_v27, 4  ;;  %v7618_v34 = vsel %vm12584_vm7, %v7613_v46, %v7617_v9  ;;  %v8709_v9 = vld [vmem:[#allocation3 + $0x84] sm:$0xf] }
 0x483   : > { %7883 = vmatmul.bf16.gmra.mxu1 %v7751_v61  ;;  %v15545_v29 = vadd.f32 %v6900_v49, %v6523_v14  ;;  %v9577_v61 = vunpack.c.l.b16 %v9501_v44  ;;  %v8925_v14 = vrot.slane %v8923_v42, 4  ;;  %v15555_v49 = vpack.c.b16 %v8157_v2, %v8156_v43 }
 0x484   : > { %8284 = vmatmul.bf16.gmra.mxu2 %v15071_v4  ;;  %v8938_v39 = vrot.slane %v8936_v23, 4  ;;  %v16600_v42 = vor.u32 %v15496_v51, %v15494_v15  ;;  %v8920_v44 = vrot.slane %v8918_v37, 5  ;;  %v7298_v23 = vld [vmem:[#allocation3 + $0xa8] sm:$0xf]  ;;  %v7629_v43 = vshll.u32 %v15553_v38, 16  ;;  %v15578_v15 = vpop.f32.mrf.mxu0 }
 0x485   : > { %16596 = vst [vmem:[#allocation19_spill] sm:$0xff] %v15545_v29  ;;  %v15559_v29 = vrot.slane %v8932_v20, 5  ;;  %v15561_v4 = vpack.c.b16 %v9578_v5, %v9577_v61  ;;  %v7633_v2 = vshrl.u32 %v15553_v38, 16  ;;  %v8929_v37 = vor.u32 %v8928_v52, %v8925_v14 }
 0x486   : > { %8599 = vmatmul.bf16.gmra.mxu3 %v12267_v10  ;;  %v8906_v31 = vrot.slane %v16600_v42, 4  ;;  %v8921_v46 = vsel %vm12584_vm7, %v8916_v56, %v8920_v44  ;;  %v7620_v61 = vshrl.u32 %v7298_v23, 16  ;;  %v7623_v5 = vshll.u32 %v7298_v23, 16 }
 0x487   : > { %16599 = vst [vmem:[#allocation18_spill] sm:$0xff] %v15561_v4  ;;  %v8939_v3 = vor.u32 %v8938_v39, %v15559_v29  ;;  %v7635_v12 = vrot.slane %v7633_v2, 4  ;;  %v8091_v42 = vrot.slane %v15479_v16, 5  ;;  %v15592_v52 = vrot.slane %v8929_v37, 4 }
 0x488   : > { %v7846_v55 = vpop.f32.mrf.mxu1  ;;  %9281 = vmatmul.bf16.gmra.mxu0 %v9169_v24  ;;  %v6525_v18 = vpop.f32.mrf.mxu2  ;;  %v8911_v27 = vsel %vm12584_vm7, %v8906_v31, %v15505_v17  ;;  %v7733_v24 = vunpack.c.l.b16 %v7618_v34  ;;  %v15586_v17 = vrot.slane %v7629_v43, 5  ;;  %v16601_v31 = vld [vmem:[#allocation20_spill] sm:$0xff]  ;;  %v7622_v23 = vrot.slane %v7620_v61, 4 }
 0x489   : > { %v15568_v22 = vadd.f32 %v7846_v55, %v7234_v6  ;;  %v6526_v20 = vadd.f32 %v6525_v18, %v15183_v1  ;;  %v6903_v10 = vpop.f32.mrf.mxu3  ;;  %v7608_v1 = vsel %vm12584_vm7, %v7603_v62, %v15516_v36  ;;  %v9145_v30 = vunpack.c.l.b16 %v8911_v27  ;;  %v7953_v18 = vld [vmem:[#allocation3 + $0x9c] sm:$0xe]  ;;  %v16602_v36 = vld [vmem:[#allocation22_spill] sm:$0xff] }
 0x48a   : > { %v7732_v56 = vunpack.c.l.b16 %v7608_v1  ;;  %v9146_v6 = vunpack.c.l.b16 %v8921_v46  ;;  %v8942_v55 = vshll.u32 %v15403_v35, 16  ;;  %v7235_v14 = vadd.f32 %v16602_v36, %v16601_v31 }
 0x48b   : > { %v15580_v51 = vadd.f32 %v6903_v10, %v6526_v20  ;;  %v8940_v39 = vrot.slane %v8939_v3, 4  ;;  %v8947_v62 = vshrl.u32 %v8709_v9, 16  ;;  %v15594_v10 = vld [vmem:[#allocation3 + $0xb0] sm:$0x1]  ;;  %v7625_v43 = vrot.slane %v7623_v5, 5 }
 0x48c   : > { %v7752_v44 = vpack.c.b16 %v7733_v24, %v7732_v56  ;;  %v8950_v2 = vshll.u32 %v8709_v9, 16  ;;  %v7636_v46 = vor.u32 %v7635_v12, %v15586_v17  ;;  %v11780_v1 = vrot.slane %v7953_v18, 9  ;;  %v15605_v5 = vld [vmem:[#allocation3 + $0xb8] sm:$0xf] }
 0x48d   : > { %v8944_v37 = vrot.slane %v8942_v55, 5  ;;  %v8956_v3 = vshll.u32 %v15443_v60, 16  ;;  %v8960_v31 = vshrl.u32 %v15443_v60, 16  ;;  %v8093_v24 = vrot.slane %v8091_v42, 4  ;;  %v12268_v55 = vld [vmem:[#allocation3 + $0x6c] sm:$0xff] }
 0x48e   : > { %v7639_v61 = vshll.u32 %v15594_v10, 16  ;;  %v8092_v9 = vsel %vm12988_vm13, %v11780_v1, %v8091_v42  ;;  %v8094_v12 = vrot.slane %v15524_v13, 5  ;;  %v9170_v18 = vpack.c.b16 %v9146_v6, %v9145_v30 }
 0x48f   : > { %v7626_v60 = vor.u32 %v7625_v43, %v7622_v23  ;;  %v8949_v36 = vrot.slane %v8947_v62, 4  ;;  %v8945_v42 = vsel %vm12584_vm7, %v8940_v39, %v8944_v37  ;;  %v7653_v30 = vshll.u32 %v15605_v5, 16  ;;  %v16605_v23 = vld [vmem:[#allocation25_spill] sm:$0xff]  ;;  %v16606_v43 = vld [vmem:[#allocation24_spill] sm:$0xff] }
 0x490   : > { %v7849_v34 = vpop.f32.mrf.mxu1  ;;  %v6527_v20 = vpop.f32.mrf.mxu2  ;;  %v8095_v13 = vsel %vm12988_vm13, %v8093_v24, %v8094_v12  ;;  %v7657_v6 = vshrl.u32 %v15605_v5, 16 }
 0x491   : > { %v15596_v27 = vadd.f32 %v7849_v34, %v7235_v14  ;;  %v6528_v35 = vadd.f32 %v6527_v20, %v15223_v11  ;;  %v6905_v16 = vpop.f32.mrf.mxu3  ;;  %v12293_v11 = vld [vmem:[%s16439_s4 + $0x200] sm:$0xff]  ;;  %v8952_v14 = vrot.slane %v8950_v2, 5  ;;  %v15613_v34 = vpop.f32.mrf.mxu0  ;;  %v8935_v20 = vsel %vm12584_vm7, %v15592_v52, %v15559_v29 }
 0x492   : > { %9676 = vmatpush.bf16.msra.mxu1 %v12293_v11  ;;  %v8159_v62 = vunpack.c.l.b16 %v8095_v13  ;;  %v7236_v2 = vadd.f32 %v16606_v43, %v16605_v23  ;;  %v8958_v29 = vrot.slane %v8956_v3, 5  ;;  %v8962_v52 = vrot.slane %v8960_v31, 4  ;;  %v7954_v43 = vld [vmem:[#allocation3 + $0xa8] sm:$0xe] }
 0x493   : > { %16603 = vst [vmem:[#allocation21_spill] sm:$0xff] %v15596_v27  ;;  %7888 = vmatmul.bf16.gmra.mxu1 %v7752_v44  ;;  %v15602_v56 = vadd.f32 %v6905_v16, %v6528_v35  ;;  %v7637_v44 = vrot.slane %v7636_v46, 4  ;;  %v7301_v35 = vld [vmem:[#allocation3 + $0xb4] sm:$0xf]  ;;  %v7641_v16 = vrot.slane %v7639_v61, 5  ;;  %v7627_v1 = vrot.slane %v7626_v60, 4 }
 0x494   : > { %8289 = vmatmul.bf16.gmra.mxu2 %v15139_v41  ;;  %v8158_v41 = vunpack.c.l.b16 %v8092_v9  ;;  %v7644_v37 = vshrl.u32 %v7301_v35, 16  ;;  %v8953_v11 = vor.u32 %v8952_v14, %v8949_v36  ;;  %v7647_v23 = vshll.u32 %v7301_v35, 16  ;;  %v9375_v35 = vld [vmem:[#allocation3 + $0x9c] sm:$0xe] }
 0x495   : > { %16604 = vst [vmem:[#allocation17_spill] sm:$0xff] %v15602_v56  ;;  %v7642_v13 = vsel %vm12584_vm7, %v7637_v44, %v7641_v16  ;;  %v15635_v61 = vunpack.c.l.b16 %v8945_v42  ;;  %v15637_v3 = vrot.slane %v7653_v30, 5  ;;  %v7659_v31 = vrot.slane %v7657_v6, 4  ;;  %v15649_v30 = vld [vmem:[#allocation3 + $0xbc] sm:$0x1] }
 0x496   : > { %8604 = vmatmul.bf16.gmra.mxu3 %v12268_v55  ;;  %v15628_v24 = vpack.c.b16 %v8159_v62, %v8158_v41  ;;  %v7632_v36 = vsel %vm12584_vm7, %v7627_v1, %v15586_v17  ;;  %v8963_v14 = vor.u32 %v8962_v52, %v8958_v29  ;;  %v7735_v41 = vunpack.c.l.b16 %v7642_v13 }
 0x497   : > { %v15647_v62 = vunpack.c.l.b16 %v8935_v20  ;;  %v7646_v44 = vrot.slane %v7644_v37, 4  ;;  %v8954_v42 = vrot.slane %v8953_v11, 4  ;;  %v7649_v6 = vrot.slane %v7647_v23, 5  ;;  %v16609_v20 = vld [vmem:[#allocation5_spill] sm:$0xff] }
 0x498   : > { %v7851_v46 = vpop.f32.mrf.mxu1  ;;  %9286 = vmatmul.bf16.gmra.mxu0 %v9170_v18  ;;  %v6530_v39 = vpop.f32.mrf.mxu2  ;;  %v15639_v18 = vld [vmem:[#allocation3 + $0xa0] sm:$0xf]  ;;  %v7734_v16 = vunpack.c.l.b16 %v7632_v36  ;;  %v7660_v17 = vor.u32 %v7659_v31, %v15637_v3  ;;  %v15662_v11 = vrot.slane %v8963_v14, 4  ;;  %v15667_v31 = vld [vmem:[#allocation3 + $0xa4] sm:$0x1]  ;;  %v12003_v36 = vrot.slane %v9375_v35, 9 }
 0x499   : > { %v15630_v12 = vadd.f32 %v7851_v46, %v7236_v2  ;;  %v6531_v55 = vadd.f32 %v6530_v39, %v15259_v45  ;;  %v6908_v9 = vpop.f32.mrf.mxu3  ;;  %v8966_v45 = vshll.u32 %v15454_v7, 16  ;;  %v9507_v2 = vrot.slane %v15639_v18, 5  ;;  %v15656_v52 = vpop.f32.mrf.mxu0  ;;  %v16610_v39 = vld [vmem:[#allocation23_spill] sm:$0xff] }
 0x49a   : > { %v9171_v46 = vpack.c.b16 %v15635_v61, %v15647_v62  ;;  %v8098_v7 = vrot.slane %v15553_v38, 5  ;;  %v7237_v1 = vadd.f32 %v16610_v39, %v16609_v20  ;;  %v8959_v37 = vsel %vm12584_vm7, %v8954_v42, %v8958_v29  ;;  %v15672_v29 = vld [vmem:[#allocation3 + $0x90] sm:$0xf]  ;;  %v15674_v42 = vld [vmem:[#allocation3 + $0xac] sm:$0xf] }
 0x49b   : > { %16607 = vst [vmem:[#allocation20_spill] sm:$0xff] %v15630_v12  ;;  %v15641_v60 = vadd.f32 %v6908_v9, %v6531_v55  ;;  %v15664_v55 = vrot.slane %v8966_v45, 5  ;;  %v7753_v13 = vpack.c.b16 %v7735_v41, %v7734_v16  ;;  %v7663_v61 = vshll.u32 %v15649_v30, 16 }
 0x49c   : > { %v11781_v38 = vrot.slane %v7954_v43, 9  ;;  %v7650_v12 = vor.u32 %v7649_v6, %v7646_v44  ;;  %v9509_v14 = vrot.slane %v9507_v2, 4  ;;  %v7661_v45 = vrot.slane %v7660_v17, 4  ;;  %v9376_v43 = vld [vmem:[#allocation3 + $0xa8] sm:$0xe]  ;;  %v12269_v17 = vld [vmem:[#allocation3 + $0x78] sm:$0xff] }
 0x49d   : > { %16608 = vst [vmem:[#allocation22_spill] sm:$0xff] %v15641_v60  ;;  %v8100_v16 = vrot.slane %v8098_v7, 4  ;;  %v8101_v27 = vrot.slane %v15594_v10, 5  ;;  %v15685_v44 = vunpack.c.l.b16 %v8959_v37  ;;  %v9510_v6 = vrot.slane %v15667_v31, 5  ;;  %v7955_v60 = vld [vmem:[#allocation3 + $0xb4] sm:$0xe] }
 0x49e   : > { %v8099_v41 = vsel %vm12988_vm13, %v11781_v38, %v8098_v7  ;;  %v8971_v7 = vshrl.u32 %v15672_v29, 16  ;;  %v16613_v38 = vld [vmem:[#allocation27_spill] sm:$0xff] }
 0x49f   : > { %v8102_v10 = vsel %vm12988_vm13, %v8100_v16, %v8101_v27  ;;  %v8160_v37 = vunpack.c.l.b16 %v8099_v41 }
 0x4a0   : > { %v7854_v9 = vpop.f32.mrf.mxu1  ;;  %v6532_v23 = vpop.f32.mrf.mxu2 }
 0x4a1   : > { %v15669_v62 = vadd.f32 %v7854_v9, %v7237_v1  ;;  %v6533_v20 = vadd.f32 %v6532_v23, %v15282_v58  ;;  %v6910_v39 = vpop.f32.mrf.mxu3  ;;  %v8969_v58 = vsel %vm12584_vm7, %v15662_v11, %v15664_v55  ;;  %v7665_v1 = vrot.slane %v7663_v61, 5  ;;  %v15688_v9 = vld [vmem:[#allocation3 + $0xc4] sm:$0xf]  ;;  %v15696_v11 = vld [vmem:[#allocation3 + $0xb0] sm:$0x1] }
 0x4a2   : > { %v8161_v55 = vunpack.c.l.b16 %v8102_v10  ;;  %v9511_v23 = vsel %vm12988_vm13, %v9509_v14, %v9510_v6  ;;  %v9514_v61 = vrot.slane %v15674_v42, 5  ;;  %v7681_v6 = vshrl.u32 %v15688_v9, 16 }
 0x4a3   : > { %16611 = vst [vmem:[#allocation25_spill] sm:$0xff] %v15669_v62  ;;  %7893 = vmatmul.bf16.gmra.mxu1 %v7753_v13  ;;  %v15679_v35 = vadd.f32 %v6910_v39, %v6533_v20  ;;  %v9508_v13 = vsel %vm12988_vm13, %v12003_v36, %v9507_v2  ;;  %v16614_v20 = vld [vmem:[#allocation4_spill] sm:$0xff]  ;;  %v7651_v62 = vrot.slane %v7650_v12, 4  ;;  %v7666_v27 = vsel %vm12584_vm7, %v7661_v45, %v7665_v1  ;;  %v7304_v36 = vld [vmem:[#allocation3 + $0xc0] sm:$0xf]  ;;  %v15712_v45 = vpop.f32.mrf.mxu0 }
 0x4a4   : > { %8294 = vmatmul.bf16.gmra.mxu2 %v15221_v53  ;;  %v7238_v39 = vadd.f32 %v16614_v20, %v16613_v38  ;;  %v12004_v2 = vrot.slane %v9376_v43, 9  ;;  %v7677_v53 = vshll.u32 %v15688_v9, 16  ;;  %v15706_v16 = vpack.c.b16 %v8161_v55, %v8160_v37  ;;  %16615 = vst [vmem:[#allocation5_spill] sm:$0xff] %v15712_v45 }
 0x4a5   : > { %16612 = vst [vmem:[#allocation24_spill] sm:$0xff] %v15679_v35  ;;  %v9579_v41 = vunpack.c.l.b16 %v9508_v13  ;;  %v9580_v10 = vunpack.c.l.b16 %v9511_v23  ;;  %v9516_v12 = vrot.slane %v9514_v61, 4  ;;  %v9517_v38 = vrot.slane %v15696_v11, 5 }
 0x4a6   : > { %8609 = vmatmul.bf16.gmra.mxu3 %v12269_v17  ;;  %v9515_v17 = vsel %vm12988_vm13, %v12004_v2, %v9514_v61  ;;  %v8980_v13 = vshll.u32 %v15514_v54, 16  ;;  %v7656_v55 = vsel %vm12584_vm7, %v7651_v62, %v15637_v3  ;;  %v7668_v23 = vshrl.u32 %v7304_v36, 16  ;;  %v15733_v62 = vld [vmem:[#allocation3 + $0xb8] sm:$0xf] }
 0x4a7   : > { %v15722_v20 = vpack.c.b16 %v9580_v10, %v9579_v41  ;;  %v9518_v61 = vsel %vm12988_vm13, %v9516_v12, %v9517_v38  ;;  %v15728_v35 = vrot.slane %v7677_v53, 5  ;;  %v7736_v56 = vunpack.c.l.b16 %v7656_v55  ;;  %v9377_v10 = vld [vmem:[#allocation3 + $0xb4] sm:$0xe]  ;;  %v16619_v12 = vld [vmem:[#allocation9_spill] sm:$0xff] }
 0x4a8   : > { %v7856_v4 = vpop.f32.mrf.mxu1  ;;  %9291 = vmatmul.bf16.gmra.mxu0 %v9171_v46  ;;  %v8255_v14 = vpop.f32.mrf.mxu2  ;;  %v8984_v46 = vshrl.u32 %v15514_v54, 16  ;;  %v7683_v54 = vrot.slane %v7681_v6, 4  ;;  %v15730_v45 = vrot.slane %v8971_v7, 4  ;;  %v8974_v3 = vshll.u32 %v15672_v29, 16 }
 0x4a9   : > { %v15714_v43 = vadd.f32 %v7856_v4, %v7238_v39  ;;  %v8335_v1 = vadd.f32 %v8255_v14, %v15327_v59  ;;  %v8570_v37 = vpop.f32.mrf.mxu3  ;;  %16617 = vst [vmem:[#allocation27_spill] sm:$0xff] %v15722_v20  ;;  %v7737_v4 = vunpack.c.l.b16 %v7666_v27  ;;  %v9581_v39 = vunpack.c.l.b16 %v9515_v17  ;;  %v16620_v27 = vld [vmem:[#allocation8_spill] sm:$0xff] }
 0x4aa   : > { %v9582_v59 = vunpack.c.l.b16 %v9518_v61  ;;  %v9150_v14 = vunpack.c.l.b16 %v8969_v58  ;;  %v7239_v17 = vadd.f32 %v16620_v27, %v16619_v12  ;;  %v15739_v38 = vrot.slane %v8980_v13, 5  ;;  %v15745_v61 = vld [vmem:[#allocation3 + $0xc8] sm:$0x1] }
 0x4ab   : > { %16616 = vst [vmem:[#allocation23_spill] sm:$0xff] %v15714_v43  ;;  %v15726_v2 = vadd.f32 %v8570_v37, %v8335_v1  ;;  %v7671_v43 = vshll.u32 %v7304_v36, 16  ;;  %v8986_v58 = vrot.slane %v8984_v46, 4  ;;  %v8105_v36 = vrot.slane %v15605_v5, 5  ;;  %v15742_v1 = vld [vmem:[#allocation3 + $0xbc] sm:$0x1] }
 0x4ac   : > { %v15735_v41 = vpack.c.b16 %v9582_v59, %v9581_v39  ;;  %v7754_v53 = vpack.c.b16 %v7737_v4, %v7736_v56  ;;  %v7670_v6 = vrot.slane %v7668_v23, 4  ;;  %v11782_v7 = vrot.slane %v7955_v60, 9 }
 0x4ad   : > { %v9521_v29 = vrot.slane %v15733_v62, 5  ;;  %v7673_v39 = vrot.slane %v7671_v43, 5  ;;  %v7684_v59 = vor.u32 %v7683_v54, %v15728_v35  ;;  %v8108_v13 = vrot.slane %v15649_v30, 5  ;;  %v15757_v54 = vpop.f32.mrf.mxu0 }
 0x4ae   : > { %16618 = vst [vmem:[#allocation4_spill] sm:$0xff] %v15735_v41  ;;  %v12005_v12 = vrot.slane %v9377_v10, 9  ;;  %v8106_v60 = vsel %vm12988_vm13, %v11782_v7, %v8105_v36  ;;  %v8107_v23 = vrot.slane %v8105_v36, 4  ;;  %v8976_v4 = vrot.slane %v8974_v3, 5  ;;  %v12270_v36 = vld [vmem:[#allocation3 + $0x84] sm:$0xff] }
 0x4af   : > { %v9523_v41 = vrot.slane %v9521_v29, 4  ;;  %v9524_v43 = vrot.slane %v15742_v1, 5  ;;  %v7687_v10 = vshll.u32 %v15745_v61, 16  ;;  %v8990_v3 = vshll.u32 %v15528_v33, 16  ;;  %v16623_v33 = vld [vmem:[#allocation29_spill] sm:$0xff] }
 0x4b0   : > { %v7859_v37 = vpop.f32.mrf.mxu1  ;;  %v8257_v55 = vpop.f32.mrf.mxu2  ;;  %v9522_v27 = vsel %vm12988_vm13, %v12005_v12, %v9521_v29  ;;  %v8162_v7 = vunpack.c.l.b16 %v8106_v60 }
 0x4b1   : > { %v15749_v46 = vadd.f32 %v7859_v37, %v7239_v17  ;;  %v8336_v56 = vadd.f32 %v8257_v55, %v15364_v48  ;;  %v8572_v5 = vpop.f32.mrf.mxu3  ;;  %v8987_v48 = vor.u32 %v8986_v58, %v15739_v38  ;;  %v8109_v17 = vsel %vm12988_vm13, %v8107_v23, %v8108_v13  ;;  %v16622_v23 = vld [vmem:[#allocation30_spill] sm:$0xff] }
 0x4b2   : > { %v8163_v37 = vunpack.c.l.b16 %v8109_v17  ;;  %v9525_v29 = vsel %vm12988_vm13, %v9523_v41, %v9524_v43  ;;  %v7685_v55 = vrot.slane %v7684_v59, 4  ;;  %v9583_v12 = vunpack.c.l.b16 %v9522_v27 }
 0x4b3   : > { %16621 = vst [vmem:[#allocation9_spill] sm:$0xff] %v15749_v46  ;;  %7898 = vmatmul.bf16.gmra.mxu1 %v7754_v53  ;;  %v15759_v30 = vadd.f32 %v8572_v5, %v8336_v56  ;;  %v7674_v53 = vor.u32 %v7673_v39, %v7670_v6  ;;  %v9584_v56 = vunpack.c.l.b16 %v9525_v29  ;;  %v9172_v58 = vpack.c.b16 %v9150_v14, %v15685_v44  ;;  %v9378_v29 = vld [vmem:[#allocation3 + $0xc0] sm:$0xe] }
 0x4b4   : > { %8299 = vmatmul.bf16.gmra.mxu2 %v15278_v21  ;;  %v8977_v5 = vor.u32 %v8976_v4, %v15730_v45  ;;  %v15771_v13 = vpack.c.b16 %v8163_v37, %v8162_v7  ;;  %v7240_v60 = vadd.f32 %v16623_v33, %v16622_v23  ;;  %v7689_v17 = vrot.slane %v7687_v10, 5  ;;  %v8715_v7 = vld [vmem:[#allocation3 + $0x9c] sm:$0xf]  ;;  %v15794_v37 = vld [vmem:[#allocation3 + $0xc4] sm:$0xf] }
 0x4b5   : > { %v8988_v46 = vrot.slane %v8987_v48, 4  ;;  %v15775_v20 = vpack.c.b16 %v9584_v56, %v9583_v12  ;;  %v8992_v6 = vrot.slane %v8990_v3, 5  ;;  %v7675_v14 = vrot.slane %v7674_v53, 4  ;;  %v15789_v3 = vpop.f32.mrf.mxu0  ;;  %v16624_v56 = vld [vmem:[#allocation32_spill] sm:$0xff]  ;;  %v15801_v23 = vld [vmem:[#allocation3 + $0xc8] sm:$0x1] }
 0x4b6   : > { %8614 = vmatmul.bf16.gmra.mxu3 %v12270_v36  ;;  %v7690_v45 = vsel %vm12584_vm7, %v7685_v55, %v7689_v17  ;;  %v8978_v43 = vrot.slane %v8977_v5, 4  ;;  %v7956_v36 = vld [vmem:[#allocation3 + $0xc0] sm:$0xe]  ;;  %v8112_v12 = vrot.slane %v15688_v9, 5  ;;  %v9008_v5 = vshrl.u32 %v15639_v18, 16 }
 0x4b7   : > { %v7680_v27 = vsel %vm12584_vm7, %v7675_v14, %v15728_v35  ;;  %v8993_v10 = vsel %vm12584_vm7, %v8988_v46, %v8992_v6  ;;  %v7739_v48 = vunpack.c.l.b16 %v7690_v45  ;;  %v9004_v35 = vshll.u32 %v15639_v18, 16  ;;  %v16625_v46 = vld [vmem:[#allocation33_spill] sm:$0xff] }
 0x4b8   : > { %v7861_v41 = vpop.f32.mrf.mxu1  ;;  %9296 = vmatmul.bf16.gmra.mxu0 %v9172_v58  ;;  %v8260_v21 = vpop.f32.mrf.mxu2  ;;  %v7738_v53 = vunpack.c.l.b16 %v7680_v27  ;;  %v9152_v55 = vunpack.c.l.b16 %v8993_v10  ;;  %v7241_v58 = vadd.f32 %v16625_v46, %v16624_v56  ;;  %v11783_v33 = vrot.slane %v7956_v36, 9 }
 0x4b9   : > { %v15777_v39 = vadd.f32 %v7861_v41, %v7240_v60  ;;  %v8337_v59 = vadd.f32 %v8260_v21, %v15399_v40  ;;  %v8575_v44 = vpop.f32.mrf.mxu3  ;;  %v8983_v40 = vsel %vm12584_vm7, %v8978_v43, %v15739_v38  ;;  %v9528_v38 = vrot.slane %v15794_v37, 5 }
 0x4ba   : > { %v7755_v17 = vpack.c.b16 %v7739_v48, %v7738_v53  ;;  %v8995_v21 = vshrl.u32 %v8715_v7, 16  ;;  %v8115_v6 = vrot.slane %v15745_v61, 5  ;;  %v8113_v18 = vsel %vm12988_vm13, %v11783_v33, %v8112_v12  ;;  %v12271_v53 = vld [vmem:[#allocation3 + $0x90] sm:$0xff] }
 0x4bb   : > { %v15782_v4 = vadd.f32 %v8575_v44, %v8337_v59  ;;  %v12006_v59 = vrot.slane %v9378_v29, 9  ;;  %v8114_v45 = vrot.slane %v8112_v12, 4  ;;  %v8998_v27 = vshll.u32 %v8715_v7, 16 }
 0x4bc   : > { %v9530_v10 = vrot.slane %v9528_v38, 4  ;;  %v9531_v48 = vrot.slane %v15801_v23, 5  ;;  %v9006_v61 = vrot.slane %v9004_v35, 5  ;;  %v9010_v29 = vrot.slane %v9008_v5, 4 }
 0x4bd   : > { %v9529_v43 = vsel %vm12988_vm13, %v12006_v59, %v9528_v38  ;;  %v9151_v56 = vunpack.c.l.b16 %v8983_v40  ;;  %v8164_v46 = vunpack.c.l.b16 %v8113_v18  ;;  %v15822_v5 = vpop.f32.mrf.mxu0 }
 0x4be   : > { %v9532_v7 = vsel %vm12988_vm13, %v9530_v10, %v9531_v48  ;;  %v9585_v12 = vunpack.c.l.b16 %v9529_v43  ;;  %v9011_v59 = vor.u32 %v9010_v29, %v9006_v61  ;;  %v16629_v29 = vld [vmem:[#allocation38_spill] sm:$0xff] }
 0x4bf   : > { %v9586_v33 = vunpack.c.l.b16 %v9532_v7  ;;  %v9173_v38 = vpack.c.b16 %v9152_v55, %v9151_v56  ;;  %v9028_v7 = vshll.u32 %v15674_v42, 16 }
 0x4c0   : > { %v7864_v60 = vpop.f32.mrf.mxu1  ;;  %v8262_v41 = vpop.f32.mrf.mxu2  ;;  %v9012_v10 = vrot.slane %v9011_v59, 4 }
 0x4c1   : > { %v15805_v44 = vadd.f32 %v7864_v60, %v7241_v58  ;;  %v8338_v9 = vadd.f32 %v8262_v41, %v15432_v32  ;;  %v8577_v14 = vpop.f32.mrf.mxu3  ;;  %v8116_v32 = vsel %vm12988_vm13, %v8114_v45, %v8115_v6  ;;  %v8997_v60 = vrot.slane %v8995_v21, 4  ;;  %v16626_v41 = vld [vmem:[#allocation34_spill] sm:$0xff]  ;;  %v16627_v6 = vld [vmem:[#allocation35_spill] sm:$0xff] }
 0x4c2   : > { %v8165_v58 = vunpack.c.l.b16 %v8116_v32  ;;  %v7242_v40 = vadd.f32 %v16627_v6, %v16626_v41  ;;  %v9014_v21 = vshll.u32 %v15667_v31, 16 }
 0x4c3   : > { %7903 = vmatmul.bf16.gmra.mxu1 %v7755_v17  ;;  %v15813_v36 = vadd.f32 %v8577_v14, %v8338_v9  ;;  %v9000_v17 = vrot.slane %v8998_v27, 5  ;;  %v15826_v9 = vpack.c.b16 %v9586_v33, %v9585_v12 }
 0x4c4   : > { %8304 = vmatmul.bf16.gmra.mxu2 %v15354_v47  ;;  %v15820_v35 = vpack.c.b16 %v8165_v58, %v8164_v46  ;;  %v9016_v48 = vrot.slane %v9014_v21, 5  ;;  %v8718_v58 = vld [vmem:[#allocation3 + $0xa8] sm:$0xf] }
 0x4c5   : > { %v9001_v27 = vor.u32 %v9000_v17, %v8997_v60  ;;  %v15845_v41 = vpop.f32.mrf.mxu0  ;;  %v9022_v59 = vshll.u32 %v8718_v58, 16 }
 0x4c6   : > { %8619 = vmatmul.bf16.gmra.mxu3 %v12271_v53  ;;  %v16628_v53 = vld [vmem:[#allocation37_spill] sm:$0xff]  ;;  %v9017_v46 = vsel %vm12584_vm7, %v9012_v10, %v9016_v48 }
 0x4c7   : > { %v9002_v32 = vrot.slane %v9001_v27, 4  ;;  %v7243_v56 = vadd.f32 %v16629_v29, %v16628_v53  ;;  %v9154_v6 = vunpack.c.l.b16 %v9017_v46  ;;  %v9024_v10 = vrot.slane %v9022_v59, 5  ;;  %v16632_v48 = vld [vmem:[#allocation41_spill] sm:$0xff] }
 0x4c8   : > { %v7866_v14 = vpop.f32.mrf.mxu1  ;;  %9301 = vmatmul.bf16.gmra.mxu0 %v9173_v38  ;;  %v8265_v18 = vpop.f32.mrf.mxu2 }
 0x4c9   : > { %v15828_v47 = vadd.f32 %v7866_v14, %v7242_v40  ;;  %v8339_v45 = vadd.f32 %v8265_v18, %v15465_v57  ;;  %v8580_v55 = vpop.f32.mrf.mxu3  ;;  %v9032_v57 = vshrl.u32 %v15674_v42, 16  ;;  %v9007_v17 = vsel %vm12584_vm7, %v9002_v32, %v9006_v61  ;;  %v16630_v14 = vld [vmem:[#allocation6_spill] sm:$0xff]  ;;  %v16631_v61 = vld [vmem:[#allocation39_spill] sm:$0xff] }
 0x4ca   : > { %v9019_v40 = vshrl.u32 %v8718_v58, 16  ;;  %v9030_v42 = vrot.slane %v9028_v7, 5  ;;  %v9153_v21 = vunpack.c.l.b16 %v9007_v17  ;;  %v7244_v32 = vadd.f32 %v16632_v48, %v16631_v61  ;;  %v16634_v48 = vld [vmem:[#allocation28_spill] sm:$0xff] }
 0x4cb   : > { %v15832_v43 = vadd.f32 %v8580_v55, %v8339_v45  ;;  %v9034_v45 = vrot.slane %v9032_v57, 4  ;;  %v12272_v55 = vld [vmem:[#allocation3 + $0x9c] sm:$0xff]  ;;  %v9038_v57 = vshll.u32 %v15696_v11, 16 }
 0x4cc   : > { %v9021_v27 = vrot.slane %v9019_v40, 4 }
 0x4cd   : > { %v9035_v53 = vor.u32 %v9034_v45, %v9030_v42  ;;  %v9056_v45 = vshrl.u32 %v15733_v62, 16 }
 0x4d0   : > { %v7869_v12 = vpop.f32.mrf.mxu1  ;;  %v8267_v33 = vpop.f32.mrf.mxu2 }
 0x4d1   : > { %v15840_v31 = vadd.f32 %v7869_v12, %v7243_v56  ;;  %v8340_v38 = vadd.f32 %v8267_v33, %v15502_v19  ;;  %v8582_v60 = vpop.f32.mrf.mxu3  ;;  %v9174_v19 = vpack.c.b16 %v9154_v6, %v9153_v21  ;;  %v9025_v12 = vor.u32 %v9024_v10, %v9021_v27  ;;  %v16633_v6 = vld [vmem:[#allocation42_spill] sm:$0xff] }
 0x4d2   : > { %v9036_v33 = vrot.slane %v9035_v53, 4  ;;  %v7245_v40 = vadd.f32 %v15275_v28, %v16633_v6  ;;  %v9062_v6 = vshll.u32 %v15742_v1, 16 }
 0x4d3   : > { %9677 = vmatmul.bf16.vlgmr.msra.gmra.mxu1 %v16630_v14  ;;  %v15848_v18 = vadd.f32 %v8582_v60, %v8340_v38  ;;  %v15859_v38 = vpop.f32.mrf.mxu0  ;;  %v9040_v60 = vrot.slane %v9038_v57, 5  ;;  %v9026_v17 = vrot.slane %v9025_v12, 4  ;;  %v8721_v14 = vld [vmem:[#allocation3 + $0xb4] sm:$0xf] }
 0x4d4   : > { %8309 = vmatmul.bf16.gmra.mxu2 %v15555_v49  ;;  %v9043_v28 = vshrl.u32 %v8721_v14, 16  ;;  %v9046_v53 = vshll.u32 %v8721_v14, 16  ;;  %v9064_v14 = vrot.slane %v9062_v6, 5  ;;  %v9086_v6 = vshll.u32 %v15801_v23, 16 }
 0x4d5   : > { %v9041_v59 = vsel %vm12584_vm7, %v9036_v33, %v9040_v60  ;;  %v9031_v27 = vsel %vm12584_vm7, %v9026_v17, %v9030_v42  ;;  %v7246_v42 = vadd.f32 %v15319_v25, %v15272_v0 }
 0x4d6   : > { %8624 = vmatmul.bf16.gmra.mxu3 %v12272_v55  ;;  %v9156_v61 = vunpack.c.l.b16 %v9041_v59  ;;  %v9045_v57 = vrot.slane %v9043_v28, 4  ;;  %v9048_v12 = vrot.slane %v9046_v53, 5 }
 0x4d8   : > { %v7871_v29 = vpop.f32.mrf.mxu1  ;;  %9306 = vmatmul.bf16.gmra.mxu0 %v9174_v19  ;;  %v8270_v56 = vpop.f32.mrf.mxu2 }
 0x4d9   : > { %v15853_v46 = vadd.f32 %v7871_v29, %v7244_v32  ;;  %v8341_v58 = vadd.f32 %v8270_v56, %v15534_v8  ;;  %v8585_v7 = vpop.f32.mrf.mxu3  ;;  %v9052_v8 = vshll.u32 %v15733_v62, 16  ;;  %v9058_v56 = vrot.slane %v9056_v45, 4  ;;  %v12273_v62 = vld [vmem:[#allocation3 + $0xa8] sm:$0xff] }
 0x4da   : > { %v9080_v45 = vshrl.u32 %v15794_v37, 16 }
 0x4db   : > { %v15857_v49 = vadd.f32 %v8585_v7, %v8341_v58  ;;  %v9054_v29 = vrot.slane %v9052_v8, 5  ;;  %v9155_v58 = vunpack.c.l.b16 %v9031_v27  ;;  %v15876_v7 = vpop.f32.mrf.mxu0  ;;  %v9076_v8 = vshll.u32 %v15794_v37, 16 }
 0x4dc   : > { %v9082_v37 = vrot.slane %v9080_v45, 4 }
 0x4dd   : > { %v9059_v33 = vor.u32 %v9058_v56, %v9054_v29  ;;  %v9078_v53 = vrot.slane %v9076_v8, 5  ;;  %v16636_v56 = vld [vmem:[#allocation31_spill] sm:$0xff]  ;;  %v9088_v8 = vrot.slane %v9086_v6, 5 }
 0x4df   : > { %v9060_v59 = vrot.slane %v9059_v33, 4  ;;  %v16638_v33 = vld [vmem:[#allocation48_spill] sm:$0xff] }
 0x4e0   : > { %v7874_v11 = vpop.f32.mrf.mxu1  ;;  %v8272_v55 = vpop.f32.mrf.mxu2 }
 0x4e1   : > { %v15867_v21 = vadd.f32 %v7874_v11, %v7245_v40  ;;  %v8342_v19 = vadd.f32 %v8272_v55, %v15568_v22  ;;  %v8587_v10 = vpop.f32.mrf.mxu3  ;;  %v9175_v22 = vpack.c.b16 %v9156_v61, %v9155_v58  ;;  %v9049_v40 = vor.u32 %v9048_v12, %v9045_v57  ;;  %v16635_v11 = vld [vmem:[#allocation45_spill] sm:$0xff]  ;;  %v16637_v12 = vld [vmem:[#allocation44_spill] sm:$0xff] }
 0x4e2   : > { %v7247_v0 = vadd.f32 %v16635_v11, %v15298_v63  ;;  %v9065_v55 = vsel %vm12584_vm7, %v9060_v59, %v9064_v14  ;;  %v12274_v63 = vld [vmem:[#allocation3 + $0xb4] sm:$0xff]  ;;  %v9083_v57 = vor.u32 %v9082_v37, %v9078_v53  ;;  %v15913_v37 = vld [vmem:[#allocation3 + $0xd0] sm:$0xf] }
 0x4e3   : > { %9682 = vmatmul.bf16.gmra.mxu1 %v16634_v48  ;;  %v15873_v32 = vadd.f32 %v8587_v10, %v8342_v19  ;;  %v9050_v25 = vrot.slane %v9049_v40, 4  ;;  %v15889_v19 = vpop.f32.mrf.mxu0  ;;  %v9158_v28 = vunpack.c.l.b16 %v9065_v55  ;;  %v16639_v11 = vld [vmem:[#allocation47_spill] sm:$0xff] }
 0x4e4   : > { %8314 = vmatmul.bf16.gmra.mxu2 %v15628_v24  ;;  %v8724_v24 = vld [vmem:[#allocation3 + $0xc0] sm:$0xf] }
 0x4e5   : > { %v9055_v1 = vsel %vm12584_vm7, %v9050_v25, %v9054_v29  ;;  %v9067_v61 = vshrl.u32 %v8724_v24, 16  ;;  %v9070_v48 = vshll.u32 %v8724_v24, 16  ;;  %v9084_v24 = vrot.slane %v9083_v57, 4 }
 0x4e6   : > { %8629 = vmatmul.bf16.gmra.mxu3 %v12273_v62  ;;  %v9157_v62 = vunpack.c.l.b16 %v9055_v1 }
 0x4e7   : > { %v9089_v45 = vsel %vm12584_vm7, %v9084_v24, %v9088_v8  ;;  %v16643_v24 = vld [vmem:[#allocation7_spill] sm:$0xff] }
 0x4e8   : > { %v7876_v60 = vpop.f32.mrf.mxu1  ;;  %9311 = vmatmul.bf16.gmra.mxu0 %v9175_v22  ;;  %v9176_v58 = vpack.c.b16 %v9158_v28, %v9157_v62  ;;  %v9069_v22 = vrot.slane %v9067_v61, 4  ;;  %v9160_v23 = vunpack.c.l.b16 %v9089_v45  ;;  %v16641_v61 = vld [vmem:[#allocation36_spill] sm:$0xff]  ;;  %v12275_v62 = vld [vmem:[#allocation3 + $0xc0] sm:$0xff] }
 0x4e9   : > { %v15880_v17 = vadd.f32 %v7876_v60, %v7246_v42  ;;  %v9072_v42 = vrot.slane %v9070_v48, 5  ;;  %v7248_v60 = vadd.f32 %v16638_v33, %v16637_v12  ;;  %v8727_v48 = vld [vmem:[#allocation3 + $0xcc] sm:$0xf] }
 0x4eb   : > { %v15902_v59 = vpop.f32.mrf.mxu0  ;;  %v9073_v14 = vor.u32 %v9072_v42, %v9069_v22  ;;  %v9094_v22 = vshll.u32 %v8727_v48, 16  ;;  %v9100_v42 = vshll.u32 %v15913_v37, 16 }
 0x4f0   : > { %v7879_v27 = vpop.f32.mrf.mxu1 }
 0x4f1   : > { %v15891_v10 = vadd.f32 %v7879_v27, %v7247_v0  ;;  %v16640_v0 = vld [vmem:[#allocation11_spill] sm:$0xff] }
 0x4f2   : > { %v7249_v25 = vadd.f32 %v16640_v0, %v16639_v11 }
 0x4f3   : > { %9687 = vmatmul.bf16.gmra.mxu1 %v16636_v56  ;;  %v15915_v56 = vld [vmem:[#allocation3 + $0xd4] sm:$0x1] }
 0x4f4   : > { %8319 = vmatmul.bf16.gmra.mxu2 %v15706_v16  ;;  %v9074_v16 = vrot.slane %v9073_v14, 4  ;;  %v9110_v12 = vshll.u32 %v15915_v56, 16  ;;  %v16642_v14 = vld [vmem:[#allocation49_spill] sm:$0xff] }
 0x4f5   : > { %v7250_v8 = vadd.f32 %v16643_v24, %v16642_v14  ;;  %v16650_v24 = vld [vmem:[#allocation16_spill] sm:$0xff] }
 0x4f6   : > { %8634 = vmatmul.bf16.gmra.mxu3 %v12274_v63  ;;  %v9079_v27 = vsel %vm12584_vm7, %v9074_v16, %v9078_v53  ;;  %v15917_v63 = vpop.f32.mrf.mxu0  ;;  %v9104_v53 = vshrl.u32 %v15913_v37, 16 }
 0x4f7   : > { %v9159_v28 = vunpack.c.l.b16 %v9079_v27 }
 0x4f8   : > { %v7881_v29 = vpop.f32.mrf.mxu1  ;;  %9316 = vmatmul.bf16.gmra.mxu0 %v9176_v58  ;;  %v9091_v58 = vshrl.u32 %v8727_v48, 16  ;;  %v9106_v6 = vrot.slane %v9104_v53, 4  ;;  %v16645_v48 = vld [vmem:[#allocation15_spill] sm:$0xff] }
 0x4f9   : > { %v15900_v40 = vadd.f32 %v7881_v29, %v7248_v60  ;;  %v9177_v57 = vpack.c.b16 %v9160_v23, %v9159_v28  ;;  %v9096_v60 = vrot.slane %v9094_v22, 5  ;;  %v9102_v29 = vrot.slane %v9100_v42, 5  ;;  %v16644_v28 = vld [vmem:[#allocation12_spill] sm:$0xff] }
 0x4fa   : > { %v9093_v33 = vrot.slane %v9091_v58, 4 }
 0x4fb   : > { %v9107_v11 = vor.u32 %v9106_v6, %v9102_v29 }
 0x4fc   : > { %v9097_v45 = vor.u32 %v9096_v60, %v9093_v33  ;;  %v16648_v60 = vld [vmem:[#allocation14_spill] sm:$0xff] }
 0x4fd   : > { %v7252_v26 = vadd.f32 %v15578_v15, %v16648_v60  ;;  %v16655_v15 = vld [vmem:[#allocation5_spill] sm:$0xff] }
 0x500   : > { %v7884_v55 = vpop.f32.mrf.mxu1 }
 0x501   : > { %v15910_v1 = vadd.f32 %v7884_v55, %v7249_v25  ;;  %v9112_v25 = vrot.slane %v9110_v12, 5  ;;  %v9098_v55 = vrot.slane %v9097_v45, 4  ;;  %v16647_v12 = vld [vmem:[#allocation40_spill] sm:$0xff] }
 0x503   : > { %9692 = vmatmul.bf16.gmra.mxu1 %v16641_v61  ;;  %v9103_v27 = vsel %vm12584_vm7, %v9098_v55, %v9102_v29  ;;  %v15931_v61 = vpop.f32.mrf.mxu0 }
 0x504   : > { %8324 = vmatmul.bf16.gmra.mxu2 %v15771_v13  ;;  %v9108_v13 = vrot.slane %v9107_v11, 4  ;;  %v9161_v22 = vunpack.c.l.b16 %v9103_v27  ;;  %v16652_v11 = vld [vmem:[#allocation43_spill] sm:$0xff]  ;;  %v7255_v27 = vadd.f32 %v16655_v15, %v15580_v51  ;;  %v16663_v51 = vld [vmem:[#allocation24_spill] sm:$0xff] }
 0x505   : > { %v7258_v60 = vadd.f32 %v15822_v5, %v16663_v51 }
 0x506   : > { %8639 = vmatmul.bf16.gmra.mxu3 %v12275_v62  ;;  %v9113_v23 = vsel %vm12584_vm7, %v9108_v13, %v9112_v25  ;;  %v7251_v62 = vadd.f32 %v16645_v48, %v16644_v28  ;;  %v16653_v25 = vld [vmem:[#allocation19_spill] sm:$0xff]  ;;  %v16657_v48 = vld [vmem:[#allocation46_spill] sm:$0xff] }
 0x507   : > { %v9162_v42 = vunpack.c.l.b16 %v9113_v23 }
 0x508   : > { %v7886_v16 = vpop.f32.mrf.mxu1  ;;  %9321 = vmatmul.bf16.gmra.mxu0 %v9177_v57  ;;  %v12276_v57 = vld [vmem:[#allocation3 + $0xcc] sm:$0xff] }
 0x509   : > { %v15925_v0 = vadd.f32 %v7886_v16, %v7250_v8  ;;  %v9178_v33 = vpack.c.b16 %v9162_v42, %v9161_v22  ;;  %v7253_v8 = vadd.f32 %v15613_v34, %v16650_v24  ;;  %v16658_v34 = vld [vmem:[#allocation17_spill] sm:$0xff]  ;;  %v16660_v42 = vld [vmem:[#allocation22_spill] sm:$0xff] }
 0x50a   : > { %v15977_v24 = vld [vmem:[%s16440_s5] ss:$0 sm:$0xff] }
 0x50b   : > { %v15941_v29 = vpop.f32.mrf.mxu0 }
 0x510   : > { %v7889_v58 = vpop.f32.mrf.mxu1 }
 0x511   : > { %v15935_v53 = vadd.f32 %v7889_v58, %v7251_v62  ;;  %v7256_v62 = vadd.f32 %v15757_v54, %v16658_v34  ;;  %v9332_v54 = vadd.f32 %v15845_v41, %v15726_v2  ;;  %v9333_v41 = vadd.f32 %v15859_v38, %v15759_v30 }
 0x512   : > { %v9334_v34 = vadd.f32 %v15876_v7, %v15782_v4 }
 0x513   : > { %16646 = vst [vmem:[#allocation8_spill] sm:$0xff] %v15935_v53  ;;  %9697 = vmatmul.bf16.gmra.mxu1 %v16647_v12 }
 0x514   : > { %8329 = vmatmul.bf16.gmra.mxu2 %v15820_v35  ;;  %v7254_v35 = vadd.f32 %v15656_v52, %v16653_v25  ;;  %v7257_v52 = vadd.f32 %v15789_v3, %v16660_v42 }
 0x516   : > { %8644 = vmatmul.bf16.gmra.mxu3 %v12276_v57 }
 0x518   : > { %v7891_v6 = vpop.f32.mrf.mxu1  ;;  %9326 = vmatmul.bf16.gmra.mxu0 %v9178_v33  ;;  %v16662_v33 = vld [vmem:[#allocation10_spill] sm:$0xff] }
 0x519   : > { %v15943_v14 = vadd.f32 %v7891_v6, %v7252_v26 }
 0x51b   : > { %16649 = vst [vmem:[#allocation30_spill] sm:$0xff] %v15943_v14 }
 0x520   : > { %v7894_v16 = vpop.f32.mrf.mxu1 }
 0x521   : > { %v15947_v45 = vadd.f32 %v7894_v16, %v7253_v8  ;;  %v15982_v16 = vld [vmem:[%s16441_s6] ss:$0 sm:$0xff] }
 0x523   : > { %16651 = vst [vmem:[#allocation29_spill] sm:$0xff] %v15947_v45  ;;  %9702 = vmatmul.bf16.gmra.mxu1 %v16652_v11  ;;  %v16665_v11 = vld [vmem:[#allocation26_spill] sm:$0xff] }
 0x528   : > { %v7896_v55 = vpop.f32.mrf.mxu1 }
 0x529   : > { %v15952_v13 = vadd.f32 %v7896_v55, %v7254_v35  ;;  %v15989_v55 = vpop.f32.mrf.mxu2 }
 0x52b   : > { %16654 = vst [vmem:[#allocation32_spill] sm:$0xff] %v15952_v13 }
 0x530   : > { %v7899_v23 = vpop.f32.mrf.mxu1 }
 0x531   : > { %v15956_v28 = vadd.f32 %v7899_v23, %v7255_v27  ;;  %v15999_v30 = vpop.f32.mrf.mxu2 }
 0x533   : > { %16656 = vst [vmem:[#allocation33_spill] sm:$0xff] %v15956_v28  ;;  %9707 = vmatmul.bf16.gmra.mxu1 %v16657_v48 }
 0x538   : > { %v7901_v58 = vpop.f32.mrf.mxu1 }
 0x539   : > { %v15961_v22 = vadd.f32 %v7901_v58, %v7256_v62  ;;  %v15996_v58 = vpop.f32.mrf.mxu3 }
 0x53b   : > { %16659 = vst [vmem:[#allocation34_spill] sm:$0xff] %v15961_v22 }
 0x540   : > { %v7904_v57 = vpop.f32.mrf.mxu1 }
 0x541   : > { %v15965_v12 = vadd.f32 %v7904_v57, %v7257_v52  ;;  %v16666_v52 = vld [vmem:[#allocation13_spill] sm:$0xff]  ;;  %v16003_v57 = vpop.f32.mrf.mxu0 }
 0x543   : > { %16661 = vst [vmem:[#allocation35_spill] sm:$0xff] %v15965_v12  ;;  %9712 = vmatmul.bf16.gmra.mxu1 %v16662_v33 }
 0x548   : > { %v7906_v26 = vpop.f32.mrf.mxu1 }
 0x549   : > { %v15970_v6 = vadd.f32 %v7906_v26, %v7258_v60  ;;  %v9335_v60 = vadd.f32 %v15889_v19, %v15813_v36 }
 0x54b   : > { %16664 = vst [vmem:[#allocation37_spill] sm:$0xff] %v15970_v6  ;;  %v16667_v6 = vld [vmem:[#allocation18_spill] sm:$0xff] }
 0x550   : > { %v9678_v3 = vpop.f32.mrf.mxu1 }
 0x551   : > { %v9758_v8 = vadd.f32 %v9678_v3, %v9332_v54  ;;  %v16009_v54 = vpop.f32.mrf.mxu3 }
 0x553   : > { %v9793_v5 = vmul.f32 %v15977_v24, %v9758_v8  ;;  %9717 = vmatmul.bf16.gmra.mxu1 %v16665_v11 }
 0x555   : > { %v9828_v25 = vadd.f32 %v15982_v16, %v9793_v5 }
 0x557   : > { %v9860_v2 = vmax.f32 %v9828_v25, 0.0 }
 0x558   : > { %v9680_v35 = vpop.f32.mrf.mxu1 }
 0x559   : > { %9892 = vst [vmem:[%s12441_s15] sm:$0xff] %v9860_v2  ;;  %v9759_v15 = vadd.f32 %v9680_v35, %v9333_v41  ;;  %v16013_v35 = vpop.f32.mrf.mxu2 }
 0x55b   : > { %v9794_v27 = vmul.f32 %v15977_v24, %v9759_v15 }
 0x55d   : > { %v9829_v23 = vadd.f32 %v15982_v16, %v9794_v27 }
 0x55f   : > { %v9861_v48 = vmax.f32 %v9829_v23, 0.0 }
 0x560   : > { %v9683_v62 = vpop.f32.mrf.mxu1 }
 0x561   : > { %9893 = vst [vmem:[%s12441_s15 + $0x8] sm:$0xff] %v9861_v48  ;;  %v9760_v42 = vadd.f32 %v9683_v62, %v9334_v34  ;;  %v16018_v62 = vpop.f32.mrf.mxu0 }
 0x563   : > { %v9795_v38 = vmul.f32 %v15977_v24, %v9760_v42  ;;  %9722 = vmatmul.bf16.gmra.mxu1 %v16666_v52 }
 0x565   : > { %v9830_v33 = vadd.f32 %v15982_v16, %v9795_v38  ;;  %v9336_v38 = vadd.f32 %v15902_v59, %v15832_v43  ;;  %v16026_v59 = vpop.f32.mrf.mxu3 }
 0x567   : > { %v9862_v51 = vmax.f32 %v9830_v33, 0.0 }
 0x568   : > { %v9685_v4 = vpop.f32.mrf.mxu1 }
 0x569   : > { %9894 = vst [vmem:[%s12441_s15 + $0x10] sm:$0xff] %v9862_v51  ;;  %v9924_v7 = vmax.f32 %v9860_v2, %v9862_v51  ;;  %v9761_v26 = vadd.f32 %v9685_v4, %v9335_v60 }
 0x56b   : > { %v9956_v3 = vrot.slane %v9924_v7, 2  ;;  %v9957_v8 = vrot.slane %v9924_v7, 4  ;;  %v9958_v5 = vrot.slane %v9924_v7, 6  ;;  %v10053_v11 = vsel %vm10052_vm14, %v9924_v7, -inf }
 0x56c   : > { %v10054_v25 = vrot.slane %v10053_v11, 4  ;;  %v9796_v41 = vmul.f32 %v15977_v24, %v9761_v26 }
 0x56d   : > { %v10060_v15 = vsel %vm10052_vm14, %v9956_v3, -inf  ;;  %v10067_v36 = vsel %vm10052_vm14, %v9957_v8, -inf  ;;  %v10074_v19 = vsel %vm10052_vm14, %v9958_v5, -inf }
 0x56e   : > { %v10055_v2 = vmax.f32 %v10053_v11, %v10054_v25  ;;  %v10061_v27 = vrot.slane %v10060_v15, 4  ;;  %v10068_v23 = vrot.slane %v10067_v36, 4  ;;  %v10075_v34 = vrot.slane %v10074_v19, 4 }
 0x56f   : > { %v9831_v42 = vadd.f32 %v15982_v16, %v9796_v41 }
 0x570   : > { %v10056_v52 = vrot.slane %v10055_v2, 2  ;;  %v10062_v33 = vmax.f32 %v10060_v15, %v10061_v27  ;;  %v10069_v51 = vmax.f32 %v10067_v36, %v10068_v23  ;;  %v10076_v60 = vmax.f32 %v10074_v19, %v10075_v34  ;;  %v9688_v4 = vpop.f32.mrf.mxu1 }
 0x571   : > { %v9863_v7 = vmax.f32 %v9831_v42, 0.0  ;;  %v9762_v26 = vadd.f32 %v9688_v4, %v9336_v38  ;;  %v16029_v38 = vpop.f32.mrf.mxu2 }
 0x572   : > { %v10057_v3 = vmax.f32 %v10055_v2, %v10056_v52  ;;  %v10063_v8 = vrot.slane %v10062_v33, 2  ;;  %v10070_v5 = vrot.slane %v10069_v51, 2  ;;  %v10077_v11 = vrot.slane %v10076_v60, 2 }
 0x573   : > { %9895 = vst [vmem:[%s12441_s15 + $0x18] sm:$0xff] %v9863_v7  ;;  %v9925_v25 = vmax.f32 %v9861_v48, %v9863_v7  ;;  %9727 = vmatmul.bf16.gmra.mxu1 %v16667_v6  ;;  %v9797_v43 = vmul.f32 %v15977_v24, %v9762_v26  ;;  %v9337_v7 = vadd.f32 %v15917_v63, %v15848_v18 }
 0x574   : > { %v10064_v12 = vmax.f32 %v10062_v33, %v10063_v8  ;;  %v10071_v41 = vmax.f32 %v10069_v51, %v10070_v5  ;;  %v10058_v2 = vrot.slane %v10057_v3, 1  ;;  %v10078_v42 = vmax.f32 %v10076_v60, %v10077_v11  ;;  %v16036_v8 = vpop.f32.mrf.mxu0 }
 0x575   : > { %v9959_v15 = vrot.slane %v9925_v25, 2  ;;  %v9960_v36 = vrot.slane %v9925_v25, 4  ;;  %v9961_v19 = vrot.slane %v9925_v25, 6  ;;  %v10081_v27 = vsel %vm10052_vm14, %v9925_v25, -inf }
 0x576   : > { %v10065_v23 = vrot.slane %v10064_v12, 1  ;;  %v10072_v34 = vrot.slane %v10071_v41, 1  ;;  %v10082_v48 = vrot.slane %v10081_v27, 4  ;;  %v9832_v25 = vadd.f32 %v15982_v16, %v9797_v43 }
 0x577   : > { %v10088_v6 = vsel %vm10052_vm14, %v9959_v15, -inf  ;;  %v10095_v52 = vsel %vm10052_vm14, %v9960_v36, -inf  ;;  %v10102_v33 = vsel %vm10052_vm14, %v9961_v19, -inf  ;;  %v10059_v22 = vmax.f32 %v10057_v3, %v10058_v2  ;;  %v16047_v2 = vpop.f32.mrf.mxu3 }
 0x578   : > { %v10066_v51 = vmax.f32 %v10064_v12, %v10065_v23  ;;  %v10089_v4 = vrot.slane %v10088_v6, 4  ;;  %v9690_v26 = vpop.f32.mrf.mxu1  ;;  %v10083_v5 = vmax.f32 %v10081_v27, %v10082_v48  ;;  %v10096_v60 = vrot.slane %v10095_v52, 4 }
 0x579   : > { %v10103_v11 = vrot.slane %v10102_v33, 4  ;;  %v10079_v15 = vrot.slane %v10078_v42, 1  ;;  %v9763_v36 = vadd.f32 %v9690_v26, %v9337_v7  ;;  %v10073_v19 = vmax.f32 %v10071_v41, %v10072_v34  ;;  %v16051_v7 = vpop.f32.mrf.mxu2 }
 0x57a   : > { %v10090_v28 = vmax.f32 %v10088_v6, %v10089_v4  ;;  %v10084_v12 = vrot.slane %v10083_v5, 2  ;;  %v10097_v23 = vmax.f32 %v10095_v52, %v10096_v60  ;;  %v10566_v45 = vsel %vm10565_vm15, %v10066_v51, %v10059_v22 }
 0x57b   : > { %v10104_v13 = vmax.f32 %v10102_v33, %v10103_v11  ;;  %v9864_v63 = vmax.f32 %v9832_v25, 0.0  ;;  %v9798_v14 = vmul.f32 %v15977_v24, %v9763_v36  ;;  %v9338_v41 = vadd.f32 %v15931_v61, %v15857_v49  ;;  %v16668_v11 = vld [vmem:[#allocation27_spill] sm:$0xff] }
 0x57c   : > { %v10091_v18 = vrot.slane %v10090_v28, 2  ;;  %v10085_v27 = vmax.f32 %v10083_v5, %v10084_v12  ;;  %v10098_v48 = vrot.slane %v10097_v23, 2  ;;  %v10568_v22 = vsel %vm10567_vm0, %v10073_v19, %v10566_v45  ;;  %v16669_v12 = vld [vmem:[#allocation21_spill] sm:$0xff] }
 0x57d   : > { %v10105_v53 = vrot.slane %v10104_v13, 2  ;;  %9896 = vst [vmem:[%s12441_s15 + $0x20] sm:$0xff] %v9864_v63  ;;  %v16043_v3 = vadd.f32 %v15982_v16, %v9798_v14  ;;  %v10080_v33 = vmax.f32 %v10078_v42, %v10079_v15 }
 0x57e   : > { %v10092_v43 = vmax.f32 %v10090_v28, %v10091_v18  ;;  %v10086_v34 = vrot.slane %v10085_v27, 1  ;;  %v10099_v6 = vmax.f32 %v10097_v23, %v10098_v48  ;;  %v8343_v23 = vadd.f32 %v15989_v55, %v16669_v12 }
 0x57f   : > { %v10106_v52 = vmax.f32 %v10104_v13, %v10105_v53  ;;  %v9865_v28 = vmax.f32 %v16043_v3, 0.0  ;;  %v10570_v61 = vsel %vm10569_vm1, %v10080_v33, %v10568_v22  ;;  %v16057_v53 = vpop.f32.mrf.mxu0  ;;  %v9339_v48 = vadd.f32 %v15941_v29, %v15873_v32 }
 0x580   : > { %v10093_v51 = vrot.slane %v10092_v43, 1  ;;  %v9693_v4 = vpop.f32.mrf.mxu1  ;;  %v10087_v14 = vmax.f32 %v10085_v27, %v10086_v34  ;;  %v10100_v26 = vrot.slane %v10099_v6, 1 }
 0x581   : > { %v10107_v5 = vrot.slane %v10106_v52, 1  ;;  %v9764_v49 = vadd.f32 %v9693_v4, %v9338_v41  ;;  %9897 = vst [vmem:[%s12441_s15 + $0x28] sm:$0xff] %v9865_v28  ;;  %v16071_v41 = vpop.f32.mrf.mxu3 }
 0x582   : > { %v10094_v45 = vmax.f32 %v10092_v43, %v10093_v51  ;;  %v10101_v13 = vmax.f32 %v10099_v6, %v10100_v26  ;;  %v10572_v42 = vsel %vm10571_vm2, %v10087_v14, %v10570_v61  ;;  %v8658_v6 = vadd.f32 %v15996_v58, %v8343_v23 }
 0x583   : > { %v9799_v60 = vmul.f32 %v15977_v24, %v9764_v49  ;;  %9732 = vmatmul.bf16.gmra.mxu1 %v16668_v11  ;;  %v10108_v25 = vmax.f32 %v10106_v52, %v10107_v5  ;;  %v16075_v52 = vpop.f32.mrf.mxu2 }
 0x584   : > { %v10574_v15 = vsel %vm10573_vm3, %v10094_v45, %v10572_v42  ;;  %v9340_v11 = vadd.f32 %v16003_v57, %v8658_v6  ;;  %v16671_v57 = vld [vmem:[#allocation4_spill] sm:$0xff]  ;;  %v16672_v6 = vld [vmem:[#allocation25_spill] sm:$0xff] }
 0x585   : > { %v10576_v36 = vsel %vm10575_vm4, %v10101_v13, %v10574_v15  ;;  %v9834_v19 = vadd.f32 %v15982_v16, %v9799_v60  ;;  %v16670_v13 = vld [vmem:[#allocation20_spill] sm:$0xff] }
 0x586   : > { %v10578_v18 = vsel %vm10577_vm5, %v10108_v25, %v10576_v36  ;;  %v8344_v42 = vadd.f32 %v15999_v30, %v16670_v13 }
 0x587   : > { %10636 = vst [vmem:[%s12446_s19] sm:$0xff] %v10578_v18  ;;  %v9866_v27 = vmax.f32 %v9834_v19, 0.0  ;;  %v16079_v5 = vpop.f32.mrf.mxu0 }
 0x588   : > { %v9695_v43 = vpop.f32.mrf.mxu1 }
 0x589   : > { %9898 = vst [vmem:[%s12441_s15 + $0x30] sm:$0xff] %v9866_v27  ;;  %v9926_v22 = vmax.f32 %v9864_v63, %v9866_v27  ;;  %v9765_v34 = vadd.f32 %v9695_v43, %v9339_v48 }
 0x58b   : > { %v9962_v33 = vrot.slane %v9926_v22, 2  ;;  %v9963_v51 = vrot.slane %v9926_v22, 4  ;;  %v9964_v55 = vrot.slane %v9926_v22, 6  ;;  %v10109_v4 = vsel %vm10052_vm14, %v9926_v22, -inf }
 0x58c   : > { %v10110_v14 = vrot.slane %v10109_v4, 4  ;;  %v9800_v26 = vmul.f32 %v15977_v24, %v9765_v34  ;;  %v8659_v34 = vadd.f32 %v16009_v54, %v8344_v42 }
 0x58d   : > { %v10116_v32 = vsel %vm10052_vm14, %v9962_v33, -inf  ;;  %v10123_v29 = vsel %vm10052_vm14, %v9963_v51, -inf  ;;  %v10130_v63 = vsel %vm10052_vm14, %v9964_v55, -inf  ;;  %v16089_v33 = vpop.f32.mrf.mxu3  ;;  %v8345_v51 = vadd.f32 %v16013_v35, %v16672_v6 }
 0x58e   : > { %v10111_v49 = vmax.f32 %v10109_v4, %v10110_v14  ;;  %v10117_v58 = vrot.slane %v10116_v32, 4  ;;  %v10124_v61 = vrot.slane %v10123_v29, 4  ;;  %v10131_v45 = vrot.slane %v10130_v63, 4 }
 0x58f   : > { %v9835_v60 = vadd.f32 %v15982_v16, %v9800_v26  ;;  %v16098_v26 = vpop.f32.mrf.mxu2 }
 0x590   : > { %v10112_v25 = vrot.slane %v10111_v49, 2  ;;  %v10118_v15 = vmax.f32 %v10116_v32, %v10117_v58  ;;  %v10125_v36 = vmax.f32 %v10123_v29, %v10124_v61  ;;  %v10132_v19 = vmax.f32 %v10130_v63, %v10131_v45  ;;  %v9698_v12 = vpop.f32.mrf.mxu1  ;;  %v16101_v61 = vpop.f32.mrf.mxu0 }
 0x591   : > { %v9867_v23 = vmax.f32 %v9835_v60, 0.0  ;;  %v9766_v18 = vadd.f32 %v9698_v12, %v9340_v11  ;;  %v8660_v60 = vadd.f32 %v16026_v59, %v8345_v51 }
 0x592   : > { %v10113_v27 = vmax.f32 %v10111_v49, %v10112_v25  ;;  %v10119_v48 = vrot.slane %v10118_v15, 2  ;;  %v10126_v43 = vrot.slane %v10125_v36, 2  ;;  %v10133_v22 = vrot.slane %v10132_v19, 2 }
 0x593   : > { %9899 = vst [vmem:[%s12441_s15 + $0x38] sm:$0xff] %v9867_v23  ;;  %v9927_v30 = vmax.f32 %v9865_v28, %v9867_v23  ;;  %9737 = vmatmul.bf16.gmra.mxu1 %v16671_v57  ;;  %v9801_v14 = vmul.f32 %v15977_v24, %v9766_v18 }
 0x594   : > { %v10120_v55 = vmax.f32 %v10118_v15, %v10119_v48  ;;  %v10127_v4 = vmax.f32 %v10125_v36, %v10126_v43  ;;  %v10114_v49 = vrot.slane %v10113_v27, 1  ;;  %v10134_v28 = vmax.f32 %v10132_v19, %v10133_v22 }
 0x595   : > { %v9965_v32 = vrot.slane %v9927_v30, 2  ;;  %v9966_v29 = vrot.slane %v9927_v30, 4  ;;  %v9967_v54 = vrot.slane %v9927_v30, 6  ;;  %v10137_v63 = vsel %vm10052_vm14, %v9927_v30, -inf }
 0x596   : > { %v10121_v58 = vrot.slane %v10120_v55, 1  ;;  %v10128_v3 = vrot.slane %v10127_v4, 1  ;;  %v10138_v45 = vrot.slane %v10137_v63, 4  ;;  %v9341_v15 = vadd.f32 %v16018_v62, %v8659_v34  ;;  %v16111_v34 = vpop.f32.mrf.mxu3 }
 0x597   : > { %v10144_v35 = vsel %vm10052_vm14, %v9965_v32, -inf  ;;  %v10151_v13 = vsel %vm10052_vm14, %v9966_v29, -inf  ;;  %v10158_v42 = vsel %vm10052_vm14, %v9967_v54, -inf  ;;  %v9836_v19 = vadd.f32 %v15982_v16, %v9801_v14 }
 0x598   : > { %v10122_v11 = vmax.f32 %v10120_v55, %v10121_v58  ;;  %v10145_v25 = vrot.slane %v10144_v35, 4  ;;  %v9700_v36 = vpop.f32.mrf.mxu1  ;;  %v10139_v12 = vmax.f32 %v10137_v63, %v10138_v45  ;;  %v10152_v23 = vrot.slane %v10151_v13, 4  ;;  %v16120_v45 = vpop.f32.mrf.mxu2 }
 0x599   : > { %v10159_v18 = vrot.slane %v10158_v42, 4  ;;  %v10115_v48 = vmax.f32 %v10113_v27, %v10114_v49  ;;  %v10135_v43 = vrot.slane %v10134_v28, 1  ;;  %v9767_v30 = vadd.f32 %v9700_v36, %v9341_v15  ;;  %v16673_v27 = vld [vmem:[#allocation23_spill] sm:$0xff] }
 0x59a   : > { %v10146_v22 = vmax.f32 %v10144_v35, %v10145_v25  ;;  %v10129_v57 = vmax.f32 %v10127_v4, %v10128_v3  ;;  %v10140_v6 = vrot.slane %v10139_v12, 2  ;;  %v10153_v32 = vmax.f32 %v10151_v13, %v10152_v23 }
 0x59b   : > { %v10160_v29 = vmax.f32 %v10158_v42, %v10159_v18  ;;  %v10579_v59 = vsel %vm10565_vm15, %v10122_v11, %v10115_v48  ;;  %v9868_v55 = vmax.f32 %v9836_v19, 0.0  ;;  %v9802_v62 = vmul.f32 %v15977_v24, %v9767_v30 }
 0x59c   : > { %v10147_v51 = vrot.slane %v10146_v22, 2  ;;  %v10141_v54 = vmax.f32 %v10139_v12, %v10140_v6  ;;  %v10154_v63 = vrot.slane %v10153_v32, 2  ;;  %v8346_v49 = vadd.f32 %v16029_v38, %v16673_v27  ;;  %v16124_v12 = vpop.f32.mrf.mxu0 }
 0x59d   : > { %v10161_v14 = vrot.slane %v10160_v29, 2  ;;  %9900 = vst [vmem:[%s12441_s15 + $0x40] sm:$0xff] %v9868_v55  ;;  %v16117_v4 = vadd.f32 %v15982_v16, %v9802_v62  ;;  %v9342_v3 = vadd.f32 %v16036_v8, %v8660_v60  ;;  %v10580_v35 = vsel %vm10567_vm0, %v10129_v57, %v10579_v59  ;;  %v16674_v59 = vld [vmem:[#allocation9_spill] sm:$0xff] }
 0x59e   : > { %v10148_v58 = vmax.f32 %v10146_v22, %v10147_v51  ;;  %v10142_v13 = vrot.slane %v10141_v54, 1  ;;  %v10155_v42 = vmax.f32 %v10153_v32, %v10154_v63  ;;  %v10136_v25 = vmax.f32 %v10134_v28, %v10135_v43  ;;  %v16140_v62 = vpop.f32.mrf.mxu3 }
 0x59f   : > { %v10162_v11 = vmax.f32 %v10160_v29, %v10161_v14  ;;  %v9869_v36 = vmax.f32 %v16117_v4, 0.0  ;;  %v8661_v22 = vadd.f32 %v16047_v2, %v8346_v49  ;;  %v8347_v51 = vadd.f32 %v16051_v7, %v16674_v59 }
 0x5a0   : > { %v10149_v15 = vrot.slane %v10148_v58, 1  ;;  %v9703_v38 = vpop.f32.mrf.mxu1  ;;  %v10143_v23 = vmax.f32 %v10141_v54, %v10142_v13  ;;  %v10156_v18 = vrot.slane %v10155_v42, 1  ;;  %v10581_v8 = vsel %vm10569_vm1, %v10136_v25, %v10580_v35 }
 0x5a1   : > { %v10163_v19 = vrot.slane %v10162_v11, 1  ;;  %v9768_v48 = vadd.f32 %v9703_v38, %v9342_v3  ;;  %9901 = vst [vmem:[%s12441_s15 + $0x48] sm:$0xff] %v9869_v36  ;;  %v9343_v63 = vadd.f32 %v16057_v53, %v8661_v22  ;;  %v8348_v53 = vadd.f32 %v16075_v52, %v15777_v39 }
 0x5a2   : > { %v10150_v60 = vmax.f32 %v10148_v58, %v10149_v15  ;;  %v10157_v28 = vmax.f32 %v10155_v42, %v10156_v18  ;;  %v10582_v43 = vsel %vm10571_vm2, %v10143_v23, %v10581_v8  ;;  %v8662_v58 = vadd.f32 %v16071_v41, %v8347_v51 }
 0x5a3   : > { %v9803_v30 = vmul.f32 %v15977_v24, %v9768_v48  ;;  %9742 = vmatmul.bf16.gmra.mxu1 %v15775_v20  ;;  %v10164_v57 = vmax.f32 %v10162_v11, %v10163_v19  ;;  %v16144_v20 = vpop.f32.mrf.mxu2  ;;  %v8349_v48 = vadd.f32 %v16098_v26, %v15805_v44 }
 0x5a4   : > { %v10583_v6 = vsel %vm10573_vm3, %v10150_v60, %v10582_v43  ;;  %v16148_v3 = vpop.f32.mrf.mxu0  ;;  %v9344_v60 = vadd.f32 %v16079_v5, %v8662_v58  ;;  %v16167_v5 = vadd.f32 %v16120_v45, %v15828_v47 }
 0x5a5   : > { %v10584_v32 = vsel %vm10575_vm4, %v10157_v28, %v10583_v6  ;;  %v9838_v29 = vadd.f32 %v15982_v16, %v9803_v30  ;;  %v8663_v30 = vadd.f32 %v16089_v33, %v8348_v53  ;;  %v8664_v26 = vadd.f32 %v16111_v34, %v8349_v48 }
 0x5a6   : > { %v10585_v2 = vsel %vm10577_vm5, %v10164_v57, %v10584_v32  ;;  %v16162_v57 = vpop.f32.mrf.mxu3 }
 0x5a7   : > { %10637 = vst [vmem:[%s12446_s19 + $0x8] sm:$0xff] %v10585_v2  ;;  %v9870_v54 = vmax.f32 %v9838_v29, 0.0 }
 0x5a8   : > { %v9705_v14 = vpop.f32.mrf.mxu1 }
 0x5a9   : > { %9902 = vst [vmem:[%s12441_s15 + $0x50] sm:$0xff] %v9870_v54  ;;  %v9928_v27 = vmax.f32 %v9868_v55, %v9870_v54  ;;  %v9769_v49 = vadd.f32 %v9705_v14, %v9343_v63 }
 0x5ab   : > { %v9968_v35 = vrot.slane %v9928_v27, 2  ;;  %v9969_v7 = vrot.slane %v9928_v27, 4  ;;  %v9970_v13 = vrot.slane %v9928_v27, 6  ;;  %v10165_v42 = vsel %vm10052_vm14, %v9928_v27, -inf  ;;  %v16169_v2 = vpop.f32.mrf.mxu2 }
 0x5ac   : > { %v10166_v11 = vrot.slane %v10165_v42, 4  ;;  %v9804_v25 = vmul.f32 %v15977_v24, %v9769_v49  ;;  %v16176_v49 = vpop.f32.mrf.mxu0 }
 0x5ad   : > { %v10172_v15 = vsel %vm10052_vm14, %v9968_v35, -inf  ;;  %v10179_v55 = vsel %vm10052_vm14, %v9969_v7, -inf  ;;  %v10186_v38 = vsel %vm10052_vm14, %v9970_v13, -inf }
 0x5ae   : > { %v10167_v41 = vmax.f32 %v10165_v42, %v10166_v11  ;;  %v10173_v23 = vrot.slane %v10172_v15, 4  ;;  %v10180_v18 = vrot.slane %v10179_v55, 4  ;;  %v10187_v19 = vrot.slane %v10186_v38, 4 }
 0x5af   : > { %v9839_v8 = vadd.f32 %v15982_v16, %v9804_v25 }
 0x5b0   : > { %v10168_v22 = vrot.slane %v10167_v41, 2  ;;  %v10174_v39 = vmax.f32 %v10172_v15, %v10173_v23  ;;  %v10181_v52 = vmax.f32 %v10179_v55, %v10180_v18  ;;  %v10188_v28 = vmax.f32 %v10186_v38, %v10187_v19  ;;  %v9708_v43 = vpop.f32.mrf.mxu1 }
 0x5b1   : > { %v9871_v6 = vmax.f32 %v9839_v8, 0.0  ;;  %v9770_v32 = vadd.f32 %v9708_v43, %v9344_v60  ;;  %v9345_v15 = vadd.f32 %v16101_v61, %v8663_v30  ;;  %v9346_v38 = vadd.f32 %v16124_v12, %v8664_v26 }
 0x5b2   : > { %v10169_v29 = vmax.f32 %v10167_v41, %v10168_v22  ;;  %v10175_v59 = vrot.slane %v10174_v39, 2  ;;  %v10182_v51 = vrot.slane %v10181_v52, 2  ;;  %v10189_v44 = vrot.slane %v10188_v28, 2 }
 0x5b3   : > { %9903 = vst [vmem:[%s12441_s15 + $0x58] sm:$0xff] %v9871_v6  ;;  %v9929_v33 = vmax.f32 %v9869_v36, %v9871_v6  ;;  %9747 = vmatmul.bf16.gmra.mxu1 %v15826_v9  ;;  %v9805_v27 = vmul.f32 %v15977_v24, %v9770_v32 }
 0x5b4   : > { %v10176_v54 = vmax.f32 %v10174_v39, %v10175_v59  ;;  %v10183_v63 = vmax.f32 %v10181_v52, %v10182_v51  ;;  %v10190_v14 = vmax.f32 %v10188_v28, %v10189_v44  ;;  %v10170_v45 = vrot.slane %v10169_v29, 1  ;;  %v16187_v39 = vpop.f32.mrf.mxu3  ;;  %v9379_v59 = vld [vmem:[#allocation3 + $0xcc] sm:$0xe]  ;;  %v16192_v51 = vpop.f32.mrf.mxu2 }
 0x5b5   : > { %v9971_v34 = vrot.slane %v9929_v33, 2  ;;  %v9972_v58 = vrot.slane %v9929_v33, 4  ;;  %v9973_v35 = vrot.slane %v9929_v33, 6  ;;  %v10193_v47 = vsel %vm10052_vm14, %v9929_v33, -inf }
 0x5b6   : > { %v10177_v7 = vrot.slane %v10176_v54, 1  ;;  %v10184_v13 = vrot.slane %v10183_v63, 1  ;;  %v10191_v42 = vrot.slane %v10190_v14, 1  ;;  %v10194_v4 = vrot.slane %v10193_v47, 4 }
 0x5b7   : > { %v10200_v36 = vsel %vm10052_vm14, %v9971_v34, -inf  ;;  %v10207_v9 = vsel %vm10052_vm14, %v9972_v58, -inf  ;;  %v10214_v11 = vsel %vm10052_vm14, %v9973_v35, -inf  ;;  %v16185_v19 = vadd.f32 %v15982_v16, %v9805_v27  ;;  %v16200_v34 = vpop.f32.mrf.mxu0 }
 0x5b8   : > { %v10178_v25 = vmax.f32 %v10176_v54, %v10177_v7  ;;  %v10201_v53 = vrot.slane %v10200_v36, 4  ;;  %v9710_v55 = vpop.f32.mrf.mxu1  ;;  %v10195_v41 = vmax.f32 %v10193_v47, %v10194_v4  ;;  %v10208_v23 = vrot.slane %v10207_v9, 4 }
 0x5b9   : > { %v10215_v18 = vrot.slane %v10214_v11, 4  ;;  %v10171_v48 = vmax.f32 %v10169_v29, %v10170_v45  ;;  %v10185_v8 = vmax.f32 %v10183_v63, %v10184_v13  ;;  %v9771_v22 = vadd.f32 %v9710_v55, %v9345_v15 }
 0x5ba   : > { %v10202_v60 = vmax.f32 %v10200_v36, %v10201_v53  ;;  %v10192_v52 = vmax.f32 %v10190_v14, %v10191_v42  ;;  %v10196_v28 = vrot.slane %v10195_v41, 2  ;;  %v10209_v43 = vmax.f32 %v10207_v9, %v10208_v23 }
 0x5bb   : > { %v10216_v61 = vmax.f32 %v10214_v11, %v10215_v18  ;;  %v10586_v30 = vsel %vm10565_vm15, %v10178_v25, %v10171_v48  ;;  %v9872_v6 = vmax.f32 %v16185_v19, 0.0  ;;  %v9806_v32 = vmul.f32 %v15977_v24, %v9771_v22 }
 0x5bc   : > { %v10203_v12 = vrot.slane %v10202_v60, 2  ;;  %v10197_v29 = vmax.f32 %v10195_v41, %v10196_v28  ;;  %v10210_v44 = vrot.slane %v10209_v43, 2  ;;  %v12007_v33 = vrot.slane %v9379_v59, 9  ;;  %v16224_v28 = vpop.f32.mrf.mxu2 }
 0x5bd   : > { %v10217_v26 = vrot.slane %v10216_v61, 2  ;;  %9904 = vst [vmem:[%s12441_s15 + $0x60] sm:$0xff] %v9872_v6  ;;  %v16196_v63 = vadd.f32 %v15982_v16, %v9806_v32  ;;  %v9535_v14 = vrot.slane %v15913_v37, 5  ;;  %v9538_v27 = vrot.slane %v15915_v56, 5 }
 0x5be   : > { %v10204_v54 = vmax.f32 %v10202_v60, %v10203_v12  ;;  %v10587_v58 = vsel %vm10567_vm0, %v10185_v8, %v10586_v30  ;;  %v10198_v35 = vrot.slane %v10197_v29, 1  ;;  %v10211_v47 = vmax.f32 %v10209_v43, %v10210_v44  ;;  %v16217_v60 = vpop.f32.mrf.mxu3 }
 0x5bf   : > { %v10218_v45 = vmax.f32 %v10216_v61, %v10217_v26  ;;  %v9873_v13 = vmax.f32 %v16196_v63, 0.0  ;;  %v9536_v4 = vsel %vm12988_vm13, %v12007_v33, %v9535_v14  ;;  %v9537_v36 = vrot.slane %v9535_v14, 4  ;;  %v16228_v12 = vpop.f32.mrf.mxu0 }
 0x5c0   : > { %v10205_v7 = vrot.slane %v10204_v54, 1  ;;  %v9713_v42 = vpop.f32.mrf.mxu1  ;;  %v10199_v9 = vmax.f32 %v10197_v29, %v10198_v35  ;;  %v10212_v37 = vrot.slane %v10211_v47, 1  ;;  %v10588_v25 = vsel %vm10569_vm1, %v10192_v52, %v10587_v58 }
 0x5c1   : > { %v10219_v11 = vrot.slane %v10218_v45, 1  ;;  %v9772_v56 = vadd.f32 %v9713_v42, %v9346_v38  ;;  %9905 = vst [vmem:[%s12441_s15 + $0x68] sm:$0xff] %v9873_v13  ;;  %v9539_v15 = vsel %vm12988_vm13, %v9537_v36, %v9538_v27  ;;  %v9587_v55 = vunpack.c.l.b16 %v9536_v4 }
 0x5c2   : > { %v10206_v53 = vmax.f32 %v10204_v54, %v10205_v7  ;;  %v8665_v41 = vadd.f32 %v16140_v62, %v16167_v5  ;;  %v10213_v23 = vmax.f32 %v10211_v47, %v10212_v37  ;;  %v10589_v18 = vsel %vm10571_vm2, %v10199_v9, %v10588_v25 }
 0x5c3   : > { %v9807_v19 = vmul.f32 %v15977_v24, %v9772_v56  ;;  %v10220_v38 = vmax.f32 %v10218_v45, %v10219_v11  ;;  %v9588_v8 = vunpack.c.l.b16 %v9539_v15  ;;  %v8351_v52 = vadd.f32 %v16144_v20, %v15840_v31 }
 0x5c4   : > { %v10590_v48 = vsel %vm10573_vm3, %v10206_v53, %v10589_v18  ;;  %v9347_v61 = vadd.f32 %v16148_v3, %v8665_v41  ;;  %v16243_v56 = vpop.f32.mrf.mxu2  ;;  %v8353_v18 = vadd.f32 %v16192_v51, %v15867_v21 }
 0x5c5   : > { %v10591_v50 = vsel %vm10575_vm4, %v10213_v23, %v10590_v48  ;;  %v9842_v22 = vadd.f32 %v15982_v16, %v9807_v19  ;;  %v9604_v5 = vpack.c.b16 %v9588_v8, %v9587_v55  ;;  %v8666_v29 = vadd.f32 %v16162_v57, %v8351_v52 }
 0x5c6   : > { %v10592_v62 = vsel %vm10577_vm5, %v10220_v38, %v10591_v50  ;;  %v8352_v57 = vadd.f32 %v16169_v2, %v15853_v46  ;;  %v16239_v45 = vpop.f32.mrf.mxu3  ;;  %v8668_v51 = vadd.f32 %v16217_v60, %v8353_v18 }
 0x5c7   : > { %10638 = vst [vmem:[%s12446_s19 + $0x10] sm:$0xff] %v10592_v62  ;;  %v9874_v43 = vmax.f32 %v9842_v22, 0.0  ;;  %9752 = vmatmul.bf16.gmra.mxu1 %v9604_v5  ;;  %v9348_v42 = vadd.f32 %v16176_v49, %v8666_v29  ;;  %v16246_v23 = vpop.f32.mrf.mxu0 }
 0x5c8   : > { %v9715_v30 = vpop.f32.mrf.mxu1  ;;  %v8667_v2 = vadd.f32 %v16187_v39, %v8352_v57 }
 0x5c9   : > { %9906 = vst [vmem:[%s12441_s15 + $0x70] sm:$0xff] %v9874_v43  ;;  %v9930_v32 = vmax.f32 %v9872_v6, %v9874_v43  ;;  %v9773_v59 = vadd.f32 %v9715_v30, %v9347_v61 }
 0x5cb   : > { %v9974_v44 = vrot.slane %v9930_v32, 2  ;;  %v9975_v31 = vrot.slane %v9930_v32, 4  ;;  %v9976_v20 = vrot.slane %v9930_v32, 6  ;;  %v10221_v26 = vsel %vm10052_vm14, %v9930_v32, -inf }
 0x5cc   : > { %v10222_v33 = vrot.slane %v10221_v26, 4  ;;  %v9808_v54 = vmul.f32 %v15977_v24, %v9773_v59  ;;  %v9349_v59 = vadd.f32 %v16200_v34, %v8667_v2 }
 0x5cd   : > { %v10228_v14 = vsel %vm10052_vm14, %v9974_v44, -inf  ;;  %v10235_v3 = vsel %vm10052_vm14, %v9975_v31, -inf  ;;  %v10242_v27 = vsel %vm10052_vm14, %v9976_v20, -inf }
 0x5ce   : > { %v10223_v58 = vmax.f32 %v10221_v26, %v10222_v33  ;;  %v10229_v35 = vrot.slane %v10228_v14, 4  ;;  %v10236_v6 = vrot.slane %v10235_v3, 4  ;;  %v10243_v47 = vrot.slane %v10242_v27, 4  ;;  %v8620_v44 = vpop.f32.mrf.mxu3 }
 0x5cf   : > { %v9843_v7 = vadd.f32 %v15982_v16, %v9808_v54 }
 0x5d0   : > { %v10224_v4 = vrot.slane %v10223_v58, 2  ;;  %v10230_v36 = vmax.f32 %v10228_v14, %v10229_v35  ;;  %v10237_v9 = vmax.f32 %v10235_v3, %v10236_v6  ;;  %v10244_v37 = vmax.f32 %v10242_v27, %v10243_v47  ;;  %v9718_v11 = vpop.f32.mrf.mxu1 }
 0x5d1   : > { %v9875_v25 = vmax.f32 %v9843_v7, 0.0  ;;  %v9774_v53 = vadd.f32 %v9718_v11, %v9348_v42  ;;  %v8354_v11 = vadd.f32 %v16224_v28, %v15880_v17 }
 0x5d2   : > { %v10225_v15 = vmax.f32 %v10223_v58, %v10224_v4  ;;  %v10231_v55 = vrot.slane %v10230_v36, 2  ;;  %v10238_v41 = vrot.slane %v10237_v9, 2  ;;  %v10245_v46 = vrot.slane %v10244_v37, 2  ;;  %v16261_v58 = vpop.f32.mrf.mxu2  ;;  %v16265_v4 = vpop.f32.mrf.mxu0 }
 0x5d3   : > { %9907 = vst [vmem:[%s12441_s15 + $0x78] sm:$0xff] %v9875_v25  ;;  %v9931_v49 = vmax.f32 %v9873_v13, %v9875_v25  ;;  %v9809_v48 = vmul.f32 %v15977_v24, %v9774_v53 }
 0x5d4   : > { %v10232_v19 = vmax.f32 %v10230_v36, %v10231_v55  ;;  %v10239_v38 = vmax.f32 %v10237_v9, %v10238_v41  ;;  %v10226_v62 = vrot.slane %v10225_v15, 1  ;;  %v10246_v43 = vmax.f32 %v10244_v37, %v10245_v46 }
 0x5d5   : > { %v9977_v8 = vrot.slane %v9931_v49, 2  ;;  %v9978_v50 = vrot.slane %v9931_v49, 4  ;;  %v9979_v22 = vrot.slane %v9931_v49, 6  ;;  %v10249_v52 = vsel %vm10052_vm14, %v9931_v49, -inf }
 0x5d6   : > { %v10233_v39 = vrot.slane %v10232_v19, 1  ;;  %v10240_v5 = vrot.slane %v10239_v38, 1  ;;  %v10250_v61 = vrot.slane %v10249_v52, 4  ;;  %v9844_v33 = vadd.f32 %v15982_v16, %v9809_v48 }
 0x5d7   : > { %v10256_v63 = vsel %vm10052_vm14, %v9977_v8, -inf  ;;  %v10263_v13 = vsel %vm10052_vm14, %v9978_v50, -inf  ;;  %v10270_v21 = vsel %vm10052_vm14, %v9979_v22, -inf  ;;  %v10227_v54 = vmax.f32 %v10225_v15, %v10226_v62 }
 0x5d8   : > { %v10234_v30 = vmax.f32 %v10232_v19, %v10233_v39  ;;  %v10257_v32 = vrot.slane %v10256_v63, 4  ;;  %v9720_v29 = vpop.f32.mrf.mxu1  ;;  %v10251_v31 = vmax.f32 %v10249_v52, %v10250_v61  ;;  %v10264_v20 = vrot.slane %v10263_v13, 4  ;;  %v8622_v52 = vpop.f32.mrf.mxu3 }
 0x5d9   : > { %v10271_v26 = vrot.slane %v10270_v21, 4  ;;  %v10247_v14 = vrot.slane %v10246_v43, 1  ;;  %v9775_v27 = vadd.f32 %v9720_v29, %v9349_v59  ;;  %v10241_v35 = vmax.f32 %v10239_v38, %v10240_v5 }
 0x5da   : > { %v10258_v3 = vmax.f32 %v10256_v63, %v10257_v32  ;;  %v10252_v60 = vrot.slane %v10251_v31, 2  ;;  %v10265_v6 = vmax.f32 %v10263_v13, %v10264_v20  ;;  %v10593_v34 = vsel %vm10565_vm15, %v10234_v30, %v10227_v54  ;;  %v8310_v63 = vpop.f32.mrf.mxu2  ;;  %v16289_v30 = vpop.f32.mrf.mxu0 }
 0x5db   : > { %v10272_v47 = vmax.f32 %v10270_v21, %v10271_v26  ;;  %v9876_v7 = vmax.f32 %v9844_v33, 0.0  ;;  %v9810_v42 = vmul.f32 %v15977_v24, %v9775_v27  ;;  %v9350_v15 = vadd.f32 %v16228_v12, %v8668_v51 }
 0x5dc   : > { %v10259_v57 = vrot.slane %v10258_v3, 2  ;;  %v10253_v36 = vmax.f32 %v10251_v31, %v10252_v60  ;;  %v10266_v9 = vrot.slane %v10265_v6, 2  ;;  %v10594_v55 = vsel %vm10567_vm0, %v10241_v35, %v10593_v34 }
 0x5dd   : > { %v10273_v37 = vrot.slane %v10272_v47, 2  ;;  %9908 = vst [vmem:[%s12441_s15 + $0x80] sm:$0xff] %v9876_v7  ;;  %v16271_v53 = vadd.f32 %v15982_v16, %v9810_v42  ;;  %v10248_v49 = vmax.f32 %v10246_v43, %v10247_v14  ;;  %v8669_v12 = vadd.f32 %v16239_v45, %v8354_v11 }
 0x5de   : > { %v10260_v25 = vmax.f32 %v10258_v3, %v10259_v57  ;;  %v10254_v41 = vrot.slane %v10253_v36, 1  ;;  %v10267_v46 = vmax.f32 %v10265_v6, %v10266_v9  ;;  %v8355_v51 = vadd.f32 %v16243_v56, %v15891_v10  ;;  %v16298_v10 = vld [vmem:[%s16440_s5] ss:$0 sm:$0xff] }
 0x5df   : > { %v10274_v2 = vmax.f32 %v10272_v47, %v10273_v37  ;;  %v9877_v19 = vmax.f32 %v16271_v53, 0.0  ;;  %v10595_v50 = vsel %vm10569_vm1, %v10248_v49, %v10594_v55  ;;  %v9351_v59 = vadd.f32 %v16246_v23, %v8669_v12 }
 0x5e0   : > { %v10261_v18 = vrot.slane %v10260_v25, 1  ;;  %v9723_v38 = vpop.f32.mrf.mxu1  ;;  %v10255_v48 = vmax.f32 %v10253_v36, %v10254_v41  ;;  %v10268_v17 = vrot.slane %v10267_v46, 1  ;;  %v8670_v20 = vadd.f32 %v8620_v44, %v8355_v51  ;;  %v8625_v3 = vpop.f32.mrf.mxu3 }
 0x5e1   : > { %v10275_v28 = vrot.slane %v10274_v2, 1  ;;  %v9776_v8 = vadd.f32 %v9723_v38, %v9350_v15  ;;  %9909 = vst [vmem:[%s12441_s15 + $0x88] sm:$0xff] %v9877_v19  ;;  %v8356_v34 = vadd.f32 %v16261_v58, %v15900_v40 }
 0x5e2   : > { %v10262_v22 = vmax.f32 %v10260_v25, %v10261_v18  ;;  %v10269_v62 = vmax.f32 %v10267_v46, %v10268_v17  ;;  %v10596_v39 = vsel %vm10571_vm2, %v10255_v48, %v10595_v50  ;;  %v8312_v57 = vpop.f32.mrf.mxu2  ;;  %v9352_v36 = vadd.f32 %v16265_v4, %v8670_v20  ;;  %v9307_v55 = vpop.f32.mrf.mxu0 }
 0x5e3   : > { %v9811_v5 = vmul.f32 %v15977_v24, %v9776_v8  ;;  %v10276_v43 = vmax.f32 %v10274_v2, %v10275_v28  ;;  %v8671_v18 = vadd.f32 %v8622_v52, %v8356_v34  ;;  %v8357_v48 = vadd.f32 %v8310_v63, %v15910_v1 }
 0x5e4   : > { %v10597_v61 = vsel %vm10573_vm3, %v10262_v22, %v10596_v39  ;;  %v8358_v34 = vadd.f32 %v8312_v57, %v15925_v0 }
 0x5e5   : > { %v10598_v13 = vsel %vm10575_vm4, %v10269_v62, %v10597_v61  ;;  %v9846_v21 = vadd.f32 %v15982_v16, %v9811_v5  ;;  %v8672_v63 = vadd.f32 %v8625_v3, %v8357_v48  ;;  %v9353_v51 = vadd.f32 %v16289_v30, %v8671_v18 }
 0x5e6   : > { %v10599_v45 = vsel %vm10577_vm5, %v10276_v43, %v10598_v13 }
 0x5e7   : > { %10639 = vst [vmem:[%s12446_s19 + $0x18] sm:$0xff] %v10599_v45  ;;  %v9878_v32 = vmax.f32 %v9846_v21, 0.0 }
 0x5e8   : > { %v9725_v24 = vpop.f32.mrf.mxu1  ;;  %v8627_v52 = vpop.f32.mrf.mxu3 }
 0x5e9   : > { %9910 = vst [vmem:[%s12441_s15 + $0x90] sm:$0xff] %v9878_v32  ;;  %v9932_v29 = vmax.f32 %v9876_v7, %v9878_v32  ;;  %v9777_v31 = vadd.f32 %v9725_v24, %v9351_v59  ;;  %v16309_v7 = vld [vmem:[%s16441_s6] ss:$0 sm:$0xff]  ;;  %v8673_v48 = vadd.f32 %v8627_v52, %v8358_v34 }
 0x5ea   : > { %v8315_v32 = vpop.f32.mrf.mxu2 }
 0x5eb   : > { %v9980_v26 = vrot.slane %v9932_v29, 2  ;;  %v9981_v33 = vrot.slane %v9932_v29, 4  ;;  %v9982_v54 = vrot.slane %v9932_v29, 6  ;;  %v10277_v16 = vsel %vm10052_vm14, %v9932_v29, -inf }
 0x5ec   : > { %v10278_v14 = vrot.slane %v10277_v16, 4  ;;  %v9812_v56 = vmul.f32 %v16298_v10, %v9777_v31 }
 0x5ed   : > { %v10284_v23 = vsel %vm10052_vm14, %v9980_v26, -inf  ;;  %v10291_v27 = vsel %vm10052_vm14, %v9981_v33, -inf  ;;  %v10298_v44 = vsel %vm10052_vm14, %v9982_v54, -inf }
 0x5ee   : > { %v10279_v35 = vmax.f32 %v10277_v16, %v10278_v14  ;;  %v10285_v60 = vrot.slane %v10284_v23, 4  ;;  %v10292_v6 = vrot.slane %v10291_v27, 4  ;;  %v10299_v47 = vrot.slane %v10298_v44, 4  ;;  %v9309_v16 = vpop.f32.mrf.mxu0 }
 0x5ef   : > { %v9847_v42 = vadd.f32 %v16309_v7, %v9812_v56 }
 0x5f0   : > { %v10280_v9 = vrot.slane %v10279_v35, 2  ;;  %v10286_v37 = vmax.f32 %v10284_v23, %v10285_v60  ;;  %v10293_v11 = vmax.f32 %v10291_v27, %v10292_v6  ;;  %v10300_v25 = vmax.f32 %v10298_v44, %v10299_v47  ;;  %v9728_v15 = vpop.f32.mrf.mxu1 }
 0x5f1   : > { %v9879_v41 = vmax.f32 %v9847_v42, 0.0  ;;  %v9778_v46 = vadd.f32 %v9728_v15, %v9352_v36 }
 0x5f2   : > { %v10281_v40 = vmax.f32 %v10279_v35, %v10280_v9  ;;  %v10287_v58 = vrot.slane %v10286_v37, 2  ;;  %v10294_v2 = vrot.slane %v10293_v11, 2  ;;  %v10301_v49 = vrot.slane %v10300_v25, 2 }
 0x5f3   : > { %9911 = vst [vmem:[%s12441_s15 + $0x98] sm:$0xff] %v9879_v41  ;;  %v9933_v38 = vmax.f32 %v9877_v19, %v9879_v41  ;;  %v9813_v28 = vmul.f32 %v16298_v10, %v9778_v46  ;;  %v9354_v9 = vadd.f32 %v9307_v55, %v8672_v63 }
 0x5f4   : > { %v10288_v4 = vmax.f32 %v10286_v37, %v10287_v58  ;;  %v10295_v17 = vmax.f32 %v10293_v11, %v10294_v2  ;;  %v10282_v62 = vrot.slane %v10281_v40, 1  ;;  %v10302_v43 = vmax.f32 %v10300_v25, %v10301_v49  ;;  %v8630_v2 = vpop.f32.mrf.mxu3 }
 0x5f5   : > { %v9983_v8 = vrot.slane %v9933_v38, 2  ;;  %v9984_v50 = vrot.slane %v9933_v38, 4  ;;  %v9985_v22 = vrot.slane %v9933_v38, 6  ;;  %v10305_v12 = vsel %vm10052_vm14, %v9933_v38, -inf }
 0x5f6   : > { %v10289_v39 = vrot.slane %v10288_v4, 1  ;;  %v10296_v5 = vrot.slane %v10295_v17, 1  ;;  %v10306_v61 = vrot.slane %v10305_v12, 4  ;;  %v9848_v31 = vadd.f32 %v16309_v7, %v9813_v28 }
 0x5f7   : > { %v10312_v53 = vsel %vm10052_vm14, %v9983_v8, -inf  ;;  %v10319_v19 = vsel %vm10052_vm14, %v9984_v50, -inf  ;;  %v10326_v1 = vsel %vm10052_vm14, %v9985_v22, -inf  ;;  %v10283_v20 = vmax.f32 %v10281_v40, %v10282_v62 }
 0x5f8   : > { %v10290_v13 = vmax.f32 %v10288_v4, %v10289_v39  ;;  %v10313_v21 = vrot.slane %v10312_v53, 4  ;;  %v9730_v45 = vpop.f32.mrf.mxu1  ;;  %v10307_v59 = vmax.f32 %v10305_v12, %v10306_v61  ;;  %v10320_v24 = vrot.slane %v10319_v19, 4  ;;  %v8317_v4 = vpop.f32.mrf.mxu2 }
 0x5f9   : > { %v10327_v29 = vrot.slane %v10326_v1, 4  ;;  %v10303_v26 = vrot.slane %v10302_v43, 1  ;;  %v9779_v54 = vadd.f32 %v9730_v45, %v9353_v51  ;;  %v10297_v14 = vmax.f32 %v10295_v17, %v10296_v5  ;;  %v9312_v12 = vpop.f32.mrf.mxu0  ;;  %v16675_v5 = vld [vmem:[#allocation8_spill] sm:$0xff] }
 0x5fa   : > { %v10314_v33 = vmax.f32 %v10312_v53, %v10313_v21  ;;  %v10308_v56 = vrot.slane %v10307_v59, 2  ;;  %v10321_v3 = vmax.f32 %v10319_v19, %v10320_v24  ;;  %v10600_v27 = vsel %vm10565_vm15, %v10290_v13, %v10283_v20 }
 0x5fb   : > { %v10328_v23 = vmax.f32 %v10326_v1, %v10327_v29  ;;  %v9880_v44 = vmax.f32 %v9848_v31, 0.0  ;;  %v9814_v35 = vmul.f32 %v16298_v10, %v9779_v54  ;;  %v10601_v37 = vsel %vm10567_vm0, %v10297_v14, %v10600_v27 }
 0x5fc   : > { %v10315_v30 = vrot.slane %v10314_v33, 2  ;;  %v10309_v60 = vmax.f32 %v10307_v59, %v10308_v56  ;;  %v10322_v6 = vrot.slane %v10321_v3, 2  ;;  %v10304_v41 = vmax.f32 %v10302_v43, %v10303_v26  ;;  %v8632_v21 = vpop.f32.mrf.mxu3 }
 0x5fd   : > { %v10329_v47 = vrot.slane %v10328_v23, 2  ;;  %9912 = vst [vmem:[%s12441_s15 + $0xa0] sm:$0xff] %v9880_v44  ;;  %v16329_v36 = vadd.f32 %v16309_v7, %v9814_v35  ;;  %v8359_v43 = vadd.f32 %v8315_v32, %v16675_v5  ;;  %v9355_v53 = vadd.f32 %v9309_v16, %v8673_v48 }
 0x5fe   : > { %v10316_v42 = vmax.f32 %v10314_v33, %v10315_v30  ;;  %v10310_v11 = vrot.slane %v10309_v60, 1  ;;  %v10323_v25 = vmax.f32 %v10321_v3, %v10322_v6  ;;  %v10602_v38 = vsel %vm10569_vm1, %v10304_v41, %v10601_v37 }
 0x5ff   : > { %v10330_v15 = vmax.f32 %v10328_v23, %v10329_v47  ;;  %v9881_v40 = vmax.f32 %v16329_v36, 0.0  ;;  %v8674_v13 = vadd.f32 %v8630_v2, %v8359_v43  ;;  %v16676_v23 = vld [vmem:[#allocation30_spill] sm:$0xff] }
 0x600   : > { %v10317_v46 = vrot.slane %v10316_v42, 1  ;;  %v9733_v58 = vpop.f32.mrf.mxu1  ;;  %v10311_v49 = vmax.f32 %v10309_v60, %v10310_v11  ;;  %v10324_v0 = vrot.slane %v10323_v25, 1  ;;  %v8320_v32 = vpop.f32.mrf.mxu2  ;;  %v8360_v27 = vadd.f32 %v8317_v4, %v16676_v23 }
 0x601   : > { %v10331_v57 = vrot.slane %v10330_v15, 1  ;;  %v9780_v18 = vadd.f32 %v9733_v58, %v9354_v9  ;;  %9913 = vst [vmem:[%s12441_s15 + $0xa8] sm:$0xff] %v9881_v40  ;;  %v9314_v3 = vpop.f32.mrf.mxu0 }
 0x602   : > { %v10318_v55 = vmax.f32 %v10316_v42, %v10317_v46  ;;  %v10325_v17 = vmax.f32 %v10323_v25, %v10324_v0  ;;  %v10603_v28 = vsel %vm10571_vm2, %v10311_v49, %v10602_v38  ;;  %v16677_v46 = vld [vmem:[#allocation29_spill] sm:$0xff] }
 0x603   : > { %v9815_v8 = vmul.f32 %v16298_v10, %v9780_v18  ;;  %v10332_v50 = vmax.f32 %v10330_v15, %v10331_v57  ;;  %v8675_v15 = vadd.f32 %v8632_v21, %v8360_v27  ;;  %v8361_v58 = vadd.f32 %v8320_v32, %v16677_v46 }
 0x604   : > { %v10604_v22 = vsel %vm10573_vm3, %v10318_v55, %v10603_v28  ;;  %v8635_v57 = vpop.f32.mrf.mxu3 }
 0x605   : > { %v10605_v62 = vsel %vm10575_vm4, %v10325_v17, %v10604_v22  ;;  %v9850_v39 = vadd.f32 %v16309_v7, %v9815_v8 }
 0x606   : > { %v10606_v61 = vsel %vm10577_vm5, %v10332_v50, %v10605_v62 }
 0x607   : > { %10640 = vst [vmem:[%s12446_s19 + $0x20] sm:$0xff] %v10606_v61  ;;  %v9882_v52 = vmax.f32 %v9850_v39, 0.0  ;;  %v8676_v39 = vadd.f32 %v8635_v57, %v8361_v58  ;;  %v9357_v61 = vadd.f32 %v9314_v3, %v8675_v15  ;;  %v16678_v3 = vld [vmem:[#allocation32_spill] sm:$0xff] }
 0x608   : > { %v9735_v19 = vpop.f32.mrf.mxu1  ;;  %v8322_v50 = vpop.f32.mrf.mxu2 }
 0x609   : > { %9914 = vst [vmem:[%s12441_s15 + $0xb0] sm:$0xff] %v9882_v52  ;;  %v9934_v1 = vmax.f32 %v9880_v44, %v9882_v52  ;;  %v9781_v63 = vadd.f32 %v9735_v19, %v9355_v53  ;;  %v9356_v44 = vadd.f32 %v9312_v12, %v8674_v13  ;;  %v9317_v53 = vpop.f32.mrf.mxu0  ;;  %v8362_v23 = vadd.f32 %v8322_v50, %v16678_v3 }
 0x60b   : > { %v9986_v51 = vrot.slane %v9934_v1, 2  ;;  %v9987_v45 = vrot.slane %v9934_v1, 4  ;;  %v9988_v59 = vrot.slane %v9934_v1, 6  ;;  %v10333_v24 = vsel %vm10052_vm14, %v9934_v1, -inf }
 0x60c   : > { %v10334_v29 = vrot.slane %v10333_v24, 4  ;;  %v9816_v31 = vmul.f32 %v16298_v10, %v9781_v63 }
 0x60d   : > { %v10340_v20 = vsel %vm10052_vm14, %v9986_v51, -inf  ;;  %v10347_v26 = vsel %vm10052_vm14, %v9987_v45, -inf  ;;  %v10354_v33 = vsel %vm10052_vm14, %v9988_v59, -inf }
 0x60e   : > { %v10335_v54 = vmax.f32 %v10333_v24, %v10334_v29  ;;  %v10341_v16 = vrot.slane %v10340_v20, 4  ;;  %v10348_v14 = vrot.slane %v10347_v26, 4  ;;  %v10355_v56 = vrot.slane %v10354_v33, 4 }
 0x60f   : > { %v9851_v30 = vadd.f32 %v16309_v7, %v9816_v31 }
 0x610   : > { %v10336_v35 = vrot.slane %v10335_v54, 2  ;;  %v10342_v60 = vmax.f32 %v10340_v20, %v10341_v16  ;;  %v10349_v6 = vmax.f32 %v10347_v26, %v10348_v14  ;;  %v10356_v47 = vmax.f32 %v10354_v33, %v10355_v56  ;;  %v9738_v34 = vpop.f32.mrf.mxu1 }
 0x611   : > { %v9883_v42 = vmax.f32 %v9851_v30, 0.0  ;;  %v9782_v36 = vadd.f32 %v9738_v34, %v9356_v44  ;;  %v9358_v44 = vadd.f32 %v9317_v53, %v8676_v39 }
 0x612   : > { %v10337_v9 = vmax.f32 %v10335_v54, %v10336_v35  ;;  %v10343_v37 = vrot.slane %v10342_v60, 2  ;;  %v10350_v11 = vrot.slane %v10349_v6, 2  ;;  %v10357_v25 = vrot.slane %v10356_v47, 2  ;;  %v8637_v35 = vpop.f32.mrf.mxu3 }
 0x613   : > { %9915 = vst [vmem:[%s12441_s15 + $0xb8] sm:$0xff] %v9883_v42  ;;  %v9935_v41 = vmax.f32 %v9881_v40, %v9883_v42  ;;  %v9817_v0 = vmul.f32 %v16298_v10, %v9782_v36 }
 0x614   : > { %v10344_v2 = vmax.f32 %v10342_v60, %v10343_v37  ;;  %v10351_v49 = vmax.f32 %v10349_v6, %v10350_v11  ;;  %v10338_v4 = vrot.slane %v10337_v9, 1  ;;  %v10358_v8 = vmax.f32 %v10356_v47, %v10357_v25  ;;  %v8325_v11 = vpop.f32.mrf.mxu2 }
 0x615   : > { %v9989_v18 = vrot.slane %v9935_v41, 2  ;;  %v9990_v38 = vrot.slane %v9935_v41, 4  ;;  %v9991_v55 = vrot.slane %v9935_v41, 6  ;;  %v10361_v48 = vsel %vm10052_vm14, %v9935_v41, -inf }
 0x616   : > { %v10345_v17 = vrot.slane %v10344_v2, 1  ;;  %v10352_v28 = vrot.slane %v10351_v49, 1  ;;  %v10362_v22 = vrot.slane %v10361_v48, 4  ;;  %v9852_v13 = vadd.f32 %v16309_v7, %v9817_v0 }
 0x617   : > { %v10368_v40 = vsel %vm10052_vm14, %v9989_v18, -inf  ;;  %v10375_v12 = vsel %vm10052_vm14, %v9990_v38, -inf  ;;  %v10382_v62 = vsel %vm10052_vm14, %v9991_v55, -inf  ;;  %v10339_v21 = vmax.f32 %v10337_v9, %v10338_v4 }
 0x618   : > { %v10346_v5 = vmax.f32 %v10344_v2, %v10345_v17  ;;  %v10369_v43 = vrot.slane %v10368_v40, 4  ;;  %v9740_v52 = vpop.f32.mrf.mxu1  ;;  %v10363_v19 = vmax.f32 %v10361_v48, %v10362_v22  ;;  %v10376_v1 = vrot.slane %v10375_v12, 4 }
 0x619   : > { %v10383_v63 = vrot.slane %v10382_v62, 4  ;;  %v10359_v51 = vrot.slane %v10358_v8, 1  ;;  %v9783_v59 = vadd.f32 %v9740_v52, %v9357_v61  ;;  %v10353_v24 = vmax.f32 %v10351_v49, %v10352_v28  ;;  %v9319_v49 = vpop.f32.mrf.mxu0  ;;  %v16679_v28 = vld [vmem:[#allocation33_spill] sm:$0xff] }
 0x61a   : > { %v10370_v45 = vmax.f32 %v10368_v40, %v10369_v43  ;;  %v10364_v29 = vrot.slane %v10363_v19, 2  ;;  %v10377_v31 = vmax.f32 %v10375_v12, %v10376_v1  ;;  %v10607_v20 = vsel %vm10565_vm15, %v10346_v5, %v10339_v21 }
 0x61b   : > { %v10384_v32 = vmax.f32 %v10382_v62, %v10383_v63  ;;  %v9884_v33 = vmax.f32 %v9852_v13, 0.0  ;;  %v9818_v54 = vmul.f32 %v16298_v10, %v9783_v59  ;;  %v10608_v60 = vsel %vm10567_vm0, %v10353_v24, %v10607_v20  ;;  %v8640_v62 = vpop.f32.mrf.mxu3  ;;  %v16680_v20 = vld [vmem:[#allocation34_spill] sm:$0xff] }
 0x61c   : > { %v10371_v26 = vrot.slane %v10370_v45, 2  ;;  %v10365_v16 = vmax.f32 %v10363_v19, %v10364_v29  ;;  %v10378_v14 = vrot.slane %v10377_v31, 2  ;;  %v10360_v42 = vmax.f32 %v10358_v8, %v10359_v51  ;;  %v8327_v61 = vpop.f32.mrf.mxu2 }
 0x61d   : > { %v10385_v56 = vrot.slane %v10384_v32, 2  ;;  %9916 = vst [vmem:[%s12441_s15 + $0xc0] sm:$0xff] %v9884_v33  ;;  %v16364_v30 = vadd.f32 %v16309_v7, %v9818_v54  ;;  %v8677_v0 = vadd.f32 %v8637_v35, %v8362_v23  ;;  %v8363_v8 = vadd.f32 %v8325_v11, %v16679_v28 }
 0x61e   : > { %v10372_v27 = vmax.f32 %v10370_v45, %v10371_v26  ;;  %v10366_v6 = vrot.slane %v10365_v16, 1  ;;  %v10379_v47 = vmax.f32 %v10377_v31, %v10378_v14  ;;  %v10609_v58 = vsel %vm10569_vm1, %v10360_v42, %v10608_v60 }
 0x61f   : > { %v10386_v34 = vmax.f32 %v10384_v32, %v10385_v56  ;;  %v9885_v9 = vmax.f32 %v16364_v30, 0.0  ;;  %v9359_v40 = vadd.f32 %v9319_v49, %v8677_v0  ;;  %v8678_v43 = vadd.f32 %v8640_v62, %v8363_v8 }
 0x620   : > { %v10373_v36 = vrot.slane %v10372_v27, 1  ;;  %v9743_v37 = vpop.f32.mrf.mxu1  ;;  %v10367_v25 = vmax.f32 %v10365_v16, %v10366_v6  ;;  %v10380_v15 = vrot.slane %v10379_v47, 1  ;;  %v8364_v26 = vadd.f32 %v8327_v61, %v16680_v20 }
 0x621   : > { %v10387_v41 = vrot.slane %v10386_v34, 1  ;;  %v9784_v46 = vadd.f32 %v9743_v37, %v9358_v44  ;;  %9917 = vst [vmem:[%s12441_s15 + $0xc8] sm:$0xff] %v9885_v9  ;;  %v9322_v21 = vpop.f32.mrf.mxu0 }
 0x622   : > { %v10374_v2 = vmax.f32 %v10372_v27, %v10373_v36  ;;  %v10381_v57 = vmax.f32 %v10379_v47, %v10380_v15  ;;  %v10610_v18 = vsel %vm10571_vm2, %v10367_v25, %v10609_v58  ;;  %v9360_v54 = vadd.f32 %v9322_v21, %v8678_v43 }
 0x623   : > { %v9819_v38 = vmul.f32 %v16298_v10, %v9784_v46  ;;  %v10388_v55 = vmax.f32 %v10386_v34, %v10387_v41  ;;  %v8642_v47 = vpop.f32.mrf.mxu3 }
 0x624   : > { %v10611_v48 = vsel %vm10573_vm3, %v10374_v2, %v10610_v18  ;;  %v8679_v42 = vadd.f32 %v8642_v47, %v8364_v26  ;;  %v8330_v25 = vpop.f32.mrf.mxu2 }
 0x625   : > { %v10612_v4 = vsel %vm10575_vm4, %v10381_v57, %v10611_v48  ;;  %v9854_v17 = vadd.f32 %v16309_v7, %v9819_v38 }
 0x626   : > { %v10613_v50 = vsel %vm10577_vm5, %v10388_v55, %v10612_v4  ;;  %v16681_v4 = vld [vmem:[#allocation35_spill] sm:$0xff] }
 0x627   : > { %10641 = vst [vmem:[%s12446_s19 + $0x28] sm:$0xff] %v10613_v50  ;;  %v9886_v22 = vmax.f32 %v9854_v17, 0.0  ;;  %v8365_v17 = vadd.f32 %v8330_v25, %v16681_v4 }
 0x628   : > { %v9745_v12 = vpop.f32.mrf.mxu1 }
 0x629   : > { %9918 = vst [vmem:[%s12441_s15 + $0xd0] sm:$0xff] %v9886_v22  ;;  %v9936_v39 = vmax.f32 %v9884_v33, %v9886_v22  ;;  %v9785_v5 = vadd.f32 %v9745_v12, %v9359_v40  ;;  %v9324_v18 = vpop.f32.mrf.mxu0 }
 0x62a   : > { %v9361_v50 = vadd.f32 %v9324_v18, %v8679_v42 }
 0x62b   : > { %v9992_v52 = vrot.slane %v9936_v39, 2  ;;  %v9993_v53 = vrot.slane %v9936_v39, 4  ;;  %v9994_v19 = vrot.slane %v9936_v39, 6  ;;  %v10389_v1 = vsel %vm10052_vm14, %v9936_v39, -inf }
 0x62c   : > { %v10390_v63 = vrot.slane %v10389_v1, 4  ;;  %v9820_v13 = vmul.f32 %v16298_v10, %v9785_v5 }
 0x62d   : > { %v10396_v51 = vsel %vm10052_vm14, %v9992_v52, -inf  ;;  %v10403_v45 = vsel %vm10052_vm14, %v9993_v53, -inf  ;;  %v10410_v59 = vsel %vm10052_vm14, %v9994_v19, -inf  ;;  %v8645_v53 = vpop.f32.mrf.mxu3 }
 0x62e   : > { %v10391_v24 = vmax.f32 %v10389_v1, %v10390_v63  ;;  %v10397_v29 = vrot.slane %v10396_v51, 4  ;;  %v10404_v31 = vrot.slane %v10403_v45, 4  ;;  %v10411_v32 = vrot.slane %v10410_v59, 4 }
 0x62f   : > { %v9855_v33 = vadd.f32 %v16309_v7, %v9820_v13 }
 0x630   : > { %v10392_v16 = vrot.slane %v10391_v24, 2  ;;  %v10398_v14 = vmax.f32 %v10396_v51, %v10397_v29  ;;  %v10405_v56 = vmax.f32 %v10403_v45, %v10404_v31  ;;  %v10412_v3 = vmax.f32 %v10410_v59, %v10411_v32  ;;  %v9748_v23 = vpop.f32.mrf.mxu1 }
 0x631   : > { %v9887_v27 = vmax.f32 %v9855_v33, 0.0  ;;  %v9786_v30 = vadd.f32 %v9748_v23, %v9360_v54  ;;  %v9327_v26 = vpop.f32.mrf.mxu0 }
 0x632   : > { %v10393_v44 = vmax.f32 %v10391_v24, %v10392_v16  ;;  %v10399_v35 = vrot.slane %v10398_v14, 2  ;;  %v10406_v60 = vrot.slane %v10405_v56, 2  ;;  %v10413_v6 = vrot.slane %v10412_v3, 2 }
 0x633   : > { %9919 = vst [vmem:[%s12441_s15 + $0xd8] sm:$0xff] %v9887_v27  ;;  %v9937_v34 = vmax.f32 %v9885_v9, %v9887_v27  ;;  %v9821_v11 = vmul.f32 %v16298_v10, %v9786_v30  ;;  %v8332_v30 = vpop.f32.mrf.mxu2 }
 0x634   : > { %v10400_v36 = vmax.f32 %v10398_v14, %v10399_v35  ;;  %v10407_v37 = vmax.f32 %v10405_v56, %v10406_v60  ;;  %v10394_v2 = vrot.slane %v10393_v44, 1  ;;  %v10414_v57 = vmax.f32 %v10412_v3, %v10413_v6 }
 0x635   : > { %v9995_v15 = vrot.slane %v9937_v34, 2  ;;  %v9996_v41 = vrot.slane %v9937_v34, 4  ;;  %v9997_v46 = vrot.slane %v9937_v34, 6  ;;  %v10417_v58 = vsel %vm10052_vm14, %v9937_v34, -inf }
 0x636   : > { %v10401_v49 = vrot.slane %v10400_v36, 1  ;;  %v10408_v0 = vrot.slane %v10407_v37, 1  ;;  %v10418_v38 = vrot.slane %v10417_v58, 4  ;;  %v9856_v39 = vadd.f32 %v16309_v7, %v9821_v11 }
 0x637   : > { %v10424_v55 = vsel %vm10052_vm14, %v9995_v15, -inf  ;;  %v10431_v9 = vsel %vm10052_vm14, %v9996_v41, -inf  ;;  %v10438_v48 = vsel %vm10052_vm14, %v9997_v46, -inf  ;;  %v10395_v5 = vmax.f32 %v10393_v44, %v10394_v2  ;;  %v8647_v41 = vpop.f32.mrf.mxu3 }
 0x638   : > { %v10402_v28 = vmax.f32 %v10400_v36, %v10401_v49  ;;  %v10425_v8 = vrot.slane %v10424_v55, 4  ;;  %v9750_v22 = vpop.f32.mrf.mxu1  ;;  %v10419_v40 = vmax.f32 %v10417_v58, %v10418_v38  ;;  %v10432_v12 = vrot.slane %v10431_v9, 4 }
 0x639   : > { %v10439_v62 = vrot.slane %v10438_v48, 4  ;;  %v10415_v43 = vrot.slane %v10414_v57, 1  ;;  %v9787_v52 = vadd.f32 %v9750_v22, %v9361_v50  ;;  %v10409_v19 = vmax.f32 %v10407_v37, %v10408_v0  ;;  %v16682_v37 = vld [vmem:[#allocation37_spill] sm:$0xff]  ;;  %v9329_v18 = vpop.f32.mrf.mxu0 }
 0x63a   : > { %v10426_v61 = vmax.f32 %v10424_v55, %v10425_v8  ;;  %v10420_v1 = vrot.slane %v10419_v40, 2  ;;  %v10433_v63 = vmax.f32 %v10431_v9, %v10432_v12  ;;  %v10614_v21 = vsel %vm10565_vm15, %v10402_v28, %v10395_v5 }
 0x63b   : > { %v10440_v13 = vmax.f32 %v10438_v48, %v10439_v62  ;;  %v9888_v45 = vmax.f32 %v9856_v39, 0.0  ;;  %v9822_v59 = vmul.f32 %v16298_v10, %v9787_v52  ;;  %v10615_v33 = vsel %vm10567_vm0, %v10409_v19, %v10614_v21 }
 0x63c   : > { %v10427_v51 = vrot.slane %v10426_v61, 2  ;;  %v10421_v24 = vmax.f32 %v10419_v40, %v10420_v1  ;;  %v10434_v29 = vrot.slane %v10433_v63, 2  ;;  %v8680_v56 = vadd.f32 %v8645_v53, %v8365_v17 }
 0x63d   : > { %v10441_v31 = vrot.slane %v10440_v13, 2  ;;  %9920 = vst [vmem:[%s12441_s15 + $0xe0] sm:$0xff] %v9888_v45  ;;  %v16398_v20 = vadd.f32 %v16309_v7, %v9822_v59  ;;  %v10416_v3 = vmax.f32 %v10414_v57, %v10415_v43  ;;  %v8366_v11 = vadd.f32 %v8332_v30, %v16682_v37 }
 0x63e   : > { %v10428_v32 = vmax.f32 %v10426_v61, %v10427_v51  ;;  %v10422_v54 = vrot.slane %v10421_v24, 1  ;;  %v10435_v16 = vmax.f32 %v10433_v63, %v10434_v29  ;;  %v9362_v36 = vadd.f32 %v9327_v26, %v8680_v56 }
 0x63f   : > { %v10442_v14 = vmax.f32 %v10440_v13, %v10441_v31  ;;  %v9889_v27 = vmax.f32 %v16398_v20, 0.0  ;;  %v10616_v6 = vsel %vm10569_vm1, %v10416_v3, %v10615_v33  ;;  %v8681_v0 = vadd.f32 %v8647_v41, %v8366_v11 }
 0x640   : > { %v10429_v23 = vrot.slane %v10428_v32, 1  ;;  %v10423_v44 = vmax.f32 %v10421_v24, %v10422_v54  ;;  %v10436_v35 = vrot.slane %v10435_v16, 1 }
 0x641   : > { %v10443_v60 = vrot.slane %v10442_v14, 1  ;;  %9921 = vst [vmem:[%s12441_s15 + $0xe8] sm:$0xff] %v9889_v27  ;;  %v9363_v55 = vadd.f32 %v9329_v18, %v8681_v0 }
 0x642   : > { %v10430_v47 = vmax.f32 %v10428_v32, %v10429_v23  ;;  %v10437_v34 = vmax.f32 %v10435_v16, %v10436_v35  ;;  %v10617_v42 = vsel %vm10571_vm2, %v10423_v44, %v10616_v6 }
 0x643   : > { %v10444_v25 = vmax.f32 %v10442_v14, %v10443_v60 }
 0x644   : > { %v10618_v15 = vsel %vm10573_vm3, %v10430_v47, %v10617_v42  ;;  %v9753_v58 = vpop.f32.mrf.mxu1 }
 0x645   : > { %v10619_v46 = vsel %vm10575_vm4, %v10437_v34, %v10618_v15  ;;  %v9788_v49 = vadd.f32 %v9753_v58, %v9362_v36 }
 0x646   : > { %v10620_v2 = vsel %vm10577_vm5, %v10444_v25, %v10619_v46 }
 0x647   : > { %10642 = vst [vmem:[%s12446_s19 + $0x30] sm:$0xff] %v10620_v2  ;;  %v9823_v57 = vmul.f32 %v16298_v10, %v9788_v49 }
 0x649   : > { %v9858_v38 = vadd.f32 %v16309_v7, %v9823_v57 }
 0x64b   : > { %v9890_v9 = vmax.f32 %v9858_v38, 0.0 }
 0x64c   : > { %v9755_v48 = vpop.f32.mrf.mxu1 }
 0x64d   : > { %9922 = vst [vmem:[%s12441_s15 + $0xf0] sm:$0xff] %v9890_v9  ;;  %v9938_v4 = vmax.f32 %v9888_v45, %v9890_v9  ;;  %v9789_v17 = vadd.f32 %v9755_v48, %v9363_v55 }
 0x64f   : > { %v9998_v28 = vrot.slane %v9938_v4, 2  ;;  %v9999_v8 = vrot.slane %v9938_v4, 4  ;;  %v10000_v50 = vrot.slane %v9938_v4, 6  ;;  %v10445_v22 = vsel %vm10052_vm14, %v9938_v4, -inf }
 0x650   : > { %v10446_v40 = vrot.slane %v10445_v22, 4  ;;  %v9824_v12 = vmul.f32 %v16298_v10, %v9789_v17 }
 0x651   : > { %v10452_v62 = vsel %vm10052_vm14, %v9998_v28, -inf  ;;  %v10459_v39 = vsel %vm10052_vm14, %v9999_v8, -inf  ;;  %v10466_v5 = vsel %vm10052_vm14, %v10000_v50, -inf }
 0x652   : > { %v10447_v43 = vmax.f32 %v10445_v22, %v10446_v40  ;;  %v10453_v61 = vrot.slane %v10452_v62, 4  ;;  %v10460_v52 = vrot.slane %v10459_v39, 4  ;;  %v10467_v53 = vrot.slane %v10466_v5, 4 }
 0x653   : > { %v9859_v19 = vadd.f32 %v16309_v7, %v9824_v12 }
 0x654   : > { %v10448_v1 = vrot.slane %v10447_v43, 2  ;;  %v10454_v63 = vmax.f32 %v10452_v62, %v10453_v61  ;;  %v10461_v13 = vmax.f32 %v10459_v39, %v10460_v52  ;;  %v10468_v21 = vmax.f32 %v10466_v5, %v10467_v53 }
 0x655   : > { %v9891_v51 = vmax.f32 %v9859_v19, 0.0 }
 0x656   : > { %v10449_v45 = vmax.f32 %v10447_v43, %v10448_v1  ;;  %v10455_v10 = vrot.slane %v10454_v63, 2  ;;  %v10462_v59 = vrot.slane %v10461_v13, 2  ;;  %v10469_v32 = vrot.slane %v10468_v21, 2 }
 0x657   : > { %9923 = vst [vmem:[%s12441_s15 + $0xf8] sm:$0xff] %v9891_v51  ;;  %v9939_v24 = vmax.f32 %v9889_v27, %v9891_v51 }
 0x658   : > { %v10456_v29 = vmax.f32 %v10454_v63, %v10455_v10  ;;  %v10463_v31 = vmax.f32 %v10461_v13, %v10462_v59  ;;  %v10450_v16 = vrot.slane %v10449_v45, 1  ;;  %v10470_v27 = vmax.f32 %v10468_v21, %v10469_v32 }
 0x659   : > { %v10001_v20 = vrot.slane %v9939_v24, 2  ;;  %v10002_v26 = vrot.slane %v9939_v24, 4  ;;  %v10003_v33 = vrot.slane %v9939_v24, 6  ;;  %v10473_v54 = vsel %vm10052_vm14, %v9939_v24, -inf }
 0x65a   : > { %v10457_v7 = vrot.slane %v10456_v29, 1  ;;  %v10464_v14 = vrot.slane %v10463_v31, 1  ;;  %v10474_v56 = vrot.slane %v10473_v54, 4  ;;  %v10451_v34 = vmax.f32 %v10449_v45, %v10450_v16 }
 0x65b   : > { %v10480_v3 = vsel %vm10052_vm14, %v10001_v20, -inf  ;;  %v10487_v23 = vsel %vm10052_vm14, %v10002_v26, -inf  ;;  %v10494_v30 = vsel %vm10052_vm14, %v10003_v33, -inf  ;;  %v10471_v15 = vrot.slane %v10470_v27, 1 }
 0x65c   : > { %v10458_v44 = vmax.f32 %v10456_v29, %v10457_v7  ;;  %v10481_v35 = vrot.slane %v10480_v3, 4  ;;  %v10475_v60 = vmax.f32 %v10473_v54, %v10474_v56  ;;  %v10488_v6 = vrot.slane %v10487_v23, 4 }
 0x65d   : > { %v10495_v47 = vrot.slane %v10494_v30, 4  ;;  %v10465_v36 = vmax.f32 %v10463_v31, %v10464_v14  ;;  %v10472_v9 = vmax.f32 %v10470_v27, %v10471_v15 }
 0x65e   : > { %v10482_v42 = vmax.f32 %v10480_v3, %v10481_v35  ;;  %v10476_v37 = vrot.slane %v10475_v60, 2  ;;  %v10489_v11 = vmax.f32 %v10487_v23, %v10488_v6  ;;  %v10621_v41 = vsel %vm10565_vm15, %v10458_v44, %v10451_v34 }
 0x65f   : > { %v10496_v25 = vmax.f32 %v10494_v30, %v10495_v47  ;;  %v10622_v57 = vsel %vm10567_vm0, %v10465_v36, %v10621_v41 }
 0x660   : > { %v10483_v46 = vrot.slane %v10482_v42, 2  ;;  %v10477_v58 = vmax.f32 %v10475_v60, %v10476_v37  ;;  %v10490_v2 = vrot.slane %v10489_v11, 2  ;;  %v10623_v8 = vsel %vm10569_vm1, %v10472_v9, %v10622_v57 }
 0x661   : > { %v10497_v49 = vrot.slane %v10496_v25, 2 }
 0x662   : > { %v10484_v0 = vmax.f32 %v10482_v42, %v10483_v46  ;;  %v10478_v18 = vrot.slane %v10477_v58, 1  ;;  %v10491_v38 = vmax.f32 %v10489_v11, %v10490_v2 }
 0x663   : > { %v10498_v55 = vmax.f32 %v10496_v25, %v10497_v49 }
 0x664   : > { %v10485_v48 = vrot.slane %v10484_v0, 1  ;;  %v10479_v4 = vmax.f32 %v10477_v58, %v10478_v18  ;;  %v10492_v17 = vrot.slane %v10491_v38, 1 }
 0x665   : > { %v10499_v28 = vrot.slane %v10498_v55, 1 }
 0x666   : > { %v10486_v50 = vmax.f32 %v10484_v0, %v10485_v48  ;;  %v10493_v22 = vmax.f32 %v10491_v38, %v10492_v17  ;;  %v10624_v40 = vsel %vm10571_vm2, %v10479_v4, %v10623_v8 }
 0x667   : > { %v10500_v12 = vmax.f32 %v10498_v55, %v10499_v28 }
 0x668   : > { %v10625_v62 = vsel %vm10573_vm3, %v10486_v50, %v10624_v40 }
 0x669   : > { %v10626_v39 = vsel %vm10575_vm4, %v10493_v22, %v10625_v62 }
 0x66a   : > { %v10627_v5 = vsel %vm10577_vm5, %v10500_v12, %v10626_v39 }
 0x66b   : > { %10643 = vst [vmem:[%s12446_s19 + $0x38] sm:$0xff] %v10627_v5 }
 0x66c PF: > { %s19_s27 = sadd.s32 1, %s12377_s27  }
 0x66d   : > { %p16_p5 = scmp.ge.s32.totalorder %s19_s27, 4  }
 0x66f   :  { %18 = sbr.rel (!%p16_p5) target bundleno = 1 (0x1), region = 114 }

</bundles_post_ra>
